<compile_context>
chip_gen: v7x
topology: tpu7x:2x2x1
jax: 0.10.0
libtpu: 0.0.40
codegen_flags: <defaults>
</compile_context>

<pallas_src>
import jax
import jax.numpy as jnp
import numpy as np
from jax.experimental import pallas as pl
from jax.experimental.pallas import tpu as pltpu

B, C, H, W = 2, 64, 16, 16      # baseline=True -> fc expects 64 channels
S = H * W
NUM_CLASSES = 5
K = 7
PAD = K // 2
EPS = 1e-5


def _flat_to_hw(v_flat):
    """(B, H*W) lane-dense -> (B, H, W) via static slices + concat."""
    rows = [v_flat[:, r * W:(r + 1) * W][:, None, :] for r in range(H)]
    return jnp.concatenate(rows, axis=1)


def _hw_to_flat(v):
    """(B, H, W) -> (B, H*W) lane-dense via static slices + concat."""
    return jnp.concatenate([v[:, r, :] for r in range(H)], axis=1)


def _pad_hw(v):
    """(B, H, W) -> (B, H+2*PAD, W+2*PAD) zero-padded (conv padding = 3)."""
    zc = jnp.zeros((B, H, PAD), v.dtype)
    v = jnp.concatenate([zc, v, zc], axis=2)
    zr = jnp.zeros((B, PAD, W + 2 * PAD), v.dtype)
    return jnp.concatenate([zr, v, zr], axis=1)


def classification_kernel(x_ref, wconv_ref, bn_ref, wfc_ref, bfc_ref, out_ref):
    x = x_ref[...]                                   # (B, C, S) f32, lane-dense

    # ---- SpatialAttention: channel mean / max on lane-dense (C, S) slabs ----
    avg_flat = jnp.mean(x, axis=1)                   # (B, S)
    max_flat = jnp.max(x, axis=1)                    # (B, S)

    # Padded spatial maps as values (no VMEM scratch round-trip).
    pad_avg = _pad_hw(_flat_to_hw(avg_flat))         # (B, H+6, W+6)
    pad_max = _pad_hw(_flat_to_hw(max_flat))         # (B, H+6, W+6)

    # ---- 7x7 conv, 2 -> 1 channels, no bias: unrolled shift-MACs with 4
    #      independent accumulator chains (breaks the 98-deep serial add). ----
    accs = [jnp.zeros((B, H, W), jnp.float32) for _ in range(4)]
    idx = 0
    for c, pmap in enumerate((pad_avg, pad_max)):
        base = c * K * K
        for di in range(K):
            for dj in range(K):
                wt = wconv_ref[base + di * K + dj]           # SMEM scalar
                accs[idx % 4] = accs[idx % 4] + wt * pmap[:, di:di + H, dj:dj + W]
                idx += 1
    conv = (accs[0] + accs[1]) + (accs[2] + accs[3])         # (B, H, W)

    # ---- BatchNorm2d(1): training-mode batch statistics over (N, H, W) ----
    # TODO(synk): running_mean/var momentum updates are a training side effect
    # with no effect on the forward output, so they are not materialized here.
    mean = jnp.mean(conv)
    var = jnp.mean((conv - mean) ** 2)               # biased, as PyTorch uses
    bn = (conv - mean) * jax.lax.rsqrt(var + EPS) * bn_ref[0] + bn_ref[1]
    att = jax.nn.sigmoid(bn)                         # (B, H, W)

    att_flat = _hw_to_flat(att)                      # (B, S) lane-dense

    # ---- attention apply + AdaptiveAvgPool2d((1,1)) as one MXU contraction ----
    # pooled[b, c] = (1/S) * sum_s x[b, c, s] * att[b, s]
    pooled = jnp.einsum('bms,bcs->bmc', att_flat[:, None, :], x,
                        preferred_element_type=jnp.float32)[:, 0, :]
    pooled = pooled * (1.0 / S)                      # (B, C)

    # ---- fc (Linear 64 -> num_classes) + sigmoid ----
    logits = jnp.dot(pooled, wfc_ref[...],
                     preferred_element_type=jnp.float32) + bfc_ref[...]
    out_ref[...] = jax.nn.sigmoid(logits)            # (B, NUM_CLASSES)


def classification_only(x, w_conv, gamma, beta, w_fc, b_fc):
    """x: (B, C, H, W) f32. Returns (B, NUM_CLASSES) f32."""
    b, c, h, w = x.shape
    s = h * w
    # Free, contiguous reshape: hand the kernel a lane-dense (B, C, H*W) slab.
    x_flat = x.reshape(b, c, s).astype(jnp.float32)
    wconv_flat = w_conv.reshape(-1).astype(jnp.float32)            # (2*7*7,)
    bn_params = jnp.concatenate(
        [gamma.reshape(-1), beta.reshape(-1)]).astype(jnp.float32)  # (2,)
    wfc_t = w_fc.T.astype(jnp.float32)                              # (C, ncls)
    bfc = b_fc.reshape(1, -1).astype(jnp.float32)                   # (1, ncls)

    vmem = pl.BlockSpec(memory_space=pltpu.MemorySpace.VMEM)
    smem = pl.BlockSpec(memory_space=pltpu.MemorySpace.SMEM)

    flops = int(2 * b * c * s                 # channel mean + max
                + 2 * (2 * K * K) * b * s     # 7x7 conv MACs (2 in-channels)
                + 2 * b * c * s               # attention-weighted pool (MXU)
                + 2 * b * c * NUM_CLASSES)    # fc
    transcendentals = int(b * s + b * NUM_CLASSES)
    bytes_accessed = int(4 * (b * c * s + 2 * K * K + 2
                              + c * NUM_CLASSES + NUM_CLASSES
                              + b * NUM_CLASSES))

    return pl.pallas_call(
        classification_kernel,
        out_shape=jax.ShapeDtypeStruct((b, NUM_CLASSES), jnp.float32),
        in_specs=[vmem, smem, smem, vmem, vmem],
        out_specs=vmem,
        cost_estimate=pl.CostEstimate(flops=flops,
                                      transcendentals=transcendentals,
                                      bytes_accessed=bytes_accessed),
    )(x_flat, wconv_flat, bn_params, wfc_t, bfc)


def reference(x, w_conv, gamma, beta, w_fc, b_fc):
    """Pure-JAX reference mirroring the PyTorch forward (training-mode BN)."""
    avg = jnp.mean(x, axis=1, keepdims=True)
    mx = jnp.max(x, axis=1, keepdims=True)
    cat = jnp.concatenate([avg, mx], axis=1)                     # (B,2,H,W)
    conv = jax.lax.conv_general_dilated(
        cat, w_conv.reshape(1, 2, K, K),
        window_strides=(1, 1), padding=((PAD, PAD), (PAD, PAD)),
        dimension_numbers=('NCHW', 'OIHW', 'NCHW'))              # (B,1,H,W)
    mean = jnp.mean(conv)
    var = jnp.mean((conv - mean) ** 2)
    bn = (conv - mean) * jax.lax.rsqrt(var + EPS) * gamma[0] + beta[0]
    att = jax.nn.sigmoid(bn)
    pooled = jnp.mean(x * att, axis=(2, 3))                      # (B, C)
    logits = pooled @ w_fc.T + b_fc
    return jax.nn.sigmoid(logits)


if __name__ == "__main__":
    key = jax.random.PRNGKey(0)
    kx, kc, kw, kb = jax.random.split(key, 4)

    x = jax.random.normal(kx, (B, C, H, W), jnp.float32)

    # Deterministic parameter init (synthetic, shapes match nn module init).
    w_conv = jax.random.normal(kc, (2, K, K), jnp.float32) * 0.1   # Conv2d(2,1,7)
    gamma = jnp.ones((1,), jnp.float32)                            # BN affine
    beta = jnp.zeros((1,), jnp.float32)
    w_fc = jax.random.normal(kw, (NUM_CLASSES, C), jnp.float32) * (1.0 / jnp.sqrt(C))
    b_fc = jax.random.normal(kb, (NUM_CLASSES,), jnp.float32) * 0.05

    out = classification_only(x, w_conv, gamma, beta, w_fc, b_fc)
    out = jax.block_until_ready(out)

    ref = jax.block_until_ready(reference(x, w_conv, gamma, beta, w_fc, b_fc))
    # Tolerance leaves headroom for MXU matmul pass decomposition of f32
    # operands (pool/fc run on the MXU in the kernel, on the VPU/XLA outside).
    np.testing.assert_allclose(np.asarray(out), np.asarray(ref),
                               rtol=5e-3, atol=5e-4)

    print("KERNEL_OK")
</pallas_src>

<mosaic_0001>
module attributes {stable_mosaic.version = 11 : i64} {
  func.func @classification_kernel(%arg0: memref<2x64x256xf32, #tpu.memory_space<vmem>>, %arg1: memref<98xf32, #tpu.memory_space<smem>>, %arg2: memref<2xf32, #tpu.memory_space<smem>>, %arg3: memref<64x5xf32, #tpu.memory_space<vmem>>, %arg4: memref<1x5xf32, #tpu.memory_space<vmem>>, %arg5: memref<2x5xf32, #tpu.memory_space<vmem>>) attributes {dimension_semantics = [], scalar_prefetch = 0 : i64, scratch_operands = 0 : i64, tpu.core_type = #tpu.core_type<tc>} {
    %c0 = arith.constant 0 : index
    %c0_0 = arith.constant 0 : index
    %c0_1 = arith.constant 0 : index
    %0 = vector.load %arg0[%c0, %c0_0, %c0_1] : memref<2x64x256xf32, #tpu.memory_space<vmem>>, vector<2x64x256xf32>
    %cst = arith.constant dense<0.000000e+00> : vector<2x256xf32>
    %1 = vector.multi_reduction <add>, %0, %cst [1] : vector<2x64x256xf32> to vector<2x256xf32>
    %cst_2 = arith.constant 6.400000e+01 : f32
    %2 = vector.broadcast %cst_2 : f32 to vector<2x256xf32>
    %3 = arith.divf %1, %2 : vector<2x256xf32>
    %cst_3 = arith.constant dense<0xFF800000> : vector<2x256xf32>
    %4 = vector.multi_reduction <maximumf>, %0, %cst_3 [1] : vector<2x64x256xf32> to vector<2x256xf32>
    %5 = vector.extract_strided_slice %3 {offsets = [0, 0], sizes = [2, 16], strides = [1, 1]} : vector<2x256xf32> to vector<2x16xf32>
    %6 = vector.shape_cast %5 : vector<2x16xf32> to vector<2x1x16xf32>
    %7 = vector.extract_strided_slice %3 {offsets = [0, 16], sizes = [2, 16], strides = [1, 1]} : vector<2x256xf32> to vector<2x16xf32>
    %8 = vector.shape_cast %7 : vector<2x16xf32> to vector<2x1x16xf32>
    %9 = vector.extract_strided_slice %3 {offsets = [0, 32], sizes = [2, 16], strides = [1, 1]} : vector<2x256xf32> to vector<2x16xf32>
    %10 = vector.shape_cast %9 : vector<2x16xf32> to vector<2x1x16xf32>
    %11 = vector.extract_strided_slice %3 {offsets = [0, 48], sizes = [2, 16], strides = [1, 1]} : vector<2x256xf32> to vector<2x16xf32>
    %12 = vector.shape_cast %11 : vector<2x16xf32> to vector<2x1x16xf32>
    %13 = vector.extract_strided_slice %3 {offsets = [0, 64], sizes = [2, 16], strides = [1, 1]} : vector<2x256xf32> to vector<2x16xf32>
    %14 = vector.shape_cast %13 : vector<2x16xf32> to vector<2x1x16xf32>
    %15 = vector.extract_strided_slice %3 {offsets = [0, 80], sizes = [2, 16], strides = [1, 1]} : vector<2x256xf32> to vector<2x16xf32>
    %16 = vector.shape_cast %15 : vector<2x16xf32> to vector<2x1x16xf32>
    %17 = vector.extract_strided_slice %3 {offsets = [0, 96], sizes = [2, 16], strides = [1, 1]} : vector<2x256xf32> to vector<2x16xf32>
    %18 = vector.shape_cast %17 : vector<2x16xf32> to vector<2x1x16xf32>
    %19 = vector.extract_strided_slice %3 {offsets = [0, 112], sizes = [2, 16], strides = [1, 1]} : vector<2x256xf32> to vector<2x16xf32>
    %20 = vector.shape_cast %19 : vector<2x16xf32> to vector<2x1x16xf32>
    %21 = vector.extract_strided_slice %3 {offsets = [0, 128], sizes = [2, 16], strides = [1, 1]} : vector<2x256xf32> to vector<2x16xf32>
    %22 = vector.shape_cast %21 : vector<2x16xf32> to vector<2x1x16xf32>
    %23 = vector.extract_strided_slice %3 {offsets = [0, 144], sizes = [2, 16], strides = [1, 1]} : vector<2x256xf32> to vector<2x16xf32>
    %24 = vector.shape_cast %23 : vector<2x16xf32> to vector<2x1x16xf32>
    %25 = vector.extract_strided_slice %3 {offsets = [0, 160], sizes = [2, 16], strides = [1, 1]} : vector<2x256xf32> to vector<2x16xf32>
    %26 = vector.shape_cast %25 : vector<2x16xf32> to vector<2x1x16xf32>
    %27 = vector.extract_strided_slice %3 {offsets = [0, 176], sizes = [2, 16], strides = [1, 1]} : vector<2x256xf32> to vector<2x16xf32>
    %28 = vector.shape_cast %27 : vector<2x16xf32> to vector<2x1x16xf32>
    %29 = vector.extract_strided_slice %3 {offsets = [0, 192], sizes = [2, 16], strides = [1, 1]} : vector<2x256xf32> to vector<2x16xf32>
    %30 = vector.shape_cast %29 : vector<2x16xf32> to vector<2x1x16xf32>
    %31 = vector.extract_strided_slice %3 {offsets = [0, 208], sizes = [2, 16], strides = [1, 1]} : vector<2x256xf32> to vector<2x16xf32>
    %32 = vector.shape_cast %31 : vector<2x16xf32> to vector<2x1x16xf32>
    %33 = vector.extract_strided_slice %3 {offsets = [0, 224], sizes = [2, 16], strides = [1, 1]} : vector<2x256xf32> to vector<2x16xf32>
    %34 = vector.shape_cast %33 : vector<2x16xf32> to vector<2x1x16xf32>
    %35 = vector.extract_strided_slice %3 {offsets = [0, 240], sizes = [2, 16], strides = [1, 1]} : vector<2x256xf32> to vector<2x16xf32>
    %36 = vector.shape_cast %35 : vector<2x16xf32> to vector<2x1x16xf32>
    %37 = tpu.concatenate %6, %8, %10, %12, %14, %16, %18, %20, %22, %24, %26, %28, %30, %32, %34, %36 in 1 : vector<2x1x16xf32>, vector<2x1x16xf32>, vector<2x1x16xf32>, vector<2x1x16xf32>, vector<2x1x16xf32>, vector<2x1x16xf32>, vector<2x1x16xf32>, vector<2x1x16xf32>, vector<2x1x16xf32>, vector<2x1x16xf32>, vector<2x1x16xf32>, vector<2x1x16xf32>, vector<2x1x16xf32>, vector<2x1x16xf32>, vector<2x1x16xf32>, vector<2x1x16xf32> -> vector<2x16x16xf32>
    %cst_4 = arith.constant 0.000000e+00 : f32
    %38 = vector.broadcast %cst_4 : f32 to vector<2x16x3xf32>
    %39 = tpu.concatenate %38, %37, %38 in 2 : vector<2x16x3xf32>, vector<2x16x16xf32>, vector<2x16x3xf32> -> vector<2x16x22xf32>
    %cst_5 = arith.constant 0.000000e+00 : f32
    %40 = vector.broadcast %cst_5 : f32 to vector<2x3x22xf32>
    %41 = tpu.concatenate %40, %39, %40 in 1 : vector<2x3x22xf32>, vector<2x16x22xf32>, vector<2x3x22xf32> -> vector<2x22x22xf32>
    %42 = vector.extract_strided_slice %4 {offsets = [0, 0], sizes = [2, 16], strides = [1, 1]} : vector<2x256xf32> to vector<2x16xf32>
    %43 = vector.shape_cast %42 : vector<2x16xf32> to vector<2x1x16xf32>
    %44 = vector.extract_strided_slice %4 {offsets = [0, 16], sizes = [2, 16], strides = [1, 1]} : vector<2x256xf32> to vector<2x16xf32>
    %45 = vector.shape_cast %44 : vector<2x16xf32> to vector<2x1x16xf32>
    %46 = vector.extract_strided_slice %4 {offsets = [0, 32], sizes = [2, 16], strides = [1, 1]} : vector<2x256xf32> to vector<2x16xf32>
    %47 = vector.shape_cast %46 : vector<2x16xf32> to vector<2x1x16xf32>
    %48 = vector.extract_strided_slice %4 {offsets = [0, 48], sizes = [2, 16], strides = [1, 1]} : vector<2x256xf32> to vector<2x16xf32>
    %49 = vector.shape_cast %48 : vector<2x16xf32> to vector<2x1x16xf32>
    %50 = vector.extract_strided_slice %4 {offsets = [0, 64], sizes = [2, 16], strides = [1, 1]} : vector<2x256xf32> to vector<2x16xf32>
    %51 = vector.shape_cast %50 : vector<2x16xf32> to vector<2x1x16xf32>
    %52 = vector.extract_strided_slice %4 {offsets = [0, 80], sizes = [2, 16], strides = [1, 1]} : vector<2x256xf32> to vector<2x16xf32>
    %53 = vector.shape_cast %52 : vector<2x16xf32> to vector<2x1x16xf32>
    %54 = vector.extract_strided_slice %4 {offsets = [0, 96], sizes = [2, 16], strides = [1, 1]} : vector<2x256xf32> to vector<2x16xf32>
    %55 = vector.shape_cast %54 : vector<2x16xf32> to vector<2x1x16xf32>
    %56 = vector.extract_strided_slice %4 {offsets = [0, 112], sizes = [2, 16], strides = [1, 1]} : vector<2x256xf32> to vector<2x16xf32>
    %57 = vector.shape_cast %56 : vector<2x16xf32> to vector<2x1x16xf32>
    %58 = vector.extract_strided_slice %4 {offsets = [0, 128], sizes = [2, 16], strides = [1, 1]} : vector<2x256xf32> to vector<2x16xf32>
    %59 = vector.shape_cast %58 : vector<2x16xf32> to vector<2x1x16xf32>
    %60 = vector.extract_strided_slice %4 {offsets = [0, 144], sizes = [2, 16], strides = [1, 1]} : vector<2x256xf32> to vector<2x16xf32>
    %61 = vector.shape_cast %60 : vector<2x16xf32> to vector<2x1x16xf32>
    %62 = vector.extract_strided_slice %4 {offsets = [0, 160], sizes = [2, 16], strides = [1, 1]} : vector<2x256xf32> to vector<2x16xf32>
    %63 = vector.shape_cast %62 : vector<2x16xf32> to vector<2x1x16xf32>
    %64 = vector.extract_strided_slice %4 {offsets = [0, 176], sizes = [2, 16], strides = [1, 1]} : vector<2x256xf32> to vector<2x16xf32>
    %65 = vector.shape_cast %64 : vector<2x16xf32> to vector<2x1x16xf32>
    %66 = vector.extract_strided_slice %4 {offsets = [0, 192], sizes = [2, 16], strides = [1, 1]} : vector<2x256xf32> to vector<2x16xf32>
    %67 = vector.shape_cast %66 : vector<2x16xf32> to vector<2x1x16xf32>
    %68 = vector.extract_strided_slice %4 {offsets = [0, 208], sizes = [2, 16], strides = [1, 1]} : vector<2x256xf32> to vector<2x16xf32>
    %69 = vector.shape_cast %68 : vector<2x16xf32> to vector<2x1x16xf32>
    %70 = vector.extract_strided_slice %4 {offsets = [0, 224], sizes = [2, 16], strides = [1, 1]} : vector<2x256xf32> to vector<2x16xf32>
    %71 = vector.shape_cast %70 : vector<2x16xf32> to vector<2x1x16xf32>
    %72 = vector.extract_strided_slice %4 {offsets = [0, 240], sizes = [2, 16], strides = [1, 1]} : vector<2x256xf32> to vector<2x16xf32>
    %73 = vector.shape_cast %72 : vector<2x16xf32> to vector<2x1x16xf32>
    %74 = tpu.concatenate %43, %45, %47, %49, %51, %53, %55, %57, %59, %61, %63, %65, %67, %69, %71, %73 in 1 : vector<2x1x16xf32>, vector<2x1x16xf32>, vector<2x1x16xf32>, vector<2x1x16xf32>, vector<2x1x16xf32>, vector<2x1x16xf32>, vector<2x1x16xf32>, vector<2x1x16xf32>, vector<2x1x16xf32>, vector<2x1x16xf32>, vector<2x1x16xf32>, vector<2x1x16xf32>, vector<2x1x16xf32>, vector<2x1x16xf32>, vector<2x1x16xf32>, vector<2x1x16xf32> -> vector<2x16x16xf32>
    %cst_6 = arith.constant 0.000000e+00 : f32
    %75 = vector.broadcast %cst_6 : f32 to vector<2x16x3xf32>
    %76 = tpu.concatenate %75, %74, %75 in 2 : vector<2x16x3xf32>, vector<2x16x16xf32>, vector<2x16x3xf32> -> vector<2x16x22xf32>
    %cst_7 = arith.constant 0.000000e+00 : f32
    %77 = vector.broadcast %cst_7 : f32 to vector<2x3x22xf32>
    %78 = tpu.concatenate %77, %76, %77 in 1 : vector<2x3x22xf32>, vector<2x16x22xf32>, vector<2x3x22xf32> -> vector<2x22x22xf32>
    %cst_8 = arith.constant 0.000000e+00 : f32
    %79 = vector.broadcast %cst_8 : f32 to vector<2x16x16xf32>
    %cst_9 = arith.constant 0.000000e+00 : f32
    %80 = vector.broadcast %cst_9 : f32 to vector<2x16x16xf32>
    %cst_10 = arith.constant 0.000000e+00 : f32
    %81 = vector.broadcast %cst_10 : f32 to vector<2x16x16xf32>
    %cst_11 = arith.constant 0.000000e+00 : f32
    %82 = vector.broadcast %cst_11 : f32 to vector<2x16x16xf32>
    %c0_12 = arith.constant 0 : index
    %83 = memref.load %arg1[%c0_12] : memref<98xf32, #tpu.memory_space<smem>>
    %84 = vector.extract_strided_slice %41 {offsets = [0, 0, 0], sizes = [2, 16, 16], strides = [1, 1, 1]} : vector<2x22x22xf32> to vector<2x16x16xf32>
    %85 = vector.broadcast %83 : f32 to vector<2x16x16xf32>
    %86 = arith.mulf %85, %84 : vector<2x16x16xf32>
    %87 = arith.addf %79, %86 : vector<2x16x16xf32>
    %c1 = arith.constant 1 : index
    %88 = memref.load %arg1[%c1] : memref<98xf32, #tpu.memory_space<smem>>
    %89 = vector.extract_strided_slice %41 {offsets = [0, 0, 1], sizes = [2, 16, 16], strides = [1, 1, 1]} : vector<2x22x22xf32> to vector<2x16x16xf32>
    %90 = vector.broadcast %88 : f32 to vector<2x16x16xf32>
    %91 = arith.mulf %90, %89 : vector<2x16x16xf32>
    %92 = arith.addf %80, %91 : vector<2x16x16xf32>
    %c2 = arith.constant 2 : index
    %93 = memref.load %arg1[%c2] : memref<98xf32, #tpu.memory_space<smem>>
    %94 = vector.extract_strided_slice %41 {offsets = [0, 0, 2], sizes = [2, 16, 16], strides = [1, 1, 1]} : vector<2x22x22xf32> to vector<2x16x16xf32>
    %95 = vector.broadcast %93 : f32 to vector<2x16x16xf32>
    %96 = arith.mulf %95, %94 : vector<2x16x16xf32>
    %97 = arith.addf %81, %96 : vector<2x16x16xf32>
    %c3 = arith.constant 3 : index
    %98 = memref.load %arg1[%c3] : memref<98xf32, #tpu.memory_space<smem>>
    %99 = vector.extract_strided_slice %41 {offsets = [0, 0, 3], sizes = [2, 16, 16], strides = [1, 1, 1]} : vector<2x22x22xf32> to vector<2x16x16xf32>
    %100 = vector.broadcast %98 : f32 to vector<2x16x16xf32>
    %101 = arith.mulf %100, %99 : vector<2x16x16xf32>
    %102 = arith.addf %82, %101 : vector<2x16x16xf32>
    %c4 = arith.constant 4 : index
    %103 = memref.load %arg1[%c4] : memref<98xf32, #tpu.memory_space<smem>>
    %104 = vector.extract_strided_slice %41 {offsets = [0, 0, 4], sizes = [2, 16, 16], strides = [1, 1, 1]} : vector<2x22x22xf32> to vector<2x16x16xf32>
    %105 = vector.broadcast %103 : f32 to vector<2x16x16xf32>
    %106 = arith.mulf %105, %104 : vector<2x16x16xf32>
    %107 = arith.addf %87, %106 : vector<2x16x16xf32>
    %c5 = arith.constant 5 : index
    %108 = memref.load %arg1[%c5] : memref<98xf32, #tpu.memory_space<smem>>
    %109 = vector.extract_strided_slice %41 {offsets = [0, 0, 5], sizes = [2, 16, 16], strides = [1, 1, 1]} : vector<2x22x22xf32> to vector<2x16x16xf32>
    %110 = vector.broadcast %108 : f32 to vector<2x16x16xf32>
    %111 = arith.mulf %110, %109 : vector<2x16x16xf32>
    %112 = arith.addf %92, %111 : vector<2x16x16xf32>
    %c6 = arith.constant 6 : index
    %113 = memref.load %arg1[%c6] : memref<98xf32, #tpu.memory_space<smem>>
    %114 = vector.extract_strided_slice %41 {offsets = [0, 0, 6], sizes = [2, 16, 16], strides = [1, 1, 1]} : vector<2x22x22xf32> to vector<2x16x16xf32>
    %115 = vector.broadcast %113 : f32 to vector<2x16x16xf32>
    %116 = arith.mulf %115, %114 : vector<2x16x16xf32>
    %117 = arith.addf %97, %116 : vector<2x16x16xf32>
    %c7 = arith.constant 7 : index
    %118 = memref.load %arg1[%c7] : memref<98xf32, #tpu.memory_space<smem>>
    %119 = vector.extract_strided_slice %41 {offsets = [0, 1, 0], sizes = [2, 16, 16], strides = [1, 1, 1]} : vector<2x22x22xf32> to vector<2x16x16xf32>
    %120 = vector.broadcast %118 : f32 to vector<2x16x16xf32>
    %121 = arith.mulf %120, %119 : vector<2x16x16xf32>
    %122 = arith.addf %102, %121 : vector<2x16x16xf32>
    %c8 = arith.constant 8 : index
    %123 = memref.load %arg1[%c8] : memref<98xf32, #tpu.memory_space<smem>>
    %124 = vector.extract_strided_slice %41 {offsets = [0, 1, 1], sizes = [2, 16, 16], strides = [1, 1, 1]} : vector<2x22x22xf32> to vector<2x16x16xf32>
    %125 = vector.broadcast %123 : f32 to vector<2x16x16xf32>
    %126 = arith.mulf %125, %124 : vector<2x16x16xf32>
    %127 = arith.addf %107, %126 : vector<2x16x16xf32>
    %c9 = arith.constant 9 : index
    %128 = memref.load %arg1[%c9] : memref<98xf32, #tpu.memory_space<smem>>
    %129 = vector.extract_strided_slice %41 {offsets = [0, 1, 2], sizes = [2, 16, 16], strides = [1, 1, 1]} : vector<2x22x22xf32> to vector<2x16x16xf32>
    %130 = vector.broadcast %128 : f32 to vector<2x16x16xf32>
    %131 = arith.mulf %130, %129 : vector<2x16x16xf32>
    %132 = arith.addf %112, %131 : vector<2x16x16xf32>
    %c10 = arith.constant 10 : index
    %133 = memref.load %arg1[%c10] : memref<98xf32, #tpu.memory_space<smem>>
    %134 = vector.extract_strided_slice %41 {offsets = [0, 1, 3], sizes = [2, 16, 16], strides = [1, 1, 1]} : vector<2x22x22xf32> to vector<2x16x16xf32>
    %135 = vector.broadcast %133 : f32 to vector<2x16x16xf32>
    %136 = arith.mulf %135, %134 : vector<2x16x16xf32>
    %137 = arith.addf %117, %136 : vector<2x16x16xf32>
    %c11 = arith.constant 11 : index
    %138 = memref.load %arg1[%c11] : memref<98xf32, #tpu.memory_space<smem>>
    %139 = vector.extract_strided_slice %41 {offsets = [0, 1, 4], sizes = [2, 16, 16], strides = [1, 1, 1]} : vector<2x22x22xf32> to vector<2x16x16xf32>
    %140 = vector.broadcast %138 : f32 to vector<2x16x16xf32>
    %141 = arith.mulf %140, %139 : vector<2x16x16xf32>
    %142 = arith.addf %122, %141 : vector<2x16x16xf32>
    %c12 = arith.constant 12 : index
    %143 = memref.load %arg1[%c12] : memref<98xf32, #tpu.memory_space<smem>>
    %144 = vector.extract_strided_slice %41 {offsets = [0, 1, 5], sizes = [2, 16, 16], strides = [1, 1, 1]} : vector<2x22x22xf32> to vector<2x16x16xf32>
    %145 = vector.broadcast %143 : f32 to vector<2x16x16xf32>
    %146 = arith.mulf %145, %144 : vector<2x16x16xf32>
    %147 = arith.addf %127, %146 : vector<2x16x16xf32>
    %c13 = arith.constant 13 : index
    %148 = memref.load %arg1[%c13] : memref<98xf32, #tpu.memory_space<smem>>
    %149 = vector.extract_strided_slice %41 {offsets = [0, 1, 6], sizes = [2, 16, 16], strides = [1, 1, 1]} : vector<2x22x22xf32> to vector<2x16x16xf32>
    %150 = vector.broadcast %148 : f32 to vector<2x16x16xf32>
    %151 = arith.mulf %150, %149 : vector<2x16x16xf32>
    %152 = arith.addf %132, %151 : vector<2x16x16xf32>
    %c14 = arith.constant 14 : index
    %153 = memref.load %arg1[%c14] : memref<98xf32, #tpu.memory_space<smem>>
    %154 = vector.extract_strided_slice %41 {offsets = [0, 2, 0], sizes = [2, 16, 16], strides = [1, 1, 1]} : vector<2x22x22xf32> to vector<2x16x16xf32>
    %155 = vector.broadcast %153 : f32 to vector<2x16x16xf32>
    %156 = arith.mulf %155, %154 : vector<2x16x16xf32>
    %157 = arith.addf %137, %156 : vector<2x16x16xf32>
    %c15 = arith.constant 15 : index
    %158 = memref.load %arg1[%c15] : memref<98xf32, #tpu.memory_space<smem>>
    %159 = vector.extract_strided_slice %41 {offsets = [0, 2, 1], sizes = [2, 16, 16], strides = [1, 1, 1]} : vector<2x22x22xf32> to vector<2x16x16xf32>
    %160 = vector.broadcast %158 : f32 to vector<2x16x16xf32>
    %161 = arith.mulf %160, %159 : vector<2x16x16xf32>
    %162 = arith.addf %142, %161 : vector<2x16x16xf32>
    %c16 = arith.constant 16 : index
    %163 = memref.load %arg1[%c16] : memref<98xf32, #tpu.memory_space<smem>>
    %164 = vector.extract_strided_slice %41 {offsets = [0, 2, 2], sizes = [2, 16, 16], strides = [1, 1, 1]} : vector<2x22x22xf32> to vector<2x16x16xf32>
    %165 = vector.broadcast %163 : f32 to vector<2x16x16xf32>
    %166 = arith.mulf %165, %164 : vector<2x16x16xf32>
    %167 = arith.addf %147, %166 : vector<2x16x16xf32>
    %c17 = arith.constant 17 : index
    %168 = memref.load %arg1[%c17] : memref<98xf32, #tpu.memory_space<smem>>
    %169 = vector.extract_strided_slice %41 {offsets = [0, 2, 3], sizes = [2, 16, 16], strides = [1, 1, 1]} : vector<2x22x22xf32> to vector<2x16x16xf32>
    %170 = vector.broadcast %168 : f32 to vector<2x16x16xf32>
    %171 = arith.mulf %170, %169 : vector<2x16x16xf32>
    %172 = arith.addf %152, %171 : vector<2x16x16xf32>
    %c18 = arith.constant 18 : index
    %173 = memref.load %arg1[%c18] : memref<98xf32, #tpu.memory_space<smem>>
    %174 = vector.extract_strided_slice %41 {offsets = [0, 2, 4], sizes = [2, 16, 16], strides = [1, 1, 1]} : vector<2x22x22xf32> to vector<2x16x16xf32>
    %175 = vector.broadcast %173 : f32 to vector<2x16x16xf32>
    %176 = arith.mulf %175, %174 : vector<2x16x16xf32>
    %177 = arith.addf %157, %176 : vector<2x16x16xf32>
    %c19 = arith.constant 19 : index
    %178 = memref.load %arg1[%c19] : memref<98xf32, #tpu.memory_space<smem>>
    %179 = vector.extract_strided_slice %41 {offsets = [0, 2, 5], sizes = [2, 16, 16], strides = [1, 1, 1]} : vector<2x22x22xf32> to vector<2x16x16xf32>
    %180 = vector.broadcast %178 : f32 to vector<2x16x16xf32>
    %181 = arith.mulf %180, %179 : vector<2x16x16xf32>
    %182 = arith.addf %162, %181 : vector<2x16x16xf32>
    %c20 = arith.constant 20 : index
    %183 = memref.load %arg1[%c20] : memref<98xf32, #tpu.memory_space<smem>>
    %184 = vector.extract_strided_slice %41 {offsets = [0, 2, 6], sizes = [2, 16, 16], strides = [1, 1, 1]} : vector<2x22x22xf32> to vector<2x16x16xf32>
    %185 = vector.broadcast %183 : f32 to vector<2x16x16xf32>
    %186 = arith.mulf %185, %184 : vector<2x16x16xf32>
    %187 = arith.addf %167, %186 : vector<2x16x16xf32>
    %c21 = arith.constant 21 : index
    %188 = memref.load %arg1[%c21] : memref<98xf32, #tpu.memory_space<smem>>
    %189 = vector.extract_strided_slice %41 {offsets = [0, 3, 0], sizes = [2, 16, 16], strides = [1, 1, 1]} : vector<2x22x22xf32> to vector<2x16x16xf32>
    %190 = vector.broadcast %188 : f32 to vector<2x16x16xf32>
    %191 = arith.mulf %190, %189 : vector<2x16x16xf32>
    %192 = arith.addf %172, %191 : vector<2x16x16xf32>
    %c22 = arith.constant 22 : index
    %193 = memref.load %arg1[%c22] : memref<98xf32, #tpu.memory_space<smem>>
    %194 = vector.extract_strided_slice %41 {offsets = [0, 3, 1], sizes = [2, 16, 16], strides = [1, 1, 1]} : vector<2x22x22xf32> to vector<2x16x16xf32>
    %195 = vector.broadcast %193 : f32 to vector<2x16x16xf32>
    %196 = arith.mulf %195, %194 : vector<2x16x16xf32>
    %197 = arith.addf %177, %196 : vector<2x16x16xf32>
    %c23 = arith.constant 23 : index
    %198 = memref.load %arg1[%c23] : memref<98xf32, #tpu.memory_space<smem>>
    %199 = vector.extract_strided_slice %41 {offsets = [0, 3, 2], sizes = [2, 16, 16], strides = [1, 1, 1]} : vector<2x22x22xf32> to vector<2x16x16xf32>
    %200 = vector.broadcast %198 : f32 to vector<2x16x16xf32>
    %201 = arith.mulf %200, %199 : vector<2x16x16xf32>
    %202 = arith.addf %182, %201 : vector<2x16x16xf32>
    %c24 = arith.constant 24 : index
    %203 = memref.load %arg1[%c24] : memref<98xf32, #tpu.memory_space<smem>>
    %204 = vector.extract_strided_slice %41 {offsets = [0, 3, 3], sizes = [2, 16, 16], strides = [1, 1, 1]} : vector<2x22x22xf32> to vector<2x16x16xf32>
    %205 = vector.broadcast %203 : f32 to vector<2x16x16xf32>
    %206 = arith.mulf %205, %204 : vector<2x16x16xf32>
    %207 = arith.addf %187, %206 : vector<2x16x16xf32>
    %c25 = arith.constant 25 : index
    %208 = memref.load %arg1[%c25] : memref<98xf32, #tpu.memory_space<smem>>
    %209 = vector.extract_strided_slice %41 {offsets = [0, 3, 4], sizes = [2, 16, 16], strides = [1, 1, 1]} : vector<2x22x22xf32> to vector<2x16x16xf32>
    %210 = vector.broadcast %208 : f32 to vector<2x16x16xf32>
    %211 = arith.mulf %210, %209 : vector<2x16x16xf32>
    %212 = arith.addf %192, %211 : vector<2x16x16xf32>
    %c26 = arith.constant 26 : index
    %213 = memref.load %arg1[%c26] : memref<98xf32, #tpu.memory_space<smem>>
    %214 = vector.extract_strided_slice %41 {offsets = [0, 3, 5], sizes = [2, 16, 16], strides = [1, 1, 1]} : vector<2x22x22xf32> to vector<2x16x16xf32>
    %215 = vector.broadcast %213 : f32 to vector<2x16x16xf32>
    %216 = arith.mulf %215, %214 : vector<2x16x16xf32>
    %217 = arith.addf %197, %216 : vector<2x16x16xf32>
    %c27 = arith.constant 27 : index
    %218 = memref.load %arg1[%c27] : memref<98xf32, #tpu.memory_space<smem>>
    %219 = vector.extract_strided_slice %41 {offsets = [0, 3, 6], sizes = [2, 16, 16], strides = [1, 1, 1]} : vector<2x22x22xf32> to vector<2x16x16xf32>
    %220 = vector.broadcast %218 : f32 to vector<2x16x16xf32>
    %221 = arith.mulf %220, %219 : vector<2x16x16xf32>
    %222 = arith.addf %202, %221 : vector<2x16x16xf32>
    %c28 = arith.constant 28 : index
    %223 = memref.load %arg1[%c28] : memref<98xf32, #tpu.memory_space<smem>>
    %224 = vector.extract_strided_slice %41 {offsets = [0, 4, 0], sizes = [2, 16, 16], strides = [1, 1, 1]} : vector<2x22x22xf32> to vector<2x16x16xf32>
    %225 = vector.broadcast %223 : f32 to vector<2x16x16xf32>
    %226 = arith.mulf %225, %224 : vector<2x16x16xf32>
    %227 = arith.addf %207, %226 : vector<2x16x16xf32>
    %c29 = arith.constant 29 : index
    %228 = memref.load %arg1[%c29] : memref<98xf32, #tpu.memory_space<smem>>
    %229 = vector.extract_strided_slice %41 {offsets = [0, 4, 1], sizes = [2, 16, 16], strides = [1, 1, 1]} : vector<2x22x22xf32> to vector<2x16x16xf32>
    %230 = vector.broadcast %228 : f32 to vector<2x16x16xf32>
    %231 = arith.mulf %230, %229 : vector<2x16x16xf32>
    %232 = arith.addf %212, %231 : vector<2x16x16xf32>
    %c30 = arith.constant 30 : index
    %233 = memref.load %arg1[%c30] : memref<98xf32, #tpu.memory_space<smem>>
    %234 = vector.extract_strided_slice %41 {offsets = [0, 4, 2], sizes = [2, 16, 16], strides = [1, 1, 1]} : vector<2x22x22xf32> to vector<2x16x16xf32>
    %235 = vector.broadcast %233 : f32 to vector<2x16x16xf32>
    %236 = arith.mulf %235, %234 : vector<2x16x16xf32>
    %237 = arith.addf %217, %236 : vector<2x16x16xf32>
    %c31 = arith.constant 31 : index
    %238 = memref.load %arg1[%c31] : memref<98xf32, #tpu.memory_space<smem>>
    %239 = vector.extract_strided_slice %41 {offsets = [0, 4, 3], sizes = [2, 16, 16], strides = [1, 1, 1]} : vector<2x22x22xf32> to vector<2x16x16xf32>
    %240 = vector.broadcast %238 : f32 to vector<2x16x16xf32>
    %241 = arith.mulf %240, %239 : vector<2x16x16xf32>
    %242 = arith.addf %222, %241 : vector<2x16x16xf32>
    %c32 = arith.constant 32 : index
    %243 = memref.load %arg1[%c32] : memref<98xf32, #tpu.memory_space<smem>>
    %244 = vector.extract_strided_slice %41 {offsets = [0, 4, 4], sizes = [2, 16, 16], strides = [1, 1, 1]} : vector<2x22x22xf32> to vector<2x16x16xf32>
    %245 = vector.broadcast %243 : f32 to vector<2x16x16xf32>
    %246 = arith.mulf %245, %244 : vector<2x16x16xf32>
    %247 = arith.addf %227, %246 : vector<2x16x16xf32>
    %c33 = arith.constant 33 : index
    %248 = memref.load %arg1[%c33] : memref<98xf32, #tpu.memory_space<smem>>
    %249 = vector.extract_strided_slice %41 {offsets = [0, 4, 5], sizes = [2, 16, 16], strides = [1, 1, 1]} : vector<2x22x22xf32> to vector<2x16x16xf32>
    %250 = vector.broadcast %248 : f32 to vector<2x16x16xf32>
    %251 = arith.mulf %250, %249 : vector<2x16x16xf32>
    %252 = arith.addf %232, %251 : vector<2x16x16xf32>
    %c34 = arith.constant 34 : index
    %253 = memref.load %arg1[%c34] : memref<98xf32, #tpu.memory_space<smem>>
    %254 = vector.extract_strided_slice %41 {offsets = [0, 4, 6], sizes = [2, 16, 16], strides = [1, 1, 1]} : vector<2x22x22xf32> to vector<2x16x16xf32>
    %255 = vector.broadcast %253 : f32 to vector<2x16x16xf32>
    %256 = arith.mulf %255, %254 : vector<2x16x16xf32>
    %257 = arith.addf %237, %256 : vector<2x16x16xf32>
    %c35 = arith.constant 35 : index
    %258 = memref.load %arg1[%c35] : memref<98xf32, #tpu.memory_space<smem>>
    %259 = vector.extract_strided_slice %41 {offsets = [0, 5, 0], sizes = [2, 16, 16], strides = [1, 1, 1]} : vector<2x22x22xf32> to vector<2x16x16xf32>
    %260 = vector.broadcast %258 : f32 to vector<2x16x16xf32>
    %261 = arith.mulf %260, %259 : vector<2x16x16xf32>
    %262 = arith.addf %242, %261 : vector<2x16x16xf32>
    %c36 = arith.constant 36 : index
    %263 = memref.load %arg1[%c36] : memref<98xf32, #tpu.memory_space<smem>>
    %264 = vector.extract_strided_slice %41 {offsets = [0, 5, 1], sizes = [2, 16, 16], strides = [1, 1, 1]} : vector<2x22x22xf32> to vector<2x16x16xf32>
    %265 = vector.broadcast %263 : f32 to vector<2x16x16xf32>
    %266 = arith.mulf %265, %264 : vector<2x16x16xf32>
    %267 = arith.addf %247, %266 : vector<2x16x16xf32>
    %c37 = arith.constant 37 : index
    %268 = memref.load %arg1[%c37] : memref<98xf32, #tpu.memory_space<smem>>
    %269 = vector.extract_strided_slice %41 {offsets = [0, 5, 2], sizes = [2, 16, 16], strides = [1, 1, 1]} : vector<2x22x22xf32> to vector<2x16x16xf32>
    %270 = vector.broadcast %268 : f32 to vector<2x16x16xf32>
    %271 = arith.mulf %270, %269 : vector<2x16x16xf32>
    %272 = arith.addf %252, %271 : vector<2x16x16xf32>
    %c38 = arith.constant 38 : index
    %273 = memref.load %arg1[%c38] : memref<98xf32, #tpu.memory_space<smem>>
    %274 = vector.extract_strided_slice %41 {offsets = [0, 5, 3], sizes = [2, 16, 16], strides = [1, 1, 1]} : vector<2x22x22xf32> to vector<2x16x16xf32>
    %275 = vector.broadcast %273 : f32 to vector<2x16x16xf32>
    %276 = arith.mulf %275, %274 : vector<2x16x16xf32>
    %277 = arith.addf %257, %276 : vector<2x16x16xf32>
    %c39 = arith.constant 39 : index
    %278 = memref.load %arg1[%c39] : memref<98xf32, #tpu.memory_space<smem>>
    %279 = vector.extract_strided_slice %41 {offsets = [0, 5, 4], sizes = [2, 16, 16], strides = [1, 1, 1]} : vector<2x22x22xf32> to vector<2x16x16xf32>
    %280 = vector.broadcast %278 : f32 to vector<2x16x16xf32>
    %281 = arith.mulf %280, %279 : vector<2x16x16xf32>
    %282 = arith.addf %262, %281 : vector<2x16x16xf32>
    %c40 = arith.constant 40 : index
    %283 = memref.load %arg1[%c40] : memref<98xf32, #tpu.memory_space<smem>>
    %284 = vector.extract_strided_slice %41 {offsets = [0, 5, 5], sizes = [2, 16, 16], strides = [1, 1, 1]} : vector<2x22x22xf32> to vector<2x16x16xf32>
    %285 = vector.broadcast %283 : f32 to vector<2x16x16xf32>
    %286 = arith.mulf %285, %284 : vector<2x16x16xf32>
    %287 = arith.addf %267, %286 : vector<2x16x16xf32>
    %c41 = arith.constant 41 : index
    %288 = memref.load %arg1[%c41] : memref<98xf32, #tpu.memory_space<smem>>
    %289 = vector.extract_strided_slice %41 {offsets = [0, 5, 6], sizes = [2, 16, 16], strides = [1, 1, 1]} : vector<2x22x22xf32> to vector<2x16x16xf32>
    %290 = vector.broadcast %288 : f32 to vector<2x16x16xf32>
    %291 = arith.mulf %290, %289 : vector<2x16x16xf32>
    %292 = arith.addf %272, %291 : vector<2x16x16xf32>
    %c42 = arith.constant 42 : index
    %293 = memref.load %arg1[%c42] : memref<98xf32, #tpu.memory_space<smem>>
    %294 = vector.extract_strided_slice %41 {offsets = [0, 6, 0], sizes = [2, 16, 16], strides = [1, 1, 1]} : vector<2x22x22xf32> to vector<2x16x16xf32>
    %295 = vector.broadcast %293 : f32 to vector<2x16x16xf32>
    %296 = arith.mulf %295, %294 : vector<2x16x16xf32>
    %297 = arith.addf %277, %296 : vector<2x16x16xf32>
    %c43 = arith.constant 43 : index
    %298 = memref.load %arg1[%c43] : memref<98xf32, #tpu.memory_space<smem>>
    %299 = vector.extract_strided_slice %41 {offsets = [0, 6, 1], sizes = [2, 16, 16], strides = [1, 1, 1]} : vector<2x22x22xf32> to vector<2x16x16xf32>
    %300 = vector.broadcast %298 : f32 to vector<2x16x16xf32>
    %301 = arith.mulf %300, %299 : vector<2x16x16xf32>
    %302 = arith.addf %282, %301 : vector<2x16x16xf32>
    %c44 = arith.constant 44 : index
    %303 = memref.load %arg1[%c44] : memref<98xf32, #tpu.memory_space<smem>>
    %304 = vector.extract_strided_slice %41 {offsets = [0, 6, 2], sizes = [2, 16, 16], strides = [1, 1, 1]} : vector<2x22x22xf32> to vector<2x16x16xf32>
    %305 = vector.broadcast %303 : f32 to vector<2x16x16xf32>
    %306 = arith.mulf %305, %304 : vector<2x16x16xf32>
    %307 = arith.addf %287, %306 : vector<2x16x16xf32>
    %c45 = arith.constant 45 : index
    %308 = memref.load %arg1[%c45] : memref<98xf32, #tpu.memory_space<smem>>
    %309 = vector.extract_strided_slice %41 {offsets = [0, 6, 3], sizes = [2, 16, 16], strides = [1, 1, 1]} : vector<2x22x22xf32> to vector<2x16x16xf32>
    %310 = vector.broadcast %308 : f32 to vector<2x16x16xf32>
    %311 = arith.mulf %310, %309 : vector<2x16x16xf32>
    %312 = arith.addf %292, %311 : vector<2x16x16xf32>
    %c46 = arith.constant 46 : index
    %313 = memref.load %arg1[%c46] : memref<98xf32, #tpu.memory_space<smem>>
    %314 = vector.extract_strided_slice %41 {offsets = [0, 6, 4], sizes = [2, 16, 16], strides = [1, 1, 1]} : vector<2x22x22xf32> to vector<2x16x16xf32>
    %315 = vector.broadcast %313 : f32 to vector<2x16x16xf32>
    %316 = arith.mulf %315, %314 : vector<2x16x16xf32>
    %317 = arith.addf %297, %316 : vector<2x16x16xf32>
    %c47 = arith.constant 47 : index
    %318 = memref.load %arg1[%c47] : memref<98xf32, #tpu.memory_space<smem>>
    %319 = vector.extract_strided_slice %41 {offsets = [0, 6, 5], sizes = [2, 16, 16], strides = [1, 1, 1]} : vector<2x22x22xf32> to vector<2x16x16xf32>
    %320 = vector.broadcast %318 : f32 to vector<2x16x16xf32>
    %321 = arith.mulf %320, %319 : vector<2x16x16xf32>
    %322 = arith.addf %302, %321 : vector<2x16x16xf32>
    %c48 = arith.constant 48 : index
    %323 = memref.load %arg1[%c48] : memref<98xf32, #tpu.memory_space<smem>>
    %324 = vector.extract_strided_slice %41 {offsets = [0, 6, 6], sizes = [2, 16, 16], strides = [1, 1, 1]} : vector<2x22x22xf32> to vector<2x16x16xf32>
    %325 = vector.broadcast %323 : f32 to vector<2x16x16xf32>
    %326 = arith.mulf %325, %324 : vector<2x16x16xf32>
    %327 = arith.addf %307, %326 : vector<2x16x16xf32>
    %c49 = arith.constant 49 : index
    %328 = memref.load %arg1[%c49] : memref<98xf32, #tpu.memory_space<smem>>
    %329 = vector.extract_strided_slice %78 {offsets = [0, 0, 0], sizes = [2, 16, 16], strides = [1, 1, 1]} : vector<2x22x22xf32> to vector<2x16x16xf32>
    %330 = vector.broadcast %328 : f32 to vector<2x16x16xf32>
    %331 = arith.mulf %330, %329 : vector<2x16x16xf32>
    %332 = arith.addf %312, %331 : vector<2x16x16xf32>
    %c50 = arith.constant 50 : index
    %333 = memref.load %arg1[%c50] : memref<98xf32, #tpu.memory_space<smem>>
    %334 = vector.extract_strided_slice %78 {offsets = [0, 0, 1], sizes = [2, 16, 16], strides = [1, 1, 1]} : vector<2x22x22xf32> to vector<2x16x16xf32>
    %335 = vector.broadcast %333 : f32 to vector<2x16x16xf32>
    %336 = arith.mulf %335, %334 : vector<2x16x16xf32>
    %337 = arith.addf %317, %336 : vector<2x16x16xf32>
    %c51 = arith.constant 51 : index
    %338 = memref.load %arg1[%c51] : memref<98xf32, #tpu.memory_space<smem>>
    %339 = vector.extract_strided_slice %78 {offsets = [0, 0, 2], sizes = [2, 16, 16], strides = [1, 1, 1]} : vector<2x22x22xf32> to vector<2x16x16xf32>
    %340 = vector.broadcast %338 : f32 to vector<2x16x16xf32>
    %341 = arith.mulf %340, %339 : vector<2x16x16xf32>
    %342 = arith.addf %322, %341 : vector<2x16x16xf32>
    %c52 = arith.constant 52 : index
    %343 = memref.load %arg1[%c52] : memref<98xf32, #tpu.memory_space<smem>>
    %344 = vector.extract_strided_slice %78 {offsets = [0, 0, 3], sizes = [2, 16, 16], strides = [1, 1, 1]} : vector<2x22x22xf32> to vector<2x16x16xf32>
    %345 = vector.broadcast %343 : f32 to vector<2x16x16xf32>
    %346 = arith.mulf %345, %344 : vector<2x16x16xf32>
    %347 = arith.addf %327, %346 : vector<2x16x16xf32>
    %c53 = arith.constant 53 : index
    %348 = memref.load %arg1[%c53] : memref<98xf32, #tpu.memory_space<smem>>
    %349 = vector.extract_strided_slice %78 {offsets = [0, 0, 4], sizes = [2, 16, 16], strides = [1, 1, 1]} : vector<2x22x22xf32> to vector<2x16x16xf32>
    %350 = vector.broadcast %348 : f32 to vector<2x16x16xf32>
    %351 = arith.mulf %350, %349 : vector<2x16x16xf32>
    %352 = arith.addf %332, %351 : vector<2x16x16xf32>
    %c54 = arith.constant 54 : index
    %353 = memref.load %arg1[%c54] : memref<98xf32, #tpu.memory_space<smem>>
    %354 = vector.extract_strided_slice %78 {offsets = [0, 0, 5], sizes = [2, 16, 16], strides = [1, 1, 1]} : vector<2x22x22xf32> to vector<2x16x16xf32>
    %355 = vector.broadcast %353 : f32 to vector<2x16x16xf32>
    %356 = arith.mulf %355, %354 : vector<2x16x16xf32>
    %357 = arith.addf %337, %356 : vector<2x16x16xf32>
    %c55 = arith.constant 55 : index
    %358 = memref.load %arg1[%c55] : memref<98xf32, #tpu.memory_space<smem>>
    %359 = vector.extract_strided_slice %78 {offsets = [0, 0, 6], sizes = [2, 16, 16], strides = [1, 1, 1]} : vector<2x22x22xf32> to vector<2x16x16xf32>
    %360 = vector.broadcast %358 : f32 to vector<2x16x16xf32>
    %361 = arith.mulf %360, %359 : vector<2x16x16xf32>
    %362 = arith.addf %342, %361 : vector<2x16x16xf32>
    %c56 = arith.constant 56 : index
    %363 = memref.load %arg1[%c56] : memref<98xf32, #tpu.memory_space<smem>>
    %364 = vector.extract_strided_slice %78 {offsets = [0, 1, 0], sizes = [2, 16, 16], strides = [1, 1, 1]} : vector<2x22x22xf32> to vector<2x16x16xf32>
    %365 = vector.broadcast %363 : f32 to vector<2x16x16xf32>
    %366 = arith.mulf %365, %364 : vector<2x16x16xf32>
    %367 = arith.addf %347, %366 : vector<2x16x16xf32>
    %c57 = arith.constant 57 : index
    %368 = memref.load %arg1[%c57] : memref<98xf32, #tpu.memory_space<smem>>
    %369 = vector.extract_strided_slice %78 {offsets = [0, 1, 1], sizes = [2, 16, 16], strides = [1, 1, 1]} : vector<2x22x22xf32> to vector<2x16x16xf32>
    %370 = vector.broadcast %368 : f32 to vector<2x16x16xf32>
    %371 = arith.mulf %370, %369 : vector<2x16x16xf32>
    %372 = arith.addf %352, %371 : vector<2x16x16xf32>
    %c58 = arith.constant 58 : index
    %373 = memref.load %arg1[%c58] : memref<98xf32, #tpu.memory_space<smem>>
    %374 = vector.extract_strided_slice %78 {offsets = [0, 1, 2], sizes = [2, 16, 16], strides = [1, 1, 1]} : vector<2x22x22xf32> to vector<2x16x16xf32>
    %375 = vector.broadcast %373 : f32 to vector<2x16x16xf32>
    %376 = arith.mulf %375, %374 : vector<2x16x16xf32>
    %377 = arith.addf %357, %376 : vector<2x16x16xf32>
    %c59 = arith.constant 59 : index
    %378 = memref.load %arg1[%c59] : memref<98xf32, #tpu.memory_space<smem>>
    %379 = vector.extract_strided_slice %78 {offsets = [0, 1, 3], sizes = [2, 16, 16], strides = [1, 1, 1]} : vector<2x22x22xf32> to vector<2x16x16xf32>
    %380 = vector.broadcast %378 : f32 to vector<2x16x16xf32>
    %381 = arith.mulf %380, %379 : vector<2x16x16xf32>
    %382 = arith.addf %362, %381 : vector<2x16x16xf32>
    %c60 = arith.constant 60 : index
    %383 = memref.load %arg1[%c60] : memref<98xf32, #tpu.memory_space<smem>>
    %384 = vector.extract_strided_slice %78 {offsets = [0, 1, 4], sizes = [2, 16, 16], strides = [1, 1, 1]} : vector<2x22x22xf32> to vector<2x16x16xf32>
    %385 = vector.broadcast %383 : f32 to vector<2x16x16xf32>
    %386 = arith.mulf %385, %384 : vector<2x16x16xf32>
    %387 = arith.addf %367, %386 : vector<2x16x16xf32>
    %c61 = arith.constant 61 : index
    %388 = memref.load %arg1[%c61] : memref<98xf32, #tpu.memory_space<smem>>
    %389 = vector.extract_strided_slice %78 {offsets = [0, 1, 5], sizes = [2, 16, 16], strides = [1, 1, 1]} : vector<2x22x22xf32> to vector<2x16x16xf32>
    %390 = vector.broadcast %388 : f32 to vector<2x16x16xf32>
    %391 = arith.mulf %390, %389 : vector<2x16x16xf32>
    %392 = arith.addf %372, %391 : vector<2x16x16xf32>
    %c62 = arith.constant 62 : index
    %393 = memref.load %arg1[%c62] : memref<98xf32, #tpu.memory_space<smem>>
    %394 = vector.extract_strided_slice %78 {offsets = [0, 1, 6], sizes = [2, 16, 16], strides = [1, 1, 1]} : vector<2x22x22xf32> to vector<2x16x16xf32>
    %395 = vector.broadcast %393 : f32 to vector<2x16x16xf32>
    %396 = arith.mulf %395, %394 : vector<2x16x16xf32>
    %397 = arith.addf %377, %396 : vector<2x16x16xf32>
    %c63 = arith.constant 63 : index
    %398 = memref.load %arg1[%c63] : memref<98xf32, #tpu.memory_space<smem>>
    %399 = vector.extract_strided_slice %78 {offsets = [0, 2, 0], sizes = [2, 16, 16], strides = [1, 1, 1]} : vector<2x22x22xf32> to vector<2x16x16xf32>
    %400 = vector.broadcast %398 : f32 to vector<2x16x16xf32>
    %401 = arith.mulf %400, %399 : vector<2x16x16xf32>
    %402 = arith.addf %382, %401 : vector<2x16x16xf32>
    %c64 = arith.constant 64 : index
    %403 = memref.load %arg1[%c64] : memref<98xf32, #tpu.memory_space<smem>>
    %404 = vector.extract_strided_slice %78 {offsets = [0, 2, 1], sizes = [2, 16, 16], strides = [1, 1, 1]} : vector<2x22x22xf32> to vector<2x16x16xf32>
    %405 = vector.broadcast %403 : f32 to vector<2x16x16xf32>
    %406 = arith.mulf %405, %404 : vector<2x16x16xf32>
    %407 = arith.addf %387, %406 : vector<2x16x16xf32>
    %c65 = arith.constant 65 : index
    %408 = memref.load %arg1[%c65] : memref<98xf32, #tpu.memory_space<smem>>
    %409 = vector.extract_strided_slice %78 {offsets = [0, 2, 2], sizes = [2, 16, 16], strides = [1, 1, 1]} : vector<2x22x22xf32> to vector<2x16x16xf32>
    %410 = vector.broadcast %408 : f32 to vector<2x16x16xf32>
    %411 = arith.mulf %410, %409 : vector<2x16x16xf32>
    %412 = arith.addf %392, %411 : vector<2x16x16xf32>
    %c66 = arith.constant 66 : index
    %413 = memref.load %arg1[%c66] : memref<98xf32, #tpu.memory_space<smem>>
    %414 = vector.extract_strided_slice %78 {offsets = [0, 2, 3], sizes = [2, 16, 16], strides = [1, 1, 1]} : vector<2x22x22xf32> to vector<2x16x16xf32>
    %415 = vector.broadcast %413 : f32 to vector<2x16x16xf32>
    %416 = arith.mulf %415, %414 : vector<2x16x16xf32>
    %417 = arith.addf %397, %416 : vector<2x16x16xf32>
    %c67 = arith.constant 67 : index
    %418 = memref.load %arg1[%c67] : memref<98xf32, #tpu.memory_space<smem>>
    %419 = vector.extract_strided_slice %78 {offsets = [0, 2, 4], sizes = [2, 16, 16], strides = [1, 1, 1]} : vector<2x22x22xf32> to vector<2x16x16xf32>
    %420 = vector.broadcast %418 : f32 to vector<2x16x16xf32>
    %421 = arith.mulf %420, %419 : vector<2x16x16xf32>
    %422 = arith.addf %402, %421 : vector<2x16x16xf32>
    %c68 = arith.constant 68 : index
    %423 = memref.load %arg1[%c68] : memref<98xf32, #tpu.memory_space<smem>>
    %424 = vector.extract_strided_slice %78 {offsets = [0, 2, 5], sizes = [2, 16, 16], strides = [1, 1, 1]} : vector<2x22x22xf32> to vector<2x16x16xf32>
    %425 = vector.broadcast %423 : f32 to vector<2x16x16xf32>
    %426 = arith.mulf %425, %424 : vector<2x16x16xf32>
    %427 = arith.addf %407, %426 : vector<2x16x16xf32>
    %c69 = arith.constant 69 : index
    %428 = memref.load %arg1[%c69] : memref<98xf32, #tpu.memory_space<smem>>
    %429 = vector.extract_strided_slice %78 {offsets = [0, 2, 6], sizes = [2, 16, 16], strides = [1, 1, 1]} : vector<2x22x22xf32> to vector<2x16x16xf32>
    %430 = vector.broadcast %428 : f32 to vector<2x16x16xf32>
    %431 = arith.mulf %430, %429 : vector<2x16x16xf32>
    %432 = arith.addf %412, %431 : vector<2x16x16xf32>
    %c70 = arith.constant 70 : index
    %433 = memref.load %arg1[%c70] : memref<98xf32, #tpu.memory_space<smem>>
    %434 = vector.extract_strided_slice %78 {offsets = [0, 3, 0], sizes = [2, 16, 16], strides = [1, 1, 1]} : vector<2x22x22xf32> to vector<2x16x16xf32>
    %435 = vector.broadcast %433 : f32 to vector<2x16x16xf32>
    %436 = arith.mulf %435, %434 : vector<2x16x16xf32>
    %437 = arith.addf %417, %436 : vector<2x16x16xf32>
    %c71 = arith.constant 71 : index
    %438 = memref.load %arg1[%c71] : memref<98xf32, #tpu.memory_space<smem>>
    %439 = vector.extract_strided_slice %78 {offsets = [0, 3, 1], sizes = [2, 16, 16], strides = [1, 1, 1]} : vector<2x22x22xf32> to vector<2x16x16xf32>
    %440 = vector.broadcast %438 : f32 to vector<2x16x16xf32>
    %441 = arith.mulf %440, %439 : vector<2x16x16xf32>
    %442 = arith.addf %422, %441 : vector<2x16x16xf32>
    %c72 = arith.constant 72 : index
    %443 = memref.load %arg1[%c72] : memref<98xf32, #tpu.memory_space<smem>>
    %444 = vector.extract_strided_slice %78 {offsets = [0, 3, 2], sizes = [2, 16, 16], strides = [1, 1, 1]} : vector<2x22x22xf32> to vector<2x16x16xf32>
    %445 = vector.broadcast %443 : f32 to vector<2x16x16xf32>
    %446 = arith.mulf %445, %444 : vector<2x16x16xf32>
    %447 = arith.addf %427, %446 : vector<2x16x16xf32>
    %c73 = arith.constant 73 : index
    %448 = memref.load %arg1[%c73] : memref<98xf32, #tpu.memory_space<smem>>
    %449 = vector.extract_strided_slice %78 {offsets = [0, 3, 3], sizes = [2, 16, 16], strides = [1, 1, 1]} : vector<2x22x22xf32> to vector<2x16x16xf32>
    %450 = vector.broadcast %448 : f32 to vector<2x16x16xf32>
    %451 = arith.mulf %450, %449 : vector<2x16x16xf32>
    %452 = arith.addf %432, %451 : vector<2x16x16xf32>
    %c74 = arith.constant 74 : index
    %453 = memref.load %arg1[%c74] : memref<98xf32, #tpu.memory_space<smem>>
    %454 = vector.extract_strided_slice %78 {offsets = [0, 3, 4], sizes = [2, 16, 16], strides = [1, 1, 1]} : vector<2x22x22xf32> to vector<2x16x16xf32>
    %455 = vector.broadcast %453 : f32 to vector<2x16x16xf32>
    %456 = arith.mulf %455, %454 : vector<2x16x16xf32>
    %457 = arith.addf %437, %456 : vector<2x16x16xf32>
    %c75 = arith.constant 75 : index
    %458 = memref.load %arg1[%c75] : memref<98xf32, #tpu.memory_space<smem>>
    %459 = vector.extract_strided_slice %78 {offsets = [0, 3, 5], sizes = [2, 16, 16], strides = [1, 1, 1]} : vector<2x22x22xf32> to vector<2x16x16xf32>
    %460 = vector.broadcast %458 : f32 to vector<2x16x16xf32>
    %461 = arith.mulf %460, %459 : vector<2x16x16xf32>
    %462 = arith.addf %442, %461 : vector<2x16x16xf32>
    %c76 = arith.constant 76 : index
    %463 = memref.load %arg1[%c76] : memref<98xf32, #tpu.memory_space<smem>>
    %464 = vector.extract_strided_slice %78 {offsets = [0, 3, 6], sizes = [2, 16, 16], strides = [1, 1, 1]} : vector<2x22x22xf32> to vector<2x16x16xf32>
    %465 = vector.broadcast %463 : f32 to vector<2x16x16xf32>
    %466 = arith.mulf %465, %464 : vector<2x16x16xf32>
    %467 = arith.addf %447, %466 : vector<2x16x16xf32>
    %c77 = arith.constant 77 : index
    %468 = memref.load %arg1[%c77] : memref<98xf32, #tpu.memory_space<smem>>
    %469 = vector.extract_strided_slice %78 {offsets = [0, 4, 0], sizes = [2, 16, 16], strides = [1, 1, 1]} : vector<2x22x22xf32> to vector<2x16x16xf32>
    %470 = vector.broadcast %468 : f32 to vector<2x16x16xf32>
    %471 = arith.mulf %470, %469 : vector<2x16x16xf32>
    %472 = arith.addf %452, %471 : vector<2x16x16xf32>
    %c78 = arith.constant 78 : index
    %473 = memref.load %arg1[%c78] : memref<98xf32, #tpu.memory_space<smem>>
    %474 = vector.extract_strided_slice %78 {offsets = [0, 4, 1], sizes = [2, 16, 16], strides = [1, 1, 1]} : vector<2x22x22xf32> to vector<2x16x16xf32>
    %475 = vector.broadcast %473 : f32 to vector<2x16x16xf32>
    %476 = arith.mulf %475, %474 : vector<2x16x16xf32>
    %477 = arith.addf %457, %476 : vector<2x16x16xf32>
    %c79 = arith.constant 79 : index
    %478 = memref.load %arg1[%c79] : memref<98xf32, #tpu.memory_space<smem>>
    %479 = vector.extract_strided_slice %78 {offsets = [0, 4, 2], sizes = [2, 16, 16], strides = [1, 1, 1]} : vector<2x22x22xf32> to vector<2x16x16xf32>
    %480 = vector.broadcast %478 : f32 to vector<2x16x16xf32>
    %481 = arith.mulf %480, %479 : vector<2x16x16xf32>
    %482 = arith.addf %462, %481 : vector<2x16x16xf32>
    %c80 = arith.constant 80 : index
    %483 = memref.load %arg1[%c80] : memref<98xf32, #tpu.memory_space<smem>>
    %484 = vector.extract_strided_slice %78 {offsets = [0, 4, 3], sizes = [2, 16, 16], strides = [1, 1, 1]} : vector<2x22x22xf32> to vector<2x16x16xf32>
    %485 = vector.broadcast %483 : f32 to vector<2x16x16xf32>
    %486 = arith.mulf %485, %484 : vector<2x16x16xf32>
    %487 = arith.addf %467, %486 : vector<2x16x16xf32>
    %c81 = arith.constant 81 : index
    %488 = memref.load %arg1[%c81] : memref<98xf32, #tpu.memory_space<smem>>
    %489 = vector.extract_strided_slice %78 {offsets = [0, 4, 4], sizes = [2, 16, 16], strides = [1, 1, 1]} : vector<2x22x22xf32> to vector<2x16x16xf32>
    %490 = vector.broadcast %488 : f32 to vector<2x16x16xf32>
    %491 = arith.mulf %490, %489 : vector<2x16x16xf32>
    %492 = arith.addf %472, %491 : vector<2x16x16xf32>
    %c82 = arith.constant 82 : index
    %493 = memref.load %arg1[%c82] : memref<98xf32, #tpu.memory_space<smem>>
    %494 = vector.extract_strided_slice %78 {offsets = [0, 4, 5], sizes = [2, 16, 16], strides = [1, 1, 1]} : vector<2x22x22xf32> to vector<2x16x16xf32>
    %495 = vector.broadcast %493 : f32 to vector<2x16x16xf32>
    %496 = arith.mulf %495, %494 : vector<2x16x16xf32>
    %497 = arith.addf %477, %496 : vector<2x16x16xf32>
    %c83 = arith.constant 83 : index
    %498 = memref.load %arg1[%c83] : memref<98xf32, #tpu.memory_space<smem>>
    %499 = vector.extract_strided_slice %78 {offsets = [0, 4, 6], sizes = [2, 16, 16], strides = [1, 1, 1]} : vector<2x22x22xf32> to vector<2x16x16xf32>
    %500 = vector.broadcast %498 : f32 to vector<2x16x16xf32>
    %501 = arith.mulf %500, %499 : vector<2x16x16xf32>
    %502 = arith.addf %482, %501 : vector<2x16x16xf32>
    %c84 = arith.constant 84 : index
    %503 = memref.load %arg1[%c84] : memref<98xf32, #tpu.memory_space<smem>>
    %504 = vector.extract_strided_slice %78 {offsets = [0, 5, 0], sizes = [2, 16, 16], strides = [1, 1, 1]} : vector<2x22x22xf32> to vector<2x16x16xf32>
    %505 = vector.broadcast %503 : f32 to vector<2x16x16xf32>
    %506 = arith.mulf %505, %504 : vector<2x16x16xf32>
    %507 = arith.addf %487, %506 : vector<2x16x16xf32>
    %c85 = arith.constant 85 : index
    %508 = memref.load %arg1[%c85] : memref<98xf32, #tpu.memory_space<smem>>
    %509 = vector.extract_strided_slice %78 {offsets = [0, 5, 1], sizes = [2, 16, 16], strides = [1, 1, 1]} : vector<2x22x22xf32> to vector<2x16x16xf32>
    %510 = vector.broadcast %508 : f32 to vector<2x16x16xf32>
    %511 = arith.mulf %510, %509 : vector<2x16x16xf32>
    %512 = arith.addf %492, %511 : vector<2x16x16xf32>
    %c86 = arith.constant 86 : index
    %513 = memref.load %arg1[%c86] : memref<98xf32, #tpu.memory_space<smem>>
    %514 = vector.extract_strided_slice %78 {offsets = [0, 5, 2], sizes = [2, 16, 16], strides = [1, 1, 1]} : vector<2x22x22xf32> to vector<2x16x16xf32>
    %515 = vector.broadcast %513 : f32 to vector<2x16x16xf32>
    %516 = arith.mulf %515, %514 : vector<2x16x16xf32>
    %517 = arith.addf %497, %516 : vector<2x16x16xf32>
    %c87 = arith.constant 87 : index
    %518 = memref.load %arg1[%c87] : memref<98xf32, #tpu.memory_space<smem>>
    %519 = vector.extract_strided_slice %78 {offsets = [0, 5, 3], sizes = [2, 16, 16], strides = [1, 1, 1]} : vector<2x22x22xf32> to vector<2x16x16xf32>
    %520 = vector.broadcast %518 : f32 to vector<2x16x16xf32>
    %521 = arith.mulf %520, %519 : vector<2x16x16xf32>
    %522 = arith.addf %502, %521 : vector<2x16x16xf32>
    %c88 = arith.constant 88 : index
    %523 = memref.load %arg1[%c88] : memref<98xf32, #tpu.memory_space<smem>>
    %524 = vector.extract_strided_slice %78 {offsets = [0, 5, 4], sizes = [2, 16, 16], strides = [1, 1, 1]} : vector<2x22x22xf32> to vector<2x16x16xf32>
    %525 = vector.broadcast %523 : f32 to vector<2x16x16xf32>
    %526 = arith.mulf %525, %524 : vector<2x16x16xf32>
    %527 = arith.addf %507, %526 : vector<2x16x16xf32>
    %c89 = arith.constant 89 : index
    %528 = memref.load %arg1[%c89] : memref<98xf32, #tpu.memory_space<smem>>
    %529 = vector.extract_strided_slice %78 {offsets = [0, 5, 5], sizes = [2, 16, 16], strides = [1, 1, 1]} : vector<2x22x22xf32> to vector<2x16x16xf32>
    %530 = vector.broadcast %528 : f32 to vector<2x16x16xf32>
    %531 = arith.mulf %530, %529 : vector<2x16x16xf32>
    %532 = arith.addf %512, %531 : vector<2x16x16xf32>
    %c90 = arith.constant 90 : index
    %533 = memref.load %arg1[%c90] : memref<98xf32, #tpu.memory_space<smem>>
    %534 = vector.extract_strided_slice %78 {offsets = [0, 5, 6], sizes = [2, 16, 16], strides = [1, 1, 1]} : vector<2x22x22xf32> to vector<2x16x16xf32>
    %535 = vector.broadcast %533 : f32 to vector<2x16x16xf32>
    %536 = arith.mulf %535, %534 : vector<2x16x16xf32>
    %537 = arith.addf %517, %536 : vector<2x16x16xf32>
    %c91 = arith.constant 91 : index
    %538 = memref.load %arg1[%c91] : memref<98xf32, #tpu.memory_space<smem>>
    %539 = vector.extract_strided_slice %78 {offsets = [0, 6, 0], sizes = [2, 16, 16], strides = [1, 1, 1]} : vector<2x22x22xf32> to vector<2x16x16xf32>
    %540 = vector.broadcast %538 : f32 to vector<2x16x16xf32>
    %541 = arith.mulf %540, %539 : vector<2x16x16xf32>
    %542 = arith.addf %522, %541 : vector<2x16x16xf32>
    %c92 = arith.constant 92 : index
    %543 = memref.load %arg1[%c92] : memref<98xf32, #tpu.memory_space<smem>>
    %544 = vector.extract_strided_slice %78 {offsets = [0, 6, 1], sizes = [2, 16, 16], strides = [1, 1, 1]} : vector<2x22x22xf32> to vector<2x16x16xf32>
    %545 = vector.broadcast %543 : f32 to vector<2x16x16xf32>
    %546 = arith.mulf %545, %544 : vector<2x16x16xf32>
    %547 = arith.addf %527, %546 : vector<2x16x16xf32>
    %c93 = arith.constant 93 : index
    %548 = memref.load %arg1[%c93] : memref<98xf32, #tpu.memory_space<smem>>
    %549 = vector.extract_strided_slice %78 {offsets = [0, 6, 2], sizes = [2, 16, 16], strides = [1, 1, 1]} : vector<2x22x22xf32> to vector<2x16x16xf32>
    %550 = vector.broadcast %548 : f32 to vector<2x16x16xf32>
    %551 = arith.mulf %550, %549 : vector<2x16x16xf32>
    %552 = arith.addf %532, %551 : vector<2x16x16xf32>
    %c94 = arith.constant 94 : index
    %553 = memref.load %arg1[%c94] : memref<98xf32, #tpu.memory_space<smem>>
    %554 = vector.extract_strided_slice %78 {offsets = [0, 6, 3], sizes = [2, 16, 16], strides = [1, 1, 1]} : vector<2x22x22xf32> to vector<2x16x16xf32>
    %555 = vector.broadcast %553 : f32 to vector<2x16x16xf32>
    %556 = arith.mulf %555, %554 : vector<2x16x16xf32>
    %557 = arith.addf %537, %556 : vector<2x16x16xf32>
    %c95 = arith.constant 95 : index
    %558 = memref.load %arg1[%c95] : memref<98xf32, #tpu.memory_space<smem>>
    %559 = vector.extract_strided_slice %78 {offsets = [0, 6, 4], sizes = [2, 16, 16], strides = [1, 1, 1]} : vector<2x22x22xf32> to vector<2x16x16xf32>
    %560 = vector.broadcast %558 : f32 to vector<2x16x16xf32>
    %561 = arith.mulf %560, %559 : vector<2x16x16xf32>
    %562 = arith.addf %542, %561 : vector<2x16x16xf32>
    %c96 = arith.constant 96 : index
    %563 = memref.load %arg1[%c96] : memref<98xf32, #tpu.memory_space<smem>>
    %564 = vector.extract_strided_slice %78 {offsets = [0, 6, 5], sizes = [2, 16, 16], strides = [1, 1, 1]} : vector<2x22x22xf32> to vector<2x16x16xf32>
    %565 = vector.broadcast %563 : f32 to vector<2x16x16xf32>
    %566 = arith.mulf %565, %564 : vector<2x16x16xf32>
    %567 = arith.addf %547, %566 : vector<2x16x16xf32>
    %c97 = arith.constant 97 : index
    %568 = memref.load %arg1[%c97] : memref<98xf32, #tpu.memory_space<smem>>
    %569 = vector.extract_strided_slice %78 {offsets = [0, 6, 6], sizes = [2, 16, 16], strides = [1, 1, 1]} : vector<2x22x22xf32> to vector<2x16x16xf32>
    %570 = vector.broadcast %568 : f32 to vector<2x16x16xf32>
    %571 = arith.mulf %570, %569 : vector<2x16x16xf32>
    %572 = arith.addf %552, %571 : vector<2x16x16xf32>
    %573 = arith.addf %567, %572 : vector<2x16x16xf32>
    %574 = arith.addf %557, %562 : vector<2x16x16xf32>
    %575 = arith.addf %573, %574 : vector<2x16x16xf32>
    %576 = vector.shape_cast %575 : vector<2x16x16xf32> to vector<1x2x16x16xf32>
    %cst_13 = arith.constant dense<0.000000e+00> : vector<1xf32>
    %577 = vector.multi_reduction <add>, %576, %cst_13 [1, 2, 3] : vector<1x2x16x16xf32> to vector<1xf32>
    %578 = vector.shape_cast %577 : vector<1xf32> to vector<1x1x1x1xf32>
    %579 = vector.extract %578[0, 0, 0, 0] : f32 from vector<1x1x1x1xf32>
    %cst_14 = arith.constant 5.120000e+02 : f32
    %580 = arith.divf %579, %cst_14 : f32
    %581 = vector.broadcast %580 : f32 to vector<2x16x16xf32>
    %582 = arith.subf %575, %581 : vector<2x16x16xf32>
    %583 = arith.mulf %582, %582 : vector<2x16x16xf32>
    %584 = vector.shape_cast %583 : vector<2x16x16xf32> to vector<1x2x16x16xf32>
    %cst_15 = arith.constant dense<0.000000e+00> : vector<1xf32>
    %585 = vector.multi_reduction <add>, %584, %cst_15 [1, 2, 3] : vector<1x2x16x16xf32> to vector<1xf32>
    %586 = vector.shape_cast %585 : vector<1xf32> to vector<1x1x1x1xf32>
    %587 = vector.extract %586[0, 0, 0, 0] : f32 from vector<1x1x1x1xf32>
    %cst_16 = arith.constant 5.120000e+02 : f32
    %588 = arith.divf %587, %cst_16 : f32
    %589 = vector.broadcast %580 : f32 to vector<2x16x16xf32>
    %590 = arith.subf %575, %589 : vector<2x16x16xf32>
    %cst_17 = arith.constant 9.99999974E-6 : f32
    %591 = arith.addf %588, %cst_17 : f32
    %592 = math.rsqrt %591 : f32
    %593 = vector.broadcast %592 : f32 to vector<2x16x16xf32>
    %594 = arith.mulf %590, %593 : vector<2x16x16xf32>
    %c0_18 = arith.constant 0 : index
    %595 = memref.load %arg2[%c0_18] : memref<2xf32, #tpu.memory_space<smem>>
    %596 = vector.broadcast %595 : f32 to vector<2x16x16xf32>
    %597 = arith.mulf %594, %596 : vector<2x16x16xf32>
    %c1_19 = arith.constant 1 : index
    %598 = memref.load %arg2[%c1_19] : memref<2xf32, #tpu.memory_space<smem>>
    %599 = vector.broadcast %598 : f32 to vector<2x16x16xf32>
    %600 = arith.addf %597, %599 : vector<2x16x16xf32>
    %601 = arith.negf %600 : vector<2x16x16xf32>
    %602 = math.exp %601 : vector<2x16x16xf32>
    %cst_20 = arith.constant 1.000000e+00 : f32
    %603 = vector.broadcast %cst_20 : f32 to vector<2x16x16xf32>
    %604 = arith.addf %603, %602 : vector<2x16x16xf32>
    %605 = arith.divf %603, %604 : vector<2x16x16xf32>
    %606 = vector.extract_strided_slice %605 {offsets = [0, 0, 0], sizes = [2, 1, 16], strides = [1, 1, 1]} : vector<2x16x16xf32> to vector<2x1x16xf32>
    %607 = vector.shape_cast %606 : vector<2x1x16xf32> to vector<2x16xf32>
    %608 = vector.extract_strided_slice %605 {offsets = [0, 1, 0], sizes = [2, 1, 16], strides = [1, 1, 1]} : vector<2x16x16xf32> to vector<2x1x16xf32>
    %609 = vector.shape_cast %608 : vector<2x1x16xf32> to vector<2x16xf32>
    %610 = vector.extract_strided_slice %605 {offsets = [0, 2, 0], sizes = [2, 1, 16], strides = [1, 1, 1]} : vector<2x16x16xf32> to vector<2x1x16xf32>
    %611 = vector.shape_cast %610 : vector<2x1x16xf32> to vector<2x16xf32>
    %612 = vector.extract_strided_slice %605 {offsets = [0, 3, 0], sizes = [2, 1, 16], strides = [1, 1, 1]} : vector<2x16x16xf32> to vector<2x1x16xf32>
    %613 = vector.shape_cast %612 : vector<2x1x16xf32> to vector<2x16xf32>
    %614 = vector.extract_strided_slice %605 {offsets = [0, 4, 0], sizes = [2, 1, 16], strides = [1, 1, 1]} : vector<2x16x16xf32> to vector<2x1x16xf32>
    %615 = vector.shape_cast %614 : vector<2x1x16xf32> to vector<2x16xf32>
    %616 = vector.extract_strided_slice %605 {offsets = [0, 5, 0], sizes = [2, 1, 16], strides = [1, 1, 1]} : vector<2x16x16xf32> to vector<2x1x16xf32>
    %617 = vector.shape_cast %616 : vector<2x1x16xf32> to vector<2x16xf32>
    %618 = vector.extract_strided_slice %605 {offsets = [0, 6, 0], sizes = [2, 1, 16], strides = [1, 1, 1]} : vector<2x16x16xf32> to vector<2x1x16xf32>
    %619 = vector.shape_cast %618 : vector<2x1x16xf32> to vector<2x16xf32>
    %620 = vector.extract_strided_slice %605 {offsets = [0, 7, 0], sizes = [2, 1, 16], strides = [1, 1, 1]} : vector<2x16x16xf32> to vector<2x1x16xf32>
    %621 = vector.shape_cast %620 : vector<2x1x16xf32> to vector<2x16xf32>
    %622 = vector.extract_strided_slice %605 {offsets = [0, 8, 0], sizes = [2, 1, 16], strides = [1, 1, 1]} : vector<2x16x16xf32> to vector<2x1x16xf32>
    %623 = vector.shape_cast %622 : vector<2x1x16xf32> to vector<2x16xf32>
    %624 = vector.extract_strided_slice %605 {offsets = [0, 9, 0], sizes = [2, 1, 16], strides = [1, 1, 1]} : vector<2x16x16xf32> to vector<2x1x16xf32>
    %625 = vector.shape_cast %624 : vector<2x1x16xf32> to vector<2x16xf32>
    %626 = vector.extract_strided_slice %605 {offsets = [0, 10, 0], sizes = [2, 1, 16], strides = [1, 1, 1]} : vector<2x16x16xf32> to vector<2x1x16xf32>
    %627 = vector.shape_cast %626 : vector<2x1x16xf32> to vector<2x16xf32>
    %628 = vector.extract_strided_slice %605 {offsets = [0, 11, 0], sizes = [2, 1, 16], strides = [1, 1, 1]} : vector<2x16x16xf32> to vector<2x1x16xf32>
    %629 = vector.shape_cast %628 : vector<2x1x16xf32> to vector<2x16xf32>
    %630 = vector.extract_strided_slice %605 {offsets = [0, 12, 0], sizes = [2, 1, 16], strides = [1, 1, 1]} : vector<2x16x16xf32> to vector<2x1x16xf32>
    %631 = vector.shape_cast %630 : vector<2x1x16xf32> to vector<2x16xf32>
    %632 = vector.extract_strided_slice %605 {offsets = [0, 13, 0], sizes = [2, 1, 16], strides = [1, 1, 1]} : vector<2x16x16xf32> to vector<2x1x16xf32>
    %633 = vector.shape_cast %632 : vector<2x1x16xf32> to vector<2x16xf32>
    %634 = vector.extract_strided_slice %605 {offsets = [0, 14, 0], sizes = [2, 1, 16], strides = [1, 1, 1]} : vector<2x16x16xf32> to vector<2x1x16xf32>
    %635 = vector.shape_cast %634 : vector<2x1x16xf32> to vector<2x16xf32>
    %636 = vector.extract_strided_slice %605 {offsets = [0, 15, 0], sizes = [2, 1, 16], strides = [1, 1, 1]} : vector<2x16x16xf32> to vector<2x1x16xf32>
    %637 = vector.shape_cast %636 : vector<2x1x16xf32> to vector<2x16xf32>
    %638 = tpu.concatenate %607, %609, %611, %613, %615, %617, %619, %621, %623, %625, %627, %629, %631, %633, %635, %637 in 1 : vector<2x16xf32>, vector<2x16xf32>, vector<2x16xf32>, vector<2x16xf32>, vector<2x16xf32>, vector<2x16xf32>, vector<2x16xf32>, vector<2x16xf32>, vector<2x16xf32>, vector<2x16xf32>, vector<2x16xf32>, vector<2x16xf32>, vector<2x16xf32>, vector<2x16xf32>, vector<2x16xf32>, vector<2x16xf32> -> vector<2x256xf32>
    %639 = vector.shape_cast %638 : vector<2x256xf32> to vector<2x1x256xf32>
    "tpu.trace_start"() <{level = 10 : i32, message = "bms,bcs->bmc"}> : () -> ()
    %cst_21 = arith.constant dense<0.000000e+00> : vector<2x1x64xf32>
    %640 = tpu.matmul %639, %0, %cst_21 {dimension_numbers = #tpu.dot_dimension_numbers<[2], [2], [1], [1], [0, 0, 0, 1, 1, 1], [0], [0]>} : vector<2x1x256xf32>, vector<2x64x256xf32>, vector<2x1x64xf32> -> vector<2x1x64xf32>
    "tpu.trace_stop"() : () -> ()
    %641 = vector.shape_cast %640 : vector<2x1x64xf32> to vector<2x64xf32>
    %cst_22 = arith.constant 3.906250e-03 : f32
    %642 = vector.broadcast %cst_22 : f32 to vector<2x64xf32>
    %643 = arith.mulf %641, %642 : vector<2x64xf32>
    %c0_23 = arith.constant 0 : index
    %c0_24 = arith.constant 0 : index
    %644 = vector.load %arg3[%c0_23, %c0_24] : memref<64x5xf32, #tpu.memory_space<vmem>>, vector<64x5xf32>
    %cst_25 = arith.constant dense<0.000000e+00> : vector<2x5xf32>
    %645 = tpu.matmul %643, %644, %cst_25 {dimension_numbers = #tpu.dot_dimension_numbers<[1], [0], [0], [1], [0, 0, 1, 1], [], []>} : vector<2x64xf32>, vector<64x5xf32>, vector<2x5xf32> -> vector<2x5xf32>
    %c0_26 = arith.constant 0 : index
    %c0_27 = arith.constant 0 : index
    %646 = vector.load %arg4[%c0_26, %c0_27] : memref<1x5xf32, #tpu.memory_space<vmem>>, vector<1x5xf32>
    %647 = vector.broadcast %646 : vector<1x5xf32> to vector<2x5xf32>
    %648 = arith.addf %645, %647 : vector<2x5xf32>
    %649 = arith.negf %648 : vector<2x5xf32>
    %650 = math.exp %649 : vector<2x5xf32>
    %cst_28 = arith.constant 1.000000e+00 : f32
    %651 = vector.broadcast %cst_28 : f32 to vector<2x5xf32>
    %652 = arith.addf %651, %650 : vector<2x5xf32>
    %653 = arith.divf %651, %652 : vector<2x5xf32>
    %c0_29 = arith.constant 0 : index
    %c0_30 = arith.constant 0 : index
    %654 = vector.load %arg5[%c0_29, %c0_30] : memref<2x5xf32, #tpu.memory_space<vmem>>, vector<2x5xf32>
    tpu.vector_store %arg5[%c0_29, %c0_30], %653 {strides = array<i32>} : memref<2x5xf32, #tpu.memory_space<vmem>>, vector<2x5xf32>,
    return
  }
}

</mosaic_0001>

<bundles_post_ra>
// kernel: tpu_custom_call.1
= control target key start
LH: loop header
LB: loop body
LE: loop exit
PB: predicated region body
PF: predicated region fallthrough
CT: control target
= control target key end

     0   :  { %10 = vsyncpa [#allocation3], 0  ;;  %s8723_s0 = inlined_call_operand.hbm [shape: f32[2,64,256], index: 0, kind: input, shape index: {}]   ;;  %s8724_s1 = inlined_call_operand.vmem [shape: f32[98], index: 1, kind: input, shape index: {}]   ;;  %s8725_s2 = inlined_call_operand.vmem [shape: f32[2], index: 2, kind: input, shape index: {}]   ;;  %s8726_s3 = inlined_call_operand.vmem [shape: f32[64,5], index: 3, kind: input, shape index: {}]   ;;  %s8727_s4 = inlined_call_operand.vmem [shape: f32[1,5], index: 4, kind: input, shape index: {}]   ;;  %s8728_s5 = inlined_call_operand.hbm [shape: f32[2,5], index: 5, kind: output, shape index: {}]  }
   0x1   :  { %11 = vsyncpa [#allocation5], 0 }
   0x2   :  { %12 = vsyncpa [#allocation8], 0 }
   0x3   :  { %13 = vsyncpa [#allocation4], 0  ;;  %s5001_s18 = smov [#allocation2]   ;;  %s32_s22 = sshll.u32 %s8724_s1, 4  ;;  %s33_s22 = int_to_ptr.vmem [resolvable:$true] %s32_s22 }
   0x4   :  { %s19_s19 = sshll.u32 %s5001_s18, 4  ;;  %s4925_s25 = scalar_lea.hbm %s8723_s0, 4096  ;;  %s20_s19 = int_to_ptr.vmem [resolvable:$true] %s19_s19 }
   0x5   :  { %p4926_p0 = scmp.ne.s32.totalorder %s8723_s0, %s4925_s25  ;;  %p4929_p1 = scmp.lt.u32.totalorder %s4925_s25, %s8723_s0 }
   0x7   :  { %p4931_p2 = pnand %p4929_p1, %p4926_p0 }
   0x9   :  { %4934 = shalt.err (!%p4931_p2)
}
   0xa   :  { %s4935_s30 = scalar_lea.vmem %s20_s19, 4096  ;;  %p4940_p4 = scmp.lt.s32.totalorder %s20_s19, %s20_s19 }
   0xb   :  { %p4936_p3 = scmp.ne.s32.totalorder %s20_s19, %s4935_s30  ;;  %p4941_p5 = scmp.lt.s32.totalorder %s4935_s30, %s4935_s30 }
   0xd   :  { %p4942_p6 = por %p4941_p5, %p4940_p4 }
   0xf   :  { %p4943_p7 = pnand %p4942_p6, %p4936_p3 }
  0x11   :  { %4946 = shalt.err (!%p4943_p7)
}
  0x12   :  { %s5002_s1 = smov 256   ;;  %s5003_s6 = smov 16  }
  0x13   :  { %25 = dma.hbm_to_vmem [thread:$0]  %s8723_s0, 4096, %s20_s19, [#allocation3], %s5002_s1, %s5002_s1, %s5003_s6  }
  0x14   :  { %s4947_s9 = scalar_lea.vmem %s33_s22, 16  ;;  %p4952_p9 = scmp.lt.s32.totalorder %s33_s22, %s33_s22 }
  0x15   :  { %p4948_p8 = scmp.ne.s32.totalorder %s33_s22, %s4947_s9  ;;  %p4953_p10 = scmp.lt.s32.totalorder %s4947_s9, %s4947_s9 }
  0x17   :  { %p4954_p11 = por %p4953_p10, %p4952_p9 }
  0x19   :  { %p4955_p12 = pnand %p4954_p11, %p4948_p8 }
  0x1b   :  { %4958 = shalt.err (!%p4955_p12)
}
  0x1c   :  { %s5004_s10 = smov [#allocation6]   ;;  %s42_s13 = sshll.u32 %s8725_s2, 4  ;;  %s43_s13 = int_to_ptr.vmem [resolvable:$true] %s42_s13 }
  0x1d   :  { %35 = dma.vmem_to_smem %s33_s22, 16, %s5004_s10, [#allocation5]  }
  0x1e   :  { %s4959_s14 = scalar_lea.vmem %s43_s13, 16  ;;  %p4964_p0 = scmp.lt.s32.totalorder %s43_s13, %s43_s13 }
  0x1f   :  { %p4960_p13 = scmp.ne.s32.totalorder %s43_s13, %s4959_s14  ;;  %p4965_p1 = scmp.lt.s32.totalorder %s4959_s14, %s4959_s14 }
  0x21   :  { %p4966_p2 = por %p4965_p1, %p4964_p0 }
  0x23   :  { %p4967_p3 = pnand %p4966_p2, %p4960_p13 }
  0x25   :  { %4970 = shalt.err (!%p4967_p3)
}
  0x26   :  { %s5005_s0 = smov [#allocation7]  }
  0x27   :  { %45 = dma.vmem_to_smem %s43_s13, 16, %s5005_s0, [#allocation8]  }
  0x28   :  { %4993 = dma.done.wait [#allocation3], 4096  }
  0x29   :  { %4994 = vsyncadd [#allocation3], 4294963200 }
  0x2a   :  { %4995 = dma.done.wait [#allocation5], 16  }
  0x2b   :  { %4996 = vsyncadd [#allocation5], 4294967280 }
  0x2c   :  { %4997 = dma.done.wait [#allocation8], 16  }
  0x2d   :  { %4998 = vsyncadd [#allocation8], 4294967280 }
  0x2e   :  { %59 = sfence }
  0x2f   :  { %v5075_v0 = vld [vmem:[#allocation2] sm:$0xff]  ;;  %v5077_v1 = vld [vmem:[#allocation2 + $0x10] sm:$0xff]  ;;  %v5085_v5 = vld [vmem:[#allocation2 + $0x8] sm:$0xff]  ;;  %s5006_s2 = smov 96   ;;  %s5007_s15 = smov 112   ;;  %vm289_vm0 = vcmask 1040384  }
  0x30   :  { %v5079_v2 = vld [vmem:[#allocation2 + $0x20] sm:$0xff]  ;;  %v92_v3 = vadd.f32 %v5077_v1, %v5075_v0  ;;  %v5083_v4 = vld [vmem:[#allocation2 + $0x30] sm:$0xff]  ;;  %v5088_v7 = vld [vmem:[#allocation2 + $0x18] sm:$0xff]  ;;  %s5008_s16 = smov 80   ;;  %s5009_s17 = smov 64   ;;  %vm292_vm1 = vcmask 1041408  }
  0x31   :  { %v5090_v8 = vld [vmem:[#allocation2 + $0x28] sm:$0xff]  ;;  %v5092_v9 = vld [vmem:[#allocation2 + $0x40] sm:$0xff]  ;;  %v105_v10 = vadd.f32 %v5088_v7, %v5085_v5  ;;  %v5097_v12 = vld [vmem:[#allocation2 + $0x38] sm:$0xff]  ;;  %s5010_s18 = smov 48   ;;  %s5011_s19 = smov 32   ;;  %vm295_vm2 = vcmask 1042432  }
  0x32   :  { %v93_v6 = vadd.f32 %v92_v3, %v5079_v2  ;;  %v5099_v13 = vld [vmem:[#allocation2 + $0x80] sm:$0xff]  ;;  %v5101_v14 = vld [vmem:[#allocation2 + $0x90] sm:$0xff]  ;;  %v5113_v21 = vld [vmem:[#allocation2 + $0x48] sm:$0xff]  ;;  %vm298_vm3 = vcmask 1043456   ;;  %vm301_vm4 = vcmask 1044480   ;;  %vm304_vm5 = vcmask 1045504  }
  0x33   :  { %v5103_v15 = vld [vmem:[#allocation2 + $0x50] sm:$0xff]  ;;  %v106_v16 = vadd.f32 %v105_v10, %v5090_v8  ;;  %v5106_v17 = vld [vmem:[#allocation2 + $0xa0] sm:$0xff]  ;;  %v118_v18 = vadd.f32 %v5101_v14, %v5099_v13  ;;  %v5119_v25 = vld [vmem:[#allocation2 + $0x88] sm:$0xff]  ;;  %vm307_vm6 = vcmask 1046528   ;;  %s5012_s20 = smov 3   ;;  %s4713_s21 = sld [smem:[#allocation6 + $0x33]] }
  0x34   :  { %v94_v11 = vadd.f32 %v93_v6, %v5083_v4  ;;  %v5110_v19 = vld [vmem:[#allocation2 + $0x60] sm:$0xff]  ;;  %v5115_v22 = vld [vmem:[#allocation2 + $0xb0] sm:$0xff]  ;;  %v5121_v26 = vld [vmem:[#allocation2 + $0x98] sm:$0xff]  ;;  %vm340_vm7 = vcmask 23552   ;;  %vm345_vm8 = vcmask 154624   ;;  %s4717_s22 = sld [smem:[#allocation6 + $0x37]] }
  0x35   :  { %v107_v23 = vadd.f32 %v106_v16, %v5097_v12  ;;  %v119_v24 = vadd.f32 %v118_v18, %v5106_v17  ;;  %v5123_v27 = vld [vmem:[#allocation2 + $0xa8] sm:$0xff]  ;;  %v5126_v29 = vld [vmem:[#allocation2 + $0x58] sm:$0xff]  ;;  %v5128_v30 = vld [vmem:[#allocation2 + $0xc0] sm:$0xff]  ;;  %v131_v31 = vadd.f32 %v5121_v26, %v5119_v25  ;;  %s5013_s23 = smov 1   ;;  %s5014_s24 = smov 125   ;;  %vm4154_vm9 = vcmask 130048  }
  0x36   :  { %v95_v20 = vadd.f32 %v94_v11, %v5092_v9  ;;  %v5132_v32 = vld [vmem:[#allocation2 + $0x70] sm:$0xff]  ;;  %v5136_v35 = vld [vmem:[#allocation2 + $0xb8] sm:$0xff]  ;;  %v5139_v37 = vld [vmem:[#allocation2 + $0x68] sm:$0xff]  ;;  %s4725_s25 = sld [smem:[#allocation6 + $0x3f]]  ;;  %s4729_s26 = sld [smem:[#allocation6 + $0x43]]  ;;  %vm4250_vm10 = vcmask 1041409  }
  0x37   :  { %v108_v33 = vadd.f32 %v107_v23, %v5113_v21  ;;  %v120_v34 = vadd.f32 %v119_v24, %v5115_v22  ;;  %v5141_v38 = vld [vmem:[#allocation2 + $0xd0] sm:$0xff]  ;;  %v132_v39 = vadd.f32 %v131_v31, %v5123_v27  ;;  %v5146_v42 = vld [vmem:[#allocation2 + $0xc8] sm:$0xff]  ;;  %v5149_v44 = vld [vmem:[#allocation2 + $0x78] sm:$0xff]  ;;  %s4733_s27 = sld [smem:[#allocation6 + $0x47]]  ;;  %s4737_s28 = sld [smem:[#allocation6 + $0x4b]]  ;;  %vm4341_vm11 = vcmask 261120  }
  0x38   :  { %v96_v28 = vadd.f32 %v95_v20, %v5103_v15  ;;  %v5151_v45 = vld [vmem:[#allocation2 + $0xe0] sm:$0xff]  ;;  %v5156_v49 = vld [vmem:[#allocation2 + $0xd8] sm:$0xff]  ;;  %v5158_v51 = vld [vmem:[#allocation2 + $0xf0] sm:$0xff]  ;;  %s5015_s29 = smov 127   ;;  %s4741_s30 = sld [smem:[#allocation6 + $0x4f]]  ;;  %vm4343_vm12 = vcmask 392192  }
  0x39   :  { %v109_v40 = vadd.f32 %v108_v33, %v5126_v29  ;;  %v121_v41 = vadd.f32 %v120_v34, %v5128_v30  ;;  %v133_v46 = vadd.f32 %v132_v39, %v5136_v35  ;;  %v5163_v55 = vld [vmem:[#allocation2 + $0xe8] sm:$0xff]  ;;  %v5167_v60 = vld [vmem:[#allocation2 + $0xf8] sm:$0xff]  ;;  %s5016_s1 = smov 2   ;;  %s4745_s7 = sld [smem:[#allocation6 + $0x53]]  ;;  %vm4345_vm13 = vcmask 523264  }
  0x3a   :  { %v97_v36 = vadd.f32 %v96_v28, %v5110_v19  ;;  %s5017_s8 = smov 126   ;;  %s4753_s9 = sld [smem:[#allocation6 + $0x5b]]  ;;  %vm4347_vm14 = vcmask 654336   ;;  %vm4349_vm15 = vcmask 785408  }
  0x3b   :  { %v110_v47 = vadd.f32 %v109_v40, %v5139_v37  ;;  %v122_v48 = vadd.f32 %v121_v41, %v5141_v38  ;;  %v134_v52 = vadd.f32 %v133_v46, %v5146_v42  ;;  %s4757_s10 = sld [smem:[#allocation6 + $0x5f]]  ;;  %s4673_s12 = sld [smem:[#allocation6 + $0xb]] }
  0x3c   :  { %v98_v43 = vadd.f32 %v97_v36, %v5132_v32  ;;  %s4669_s11 = sld [smem:[#allocation6 + $0x7]]  ;;  %s4681_s14 = sld [smem:[#allocation6 + $0x13]] }
  0x3d   :  { %v111_v53 = vadd.f32 %v110_v47, %v5149_v44  ;;  %v123_v54 = vadd.f32 %v122_v48, %v5151_v45  ;;  %v135_v57 = vadd.f32 %v134_v52, %v5156_v49  ;;  %s4677_s13 = sld [smem:[#allocation6 + $0xf]] }
  0x3e   :  { %v99_v50 = vrot.slane %v98_v43, 4  ;;  %s4685_s0 = sld [smem:[#allocation6 + $0x17]] }
  0x3f   :  { %v112_v58 = vrot.slane %v111_v53, 4  ;;  %v124_v59 = vadd.f32 %v123_v54, %v5158_v51  ;;  %v136_v62 = vadd.f32 %v135_v57, %v5163_v55  ;;  %v149_v54 = vmax.f32 %v5075_v0, %v5077_v1 }
  0x40   :  { %v100_v56 = vadd.f32 %v99_v50, %v98_v43 }
  0x41   :  { %v113_v63 = vadd.f32 %v112_v58, %v111_v53  ;;  %v125_v3 = vrot.slane %v124_v59, 4  ;;  %v137_v10 = vadd.f32 %v136_v62, %v5167_v60  ;;  %v162_v53 = vmax.f32 %v5085_v5, %v5088_v7 }
  0x42   :  { %v101_v61 = vrot.slane %v100_v56, 2  ;;  %v150_v58 = vmax.f32 %v149_v54, %v5079_v2  ;;  %v175_v5 = vmax.f32 %v5099_v13, %v5101_v14 }
  0x43   :  { %v114_v11 = vrot.slane %v113_v63, 2  ;;  %v126_v16 = vadd.f32 %v125_v3, %v124_v59  ;;  %v138_v20 = vrot.slane %v137_v10, 4  ;;  %v163_v57 = vmax.f32 %v162_v53, %v5090_v8 }
  0x44   :  { %v102_v6 = vadd.f32 %v101_v61, %v100_v56  ;;  %v151_v1 = vmax.f32 %v150_v58, %v5083_v4  ;;  %v176_v8 = vmax.f32 %v175_v5, %v5106_v17 }
  0x45   :  { %v115_v23 = vadd.f32 %v114_v11, %v113_v63  ;;  %v127_v24 = vrot.slane %v126_v16, 2  ;;  %v139_v31 = vadd.f32 %v138_v20, %v137_v10  ;;  %v164_v0 = vmax.f32 %v163_v57, %v5097_v12 }
  0x46   :  { %v103_v18 = vrot.slane %v102_v6, 1  ;;  %v152_v7 = vmax.f32 %v151_v1, %v5092_v9  ;;  %v177_v13 = vmax.f32 %v176_v8, %v5115_v22 }
  0x47   :  { %v116_v33 = vrot.slane %v115_v23, 1  ;;  %v128_v34 = vadd.f32 %v127_v24, %v126_v16  ;;  %v140_v39 = vrot.slane %v139_v31, 2  ;;  %v165_v2 = vmax.f32 %v164_v0, %v5113_v21 }
  0x48   :  { %v104_v28 = vadd.f32 %v103_v18, %v102_v6  ;;  %v153_v12 = vmax.f32 %v152_v7, %v5103_v15  ;;  %v178_v17 = vmax.f32 %v177_v13, %v5128_v30  ;;  %v188_v21 = vmax.f32 %v5119_v25, %v5121_v26 }
  0x49   :  { %v117_v40 = vadd.f32 %v116_v33, %v115_v23  ;;  %v129_v41 = vrot.slane %v128_v34, 1  ;;  %v141_v43 = vadd.f32 %v140_v39, %v139_v31  ;;  %v166_v4 = vmax.f32 %v165_v2, %v5126_v29 }
  0x4a   :  { %v5171_v36 = vmul.f32 0.015625, %v104_v28  ;;  %v154_v14 = vmax.f32 %v153_v12, %v5110_v19  ;;  %v179_v29 = vmax.f32 %v178_v17, %v5141_v38 }
  0x4b   :  { %v5177_v46 = vmul.f32 0.015625, %v117_v40  ;;  %v130_v47 = vadd.f32 %v129_v41, %v128_v34  ;;  %v142_v48 = vrot.slane %v141_v43, 1  ;;  %v167_v9 = vmax.f32 %v166_v4, %v5139_v37 }
  0x4c   :  { %209 = vrot.lane.b32.xlu1 %v5171_v36, %s5006_s2  ;;  %203 = vrot.lane.b32.xlu0 %v5171_v36, %s5007_s15  ;;  %v155_v22 = vmax.f32 %v154_v14, %v5132_v32  ;;  %v189_v37 = vmax.f32 %v188_v21, %v5123_v27  ;;  %v180_v26 = vmax.f32 %v179_v29, %v5151_v45 }
  0x4d   :  { %v5183_v50 = vmul.f32 0.015625, %v130_v47  ;;  %v143_v52 = vadd.f32 %v142_v48, %v141_v43  ;;  %v168_v15 = vmax.f32 %v167_v9, %v5149_v44 }
  0x4e   :  { %v156_v25 = vrot.slane %v155_v22, 4  ;;  %v190_v30 = vmax.f32 %v189_v37, %v5136_v35  ;;  %v181_v38 = vmax.f32 %v180_v26, %v5158_v51 }
  0x4f   :  { %v5193_v56 = vmul.f32 0.015625, %v143_v52  ;;  %v169_v19 = vrot.slane %v168_v15, 4 }
  0x50   :  { %253 = vrot.lane.b32.xlu1 %v5177_v46, %s5006_s2  ;;  %247 = vrot.lane.b32.xlu0 %v5177_v46, %s5007_s15  ;;  %v157_v32 = vmax.f32 %v155_v22, %v156_v25  ;;  %v191_v44 = vmax.f32 %v190_v30, %v5146_v42  ;;  %v182_v59 = vrot.slane %v181_v38, 4 }
  0x51   :  { %v170_v27 = vmax.f32 %v168_v15, %v169_v19 }
  0x52   :  { %v158_v35 = vrot.slane %v157_v32, 2  ;;  %v192_v61 = vmax.f32 %v191_v44, %v5156_v49  ;;  %v183_v42 = vmax.f32 %v181_v38, %v182_v59 }
  0x53   :  { %v171_v45 = vrot.slane %v170_v27, 2 }
  0x54   :  { %215 = vrot.lane.b32.xlu1 %v5171_v36, %s5008_s16  ;;  %205 = vrot.lane.b32.xlu0 %v5183_v50, %s5007_s15  ;;  %v159_v62 = vmax.f32 %v157_v32, %v158_v35  ;;  %v193_v63 = vmax.f32 %v192_v61, %v5163_v55  ;;  %v184_v49 = vrot.slane %v183_v42, 2 }
  0x55   :  { %v172_v51 = vmax.f32 %v170_v27, %v171_v45 }
  0x56   :  { %v160_v6 = vrot.slane %v159_v62, 1  ;;  %v194_v10 = vmax.f32 %v193_v63, %v5167_v60  ;;  %v185_v16 = vmax.f32 %v183_v42, %v184_v49 }
  0x57   :  { %v173_v3 = vrot.slane %v172_v51, 1 }
  0x58   :  { %259 = vrot.lane.b32.xlu1 %v5177_v46, %s5008_s16  ;;  %249 = vrot.lane.b32.xlu0 %v5193_v56, %s5007_s15  ;;  %v5269_v55 = vmax.f32 %v159_v62, %v160_v6  ;;  %v186_v18 = vrot.slane %v185_v16, 1  ;;  %v195_v20 = vrot.slane %v194_v10, 4 }
  0x59   :  { %v5267_v11 = vmax.f32 %v172_v51, %v173_v3 }
  0x5a   :  { %v5279_v60 = vmax.f32 %v185_v16, %v186_v18  ;;  %v196_v23 = vmax.f32 %v194_v10, %v195_v20 }
  0x5c   :  { %221 = vrot.lane.b32.xlu1 %v5171_v36, %s5009_s17  ;;  %211 = vrot.lane.b32.xlu0 %v5183_v50, %s5006_s2  ;;  %v197_v24 = vrot.slane %v196_v23, 2 }
  0x5e   :  { %v198_v28 = vmax.f32 %v196_v23, %v197_v24 }
  0x60   :  { %265 = vrot.lane.b32.xlu1 %v5177_v46, %s5009_s17  ;;  %255 = vrot.lane.b32.xlu0 %v5193_v56, %s5006_s2  ;;  %v199_v31 = vrot.slane %v198_v28, 1 }
  0x62   :  { %v5297_v33 = vmax.f32 %v198_v28, %v199_v31 }
  0x64   :  { %227 = vrot.lane.b32.xlu1 %v5171_v36, %s5010_s18  ;;  %217 = vrot.lane.b32.xlu0 %v5183_v50, %s5008_s16 }
  0x68   :  { %271 = vrot.lane.b32.xlu1 %v5177_v46, %s5010_s18  ;;  %261 = vrot.lane.b32.xlu0 %v5193_v56, %s5008_s16 }
  0x6c   :  { %233 = vrot.lane.b32.xlu1 %v5171_v36, %s5011_s19  ;;  %223 = vrot.lane.b32.xlu0 %v5183_v50, %s5009_s17 }
  0x70   :  { %277 = vrot.lane.b32.xlu1 %v5177_v46, %s5011_s19  ;;  %267 = vrot.lane.b32.xlu0 %v5193_v56, %s5009_s17 }
  0x74   :  { %239 = vrot.lane.b32.xlu1 %v5171_v36, %s5003_s6  ;;  %229 = vrot.lane.b32.xlu0 %v5183_v50, %s5010_s18 }
  0x78   :  { %283 = vrot.lane.b32.xlu1 %v5177_v46, %s5003_s6  ;;  %273 = vrot.lane.b32.xlu0 %v5193_v56, %s5010_s18 }
  0x7c   :  { %279 = vrot.lane.b32.xlu1 %v5193_v56, %s5011_s19  ;;  %235 = vrot.lane.b32.xlu0 %v5183_v50, %s5011_s19 }
  0x80   :  { %285 = vrot.lane.b32.xlu1 %v5193_v56, %s5003_s6  ;;  %241 = vrot.lane.b32.xlu0 %v5183_v50, %s5003_s6 }
  0x84   :  { %416 = vrot.lane.b32.xlu1 %v5267_v11, %s5007_s15  ;;  %372 = vrot.lane.b32.xlu0 %v5269_v55, %s5007_s15 }
  0x88   :  { %422 = vrot.lane.b32.xlu1 %v5267_v11, %s5006_s2  ;;  %378 = vrot.lane.b32.xlu0 %v5269_v55, %s5006_s2 }
  0x8c   :  { %384 = vrot.lane.b32.xlu1 %v5269_v55, %s5008_s16  ;;  %374 = vrot.lane.b32.xlu0 %v5279_v60, %s5007_s15 }
  0x90   :  { %380 = vrot.lane.b32.xlu1 %v5279_v60, %s5006_s2  ;;  %428 = vrot.lane.b32.xlu0 %v5267_v11, %s5008_s16 }
  0x94   :  { %434 = vrot.lane.b32.xlu1 %v5267_v11, %s5009_s17  ;;  %390 = vrot.lane.b32.xlu0 %v5269_v55, %s5009_s17 }
  0x98   :  { %396 = vrot.lane.b32.xlu1 %v5269_v55, %s5010_s18  ;;  %386 = vrot.lane.b32.xlu0 %v5279_v60, %s5008_s16 }
  0x9c   :  { %440 = vrot.lane.b32.xlu1 %v5267_v11, %s5010_s18  ;;  %418 = vrot.lane.b32.xlu0 %v5297_v33, %s5007_s15 }
  0xa0   :  { %402 = vrot.lane.b32.xlu1 %v5269_v55, %s5011_s19  ;;  %392 = vrot.lane.b32.xlu0 %v5279_v60, %s5009_s17 }
  0xa4   :  { %446 = vrot.lane.b32.xlu1 %v5267_v11, %s5011_s19  ;;  %424 = vrot.lane.b32.xlu0 %v5297_v33, %s5006_s2 }
  0xa8   :  { %408 = vrot.lane.b32.xlu1 %v5269_v55, %s5003_s6  ;;  %398 = vrot.lane.b32.xlu0 %v5279_v60, %s5010_s18 }
  0xac   :  { %452 = vrot.lane.b32.xlu1 %v5267_v11, %s5003_s6  ;;  %430 = vrot.lane.b32.xlu0 %v5297_v33, %s5008_s16 }
  0xb0   :  { %436 = vrot.lane.b32.xlu1 %v5297_v33, %s5009_s17  ;;  %404 = vrot.lane.b32.xlu0 %v5279_v60, %s5011_s19 }
  0xb4   :  { %442 = vrot.lane.b32.xlu1 %v5297_v33, %s5010_s18  ;;  %410 = vrot.lane.b32.xlu0 %v5279_v60, %s5003_s6 }
  0xb8   :  { %448 = vrot.lane.b32.xlu0 %v5297_v33, %s5011_s19  ;;  %454 = vrot.lane.b32.xlu1 %v5297_v33, %s5003_s6 }
  0xbe   :  { %v5331_v34 = vpop.permute.xlu1 %209  ;;  %v5333_v39 = vpop.permute.xlu0 %203 }
  0xc2   :  { %v5335_v40 = vpop.permute.xlu1 %253  ;;  %v5337_v41 = vpop.permute.xlu0 %247 }
  0xc6   :  { %v5339_v43 = vpop.permute.xlu1 %215  ;;  %v5341_v47 = vpop.permute.xlu0 %205 }
  0xca   :  { %v5343_v48 = vpop.permute.xlu1 %259  ;;  %v5345_v52 = vpop.permute.xlu0 %249 }
  0xce   :  { %v5347_v53 = vpop.permute.xlu1 %221  ;;  %v5349_v54 = vpop.permute.xlu0 %211 }
  0xd2   :  { %v5351_v57 = vpop.permute.xlu1 %265  ;;  %v5353_v58 = vpop.permute.xlu0 %255 }
  0xd6   :  { %v5355_v0 = vpop.permute.xlu1 %227  ;;  %v5357_v1 = vpop.permute.xlu0 %217 }
  0xda   :  { %v5359_v5 = vpop.permute.xlu1 %271  ;;  %v5361_v2 = vpop.permute.xlu0 %261 }
  0xde   :  { %v5363_v7 = vpop.permute.xlu1 %233  ;;  %v5365_v8 = vpop.permute.xlu0 %223 }
  0xe2   :  { %v5367_v4 = vpop.permute.xlu1 %277  ;;  %v5369_v12 = vpop.permute.xlu0 %267 }
  0xe6   :  { %v5371_v13 = vpop.permute.xlu1 %239  ;;  %v5373_v9 = vpop.permute.xlu0 %229 }
  0xea   :  { %v5375_v14 = vpop.permute.xlu1 %283  ;;  %v5377_v17 = vpop.permute.xlu0 %273 }
  0xee   :  { %v5379_v21 = vpop.permute.xlu1 %279  ;;  %v5381_v15 = vpop.permute.xlu0 %235 }
  0xf2   :  { %v5383_v22 = vpop.permute.xlu1 %285  ;;  %v5385_v29 = vpop.permute.xlu0 %241 }
  0xf6   :  { %v417_v37 = vpop.permute.xlu1 %416  ;;  %v373_v19 = vpop.permute.xlu0 %372 }
  0xf7   :  { %v458_v63 = vsel %vm289_vm0, %v5269_v55, %v373_v19  ;;  %v472_v10 = vsel %vm289_vm0, %v5267_v11, %v417_v37 }
  0xfa   :  { %v423_v25 = vpop.permute.xlu1 %422  ;;  %v379_v26 = vpop.permute.xlu0 %378 }
  0xfb   :  { %v460_v3 = vsel %vm292_vm1, %v458_v63, %v379_v26  ;;  %v474_v23 = vsel %vm292_vm1, %v472_v10, %v423_v25  ;;  %v290_v63 = vsel %vm289_vm0, %v5171_v36, %v5333_v39 }
  0xfc   :  { %v293_v10 = vsel %vm292_vm1, %v290_v63, %v5331_v34 }
  0xfe   :  { %v385_v30 = vpop.permute.xlu1 %384  ;;  %v375_v27 = vpop.permute.xlu0 %374 }
  0xff   :  { %v462_v16 = vsel %vm295_vm2, %v460_v3, %v385_v30 }
 0x102   :  { %v381_v32 = vpop.permute.xlu1 %380  ;;  %v429_v38 = vpop.permute.xlu0 %428 }
 0x103   :  { %v476_v31 = vsel %vm295_vm2, %v474_v23, %v429_v38  ;;  %v459_v38 = vsel %vm289_vm0, %v5279_v60, %v375_v27 }
 0x106   :  { %v435_v44 = vpop.permute.xlu1 %434  ;;  %v391_v45 = vpop.permute.xlu0 %390 }
 0x107   :  { %v464_v18 = vsel %vm298_vm3, %v462_v16, %v391_v45  ;;  %v478_v11 = vsel %vm298_vm3, %v476_v31, %v435_v44 }
 0x10a   :  { %v397_v35 = vpop.permute.xlu1 %396  ;;  %v387_v59 = vpop.permute.xlu0 %386 }
 0x10b   :  { %v466_v20 = vsel %vm301_vm4, %v464_v18, %v397_v35  ;;  %v461_v35 = vsel %vm292_vm1, %v459_v38, %v381_v32  ;;  %v296_v18 = vsel %vm295_vm2, %v293_v10, %v5339_v43 }
 0x10c   :  { %v299_v34 = vsel %vm298_vm3, %v296_v18, %v5347_v53 }
 0x10d   :  { %v302_v43 = vsel %vm301_vm4, %v299_v34, %v5355_v0 }
 0x10e   :  { %v441_v61 = vpop.permute.xlu1 %440  ;;  %v419_v51 = vpop.permute.xlu0 %418 }
 0x10f   :  { %v480_v37 = vsel %vm301_vm4, %v478_v11, %v441_v61  ;;  %v463_v61 = vsel %vm295_vm2, %v461_v35, %v387_v59  ;;  %v473_v60 = vsel %vm289_vm0, %v5297_v33, %v419_v51  ;;  %v310_v59 = vsel %vm289_vm0, %v5177_v46, %v5337_v41 }
 0x110   :  { %v291_v51 = vsel %vm289_vm0, %v5183_v50, %v5341_v47  ;;  %v305_v46 = vsel %vm304_vm5, %v302_v43, %v5363_v7  ;;  %v312_v23 = vsel %vm292_vm1, %v310_v59, %v5335_v40  ;;  %v2727_v59 = vstv %s4725_s25  ;;  %s4701_s25 = sld [smem:[#allocation6 + $0x27]] }
 0x111   :  { %v308_v0 = vsel %vm307_vm6, %v305_v46, %v5371_v13  ;;  %v311_v13 = vsel %vm289_vm0, %v5193_v56, %v5345_v52  ;;  %vm4351_vm0 = vcmask 916480  }
 0x112   :  { %v403_v62 = vpop.permute.xlu1 %402  ;;  %v393_v42 = vpop.permute.xlu0 %392 }
 0x113   :  { %v468_v55 = vsel %vm304_vm5, %v466_v20, %v403_v62  ;;  %v465_v3 = vsel %vm298_vm3, %v463_v61, %v393_v42 }
 0x116   :  { %v447_v6 = vpop.permute.xlu1 %446  ;;  %v425_v49 = vpop.permute.xlu0 %424 }
 0x117   :  { %v482_v26 = vsel %vm304_vm5, %v480_v37, %v447_v6  ;;  %v475_v36 = vsel %vm292_vm1, %v473_v60, %v425_v49  ;;  %v294_v49 = vsel %vm292_vm1, %v291_v51, %v5349_v54  ;;  %v314_v54 = vsel %vm295_vm2, %v312_v23, %v5343_v48 }
 0x118   :  { %v297_v50 = vsel %vm295_vm2, %v294_v49, %v5357_v1  ;;  %v316_v40 = vsel %vm298_vm3, %v314_v54, %v5351_v57  ;;  %v2453_v37 = vstv %s4717_s22  ;;  %s4697_s22 = sld [smem:[#allocation6 + $0x23]] }
 0x119   :  { %v300_v7 = vsel %vm298_vm3, %v297_v50, %v5365_v8  ;;  %v318_v48 = vsel %vm301_vm4, %v316_v40, %v5359_v5 }
 0x11a   :  { %v409_v24 = vpop.permute.xlu1 %408  ;;  %v399_v28 = vpop.permute.xlu0 %398  ;;  %v303_v1 = vsel %vm301_vm4, %v300_v7, %v5373_v9  ;;  %v320_v57 = vsel %vm304_vm5, %v318_v48, %v5367_v4  ;;  %v2887_v7 = vstv %s4729_s26  ;;  %s4705_s26 = sld [smem:[#allocation6 + $0x2b]] }
 0x11b   :  { %v470_v19 = vsel %vm307_vm6, %v468_v55, %v409_v24  ;;  %v467_v6 = vsel %vm301_vm4, %v465_v3, %v399_v28  ;;  %v306_v8 = vsel %vm304_vm5, %v303_v1, %v5381_v15  ;;  %v313_v24 = vsel %vm292_vm1, %v311_v13, %v5353_v58 }
 0x11c   :  { %490 = vrot.lane.b32.xlu0 %v470_v19, %s5012_s20  ;;  %v309_v9 = vsel %vm307_vm6, %v306_v8, %v5385_v29  ;;  %v315_v28 = vsel %vm295_vm2, %v313_v24, %v5361_v2  ;;  %v322_v56 = vsel %vm307_vm6, %v320_v57, %v5375_v14  ;;  %v2349_v29 = vstv %s4713_s21  ;;  %s4689_s21 = sld [smem:[#allocation6 + $0x1b]] }
 0x11d   :  { %v317_v52 = vsel %vm298_vm3, %v315_v28, %v5369_v12 }
 0x11e   :  { %v453_v30 = vpop.permute.xlu1 %452  ;;  %v431_v25 = vpop.permute.xlu0 %430  ;;  %v319_v58 = vsel %vm301_vm4, %v317_v52, %v5377_v17 }
 0x11f   :  { %v484_v45 = vsel %vm307_vm6, %v482_v26, %v453_v30  ;;  %v477_v33 = vsel %vm295_vm2, %v475_v36, %v431_v25  ;;  %v321_v5 = vsel %vm304_vm5, %v319_v58, %v5379_v21 }
 0x120   :  { %492 = vrot.lane.b32.xlu1 %v484_v45, %s5012_s20  ;;  %v323_v4 = vsel %vm307_vm6, %v321_v5, %v5383_v22 }
 0x122   :  { %v437_v62 = vpop.permute.xlu1 %436  ;;  %v405_v44 = vpop.permute.xlu0 %404 }
 0x123   :  { %v469_v27 = vsel %vm304_vm5, %v467_v6, %v405_v44  ;;  %v479_v42 = vsel %vm298_vm3, %v477_v33, %v437_v62 }
 0x126   :  { %v443_v32 = vpop.permute.xlu1 %442  ;;  %v411_v16 = vpop.permute.xlu0 %410 }
 0x127   :  { %v471_v39 = vsel %vm307_vm6, %v469_v27, %v411_v16  ;;  %v481_v41 = vsel %vm301_vm4, %v479_v42, %v443_v32 }
 0x128   :  { %494 = vrot.lane.b32.xlu0 %v471_v39, %s5012_s20 }
 0x12a   :  { %v449_v53 = vpop.permute.xlu0 %448  ;;  %v455_v20 = vpop.permute.xlu1 %454 }
 0x12b   :  { %v483_v47 = vsel %vm304_vm5, %v481_v41, %v449_v53 }
 0x12c   :  { %328 = vrot.lane.b32.xlu0 %v308_v0, %s5012_s20  ;;  %v485_v55 = vsel %vm307_vm6, %v483_v47, %v455_v20 }
 0x12d   :  { %496 = vrot.lane.b32.xlu1 %v485_v55, %s5012_s20 }
 0x130   :  { %332 = vrot.lane.b32.xlu0 %v309_v9, %s5012_s20 }
 0x131   :  { %330 = vrot.lane.b32.xlu1 %v322_v56, %s5012_s20 }
 0x135   :  { %334 = vrot.lane.b32.xlu1 %v323_v4, %s5012_s20 }
 0x18e   :  { %v491_v2 = vpop.permute.xlu0 %490 }
 0x18f   :  { %v502_v12 = vsel %vm340_vm7, 0.0, %v491_v2 }
 0x190   :  { %v506_v14 = vsel %vm345_vm8, %v502_v12, 0.0 }
 0x191   :  { %v514_v15 = vrot.slane %v506_v14, 5 }
 0x192   :  { %v493_v17 = vpop.permute.xlu1 %492 }
 0x193   :  { %v5490_v31 = vsel %vm295_vm2, 0.0, %v514_v15  ;;  %v503_v21 = vsel %vm340_vm7, 0.0, %v493_v17 }
 0x194   :  { %8753 = vst [vmem:[#allocation14_spill] sm:$0xff] %v5490_v31  ;;  %v507_v22 = vsel %vm345_vm8, %v503_v21, 0.0  ;;  %v2350_v19 = vmul.f32 %v2349_v29, %v5490_v31  ;;  %v2454_v30 = vmul.f32 %v2453_v37, %v5490_v31  ;;  %v2728_v50 = vmul.f32 %v2727_v59, %v5490_v31 }
 0x195   :  { %v515_v11 = vrot.slane %v507_v22, 5  ;;  %v2888_v58 = vmul.f32 %v2887_v7, %v5490_v31 }
 0x196   :  { %2358 = vrot.lane.b32.xlu1 %v2350_v19, %s5013_s23  ;;  %v2740_v28 = vrot.slane %v2728_v50, 2 }
 0x197   :  { %v5497_v26 = vsel %vm295_vm2, %v514_v15, %v515_v11  ;;  %v5517_v18 = vsel %vm295_vm2, %v515_v11, 0.0  ;;  %v2900_v17 = vrot.slane %v2888_v58, 2  ;;  %v3047_v11 = vstv %s4733_s27  ;;  %s4709_s27 = sld [smem:[#allocation6 + $0x2f]] }
 0x198   :  { %8754 = vst [vmem:[#allocation15_spill] sm:$0xff] %v5497_v26  ;;  %v2351_v25 = vmul.f32 %v2349_v29, %v5497_v26  ;;  %8756 = vst [vmem:[#allocation17_spill] sm:$0xff] %v5517_v18  ;;  %v2455_v43 = vmul.f32 %v2453_v37, %v5497_v26  ;;  %v2729_v46 = vmul.f32 %v2727_v59, %v5497_v26 }
 0x199   :  { %v2730_v20 = vmul.f32 %v2727_v59, %v5517_v18  ;;  %v2889_v57 = vmul.f32 %v2887_v7, %v5497_v26  ;;  %v2890_v2 = vmul.f32 %v2887_v7, %v5517_v18 }
 0x19a   :  { %2462 = vrot.lane.b32.xlu1 %v2454_v30, %s5014_s24  ;;  %2360 = vrot.lane.b32.xlu0 %v2351_v25, %s5013_s23  ;;  %v495_v45 = vpop.permute.xlu0 %494  ;;  %v2741_v1 = vrot.slane %v2729_v46, 2  ;;  %v3049_v25 = vmul.f32 %v3047_v11, %v5497_v26 }
 0x19b   :  { %v504_v38 = vsel %vm340_vm7, 0.0, %v495_v45  ;;  %v2743_v24 = vrot.slane %v2730_v20, 2  ;;  %v2901_v14 = vrot.slane %v2889_v57, 2  ;;  %v2903_v22 = vrot.slane %v2890_v2, 2 }
 0x19c   :  { %v508_v35 = vsel %vm345_vm8, %v504_v38, 0.0  ;;  %v2742_v5 = vsel %vm304_vm5, %v2740_v28, %v2741_v1  ;;  %v3048_v38 = vmul.f32 %v3047_v11, %v5490_v31  ;;  %v3367_v28 = vstv %s4741_s30  ;;  %s4671_s30 = sld [smem:[#allocation6 + $0x9]] }
 0x19d   :  { %v517_v62 = vrot.slane %v508_v35, 5  ;;  %v2744_v12 = vsel %vm304_vm5, %v2741_v1, %v2743_v24  ;;  %v2904_v35 = vsel %vm304_vm5, %v2901_v14, %v2903_v22  ;;  %v3368_v2 = vmul.f32 %v3367_v28, %v5490_v31 }
 0x19e   :  { %v329_v44 = vpop.permute.xlu0 %328 }
 0x19f   :  { %v5506_v63 = vsel %vm295_vm2, 0.0, %v517_v62  ;;  %v341_v61 = vsel %vm340_vm7, 0.0, %v329_v44  ;;  %v497_v3 = vpop.permute.xlu1 %496  ;;  %v3050_v44 = vmul.f32 %v3047_v11, %v5517_v18 }
 0x1a0   :  { %8755 = vst [vmem:[#allocation16_spill] sm:$0xff] %v5506_v63  ;;  %v5510_v6 = vsel %vm345_vm8, %v341_v61, 0.0  ;;  %v505_v10 = vsel %vm340_vm7, 0.0, %v497_v3  ;;  %v2352_v60 = vmul.f32 %v2349_v29, %v5506_v63  ;;  %v2456_v54 = vmul.f32 %v2453_v37, %v5506_v63 }
 0x1a1   :  { %v509_v27 = vsel %vm345_vm8, %v505_v10, 0.0  ;;  %v354_v41 = vrot.slane %v5510_v6, 5  ;;  %v2731_v56 = vmul.f32 %v2727_v59, %v5506_v63  ;;  %v2891_v45 = vmul.f32 %v2887_v7, %v5506_v63 }
 0x1a2   :  { %v518_v32 = vrot.slane %v509_v27, 5  ;;  %2362 = vrot.lane.b32.xlu0 %v2352_v60, %s5013_s23  ;;  %v333_v16 = vpop.permute.xlu0 %332  ;;  %v3061_v3 = vrot.slane %v3049_v25, 3  ;;  %v3060_v27 = vrot.slane %v3048_v38, 3  ;;  %v3527_v25 = vstv %s4745_s7  ;;  %s4668_s7 = sld [smem:[#allocation6 + $0x6]] }
 0x1a3   :  { %v343_v36 = vsel %vm340_vm7, 0.0, %v333_v16  ;;  %v331_v39 = vpop.permute.xlu1 %330  ;;  %v2905_v60 = vrot.slane %v2891_v45, 2  ;;  %v3063_v16 = vrot.slane %v3050_v44, 3  ;;  %v3528_v44 = vmul.f32 %v3527_v25, %v5490_v31 }
 0x1a4   :  { %v5521_v34 = vsel %vm295_vm2, %v517_v62, %v518_v32  ;;  %v5524_v33 = vsel %vm345_vm8, %v343_v36, 0.0  ;;  %v342_v51 = vsel %vm340_vm7, 0.0, %v331_v39  ;;  %v5558_v9 = vsel %vm295_vm2, %v518_v32, 0.0 }
 0x1a5   :  { %8757 = vst [vmem:[#allocation18_spill] sm:$0xff] %v5521_v34  ;;  %v5529_v42 = vsel %vm345_vm8, %v342_v51, 0.0  ;;  %v2353_v49 = vmul.f32 %v2349_v29, %v5521_v34  ;;  %v2457_v40 = vmul.f32 %v2453_v37, %v5521_v34  ;;  %v2732_v13 = vmul.f32 %v2727_v59, %v5521_v34  ;;  %8758 = vst [vmem:[#allocation19_spill] sm:$0xff] %v5558_v9 }
 0x1a6   :  { %v355_v53 = vrot.slane %v5529_v42, 5  ;;  %2464 = vrot.lane.b32.xlu0 %v2455_v43, %s5014_s24  ;;  %v357_v48 = vrot.slane %v5524_v33, 5  ;;  %v2733_v15 = vmul.f32 %v2727_v59, %v5558_v9  ;;  %v2745_v29 = vrot.slane %v2731_v56, 2 }
 0x1a7   :  { %v335_v23 = vpop.permute.xlu1 %334  ;;  %2364 = vrot.lane.b32.xlu1 %v2353_v49, %s5013_s23  ;;  %v2746_v4 = vrot.slane %v2732_v13, 2  ;;  %v2892_v19 = vmul.f32 %v2887_v7, %v5521_v34  ;;  %v2902_v37 = vsel %vm304_vm5, %v2900_v17, %v2901_v14  ;;  %v2893_v10 = vmul.f32 %v2887_v7, %v5558_v9 }
 0x1a8   :  { %v5544_v47 = vsel %vm295_vm2, %v354_v41, %v355_v53  ;;  %v344_v0 = vsel %vm340_vm7, 0.0, %v335_v23  ;;  %v2748_v30 = vrot.slane %v2733_v15, 2  ;;  %v3052_v36 = vmul.f32 %v3047_v11, %v5521_v34 }
 0x1a9   :  { %v5549_v55 = vsel %vm345_vm8, %v344_v0, 0.0  ;;  %v2747_v21 = vsel %vm304_vm5, %v2745_v29, %v2746_v4  ;;  %v2906_v62 = vrot.slane %v2892_v19, 2  ;;  %v3207_v39 = vstv %s4737_s28  ;;  %s4667_s28 = sld [smem:[#allocation6 + $0x5]] }
 0x1aa   :  { %v358_v8 = vrot.slane %v5549_v55, 5  ;;  %2466 = vrot.lane.b32.xlu0 %v2456_v54, %s5014_s24  ;;  %v2749_v61 = vsel %vm304_vm5, %v2746_v4, %v2748_v30  ;;  %v3062_v59 = vsel %vm301_vm4, %v3060_v27, %v3061_v3  ;;  %v2908_v51 = vrot.slane %v2893_v10, 2 }
 0x1ab   :  { %2468 = vrot.lane.b32.xlu1 %v2457_v40, %s5014_s24  ;;  %v2907_v32 = vsel %vm304_vm5, %v2905_v60, %v2906_v62  ;;  %v3209_v43 = vmul.f32 %v3207_v39, %v5497_v26  ;;  %v3051_v49 = vmul.f32 %v3047_v11, %v5506_v63  ;;  %v3208_v46 = vmul.f32 %v3207_v39, %v5490_v31 }
 0x1ac   :  { %v5567_v52 = vsel %vm295_vm2, %v357_v48, %v358_v8  ;;  %v3064_v20 = vsel %vm301_vm4, %v3061_v3, %v3063_v16  ;;  %v3066_v23 = vrot.slane %v3052_v36, 3  ;;  %v3210_v50 = vmul.f32 %v3207_v39, %v5517_v18 }
 0x1ad   :  { %8759 = vst [vmem:[#allocation20_spill] sm:$0xff] %v5567_v52  ;;  %v2909_v0 = vsel %vm304_vm5, %v2906_v62, %v2908_v51  ;;  %v3221_v54 = vrot.slane %v3209_v43, 3  ;;  %v3053_v7 = vmul.f32 %v3047_v11, %v5558_v9  ;;  %v3065_v40 = vrot.slane %v3051_v49, 3 }
 0x1ae   :  { %2750 = vrot.lane.b32.xlu0 %v2742_v5, %s5012_s20  ;;  %v3220_v1 = vrot.slane %v3208_v46, 3  ;;  %v3223_v24 = vrot.slane %v3210_v50, 3  ;;  %v3212_v57 = vmul.f32 %v3207_v39, %v5521_v34  ;;  %v3369_v5 = vmul.f32 %v3367_v28, %v5497_v26 }
 0x1af   :  { %2752 = vrot.lane.b32.xlu1 %v2744_v12, %s5012_s20  ;;  %v3067_v13 = vsel %vm301_vm4, %v3065_v40, %v3066_v23  ;;  %v3068_v58 = vrot.slane %v3053_v7, 3  ;;  %v3211_v4 = vmul.f32 %v3207_v39, %v5506_v63  ;;  %v3370_v15 = vmul.f32 %v3367_v28, %v5517_v18 }
 0x1b0   :  { %v3222_v56 = vsel %vm301_vm4, %v3220_v1, %v3221_v54  ;;  %v3224_v12 = vsel %vm301_vm4, %v3221_v54, %v3223_v24  ;;  %v3226_v14 = vrot.slane %v3212_v57, 3  ;;  %v3381_v17 = vrot.slane %v3369_v5, 4 }
 0x1b1   :  { %v3069_v29 = vsel %vm301_vm4, %v3066_v23, %v3068_v58  ;;  %v3225_v22 = vrot.slane %v3211_v4, 3  ;;  %v3380_v19 = vrot.slane %v3368_v2, 4  ;;  %v3372_v30 = vmul.f32 %v3367_v28, %v5521_v34 }
 0x1b2   :  { %2754 = vrot.lane.b32.xlu0 %v2747_v21, %s5012_s20  ;;  %v3213_v21 = vmul.f32 %v3207_v39, %v5558_v9  ;;  %v3371_v62 = vmul.f32 %v3367_v28, %v5506_v63  ;;  %v3530_v10 = vmul.f32 %v3527_v25, %v5517_v18  ;;  %v3540_v36 = vrot.slane %v3528_v44, 4 }
 0x1b3   :  { %2910 = vrot.lane.b32.xlu1 %v2902_v37, %s5015_s29  ;;  %v3227_v11 = vsel %vm301_vm4, %v3225_v22, %v3226_v14  ;;  %v3383_v37 = vrot.slane %v3370_v15, 4  ;;  %v3382_v45 = vsel %vm298_vm3, %v3380_v19, %v3381_v17  ;;  %v3386_v3 = vrot.slane %v3372_v30, 4 }
 0x1b4   :  { %v3228_v38 = vrot.slane %v3213_v21, 3  ;;  %v3385_v16 = vrot.slane %v3371_v62, 4  ;;  %v3532_v51 = vmul.f32 %v3527_v25, %v5521_v34  ;;  %v3533_v46 = vmul.f32 %v3527_v25, %v5558_v9 }
 0x1b5   :  { %v5639_v23 = vstv %s4753_s9  ;;  %v5656_v58 = vstv %s4757_s10  ;;  %v649_v21 = vstv %s4669_s11  ;;  %v5688_v30 = vsel %vm295_vm2, 0.0, %v357_v48  ;;  %s4672_s9 = sld [smem:[#allocation6 + $0xa]]  ;;  %s4675_s10 = sld [smem:[#allocation6 + $0xd]] }
 0x1b6   :  { %2912 = vrot.lane.b32.xlu0 %v2904_v35, %s5015_s29  ;;  %v3529_v35 = vmul.f32 %v3527_v25, %v5497_v26  ;;  %v3229_v60 = vsel %vm301_vm4, %v3226_v14, %v3228_v38  ;;  %v3387_v39 = vsel %vm298_vm3, %v3385_v16, %v3386_v3  ;;  %v3817_v54 = vmul.f32 %v5639_v23, %v5497_v26  ;;  %s4676_s11 = sld [smem:[#allocation6 + $0xe]] }
 0x1b7   :  { %2756 = vrot.lane.b32.xlu1 %v2749_v61, %s5012_s20  ;;  %v3384_v61 = vsel %vm298_vm3, %v3381_v17, %v3383_v37  ;;  %v3548_v40 = vrot.slane %v3533_v46, 4  ;;  %v3818_v1 = vmul.f32 %v5639_v23, %v5517_v18  ;;  %v3816_v24 = vmul.f32 %v5639_v23, %v5490_v31  ;;  %8761 = vst [vmem:[#allocation22_spill] sm:$0xff] %v5688_v30 }
 0x1b8   :  { %v3541_v27 = vrot.slane %v3529_v35, 4  ;;  %v3977_v2 = vmul.f32 %v5656_v58, %v5497_v26  ;;  %v3819_v15 = vmul.f32 %v5639_v23, %v5506_v63  ;;  %v3976_v17 = vmul.f32 %v5656_v58, %v5490_v31 }
 0x1b9   :  { %v3831_v4 = vrot.slane %v3818_v1, 6  ;;  %v3828_v14 = vrot.slane %v3816_v24, 6  ;;  %v651_v22 = vmul.f32 %v649_v21, %v5544_v47  ;;  %v654_v62 = vmul.f32 %v649_v21, %v5567_v52 }
 0x1ba   :  { %2914 = vrot.lane.b32.xlu0 %v2907_v32, %s5015_s29  ;;  %v3373_v32 = vmul.f32 %v3367_v28, %v5558_v9  ;;  %v3542_v43 = vsel %vm298_vm3, %v3540_v36, %v3541_v27  ;;  %v3829_v28 = vrot.slane %v3817_v54, 6  ;;  %v809_v44 = vstv %s4673_s12  ;;  %s4679_s12 = sld [smem:[#allocation6 + $0x11]] }
 0x1bb   :  { %3070 = vrot.lane.b32.xlu1 %v3062_v59, %s5016_s1  ;;  %v3543_v59 = vrot.slane %v3530_v10, 4  ;;  %v663_v35 = vrot.slane %v651_v22, 1  ;;  %v811_v48 = vmul.f32 %v809_v44, %v5544_v47  ;;  %v5702_v10 = vsel %vm295_vm2, %v358_v8, 0.0 }
 0x1bc   :  { %v3388_v49 = vrot.slane %v3373_v32, 4  ;;  %v3830_v42 = vsel %vm292_vm1, %v3828_v14, %v3829_v28  ;;  %v3832_v19 = vsel %vm292_vm1, %v3829_v28, %v3831_v4  ;;  %8762 = vst [vmem:[#allocation23_spill] sm:$0xff] %v5702_v10  ;;  %v813_v1 = vmul.f32 %v809_v44, %v5688_v30 }
 0x1bd   :  { %v3544_v50 = vsel %vm298_vm3, %v3541_v27, %v3543_v59  ;;  %v653_v27 = vmul.f32 %v649_v21, %v5688_v30  ;;  %v823_v8 = vrot.slane %v811_v48, 1  ;;  %v1129_v22 = vstv %s4681_s14  ;;  %s4680_s14 = sld [smem:[#allocation6 + $0x12]] }
 0x1be   :  { %3072 = vrot.lane.b32.xlu0 %v3064_v20, %s5016_s1  ;;  %v3531_v20 = vmul.f32 %v3527_v25, %v5506_v63  ;;  %v3389_v7 = vsel %vm298_vm3, %v3386_v3, %v3388_v49  ;;  %v3988_v25 = vrot.slane %v3976_v17, 6  ;;  %v827_v14 = vrot.slane %v813_v1, 1 }
 0x1bf   :  { %2916 = vrot.lane.b32.xlu1 %v2909_v0, %s5015_s29  ;;  %v3546_v0 = vrot.slane %v3532_v51, 4  ;;  %v655_v51 = vmul.f32 %v649_v21, %v5702_v10  ;;  %v1449_v1 = vstv %s4689_s21  ;;  %s4684_s21 = sld [smem:[#allocation6 + $0x16]] }
 0x1c1   :  { %v3549_v5 = vsel %vm298_vm3, %v3546_v0, %v3548_v40 }
 0x1c2   :  { %3074 = vrot.lane.b32.xlu0 %v3067_v13, %s5016_s1  ;;  %v3545_v13 = vrot.slane %v3531_v20, 4 }
 0x1c3   :  { %3230 = vrot.lane.b32.xlu1 %v3222_v56, %s5017_s8  ;;  %v5654_v56 = vmul.f32 %v5639_v23, %v5521_v34 }
 0x1c4   :  { %v3547_v57 = vsel %vm298_vm3, %v3545_v13, %v3546_v0  ;;  %v969_v0 = vstv %s4677_s13  ;;  %s5019_s13 = smov 123  }
 0x1c5   :  { %v971_v40 = vmul.f32 %v969_v0, %v5544_v47 }
 0x1c6   :  { %3232 = vrot.lane.b32.xlu0 %v3224_v12, %s5017_s8  ;;  %v5665_v12 = vsel %vm295_vm2, %v355_v53, 0.0  ;;  %v3834_v53 = vrot.slane %v5654_v56, 6 }
 0x1c7   :  { %3076 = vrot.lane.b32.xlu1 %v3069_v29, %s5016_s1  ;;  %8760 = vst [vmem:[#allocation21_spill] sm:$0xff] %v5665_v12  ;;  %v5673_v29 = vsel %vm295_vm2, 0.0, %v354_v41  ;;  %v652_v6 = vmul.f32 %v649_v21, %v5665_v12  ;;  %v3833_v41 = vrot.slane %v3819_v15, 6  ;;  %v812_v59 = vmul.f32 %v809_v44, %v5665_v12 }
 0x1c8   :  { %v650_v37 = vmul.f32 %v649_v21, %v5673_v29  ;;  %v810_v32 = vmul.f32 %v809_v44, %v5673_v29  ;;  %v970_v13 = vmul.f32 %v969_v0, %v5673_v29  ;;  %v972_v28 = vmul.f32 %v969_v0, %v5665_v12 }
 0x1c9   :  { %v3835_v38 = vsel %vm292_vm1, %v3833_v41, %v3834_v53  ;;  %v825_v20 = vrot.slane %v812_v59, 1  ;;  %v983_v4 = vrot.slane %v971_v40, 2  ;;  %v973_v41 = vmul.f32 %v969_v0, %v5688_v30 }
 0x1ca   :  { %3234 = vrot.lane.b32.xlu0 %v3227_v11, %s5017_s8  ;;  %v3989_v11 = vrot.slane %v3977_v2, 6  ;;  %v822_v49 = vrot.slane %v810_v32, 1  ;;  %v815_v2 = vmul.f32 %v809_v44, %v5702_v10  ;;  %v982_v15 = vrot.slane %v970_v13, 2 }
 0x1cb   :  { %3390 = vrot.lane.b32.xlu1 %v3382_v45, %s5013_s23  ;;  %v3978_v45 = vmul.f32 %v5656_v58, %v5517_v18  ;;  %v826_v24 = vsel %vm307_vm6, %v823_v8, %v825_v20  ;;  %v985_v21 = vrot.slane %v972_v28, 2  ;;  %v1133_v59 = vmul.f32 %v1129_v22, %v5688_v30 }
 0x1cc   :  { %v3990_v33 = vsel %vm292_vm1, %v3988_v25, %v3989_v11  ;;  %v824_v54 = vsel %vm307_vm6, %v822_v49, %v823_v8  ;;  %v1135_v20 = vmul.f32 %v1129_v22, %v5702_v10 }
 0x1cd   :  { %v3991_v3 = vrot.slane %v3978_v45, 6  ;;  %v986_v25 = vsel %vm304_vm5, %v983_v4, %v985_v21 }
 0x1ce   :  { %3392 = vrot.lane.b32.xlu0 %v3384_v61, %s5013_s23  ;;  %v665_v61 = vrot.slane %v652_v6, 1  ;;  %v1131_v6 = vmul.f32 %v1129_v22, %v5544_v47 }
 0x1cf   :  { %3236 = vrot.lane.b32.xlu1 %v3229_v60, %s5017_s8  ;;  %v662_v60 = vrot.slane %v650_v37, 1  ;;  %v5708_v16 = vsel %vm292_vm1, %v3989_v11, %v3991_v3  ;;  %v830_v11 = vrot.slane %v815_v2, 1  ;;  %v1130_v37 = vmul.f32 %v1129_v22, %v5673_v29 }
 0x1d0   :  { %v666_v55 = vsel %vm307_vm6, %v663_v35, %v665_v61 }
 0x1d1   :  { %v664_v36 = vsel %vm307_vm6, %v662_v60, %v663_v35  ;;  %v1142_v61 = vrot.slane %v1130_v37, 2  ;;  %v1134_v60 = vmul.f32 %v1129_v22, %v5567_v52 }
 0x1d2   :  { %3394 = vrot.lane.b32.xlu0 %v3387_v39, %s5013_s23  ;;  %v668_v39 = vrot.slane %v654_v62, 1  ;;  %v1143_v62 = vrot.slane %v1131_v6, 2  ;;  %v1454_v6 = vmul.f32 %v1449_v1, %v5567_v52 }
 0x1d3   :  { %3550 = vrot.lane.b32.xlu1 %v3542_v43, %s5014_s24  ;;  %v667_v43 = vrot.slane %v653_v27, 1  ;;  %v1289_v27 = vstv %s4685_s0  ;;  %s4683_s0 = sld [smem:[#allocation6 + $0x15]] }
 0x1d4   :  { %v1144_v32 = vsel %vm304_vm5, %v1142_v61, %v1143_v62  ;;  %v1294_v40 = vmul.f32 %v1289_v27, %v5567_v52  ;;  %v1293_v28 = vmul.f32 %v1289_v27, %v5688_v30  ;;  %v1295_v21 = vmul.f32 %v1289_v27, %v5702_v10 }
 0x1d5   :  { %v669_v46 = vsel %vm307_vm6, %v667_v43, %v668_v39  ;;  %v1292_v43 = vmul.f32 %v1289_v27, %v5665_v12 }
 0x1d6   :  { %3552 = vrot.lane.b32.xlu0 %v3544_v50, %s5014_s24  ;;  %v814_v50 = vmul.f32 %v809_v44, %v5567_v52  ;;  %v975_v44 = vmul.f32 %v969_v0, %v5702_v10  ;;  %v1308_v2 = vrot.slane %v1294_v40, 3  ;;  %v1310_v37 = vrot.slane %v1295_v21, 3 }
 0x1d7   :  { %3396 = vrot.lane.b32.xlu1 %v3389_v7, %s5013_s23  ;;  %v670_v7 = vrot.slane %v655_v51, 1  ;;  %v1148_v51 = vrot.slane %v1134_v60, 2 }
 0x1da   :  { %3554 = vrot.lane.b32.xlu0 %v3547_v57, %s5014_s24  ;;  %v828_v57 = vrot.slane %v814_v50, 1  ;;  %v1147_v50 = vrot.slane %v1133_v59, 2 }
 0x1db   :  { %3556 = vrot.lane.b32.xlu1 %v3549_v5, %s5014_s24  ;;  %v671_v5 = vsel %vm307_vm6, %v668_v39, %v670_v7  ;;  %v1291_v39 = vmul.f32 %v1289_v27, %v5544_v47  ;;  %v1305_v7 = vrot.slane %v1292_v43, 3 }
 0x1dc   :  { %v829_v17 = vsel %vm307_vm6, %v827_v14, %v828_v57  ;;  %v831_v35 = vsel %vm307_vm6, %v828_v57, %v830_v11  ;;  %v1451_v57 = vmul.f32 %v1449_v1, %v5544_v47  ;;  %v1452_v14 = vmul.f32 %v1449_v1, %v5665_v12 }
 0x1de   :  { %3838 = vrot.lane.b32.xlu0 %v3830_v42, %s5012_s20  ;;  %v974_v42 = vmul.f32 %v969_v0, %v5567_v52  ;;  %v1465_v11 = vrot.slane %v1452_v14, 3 }
 0x1df   :  { %3840 = vrot.lane.b32.xlu1 %v3832_v19, %s5012_s20  ;;  %v984_v19 = vsel %vm304_vm5, %v982_v15, %v983_v4 }
 0x1e0   :  { %v988_v45 = vrot.slane %v974_v42, 2  ;;  %v1307_v42 = vrot.slane %v1293_v28, 3 }
 0x1e2   :  { %3842 = vrot.lane.b32.xlu0 %v3835_v38, %s5012_s20  ;;  %v1132_v38 = vmul.f32 %v1129_v22, %v5665_v12 }
 0x1e3   :  { %3998 = vrot.lane.b32.xlu1 %v3990_v33, %s5015_s29  ;;  %v987_v33 = vrot.slane %v973_v41, 2 }
 0x1e4   :  { %v1145_v3 = vrot.slane %v1132_v38, 2  ;;  %v1737_v38 = vstv %s4697_s22  ;;  %s4687_s22 = sld [smem:[#allocation6 + $0x19]] }
 0x1e5   :  { %v989_v48 = vsel %vm304_vm5, %v987_v33, %v988_v45  ;;  %v1311_v33 = vsel %vm301_vm4, %v1308_v2, %v1310_v37  ;;  %v1742_v59 = vmul.f32 %v1737_v38, %v5567_v52 }
 0x1e6   :  { %672 = vrot.lane.b32.xlu0 %v664_v36, %s5012_s20  ;;  %v990_v36 = vrot.slane %v975_v44, 2  ;;  %v1146_v8 = vsel %vm304_vm5, %v1143_v62, %v1145_v3  ;;  %v1468_v62 = vrot.slane %v1454_v6, 3  ;;  %v1739_v44 = vmul.f32 %v1737_v38, %v5544_v47 }
 0x1e7   :  { %674 = vrot.lane.b32.xlu1 %v666_v55, %s5012_s20  ;;  %v1290_v55 = vmul.f32 %v1289_v27, %v5673_v29  ;;  %v1738_v27 = vmul.f32 %v1737_v38, %v5673_v29 }
 0x1e8   :  { %v991_v49 = vsel %vm304_vm5, %v988_v45, %v990_v36  ;;  %v1453_v45 = vmul.f32 %v1449_v1, %v5688_v30 }
 0x1e9   :  { %v1302_v0 = vrot.slane %v1290_v55, 3  ;;  %v1897_v55 = vstv %s4701_s25  ;;  %s4688_s25 = sld [smem:[#allocation6 + $0x1a]] }
 0x1ea   :  { %676 = vrot.lane.b32.xlu0 %v669_v46, %s5012_s20  ;;  %v1303_v46 = vrot.slane %v1291_v39, 3  ;;  %v1467_v60 = vrot.slane %v1453_v45, 3  ;;  %v1751_v39 = vrot.slane %v1739_v44, 5  ;;  %v1899_v43 = vmul.f32 %v1897_v55, %v5544_v47 }
 0x1eb   :  { %832 = vrot.lane.b32.xlu1 %v824_v54, %s5015_s29  ;;  %v1149_v54 = vsel %vm304_vm5, %v1147_v50, %v1148_v51  ;;  %v1898_v50 = vmul.f32 %v1897_v55, %v5673_v29  ;;  %v1900_v40 = vmul.f32 %v1897_v55, %v5665_v12 }
 0x1ec   :  { %v1304_v13 = vsel %vm301_vm4, %v1302_v0, %v1303_v46  ;;  %v1306_v4 = vsel %vm301_vm4, %v1303_v46, %v1305_v7  ;;  %v1469_v36 = vsel %vm301_vm4, %v1467_v60, %v1468_v62  ;;  %v1741_v46 = vmul.f32 %v1737_v38, %v5688_v30 }
 0x1ed   :  { %v1756_v7 = vrot.slane %v1742_v59, 5  ;;  %v1913_v14 = vrot.slane %v1900_v40, 5 }
 0x1ee   :  { %834 = vrot.lane.b32.xlu0 %v826_v24, %s5015_s29  ;;  %v1150_v24 = vrot.slane %v1135_v20, 2 }
 0x1ef   :  { %678 = vrot.lane.b32.xlu1 %v671_v5, %s5012_s20  ;;  %v1450_v5 = vmul.f32 %v1449_v1, %v5673_v29 }
 0x1f0   :  { %v1151_v15 = vsel %vm304_vm5, %v1148_v51, %v1150_v24  ;;  %v1743_v24 = vmul.f32 %v1737_v38, %v5702_v10 }
 0x1f1   :  { %v1462_v22 = vrot.slane %v1450_v5, 3  ;;  %v1910_v5 = vrot.slane %v1898_v50, 5 }
 0x1f2   :  { %836 = vrot.lane.b32.xlu0 %v829_v17, %s5015_s29  ;;  %v1463_v17 = vrot.slane %v1451_v57, 3  ;;  %v1755_v57 = vrot.slane %v1741_v46, 5 }
 0x1f3   :  { %992 = vrot.lane.b32.xlu1 %v984_v19, %s5016_s1  ;;  %v1309_v19 = vsel %vm301_vm4, %v1307_v42, %v1308_v2  ;;  %v1758_v42 = vrot.slane %v1743_v24, 5 }
 0x1f4   :  { %v1464_v41 = vsel %vm301_vm4, %v1462_v22, %v1463_v17  ;;  %v1757_v2 = vsel %vm295_vm2, %v1755_v57, %v1756_v7 }
 0x1f6   :  { %994 = vrot.lane.b32.xlu0 %v986_v25, %s5016_s1  ;;  %v1455_v25 = vmul.f32 %v1449_v1, %v5702_v10 }
 0x1f7   :  { %838 = vrot.lane.b32.xlu1 %v831_v35, %s5015_s29  ;;  %v1466_v35 = vsel %vm301_vm4, %v1463_v17, %v1465_v11  ;;  %v2057_v17 = vstv %s4705_s26  ;;  %s4695_s26 = sld [smem:[#allocation6 + $0x21]] }
 0x1f8   :  { %v1470_v61 = vrot.slane %v1455_v25, 3  ;;  %v2059_v22 = vmul.f32 %v2057_v17, %v5544_v47  ;;  %v2058_v6 = vmul.f32 %v2057_v17, %v5673_v29  ;;  %v2060_v45 = vmul.f32 %v2057_v17, %v5665_v12 }
 0x1fa   :  { %996 = vrot.lane.b32.xlu0 %v989_v48, %s5016_s1  ;;  %v1740_v48 = vmul.f32 %v1737_v38, %v5665_v12  ;;  %v1759_v38 = vsel %vm295_vm2, %v1756_v7, %v1758_v42 }
 0x1fb   :  { %1152 = vrot.lane.b32.xlu1 %v1144_v32, %s5017_s8 }
 0x1fc   :  { %v1753_v51 = vrot.slane %v1740_v48, 5 }
 0x1fe   :  { %1154 = vrot.lane.b32.xlu0 %v1146_v8, %s5017_s8  ;;  %v1471_v8 = vsel %vm301_vm4, %v1468_v62, %v1470_v61  ;;  %v1754_v1 = vsel %vm295_vm2, %v1751_v39, %v1753_v51  ;;  %v1903_v62 = vmul.f32 %v1897_v55, %v5702_v10  ;;  %v2070_v61 = vrot.slane %v2058_v6, 6 }
 0x1ff   :  { %998 = vrot.lane.b32.xlu1 %v991_v49, %s5016_s1  ;;  %v1750_v49 = vrot.slane %v1738_v27, 5  ;;  %v2073_v27 = vrot.slane %v2060_v45, 6  ;;  %v2061_v51 = vmul.f32 %v2057_v17, %v5688_v30 }
 0x201   :  { %v2075_v24 = vrot.slane %v2061_v51, 6 }
 0x202   :  { %1156 = vrot.lane.b32.xlu0 %v1149_v54, %s5017_s8  ;;  %v1752_v54 = vsel %vm295_vm2, %v1750_v49, %v1751_v39  ;;  %v2217_v39 = vstv %s4709_s27  ;;  %s4696_s27 = sld [smem:[#allocation6 + $0x22]] }
 0x203   :  { %1312 = vrot.lane.b32.xlu1 %v1304_v13, %s5013_s23  ;;  %v1911_v13 = vrot.slane %v1899_v43, 5  ;;  %v2218_v49 = vmul.f32 %v2217_v39, %v5673_v29  ;;  %v2220_v7 = vmul.f32 %v2217_v39, %v5665_v12 }
 0x205   :  { %v1912_v21 = vsel %vm295_vm2, %v1910_v5, %v1911_v13  ;;  %v1914_v37 = vsel %vm295_vm2, %v1911_v13, %v1913_v14  ;;  %v2063_v13 = vmul.f32 %v2057_v17, %v5702_v10  ;;  %v2230_v5 = vrot.slane %v2218_v49, 6 }
 0x206   :  { %1314 = vrot.lane.b32.xlu0 %v1306_v4, %s5013_s23 }
 0x207   :  { %1158 = vrot.lane.b32.xlu1 %v1151_v15, %s5017_s8  ;;  %v1902_v15 = vmul.f32 %v1897_v55, %v5567_v52 }
 0x208   :  { %v5784_v3 = vpop.permute.xlu1 %2358 }
 0x209   :  { %8763 = vst [vmem:[#allocation24_spill] sm:$0xff] %v5784_v3  ;;  %v1916_v25 = vrot.slane %v1902_v15, 5  ;;  %v2233_v15 = vrot.slane %v2220_v7, 6 }
 0x20a   :  { %1316 = vrot.lane.b32.xlu0 %v1309_v19, %s5013_s23  ;;  %v1901_v19 = vmul.f32 %v1897_v55, %v5688_v30  ;;  %v2219_v55 = vmul.f32 %v2217_v39, %v5544_v47 }
 0x20b   :  { %1472 = vrot.lane.b32.xlu1 %v1464_v41, %s5014_s24 }
 0x20c   :  { %v5788_v32 = vpop.permute.xlu0 %2360  ;;  %v5800_v0 = vpop.permute.xlu1 %2462  ;;  %v1915_v44 = vrot.slane %v1901_v19, 5  ;;  %v2221_v19 = vmul.f32 %v2217_v39, %v5688_v30 }
 0x20d   :  { %8764 = vst [vmem:[#allocation25_spill] sm:$0xff] %v5788_v32  ;;  %8766 = vst [vmem:[#allocation27_spill] sm:$0xff] %v5800_v0 }
 0x20e   :  { %1474 = vrot.lane.b32.xlu0 %v1466_v35, %s5014_s24  ;;  %v2071_v35 = vrot.slane %v2059_v22, 6  ;;  %v1917_v60 = vsel %vm295_vm2, %v1915_v44, %v1916_v25  ;;  %v2078_v22 = vrot.slane %v2063_v13, 6  ;;  %v2235_v44 = vrot.slane %v2221_v19, 6 }
 0x20f   :  { %1318 = vrot.lane.b32.xlu1 %v1311_v33, %s5013_s23  ;;  %v597_v13 = vstv %s4667_s28  ;;  %s4699_s28 = sld [smem:[#allocation6 + $0x25]] }
 0x210   :  { %v2072_v59 = vsel %vm292_vm1, %v2070_v61, %v2071_v35  ;;  %v2074_v50 = vsel %vm292_vm1, %v2071_v35, %v2073_v27 }
 0x212   :  { %1476 = vrot.lane.b32.xlu0 %v1469_v36, %s5014_s24  ;;  %v2062_v36 = vmul.f32 %v2057_v17, %v5567_v52  ;;  %v2223_v17 = vmul.f32 %v2217_v39, %v5702_v10 }
 0x213   :  { %1478 = vrot.lane.b32.xlu1 %v1471_v8, %s5014_s24  ;;  %v1918_v8 = vrot.slane %v1903_v62, 5  ;;  %v3821_v62 = vmul.f32 %v5639_v23, %v5558_v9  ;;  %v3981_v23 = vmul.f32 %v5656_v58, %v5558_v9 }
 0x214   :  { %v5797_v20 = vpop.permute.xlu0 %2362  ;;  %v2238_v35 = vrot.slane %v2223_v17, 6 }
 0x215   :  { %8765 = vst [vmem:[#allocation26_spill] sm:$0xff] %v5797_v20  ;;  %v1919_v40 = vsel %vm295_vm2, %v1916_v25, %v1918_v8  ;;  %v3979_v8 = vmul.f32 %v5656_v58, %v5506_v63 }
 0x216   :  { %1760 = vrot.lane.b32.xlu0 %v1752_v54, %s5012_s20  ;;  %v2076_v54 = vrot.slane %v2062_v36, 6  ;;  %v3980_v36 = vmul.f32 %v5656_v58, %v5521_v34 }
 0x217   :  { %1762 = vrot.lane.b32.xlu1 %v1754_v1, %s5012_s20  ;;  %v2231_v1 = vrot.slane %v2219_v55, 6  ;;  %v3993_v7 = vrot.slane %v3979_v8, 6 }
 0x218   :  { %v5808_v28 = vpop.permute.xlu0 %2464  ;;  %v2077_v14 = vsel %vm292_vm1, %v2075_v24, %v2076_v54  ;;  %v3994_v49 = vrot.slane %v3980_v36, 6 }
 0x219   :  { %8767 = vst [vmem:[#allocation28_spill] sm:$0xff] %v5808_v28  ;;  %v5810_v4 = vpop.permute.xlu1 %2364  ;;  %v2232_v42 = vsel %vm292_vm1, %v2230_v5, %v2231_v1  ;;  %v2234_v25 = vsel %vm292_vm1, %v2231_v1, %v2233_v15  ;;  %v599_v5 = vmul.f32 %v597_v13, %v5544_v47  ;;  %v5912_v15 = vstv %s4668_s7  ;;  %s4703_s7 = sld [smem:[#allocation6 + $0x29]] }
 0x21a   :  { %8768 = vst [vmem:[#allocation29_spill] sm:$0xff] %v5810_v4  ;;  %1764 = vrot.lane.b32.xlu0 %v1757_v2, %s5012_s20  ;;  %v3995_v1 = vsel %vm292_vm1, %v3993_v7, %v3994_v49  ;;  %v601_v7 = vmul.f32 %v597_v13, %v5567_v52 }
 0x21b   :  { %1920 = vrot.lane.b32.xlu1 %v1912_v21, %s5015_s29  ;;  %v2222_v21 = vmul.f32 %v2217_v39, %v5567_v52 }
 0x21c   :  { %v5819_v11 = vpop.permute.xlu0 %2466 }
 0x21d   :  { %8769 = vst [vmem:[#allocation30_spill] sm:$0xff] %v5819_v11  ;;  %v5822_v41 = vpop.permute.xlu1 %2468  ;;  %v2236_v45 = vrot.slane %v2222_v21, 6 }
 0x21e   :  { %8770 = vst [vmem:[#allocation31_spill] sm:$0xff] %v5822_v41  ;;  %1922 = vrot.lane.b32.xlu0 %v1914_v37, %s5015_s29 }
 0x21f   :  { %1766 = vrot.lane.b32.xlu1 %v1759_v38, %s5012_s20  ;;  %v2079_v38 = vsel %vm292_vm1, %v2076_v54, %v2078_v22  ;;  %v2237_v27 = vsel %vm292_vm1, %v2235_v44, %v2236_v45  ;;  %v2239_v39 = vsel %vm292_vm1, %v2236_v45, %v2238_v35  ;;  %v3996_v54 = vrot.slane %v3981_v23, 6 }
 0x220   :  { %v5830_v33 = vpop.permute.xlu0 %2750  ;;  %v600_v22 = vmul.f32 %v597_v13, %v5688_v30 }
 0x221   :  { %8771 = vst [vmem:[#allocation32_spill] sm:$0xff] %v5830_v33  ;;  %v5832_v48 = vpop.permute.xlu1 %2752 }
 0x222   :  { %8772 = vst [vmem:[#allocation33_spill] sm:$0xff] %v5832_v48  ;;  %1924 = vrot.lane.b32.xlu0 %v1917_v60, %s5015_s29 }
 0x223   :  { %2080 = vrot.lane.b32.xlu1 %v2072_v59, %s5016_s1  ;;  %v3836_v59 = vrot.slane %v3821_v62, 6  ;;  %v625_v62 = vmul.f32 %v5912_v15, %v5544_v47 }
 0x224   :  { %v5841_v43 = vpop.permute.xlu0 %2754 }
 0x225   :  { %8773 = vst [vmem:[#allocation34_spill] sm:$0xff] %v5841_v43  ;;  %v5844_v46 = vpop.permute.xlu1 %2910 }
 0x226   :  { %8774 = vst [vmem:[#allocation35_spill] sm:$0xff] %v5844_v46  ;;  %2082 = vrot.lane.b32.xlu0 %v2074_v50, %s5016_s1  ;;  %v3837_v50 = vsel %vm292_vm1, %v3834_v53, %v3836_v59  ;;  %v598_v53 = vmul.f32 %v597_v13, %v5673_v29 }
 0x227   :  { %1926 = vrot.lane.b32.xlu1 %v1919_v40, %s5015_s29 }
 0x228   :  { %v5852_v57 = vpop.permute.xlu0 %2912 }
 0x229   :  { %8775 = vst [vmem:[#allocation36_spill] sm:$0xff] %v5852_v57  ;;  %v5854_v2 = vpop.permute.xlu1 %2756 }
 0x22a   :  { %8776 = vst [vmem:[#allocation37_spill] sm:$0xff] %v5854_v2  ;;  %2084 = vrot.lane.b32.xlu0 %v2077_v14, %s5016_s1  ;;  %v729_v14 = vstv %s4671_s30  ;;  %s4700_s30 = sld [smem:[#allocation6 + $0x26]] }
 0x22b   :  { %2240 = vrot.lane.b32.xlu1 %v2232_v42, %s5017_s8  ;;  %v731_v21 = vmul.f32 %v729_v14, %v5544_v47  ;;  %v730_v17 = vmul.f32 %v729_v14, %v5673_v29  ;;  %v732_v45 = vmul.f32 %v729_v14, %v5665_v12  ;;  %v734_v59 = vmul.f32 %v729_v14, %v5567_v52 }
 0x22c   :  { %v5863_v6 = vpop.permute.xlu0 %2914  ;;  %v733_v8 = vmul.f32 %v729_v14, %v5688_v30 }
 0x22d   :  { %8777 = vst [vmem:[#allocation38_spill] sm:$0xff] %v5863_v6  ;;  %v5865_v37 = vpop.permute.xlu1 %3070  ;;  %v742_v44 = vrot.slane %v730_v17, 1  ;;  %v745_v36 = vrot.slane %v732_v45, 1  ;;  %v5958_v17 = vstv %s4675_s10  ;;  %s4707_s10 = sld [smem:[#allocation6 + $0x2d]] }
 0x22e   :  { %8778 = vst [vmem:[#allocation39_spill] sm:$0xff] %v5865_v37  ;;  %2242 = vrot.lane.b32.xlu0 %v2234_v25, %s5017_s8  ;;  %v624_v25 = vmul.f32 %v5912_v15, %v5673_v29  ;;  %v747_v13 = vrot.slane %v733_v8, 1 }
 0x22f   :  { %2086 = vrot.lane.b32.xlu1 %v2079_v38, %s5016_s1  ;;  %v743_v38 = vrot.slane %v731_v21, 1 }
 0x230   :  { %v5873_v61 = vpop.permute.xlu0 %3072 }
 0x231   :  { %8779 = vst [vmem:[#allocation40_spill] sm:$0xff] %v5873_v61  ;;  %v5875_v60 = vpop.permute.xlu1 %2916  ;;  %v1369_v61 = vstv %s4687_s22  ;;  %s4723_s22 = sld [smem:[#allocation6 + $0x3d]] }
 0x232   :  { %8780 = vst [vmem:[#allocation41_spill] sm:$0xff] %v5875_v60  ;;  %2244 = vrot.lane.b32.xlu0 %v2237_v27, %s5017_s8 }
 0x233   :  { %2246 = vrot.lane.b32.xlu1 %v2239_v39, %s5017_s8  ;;  %v744_v39 = vsel %vm307_vm6, %v742_v44, %v743_v38 }
 0x234   :  { %v5887_v55 = vpop.permute.xlu0 %3074 }
 0x235   :  { %8781 = vst [vmem:[#allocation42_spill] sm:$0xff] %v5887_v55  ;;  %v5889_v51 = vpop.permute.xlu1 %3230 }
 0x236   :  { %8782 = vst [vmem:[#allocation43_spill] sm:$0xff] %v5889_v51  ;;  %4000 = vrot.lane.b32.xlu0 %v5708_v16, %s5015_s29  ;;  %v3997_v16 = vsel %vm292_vm1, %v3994_v49, %v3996_v54  ;;  %v5940_v49 = vstv %s4672_s9  ;;  %v746_v54 = vsel %vm307_vm6, %v743_v38, %v745_v36  ;;  %v891_v38 = vmul.f32 %v5958_v17, %v5544_v47  ;;  %s4704_s9 = sld [smem:[#allocation6 + $0x2a]] }
 0x237   :  { %3844 = vrot.lane.b32.xlu1 %v3837_v50, %s5012_s20  ;;  %s5018_s20 = smov 124   ;;  %v892_v36 = vmul.f32 %v5958_v17, %v5665_v12 }
 0x238   :  { %v5897_v40 = vpop.permute.xlu0 %3232 }
 0x239   :  { %8783 = vst [vmem:[#allocation44_spill] sm:$0xff] %v5897_v40  ;;  %v5899_v58 = vpop.permute.xlu1 %3076 }
 0x23a   :  { %8784 = vst [vmem:[#allocation45_spill] sm:$0xff] %v5899_v58  ;;  %4002 = vrot.lane.b32.xlu0 %v3995_v1, %s5015_s29  ;;  %v771_v1 = vmul.f32 %v5940_v49, %v5544_v47  ;;  %v6087_v58 = vstv %s4683_s0  ;;  %s4715_s0 = sld [smem:[#allocation6 + $0x35]] }
 0x23b   :  { %4004 = vrot.lane.b32.xlu1 %v3997_v16, %s5015_s29  ;;  %v748_v16 = vrot.slane %v734_v59, 1  ;;  %v890_v59 = vmul.f32 %v5958_v17, %v5673_v29 }
 0x23c   :  { %v5905_v56 = vpop.permute.xlu0 %3234  ;;  %v783_v45 = vrot.slane %v771_v1, 1  ;;  %v903_v1 = vrot.slane %v891_v38, 1  ;;  %v5987_v38 = vmul.f32 %v5940_v49, %v5567_v52 }
 0x23d   :  { %8785 = vst [vmem:[#allocation46_spill] sm:$0xff] %v5905_v56  ;;  %v5908_v24 = vpop.permute.xlu1 %3390 }
 0x23e   :  { %8786 = vst [vmem:[#allocation47_spill] sm:$0xff] %v5908_v24  ;;  %606 = vrot.lane.b32.xlu0 %v598_v53, %s5018_s20  ;;  %v772_v53 = vmul.f32 %v5940_v49, %v5665_v12  ;;  %v1210_v24 = vmul.f32 %v6087_v58, %v5673_v29 }
 0x23f   :  { %608 = vrot.lane.b32.xlu1 %v599_v5, %s5018_s20  ;;  %v770_v5 = vmul.f32 %v5940_v49, %v5673_v29 }
 0x240   :  { %v5916_v42 = vpop.permute.xlu0 %3392  ;;  %v785_v44 = vrot.slane %v772_v53, 1  ;;  %v1222_v40 = vrot.slane %v1210_v24, 3  ;;  %v6126_v24 = vmul.f32 %v6087_v58, %v5567_v52 }
 0x241   :  { %8787 = vst [vmem:[#allocation48_spill] sm:$0xff] %v5916_v42  ;;  %v5920_v19 = vpop.permute.xlu1 %3236 }
 0x242   :  { %8788 = vst [vmem:[#allocation49_spill] sm:$0xff] %v5920_v19  ;;  %610 = vrot.lane.b32.xlu0 %v600_v22, %s5018_s20  ;;  %v626_v22 = vmul.f32 %v5912_v15, %v5688_v30  ;;  %v786_v53 = vsel %vm307_vm6, %v783_v45, %v785_v44  ;;  %v5993_v44 = vmul.f32 %v5958_v17, %v5567_v52 }
 0x243   :  { %632 = vrot.lane.b32.xlu1 %v624_v25, %s5018_s20 }
 0x244   :  { %v5927_v35 = vpop.permute.xlu0 %3394 }
 0x245   :  { %8789 = vst [vmem:[#allocation50_spill] sm:$0xff] %v5927_v35  ;;  %v5931_v27 = vpop.permute.xlu1 %3550 }
 0x246   :  { %8790 = vst [vmem:[#allocation51_spill] sm:$0xff] %v5931_v27  ;;  %634 = vrot.lane.b32.xlu0 %v625_v62, %s5018_s20  ;;  %v749_v62 = vsel %vm307_vm6, %v747_v13, %v748_v16  ;;  %v735_v13 = vmul.f32 %v729_v14, %v5702_v10 }
 0x247   :  { %752 = vrot.lane.b32.xlu1 %v744_v39, %s5015_s29  ;;  %v782_v39 = vrot.slane %v770_v5, 1  ;;  %v902_v5 = vrot.slane %v890_v59, 1  ;;  %v627_v59 = vmul.f32 %v5912_v15, %v5567_v52 }
 0x248   :  { %v5937_v23 = vpop.permute.xlu0 %3552  ;;  %v750_v14 = vrot.slane %v735_v13, 1 }
 0x249   :  { %8791 = vst [vmem:[#allocation52_spill] sm:$0xff] %v5937_v23  ;;  %v5942_v50 = vpop.permute.xlu1 %3396 }
 0x24a   :  { %8792 = vst [vmem:[#allocation53_spill] sm:$0xff] %v5942_v50  ;;  %754 = vrot.lane.b32.xlu0 %v746_v54, %s5015_s29  ;;  %v751_v13 = vsel %vm307_vm6, %v748_v16, %v750_v14 }
 0x24b   :  { %612 = vrot.lane.b32.xlu1 %v601_v7, %s5018_s20  ;;  %v784_v7 = vsel %vm307_vm6, %v782_v39, %v783_v45 }
 0x24c   :  { %v5954_v21 = vpop.permute.xlu0 %3554 }
 0x24d   :  { %8793 = vst [vmem:[#allocation54_spill] sm:$0xff] %v5954_v21  ;;  %v5960_v25 = vpop.permute.xlu1 %3556 }
 0x24e   :  { %8794 = vst [vmem:[#allocation55_spill] sm:$0xff] %v5960_v25  ;;  %636 = vrot.lane.b32.xlu0 %v626_v22, %s5018_s20  ;;  %v905_v22 = vrot.slane %v892_v36, 1  ;;  %v773_v36 = vmul.f32 %v5940_v49, %v5688_v30 }
 0x24f   :  { %756 = vrot.lane.b32.xlu1 %v749_v62, %s5015_s29 }
 0x250   :  { %v5971_v8 = vpop.permute.xlu0 %3838  ;;  %v906_v45 = vsel %vm307_vm6, %v903_v1, %v905_v22 }
 0x251   :  { %8795 = vst [vmem:[#allocation56_spill] sm:$0xff] %v5971_v8  ;;  %v5973_v54 = vpop.permute.xlu1 %3840  ;;  %v6021_v8 = vstv %s4679_s12  ;;  %s4711_s12 = sld [smem:[#allocation6 + $0x31]] }
 0x252   :  { %8796 = vst [vmem:[#allocation57_spill] sm:$0xff] %v5973_v54  ;;  %792 = vrot.lane.b32.xlu0 %v784_v7, %s5015_s29  ;;  %v904_v54 = vsel %vm307_vm6, %v902_v5, %v903_v1  ;;  %v6004_v7 = vstv %s4676_s11  ;;  %v908_v5 = vrot.slane %v5993_v44, 1  ;;  %v1051_v44 = vmul.f32 %v6021_v8, %v5544_v47  ;;  %s4708_s11 = sld [smem:[#allocation6 + $0x2e]] }
 0x253   :  { %794 = vrot.lane.b32.xlu1 %v786_v53, %s5015_s29  ;;  %v788_v53 = vrot.slane %v5987_v38, 1  ;;  %v931_v22 = vmul.f32 %v6004_v7, %v5544_v47  ;;  %v932_v15 = vmul.f32 %v6004_v7, %v5665_v12  ;;  %v1050_v50 = vmul.f32 %v6021_v8, %v5673_v29 }
 0x254   :  { %v5980_v62 = vpop.permute.xlu0 %3842 }
 0x255   :  { %8797 = vst [vmem:[#allocation58_spill] sm:$0xff] %v5980_v62  ;;  %v5982_v25 = vpop.permute.xlu1 %3998  ;;  %v930_v62 = vmul.f32 %v6004_v7, %v5673_v29  ;;  %v943_v14 = vrot.slane %v931_v22, 2  ;;  %v1062_v19 = vrot.slane %v1050_v50, 2  ;;  %v6060_v50 = vmul.f32 %v6021_v8, %v5567_v52 }
 0x256   :  { %8798 = vst [vmem:[#allocation59_spill] sm:$0xff] %v5982_v25  ;;  %912 = vrot.lane.b32.xlu0 %v904_v54, %s5019_s13  ;;  %v893_v54 = vmul.f32 %v5958_v17, %v5688_v30 }
 0x257   :  { %914 = vrot.lane.b32.xlu1 %v906_v45, %s5019_s13  ;;  %v787_v45 = vrot.slane %v773_v36, 1 }
 0x258   :  { %v5998_v39 = vpop.permute.xlu0 %672  ;;  %v907_v38 = vrot.slane %v893_v54, 1  ;;  %v942_v54 = vrot.slane %v930_v62, 2  ;;  %v895_v62 = vmul.f32 %v5958_v17, %v5702_v10 }
 0x259   :  { %v6006_v1 = vpop.permute.xlu1 %674  ;;  %v789_v16 = vsel %vm307_vm6, %v787_v45, %v788_v53 }
 0x25a   :  { %638 = vrot.lane.b32.xlu0 %v627_v59, %s5018_s20  ;;  %v909_v36 = vsel %vm307_vm6, %v907_v38, %v908_v5  ;;  %v945_v59 = vrot.slane %v932_v15, 2  ;;  %v944_v45 = vsel %vm304_vm5, %v942_v54, %v943_v14  ;;  %v775_v15 = vmul.f32 %v5940_v49, %v5702_v10 }
 0x25b   :  { %758 = vrot.lane.b32.xlu1 %v751_v13, %s5015_s29  ;;  %v1052_v13 = vmul.f32 %v6021_v8, %v5665_v12  ;;  %v6054_v49 = vmul.f32 %v6004_v7, %v5567_v52  ;;  %v910_v17 = vrot.slane %v895_v62, 1 }
 0x25c   :  { %v6019_v25 = vpop.permute.xlu0 %676  ;;  %v946_v38 = vsel %vm304_vm5, %v943_v14, %v945_v59  ;;  %v790_v54 = vrot.slane %v775_v15, 1  ;;  %v933_v59 = vmul.f32 %v6004_v7, %v5688_v30 }
 0x25d   :  { %v6023_v21 = vpop.permute.xlu1 %832  ;;  %v911_v62 = vsel %vm307_vm6, %v908_v5, %v910_v17 }
 0x25e   :  { %796 = vrot.lane.b32.xlu0 %v789_v16, %s5015_s29  ;;  %v1063_v16 = vrot.slane %v1051_v44, 2  ;;  %v947_v56 = vrot.slane %v933_v59, 2 }
 0x25f   :  { %916 = vrot.lane.b32.xlu1 %v909_v36, %s5019_s13  ;;  %v1065_v36 = vrot.slane %v1052_v13, 2  ;;  %v1053_v13 = vmul.f32 %v6021_v8, %v5688_v30 }
 0x260   :  { %v6035_v35 = vpop.permute.xlu0 %834  ;;  %v1064_v44 = vsel %vm304_vm5, %v1062_v19, %v1063_v16 }
 0x261   :  { %v6037_v22 = vpop.permute.xlu1 %678  ;;  %v1066_v14 = vsel %vm304_vm5, %v1063_v16, %v1065_v36  ;;  %v791_v16 = vsel %vm307_vm6, %v788_v53, %v790_v54 }
 0x262   :  { %952 = vrot.lane.b32.xlu0 %v944_v45, %s5016_s1  ;;  %v6069_v45 = vstv %s4680_s14  ;;  %s4712_s14 = sld [smem:[#allocation6 + $0x32]] }
 0x263   :  { %954 = vrot.lane.b32.xlu1 %v946_v38, %s5016_s1  ;;  %v948_v38 = vrot.slane %v6054_v49, 2  ;;  %v1091_v36 = vmul.f32 %v6069_v45, %v5544_v47  ;;  %v1090_v53 = vmul.f32 %v6069_v45, %v5673_v29  ;;  %v1067_v49 = vrot.slane %v1053_v13, 2 }
 0x264   :  { %v6047_v23 = vpop.permute.xlu0 %836 }
 0x265   :  { %v6049_v27 = vpop.permute.xlu1 %992  ;;  %v949_v5 = vsel %vm304_vm5, %v947_v56, %v948_v38  ;;  %v1103_v17 = vrot.slane %v1091_v36, 2  ;;  %v1102_v13 = vrot.slane %v1090_v53, 2  ;;  %v1055_v53 = vmul.f32 %v6021_v8, %v5702_v10 }
 0x266   :  { %1072 = vrot.lane.b32.xlu0 %v1064_v44, %s5017_s8  ;;  %v1068_v44 = vrot.slane %v6060_v50, 2  ;;  %v1211_v50 = vmul.f32 %v6087_v58, %v5544_v47 }
 0x267   :  { %1074 = vrot.lane.b32.xlu1 %v1066_v14, %s5017_s8  ;;  %v1092_v14 = vmul.f32 %v6069_v45, %v5665_v12  ;;  %v1104_v36 = vsel %vm304_vm5, %v1102_v13, %v1103_v17  ;;  %v1070_v8 = vrot.slane %v1055_v53, 2 }
 0x268   :  { %v6065_v19 = vpop.permute.xlu0 %994  ;;  %v1069_v59 = vsel %vm304_vm5, %v1067_v49, %v1068_v44 }
 0x269   :  { %v6071_v15 = vpop.permute.xlu1 %838  ;;  %v1071_v53 = vsel %vm304_vm5, %v1068_v44, %v1070_v8  ;;  %v1371_v8 = vmul.f32 %v1369_v61, %v5544_v47 }
 0x26a   :  { %798 = vrot.lane.b32.xlu0 %v791_v16, %s5015_s29  ;;  %v1105_v16 = vrot.slane %v1092_v14, 2  ;;  %v935_v14 = vmul.f32 %v6004_v7, %v5702_v10  ;;  %v6120_v7 = vmul.f32 %v6069_v45, %v5567_v52 }
 0x26b   :  { %918 = vrot.lane.b32.xlu1 %v911_v62, %s5019_s13  ;;  %v1212_v62 = vmul.f32 %v6087_v58, %v5665_v12 }
 0x26c   :  { %v6085_v54 = vpop.permute.xlu0 %996  ;;  %v1106_v49 = vsel %vm304_vm5, %v1103_v17, %v1105_v16  ;;  %v950_v13 = vrot.slane %v935_v14, 2  ;;  %v1093_v16 = vmul.f32 %v6069_v45, %v5688_v30 }
 0x26d   :  { %v6089_v42 = vpop.permute.xlu1 %1152 }
 0x26e   :  { %956 = vrot.lane.b32.xlu0 %v949_v5, %s5016_s1  ;;  %v1223_v5 = vrot.slane %v1211_v50, 3  ;;  %v1107_v51 = vrot.slane %v1093_v16, 2  ;;  %v1372_v16 = vmul.f32 %v1369_v61, %v5665_v12 }
 0x26f   :  { %1076 = vrot.lane.b32.xlu1 %v1069_v59, %s5017_s8  ;;  %v1225_v59 = vrot.slane %v1212_v62, 3  ;;  %v1213_v62 = vmul.f32 %v6087_v58, %v5688_v30 }
 0x270   :  { %v6101_v55 = vpop.permute.xlu0 %1154  ;;  %v1224_v50 = vsel %vm301_vm4, %v1222_v40, %v1223_v5 }
 0x271   :  { %v6103_v56 = vpop.permute.xlu1 %998  ;;  %v1226_v17 = vsel %vm301_vm4, %v1223_v5, %v1225_v59  ;;  %v951_v5 = vsel %vm304_vm5, %v948_v38, %v950_v13 }
 0x272   :  { %1112 = vrot.lane.b32.xlu0 %v1104_v36, %s5017_s8  ;;  %v6135_v36 = vstv %s4684_s21  ;;  %s4716_s21 = sld [smem:[#allocation6 + $0x36]] }
 0x273   :  { %1114 = vrot.lane.b32.xlu1 %v1106_v49, %s5017_s8  ;;  %v1108_v49 = vrot.slane %v6120_v7, 2  ;;  %v1251_v59 = vmul.f32 %v6135_v36, %v5544_v47  ;;  %v1250_v38 = vmul.f32 %v6135_v36, %v5673_v29  ;;  %v1227_v7 = vrot.slane %v1213_v62, 3 }
 0x274   :  { %v6113_v60 = vpop.permute.xlu0 %1156  ;;  %v1370_v62 = vmul.f32 %v1369_v61, %v5673_v29 }
 0x275   :  { %v6115_v6 = vpop.permute.xlu1 %1312  ;;  %v1263_v44 = vrot.slane %v1251_v59, 3  ;;  %v1262_v43 = vrot.slane %v1250_v38, 3  ;;  %v1383_v59 = vrot.slane %v1371_v8, 3  ;;  %v1215_v38 = vmul.f32 %v6087_v58, %v5702_v10 }
 0x276   :  { %1232 = vrot.lane.b32.xlu0 %v1224_v50, %s5013_s23  ;;  %v1228_v50 = vrot.slane %v6126_v24, 3  ;;  %v1374_v58 = vmul.f32 %v1369_v61, %v5567_v52 }
 0x277   :  { %1234 = vrot.lane.b32.xlu1 %v1226_v17, %s5013_s23  ;;  %v1252_v17 = vmul.f32 %v6135_v36, %v5665_v12 }
 0x278   :  { %v6131_v40 = vpop.permute.xlu0 %1314  ;;  %v1229_v24 = vsel %vm301_vm4, %v1227_v7, %v1228_v50  ;;  %v1385_v7 = vrot.slane %v1372_v16, 3  ;;  %v1253_v16 = vmul.f32 %v6135_v36, %v5688_v30 }
 0x279   :  { %v6137_v14 = vpop.permute.xlu1 %1158 }
 0x27a   :  { %958 = vrot.lane.b32.xlu0 %v951_v5, %s5016_s1  ;;  %v1109_v5 = vsel %vm304_vm5, %v1107_v51, %v1108_v49  ;;  %v1264_v51 = vsel %vm301_vm4, %v1262_v43, %v1263_v44  ;;  %v1267_v48 = vrot.slane %v1253_v16, 3 }
 0x27b   :  { %1078 = vrot.lane.b32.xlu1 %v1071_v53, %s5017_s8  ;;  %v1265_v53 = vrot.slane %v1252_v17, 3 }
 0x27c   :  { %v6151_v13 = vpop.permute.xlu0 %1316 }
 0x27d   :  { %v6153_v2 = vpop.permute.xlu1 %1472  ;;  %v1266_v17 = vsel %vm301_vm4, %v1263_v44, %v1265_v53  ;;  %v1386_v44 = vsel %vm301_vm4, %v1383_v59, %v1385_v7  ;;  %v1230_v53 = vrot.slane %v1215_v38, 3  ;;  %v1388_v38 = vrot.slane %v1374_v58, 3 }
 0x27e   :  { %1116 = vrot.lane.b32.xlu0 %v1109_v5, %s5017_s8  ;;  %v1095_v5 = vmul.f32 %v6069_v45, %v5702_v10  ;;  %v1254_v45 = vmul.f32 %v6135_v36, %v5567_v52  ;;  %v1375_v58 = vmul.f32 %v1369_v61, %v5702_v10 }
 0x27f   :  { %1236 = vrot.lane.b32.xlu1 %v1229_v24, %s5013_s23  ;;  %v1382_v24 = vrot.slane %v1370_v62, 3  ;;  %v1231_v7 = vsel %vm301_vm4, %v1228_v50, %v1230_v53 }
 0x280   :  { %v6162_v37 = vpop.permute.xlu0 %1474  ;;  %v1110_v8 = vrot.slane %v1095_v5, 2  ;;  %v1409_v5 = vstv %s4688_s25  ;;  %s4724_s25 = sld [smem:[#allocation6 + $0x3e]] }
 0x281   :  { %v6164_v57 = vpop.permute.xlu1 %1318  ;;  %v1384_v43 = vsel %vm301_vm4, %v1382_v24, %v1383_v59  ;;  %v1411_v59 = vmul.f32 %v1409_v5, %v5544_v47  ;;  %v1410_v11 = vmul.f32 %v1409_v5, %v5673_v29  ;;  %v1414_v20 = vmul.f32 %v1409_v5, %v5567_v52 }
 0x282   :  { %1272 = vrot.lane.b32.xlu0 %v1264_v51, %s5013_s23  ;;  %v1373_v51 = vmul.f32 %v1369_v61, %v5688_v30  ;;  %v1111_v24 = vsel %vm304_vm5, %v1108_v49, %v1110_v8 }
 0x283   :  { %1274 = vrot.lane.b32.xlu1 %v1266_v17, %s5013_s23  ;;  %v1422_v16 = vrot.slane %v1410_v11, 3  ;;  %v1413_v11 = vmul.f32 %v1409_v5, %v5688_v30  ;;  %v1428_v28 = vrot.slane %v1414_v20, 3 }
 0x284   :  { %v6174_v46 = vpop.permute.xlu0 %1476  ;;  %v1387_v4 = vrot.slane %v1373_v51, 3 }
 0x285   :  { %v6176_v41 = vpop.permute.xlu1 %1478 }
 0x286   :  { %8799 = vst [vmem:[#allocation60_spill] sm:$0xff] %v6176_v41  ;;  %1392 = vrot.lane.b32.xlu0 %v1384_v43, %s5014_s24  ;;  %v1268_v43 = vrot.slane %v1254_v45, 3  ;;  %v1423_v45 = vrot.slane %v1411_v59, 3  ;;  %v1389_v50 = vsel %vm301_vm4, %v1387_v4, %v1388_v38 }
 0x287   :  { %1394 = vrot.lane.b32.xlu1 %v1386_v44, %s5014_s24  ;;  %v1412_v44 = vmul.f32 %v1409_v5, %v5665_v12 }
 0x288   :  { %v6187_v62 = vpop.permute.xlu0 %1760  ;;  %v1269_v8 = vsel %vm301_vm4, %v1267_v48, %v1268_v43  ;;  %v1424_v48 = vsel %vm301_vm4, %v1422_v16, %v1423_v45 }
 0x289   :  { %v6190_v17 = vpop.permute.xlu1 %1762  ;;  %v1425_v53 = vrot.slane %v1412_v44, 3  ;;  %v1390_v44 = vrot.slane %v1375_v58, 3  ;;  %v1415_v58 = vmul.f32 %v1409_v5, %v5702_v10 }
 0x28a   :  { %1118 = vrot.lane.b32.xlu0 %v1111_v24, %s5017_s8  ;;  %v1255_v24 = vmul.f32 %v6135_v36, %v5702_v10  ;;  %v1657_v36 = vstv %s4695_s26  ;;  %s4727_s26 = sld [smem:[#allocation6 + $0x41]] }
 0x28b   :  { %1238 = vrot.lane.b32.xlu1 %v1231_v7, %s5013_s23  ;;  %v1426_v4 = vsel %vm301_vm4, %v1423_v45, %v1425_v53  ;;  %v1659_v61 = vmul.f32 %v1657_v36, %v5544_v47  ;;  %v1391_v45 = vsel %vm301_vm4, %v1388_v38, %v1390_v44  ;;  %v1430_v5 = vrot.slane %v1415_v58, 3 }
 0x28c   :  { %v6199_v33 = vpop.permute.xlu0 %1764  ;;  %v1270_v59 = vrot.slane %v1255_v24, 3  ;;  %v6255_v58 = vstv %s4699_s28  ;;  %s4731_s28 = sld [smem:[#allocation6 + $0x45]] }
 0x28d   :  { %8800 = vst [vmem:[#allocation61_spill] sm:$0xff] %v6199_v33  ;;  %v6201_v49 = vpop.permute.xlu1 %1920  ;;  %v1671_v53 = vrot.slane %v1659_v61, 4  ;;  %v1661_v61 = vmul.f32 %v1657_v36, %v5688_v30 }
 0x28e   :  { %8801 = vst [vmem:[#allocation62_spill] sm:$0xff] %v6201_v49  ;;  %1276 = vrot.lane.b32.xlu0 %v1269_v8, %s5013_s23  ;;  %v1271_v16 = vsel %vm301_vm4, %v1268_v43, %v1270_v59  ;;  %v1662_v59 = vmul.f32 %v1657_v36, %v5567_v52 }
 0x28f   :  { %1396 = vrot.lane.b32.xlu1 %v1389_v50, %s5014_s24  ;;  %v1658_v50 = vmul.f32 %v1657_v36, %v5673_v29 }
 0x290   :  { %v6210_v7 = vpop.permute.xlu0 %1922 }
 0x291   :  { %8802 = vst [vmem:[#allocation63_spill] sm:$0xff] %v6210_v7  ;;  %v6212_v51 = vpop.permute.xlu1 %1766  ;;  %v1670_v32 = vrot.slane %v1658_v50, 4 }
 0x292   :  { %8803 = vst [vmem:[#allocation64_spill] sm:$0xff] %v6212_v51  ;;  %1432 = vrot.lane.b32.xlu0 %v1424_v48, %s5014_s24  ;;  %v1660_v48 = vmul.f32 %v1657_v36, %v5665_v12 }
 0x293   :  { %1434 = vrot.lane.b32.xlu1 %v1426_v4, %s5014_s24  ;;  %v1427_v4 = vrot.slane %v1413_v11, 3  ;;  %v1672_v38 = vsel %vm298_vm3, %v1670_v32, %v1671_v53 }
 0x294   :  { %v6221_v8 = vpop.permute.xlu0 %1924  ;;  %v1673_v43 = vrot.slane %v1660_v48, 4 }
 0x295   :  { %8804 = vst [vmem:[#allocation65_spill] sm:$0xff] %v6221_v8  ;;  %v6224_v24 = vpop.permute.xlu1 %2080  ;;  %v1429_v20 = vsel %vm301_vm4, %v1427_v4, %v1428_v28  ;;  %v6238_v8 = vstv %s4696_s27  ;;  %v1431_v4 = vsel %vm301_vm4, %v1428_v28, %v1430_v5  ;;  %v1820_v28 = vmul.f32 %v6255_v58, %v5665_v12  ;;  %s4728_s27 = sld [smem:[#allocation6 + $0x42]] }
 0x296   :  { %8805 = vst [vmem:[#allocation66_spill] sm:$0xff] %v6224_v24  ;;  %1278 = vrot.lane.b32.xlu0 %v1271_v16, %s5013_s23  ;;  %v1699_v44 = vmul.f32 %v6238_v8, %v5544_v47  ;;  %v1698_v50 = vmul.f32 %v6238_v8, %v5673_v29  ;;  %v1674_v48 = vsel %vm298_vm3, %v1671_v53, %v1673_v43 }
 0x297   :  { %1398 = vrot.lane.b32.xlu1 %v1391_v45, %s5014_s24  ;;  %v1676_v45 = vrot.slane %v1662_v59, 4  ;;  %v1700_v32 = vmul.f32 %v6238_v8, %v5665_v12  ;;  %v1818_v43 = vmul.f32 %v6255_v58, %v5673_v29  ;;  %v6282_v33 = vmul.f32 %v6238_v8, %v5567_v52 }
 0x298   :  { %v6232_v0 = vpop.permute.xlu0 %2082  ;;  %v1710_v53 = vrot.slane %v1698_v50, 4 }
 0x299   :  { %8806 = vst [vmem:[#allocation67_spill] sm:$0xff] %v6232_v0  ;;  %v6234_v3 = vpop.permute.xlu1 %1926  ;;  %v1713_v51 = vrot.slane %v1700_v32, 4  ;;  %v1833_v32 = vrot.slane %v1820_v28, 5 }
 0x29a   :  { %8807 = vst [vmem:[#allocation68_spill] sm:$0xff] %v6234_v3  ;;  %1436 = vrot.lane.b32.xlu0 %v1429_v20, %s5014_s24  ;;  %v1711_v20 = vrot.slane %v1699_v44, 4 }
 0x29b   :  { %1680 = vrot.lane.b32.xlu1 %v1672_v38, %s5018_s20  ;;  %v1819_v38 = vmul.f32 %v6255_v58, %v5544_v47 }
 0x29c   :  { %v6246_v11 = vpop.permute.xlu0 %2084  ;;  %v1712_v5 = vsel %vm298_vm3, %v1710_v53, %v1711_v20  ;;  %v6288_v53 = vmul.f32 %v6255_v58, %v5567_v52 }
 0x29d   :  { %8808 = vst [vmem:[#allocation69_spill] sm:$0xff] %v6246_v11  ;;  %v6250_v16 = vpop.permute.xlu1 %2240  ;;  %v1675_v11 = vrot.slane %v1661_v61, 4  ;;  %v1831_v44 = vrot.slane %v1819_v38, 5  ;;  %v1663_v61 = vmul.f32 %v1657_v36, %v5702_v10 }
 0x29e   :  { %8809 = vst [vmem:[#allocation70_spill] sm:$0xff] %v6250_v16  ;;  %1682 = vrot.lane.b32.xlu0 %v1674_v48, %s5018_s20 }
 0x29f   :  { %1438 = vrot.lane.b32.xlu1 %v1431_v4, %s5014_s24  ;;  %v1677_v48 = vsel %vm298_vm3, %v1675_v11, %v1676_v45  ;;  %v1830_v4 = vrot.slane %v1818_v43, 5  ;;  %v1714_v11 = vsel %vm298_vm3, %v1711_v20, %v1713_v51  ;;  %v1678_v36 = vrot.slane %v1663_v61, 4 }
 0x2a0   :  { %v6262_v3 = vpop.permute.xlu0 %2242  ;;  %v1701_v43 = vmul.f32 %v6238_v8, %v5688_v30  ;;  %v1821_v20 = vmul.f32 %v6255_v58, %v5688_v30  ;;  %v1716_v61 = vrot.slane %v6282_v33, 4 }
 0x2a1   :  { %8810 = vst [vmem:[#allocation71_spill] sm:$0xff] %v6262_v3  ;;  %v6266_v59 = vpop.permute.xlu1 %2086  ;;  %v1832_v38 = vsel %vm295_vm2, %v1830_v4, %v1831_v44 }
 0x2a2   :  { %8811 = vst [vmem:[#allocation72_spill] sm:$0xff] %v6266_v59  ;;  %1684 = vrot.lane.b32.xlu0 %v1677_v48, %s5018_s20  ;;  %v6297_v48 = vstv %s4700_s30  ;;  %v1835_v33 = vrot.slane %v1821_v20, 5  ;;  %s4732_s30 = sld [smem:[#allocation6 + $0x46]] }
 0x2a3   :  { %1720 = vrot.lane.b32.xlu1 %v1712_v5, %s5018_s20  ;;  %v1834_v5 = vsel %vm295_vm2, %v1831_v44, %v1833_v32  ;;  %v1859_v4 = vmul.f32 %v6297_v48, %v5544_v47  ;;  %v1858_v44 = vmul.f32 %v6297_v48, %v5673_v29 }
 0x2a4   :  { %v6275_v50 = vpop.permute.xlu0 %2244 }
 0x2a5   :  { %8812 = vst [vmem:[#allocation73_spill] sm:$0xff] %v6275_v50  ;;  %v6277_v59 = vpop.permute.xlu1 %2246  ;;  %v1870_v20 = vrot.slane %v1858_v44, 5  ;;  %v1823_v44 = vmul.f32 %v6255_v58, %v5702_v10 }
 0x2a6   :  { %8813 = vst [vmem:[#allocation74_spill] sm:$0xff] %v6277_v59  ;;  %1722 = vrot.lane.b32.xlu0 %v1714_v11, %s5018_s20  ;;  %v1679_v11 = vsel %vm298_vm3, %v1676_v45, %v1678_v36  ;;  %v1715_v59 = vrot.slane %v1701_v43, 4  ;;  %v1871_v36 = vrot.slane %v1859_v4, 5 }
 0x2a7   :  { %1840 = vrot.lane.b32.xlu1 %v1832_v38, %s5015_s29  ;;  %v1836_v38 = vrot.slane %v6288_v53, 5  ;;  %v1838_v58 = vrot.slane %v1823_v44, 5 }
 0x2a8   :  { %v6293_v51 = vpop.permute.xlu0 %4000  ;;  %v1717_v45 = vsel %vm298_vm3, %v1715_v59, %v1716_v61  ;;  %v1872_v4 = vsel %vm295_vm2, %v1870_v20, %v1871_v36 }
 0x2a9   :  { %8814 = vst [vmem:[#allocation75_spill] sm:$0xff] %v6293_v51  ;;  %v6299_v28 = vpop.permute.xlu1 %3844  ;;  %v1860_v51 = vmul.f32 %v6297_v48, %v5665_v12  ;;  %v1837_v43 = vsel %vm295_vm2, %v1835_v33, %v1836_v38  ;;  %v1839_v44 = vsel %vm295_vm2, %v1836_v38, %v1838_v58 }
 0x2aa   :  { %8815 = vst [vmem:[#allocation76_spill] sm:$0xff] %v6299_v28  ;;  %1842 = vrot.lane.b32.xlu0 %v1834_v5, %s5015_s29  ;;  %v6315_v28 = vstv %s4703_s7  ;;  %s4735_s7 = sld [smem:[#allocation6 + $0x49]] }
 0x2ab   :  { %1686 = vrot.lane.b32.xlu1 %v1679_v11, %s5018_s20  ;;  %v1979_v53 = vmul.f32 %v6315_v28, %v5544_v47  ;;  %v1873_v5 = vrot.slane %v1860_v51, 5  ;;  %v1980_v11 = vmul.f32 %v6315_v28, %v5665_v12  ;;  %v1703_v51 = vmul.f32 %v6238_v8, %v5702_v10 }
 0x2ac   :  { %v6313_v32 = vpop.permute.xlu0 %4002  ;;  %v6348_v8 = vmul.f32 %v6297_v48, %v5567_v52 }
 0x2ad   :  { %8816 = vst [vmem:[#allocation77_spill] sm:$0xff] %v6313_v32  ;;  %v6317_v50 = vpop.permute.xlu1 %4004  ;;  %v1874_v33 = vsel %vm295_vm2, %v1871_v36, %v1873_v5  ;;  %v1718_v20 = vrot.slane %v1703_v51, 4  ;;  %v1861_v5 = vmul.f32 %v6297_v48, %v5688_v30 }
 0x2ae   :  { %8817 = vst [vmem:[#allocation78_spill] sm:$0xff] %v6317_v50  ;;  %1724 = vrot.lane.b32.xlu0 %v1717_v45, %s5018_s20  ;;  %v1978_v50 = vmul.f32 %v6315_v28, %v5673_v29  ;;  %v1991_v45 = vrot.slane %v1979_v53, 5 }
 0x2af   :  { %1844 = vrot.lane.b32.xlu1 %v1837_v43, %s5015_s29  ;;  %v1993_v43 = vrot.slane %v1980_v11, 5  ;;  %v1981_v11 = vmul.f32 %v6315_v28, %v5688_v30 }
 0x2b0   :  { %v6329_v32 = vpop.permute.xlu0 %606 }
 0x2b1   :  { %8818 = vst [vmem:[#allocation79_spill] sm:$0xff] %v6329_v32  ;;  %v6331_v59 = vpop.permute.xlu1 %608  ;;  %v1990_v32 = vrot.slane %v1978_v50, 5  ;;  %v1994_v36 = vsel %vm295_vm2, %v1991_v45, %v1993_v43  ;;  %v6354_v50 = vmul.f32 %v6315_v28, %v5567_v52 }
 0x2b2   :  { %8819 = vst [vmem:[#allocation80_spill] sm:$0xff] %v6331_v59  ;;  %1880 = vrot.lane.b32.xlu0 %v1872_v4, %s5015_s29  ;;  %v6363_v4 = vstv %s4704_s9  ;;  %s4736_s9 = sld [smem:[#allocation6 + $0x4a]] }
 0x2b3   :  { %1882 = vrot.lane.b32.xlu1 %v1874_v33, %s5015_s29  ;;  %v1992_v53 = vsel %vm295_vm2, %v1990_v32, %v1991_v45  ;;  %v1719_v45 = vsel %vm298_vm3, %v1716_v61, %v1718_v20  ;;  %v1876_v33 = vrot.slane %v6348_v8, 5  ;;  %v2019_v43 = vmul.f32 %v6363_v4, %v5544_v47 }
 0x2b4   :  { %v6341_v3 = vpop.permute.xlu0 %610  ;;  %v2018_v61 = vmul.f32 %v6363_v4, %v5673_v29  ;;  %v1995_v8 = vrot.slane %v1981_v11, 5 }
 0x2b5   :  { %8820 = vst [vmem:[#allocation81_spill] sm:$0xff] %v6341_v3  ;;  %v6343_v59 = vpop.permute.xlu1 %632  ;;  %v2031_v58 = vrot.slane %v2019_v43, 6 }
 0x2b6   :  { %8821 = vst [vmem:[#allocation82_spill] sm:$0xff] %v6343_v59  ;;  %2000 = vrot.lane.b32.xlu0 %v1992_v53, %s5019_s13  ;;  %v1996_v53 = vrot.slane %v6354_v50, 5  ;;  %v2030_v11 = vrot.slane %v2018_v61, 6  ;;  %v1983_v61 = vmul.f32 %v6315_v28, %v5702_v10 }
 0x2b7   :  { %2002 = vrot.lane.b32.xlu1 %v1994_v36, %s5019_s13  ;;  %v2020_v36 = vmul.f32 %v6363_v4, %v5665_v12 }
 0x2b8   :  { %v6359_v32 = vpop.permute.xlu0 %634  ;;  %v2032_v43 = vsel %vm292_vm1, %v2030_v11, %v2031_v58 }
 0x2b9   :  { %8822 = vst [vmem:[#allocation83_spill] sm:$0xff] %v6359_v32  ;;  %v6365_v51 = vpop.permute.xlu1 %752  ;;  %v1875_v32 = vrot.slane %v1861_v5, 5  ;;  %v1997_v5 = vsel %vm295_vm2, %v1995_v8, %v1996_v53 }
 0x2ba   :  { %8823 = vst [vmem:[#allocation84_spill] sm:$0xff] %v6365_v51  ;;  %1726 = vrot.lane.b32.xlu0 %v1719_v45, %s5018_s20  ;;  %v6381_v51 = vstv %s4707_s10  ;;  %v2033_v45 = vrot.slane %v2020_v36, 6  ;;  %v1863_v36 = vmul.f32 %v6297_v48, %v5702_v10  ;;  %v2022_v48 = vmul.f32 %v6363_v4, %v5567_v52  ;;  %s4739_s10 = sld [smem:[#allocation6 + $0x4d]] }
 0x2bb   :  { %1846 = vrot.lane.b32.xlu1 %v1839_v44, %s5015_s29  ;;  %v1877_v38 = vsel %vm295_vm2, %v1875_v32, %v1876_v33  ;;  %v2139_v50 = vmul.f32 %v6381_v51, %v5544_v47  ;;  %v2140_v44 = vmul.f32 %v6381_v51, %v5665_v12  ;;  %v2142_v28 = vmul.f32 %v6381_v51, %v5567_v52 }
 0x2bc   :  { %v6379_v20 = vpop.permute.xlu0 %754  ;;  %v2034_v8 = vsel %vm292_vm1, %v2031_v58, %v2033_v45  ;;  %v1878_v11 = vrot.slane %v1863_v36, 5  ;;  %v1998_v45 = vrot.slane %v1983_v61, 5 }
 0x2bd   :  { %8824 = vst [vmem:[#allocation85_spill] sm:$0xff] %v6379_v20  ;;  %v6383_v59 = vpop.permute.xlu1 %612 }
 0x2be   :  { %8825 = vst [vmem:[#allocation86_spill] sm:$0xff] %v6383_v59  ;;  %1884 = vrot.lane.b32.xlu0 %v1877_v38, %s5015_s29  ;;  %v2138_v59 = vmul.f32 %v6381_v51, %v5673_v29  ;;  %v2151_v38 = vrot.slane %v2139_v50, 6  ;;  %v1999_v61 = vsel %vm295_vm2, %v1996_v53, %v1998_v45 }
 0x2bf   :  { %2004 = vrot.lane.b32.xlu1 %v1997_v5, %s5019_s13  ;;  %v2153_v5 = vrot.slane %v2140_v44, 6 }
 0x2c0   :  { %v6395_v20 = vpop.permute.xlu0 %636 }
 0x2c1   :  { %8826 = vst [vmem:[#allocation87_spill] sm:$0xff] %v6395_v20  ;;  %v6397_v32 = vpop.permute.xlu1 %756  ;;  %v2150_v20 = vrot.slane %v2138_v59, 6  ;;  %v2154_v58 = vsel %vm292_vm1, %v2151_v38, %v2153_v5  ;;  %v2021_v59 = vmul.f32 %v6363_v4, %v5688_v30 }
 0x2c2   :  { %8827 = vst [vmem:[#allocation88_spill] sm:$0xff] %v6397_v32  ;;  %2040 = vrot.lane.b32.xlu0 %v2032_v43, %s5016_s1  ;;  %v6425_v43 = vstv %s4708_s11  ;;  %s4693_s11 = sld [smem:[#allocation6 + $0x1f]] }
 0x2c3   :  { %2042 = vrot.lane.b32.xlu1 %v2034_v8, %s5016_s1  ;;  %v2152_v50 = vsel %vm292_vm1, %v2150_v20, %v2151_v38  ;;  %v2141_v20 = vmul.f32 %v6381_v51, %v5688_v30  ;;  %v1879_v38 = vsel %vm295_vm2, %v1876_v33, %v1878_v11  ;;  %v2036_v8 = vrot.slane %v2022_v48, 6 }
 0x2c4   :  { %v6407_v3 = vpop.permute.xlu0 %792  ;;  %v2179_v5 = vmul.f32 %v6425_v43, %v5544_v47 }
 0x2c5   :  { %8828 = vst [vmem:[#allocation89_spill] sm:$0xff] %v6407_v3  ;;  %v6409_v32 = vpop.permute.xlu1 %794  ;;  %v2155_v11 = vrot.slane %v2141_v20, 6  ;;  %v2297_v20 = vstv %s4711_s12  ;;  %s6739_s12 = sld [smem:[#allocation6 + $0x3]] }
 0x2c6   :  { %8829 = vst [vmem:[#allocation90_spill] sm:$0xff] %v6409_v32  ;;  %2160 = vrot.lane.b32.xlu0 %v2152_v50, %s5017_s8  ;;  %v2156_v50 = vrot.slane %v2142_v28, 6 }
 0x2c7   :  { %2162 = vrot.lane.b32.xlu1 %v2154_v58, %s5017_s8  ;;  %v2180_v58 = vmul.f32 %v6425_v43, %v5665_v12 }
 0x2c8   :  { %v6421_v44 = vpop.permute.xlu0 %912  ;;  %v2157_v53 = vsel %vm292_vm1, %v2155_v11, %v2156_v50  ;;  %v2299_v11 = vmul.f32 %v2297_v20, %v5497_v26 }
 0x2c9   :  { %8830 = vst [vmem:[#allocation91_spill] sm:$0xff] %v6421_v44  ;;  %v6427_v36 = vpop.permute.xlu1 %914  ;;  %v2035_v44 = vrot.slane %v2021_v59, 6  ;;  %v2193_v45 = vrot.slane %v2180_v58, 6 }
 0x2ca   :  { %8831 = vst [vmem:[#allocation92_spill] sm:$0xff] %v6427_v36  ;;  %1886 = vrot.lane.b32.xlu0 %v1879_v38, %s5015_s29  ;;  %v2178_v36 = vmul.f32 %v6425_v43, %v5673_v29  ;;  %v2191_v38 = vrot.slane %v2179_v5, 6  ;;  %v2298_v5 = vmul.f32 %v2297_v20, %v5490_v31 }
 0x2cb   :  { %2006 = vrot.lane.b32.xlu1 %v1999_v61, %s5019_s13  ;;  %v2037_v32 = vsel %vm292_vm1, %v2035_v44, %v2036_v8  ;;  %v2143_v44 = vmul.f32 %v6381_v51, %v5702_v10  ;;  %v2181_v51 = vmul.f32 %v6425_v43, %v5688_v30 }
 0x2cc   :  { %v6439_v33 = vpop.permute.xlu0 %638  ;;  %v2190_v28 = vrot.slane %v2178_v36, 6 }
 0x2cd   :  { %8832 = vst [vmem:[#allocation93_spill] sm:$0xff] %v6439_v33  ;;  %v6441_v48 = vpop.permute.xlu1 %758 }
 0x2ce   :  { %8833 = vst [vmem:[#allocation94_spill] sm:$0xff] %v6441_v48  ;;  %2044 = vrot.lane.b32.xlu0 %v2037_v32, %s5016_s1  ;;  %v2192_v33 = vsel %vm292_vm1, %v2190_v28, %v2191_v38  ;;  %v2023_v48 = vmul.f32 %v6363_v4, %v5702_v10  ;;  %v2194_v32 = vsel %vm292_vm1, %v2191_v38, %v2193_v45 }
 0x2cf   :  { %2164 = vrot.lane.b32.xlu1 %v2157_v53, %s5017_s8  ;;  %v2182_v4 = vmul.f32 %v6425_v43, %v5567_v52 }
 0x2d0   :  { %v6447_v59 = vpop.permute.xlu0 %796  ;;  %v2038_v53 = vrot.slane %v2023_v48, 6 }
 0x2d1   :  { %8834 = vst [vmem:[#allocation95_spill] sm:$0xff] %v6447_v59  ;;  %v6449_v61 = vpop.permute.xlu1 %916 }
 0x2d2   :  { %8835 = vst [vmem:[#allocation96_spill] sm:$0xff] %v6449_v61  ;;  %2200 = vrot.lane.b32.xlu0 %v2192_v33, %s5017_s8  ;;  %v2158_v33 = vrot.slane %v2143_v44, 6  ;;  %v2039_v28 = vsel %vm292_vm1, %v2036_v8, %v2038_v53  ;;  %v2195_v44 = vrot.slane %v2181_v51, 6  ;;  %v2183_v51 = vmul.f32 %v6425_v43, %v5702_v10 }
 0x2d3   :  { %2202 = vrot.lane.b32.xlu1 %v2194_v32, %s5017_s8  ;;  %v2196_v32 = vrot.slane %v2182_v4, 6 }
 0x2d4   :  { %v6459_v36 = vpop.permute.xlu0 %952  ;;  %v2159_v48 = vsel %vm292_vm1, %v2156_v50, %v2158_v33  ;;  %v2401_v33 = vstv %s4715_s0  ;;  %s6782_s0 = sld [smem:[#allocation6 + $0x4e]] }
 0x2d5   :  { %8836 = vst [vmem:[#allocation97_spill] sm:$0xff] %v6459_v36  ;;  %v6462_v58 = vpop.permute.xlu1 %954 }
 0x2d6   :  { %8837 = vst [vmem:[#allocation98_spill] sm:$0xff] %v6462_v58  ;;  %2306 = vrot.lane.b32.xlu0 %v2298_v5, %s5013_s23  ;;  %v2197_v58 = vsel %vm292_vm1, %v2195_v44, %v2196_v32  ;;  %v2198_v44 = vrot.slane %v2183_v51, 6 }
 0x2d7   :  { %2308 = vrot.lane.b32.xlu1 %v2299_v11, %s5013_s23 }
 0x2d8   :  { %v6471_v38 = vpop.permute.xlu0 %1072 }
 0x2d9   :  { %8838 = vst [vmem:[#allocation99_spill] sm:$0xff] %v6471_v38  ;;  %v6473_v45 = vpop.permute.xlu1 %1074  ;;  %v2300_v38 = vmul.f32 %v2297_v20, %v5506_v63 }
 0x2da   :  { %8839 = vst [vmem:[#allocation100_spill] sm:$0xff] %v6473_v45  ;;  %2046 = vrot.lane.b32.xlu0 %v2039_v28, %s5016_s1  ;;  %v2323_v45 = vstv %s4712_s14  ;;  %s6752_s14 = sld [smem:[#allocation6 + $0x3b]] }
 0x2db   :  { %2166 = vrot.lane.b32.xlu1 %v2159_v48, %s5017_s8  ;;  %v2324_v50 = vmul.f32 %v2323_v45, %v5490_v31  ;;  %v2325_v4 = vmul.f32 %v2323_v45, %v5497_v26  ;;  %v2403_v48 = vmul.f32 %v2401_v33, %v5497_v26  ;;  %v2326_v51 = vmul.f32 %v2323_v45, %v5506_v63 }
 0x2dc   :  { %v6479_v5 = vpop.permute.xlu0 %798 }
 0x2dd   :  { %8840 = vst [vmem:[#allocation101_spill] sm:$0xff] %v6479_v5  ;;  %v6481_v11 = vpop.permute.xlu1 %918  ;;  %v6564_v5 = vstv %s4727_s26  ;;  %s7046_s26 = sld [smem:[#allocation6 + $0x5d]] }
 0x2de   :  { %8841 = vst [vmem:[#allocation102_spill] sm:$0xff] %v6481_v11  ;;  %2204 = vrot.lane.b32.xlu0 %v2197_v58, %s5017_s8  ;;  %v2402_v58 = vmul.f32 %v2401_v33, %v5490_v31  ;;  %v6546_v11 = vstv %s4724_s25  ;;  %s7018_s25 = sld [smem:[#allocation6 + $0x5a]] }
 0x2df   :  { %2310 = vrot.lane.b32.xlu1 %v2300_v38, %s5013_s23  ;;  %v6590_v59 = vmul.f32 %v6546_v11, %v5521_v34 }
 0x2e0   :  { %v6487_v8 = vpop.permute.xlu0 %956  ;;  %v6795_v7 = vstv %s6752_s14  ;;  %s7334_s14 = sld [smem:[#allocation6 + $0x10]] }
 0x2e1   :  { %8842 = vst [vmem:[#allocation103_spill] sm:$0xff] %v6487_v8  ;;  %v6490_v53 = vpop.permute.xlu1 %1076 }
 0x2e2   :  { %8843 = vst [vmem:[#allocation104_spill] sm:$0xff] %v6490_v53  ;;  %2332 = vrot.lane.b32.xlu0 %v2324_v50, %s5013_s23  ;;  %v2199_v50 = vsel %vm292_vm1, %v2196_v32, %v2198_v44 }
 0x2e3   :  { %2334 = vrot.lane.b32.xlu1 %v2325_v4, %s5013_s23  ;;  %v2301_v4 = vmul.f32 %v2297_v20, %v5521_v34 }
 0x2e4   :  { %v6497_v28 = vpop.permute.xlu0 %1112 }
 0x2e5   :  { %8844 = vst [vmem:[#allocation105_spill] sm:$0xff] %v6497_v28  ;;  %v6500_v38 = vpop.permute.xlu1 %1114 }
 0x2e6   :  { %8845 = vst [vmem:[#allocation106_spill] sm:$0xff] %v6500_v38  ;;  %2410 = vrot.lane.b32.xlu0 %v2402_v58, %s5014_s24 }
 0x2e7   :  { %2412 = vrot.lane.b32.xlu1 %v2403_v48, %s5014_s24  ;;  %v2404_v48 = vmul.f32 %v2401_v33, %v5506_v63 }
 0x2e8   :  { %v6505_v53 = vpop.permute.xlu0 %1232 }
 0x2e9   :  { %8846 = vst [vmem:[#allocation107_spill] sm:$0xff] %v6505_v53  ;;  %v6507_v43 = vpop.permute.xlu1 %1234  ;;  %v2427_v53 = vstv %s4716_s21  ;;  %s6802_s21 = sld [smem:[#allocation6 + $0x51]] }
 0x2ea   :  { %8847 = vst [vmem:[#allocation108_spill] sm:$0xff] %v6507_v43  ;;  %2206 = vrot.lane.b32.xlu0 %v2199_v50, %s5017_s8  ;;  %v2428_v20 = vmul.f32 %v2427_v53, %v5490_v31  ;;  %v2429_v50 = vmul.f32 %v2427_v53, %v5497_v26 }
 0x2eb   :  { %2312 = vrot.lane.b32.xlu1 %v2301_v4, %s5013_s23  ;;  %v2647_v4 = vstv %s4723_s22  ;;  %s6962_s22 = sld [smem:[#allocation6 + $0x59]] }
 0x2ec   :  { %v6513_v38 = vpop.permute.xlu0 %958  ;;  %v2650_v43 = vmul.f32 %v2647_v4, %v5517_v18 }
 0x2ed   :  { %8848 = vst [vmem:[#allocation109_spill] sm:$0xff] %v6513_v38  ;;  %v6516_v58 = vpop.permute.xlu1 %1078 }
 0x2ee   :  { %8849 = vst [vmem:[#allocation110_spill] sm:$0xff] %v6516_v58  ;;  %2336 = vrot.lane.b32.xlu0 %v2326_v51, %s5013_s23  ;;  %v2649_v58 = vmul.f32 %v2647_v4, %v5497_v26  ;;  %v2327_v51 = vmul.f32 %v2323_v45, %v5521_v34  ;;  %v2663_v8 = vrot.slane %v2650_v43, 1  ;;  %v2688_v43 = vmul.f32 %v6546_v11, %v5490_v31 }
 0x2ef   :  { %2414 = vrot.lane.b32.xlu1 %v2404_v48, %s5014_s24  ;;  %v2648_v48 = vmul.f32 %v2647_v4, %v5490_v31 }
 0x2f0   :  { %v6521_v32 = vpop.permute.xlu0 %1116 }
 0x2f1   :  { %8850 = vst [vmem:[#allocation111_spill] sm:$0xff] %v6521_v32  ;;  %v6524_v44 = vpop.permute.xlu1 %1236 }
 0x2f2   :  { %8851 = vst [vmem:[#allocation112_spill] sm:$0xff] %v6524_v44  ;;  %2436 = vrot.lane.b32.xlu0 %v2428_v20, %s5014_s24  ;;  %v2405_v44 = vmul.f32 %v2401_v33, %v5521_v34  ;;  %v2661_v20 = vrot.slane %v2649_v58, 1  ;;  %v2689_v58 = vmul.f32 %v6546_v11, %v5497_v26 }
 0x2f3   :  { %2438 = vrot.lane.b32.xlu1 %v2429_v50, %s5014_s24  ;;  %v2430_v50 = vmul.f32 %v2427_v53, %v5506_v63 }
 0x2f4   :  { %v6530_v38 = vpop.permute.xlu0 %1272 }
 0x2f5   :  { %8852 = vst [vmem:[#allocation113_spill] sm:$0xff] %v6530_v38  ;;  %v6534_v32 = vpop.permute.xlu1 %1274  ;;  %v2660_v38 = vrot.slane %v2648_v48, 1  ;;  %v2431_v48 = vmul.f32 %v2427_v53, %v5521_v34 }
 0x2f6   :  { %8853 = vst [vmem:[#allocation114_spill] sm:$0xff] %v6534_v32  ;;  %2338 = vrot.lane.b32.xlu0 %v2327_v51, %s5013_s23  ;;  %v2652_v32 = vmul.f32 %v2647_v4, %v5521_v34 }
 0x2f7   :  { %2416 = vrot.lane.b32.xlu1 %v2405_v44, %s5014_s24  ;;  %v2662_v33 = vsel %vm307_vm6, %v2660_v38, %v2661_v20  ;;  %v2651_v44 = vmul.f32 %v2647_v4, %v5506_v63  ;;  %v2690_v38 = vmul.f32 %v6546_v11, %v5517_v18 }
 0x2f8   :  { %v6540_v28 = vpop.permute.xlu0 %1392 }
 0x2f9   :  { %8854 = vst [vmem:[#allocation115_spill] sm:$0xff] %v6540_v28  ;;  %v6543_v45 = vpop.permute.xlu1 %1394  ;;  %v2666_v28 = vrot.slane %v2652_v32, 1  ;;  %v2665_v53 = vrot.slane %v2651_v44, 1  ;;  %v2703_v61 = vrot.slane %v2690_v38, 1 }
 0x2fa   :  { %8855 = vst [vmem:[#allocation116_spill] sm:$0xff] %v6543_v45  ;;  %2440 = vrot.lane.b32.xlu0 %v2430_v50, %s5014_s24  ;;  %v2664_v50 = vsel %vm307_vm6, %v2661_v20, %v2663_v8  ;;  %v2808_v8 = vmul.f32 %v6564_v5, %v5490_v31 }
 0x2fb   :  { %2670 = vrot.lane.b32.xlu1 %v2662_v33, %s5018_s20  ;;  %v2701_v33 = vrot.slane %v2689_v58, 1  ;;  %v2667_v20 = vsel %vm307_vm6, %v2665_v53, %v2666_v28  ;;  %v2810_v58 = vmul.f32 %v6564_v5, %v5517_v18 }
 0x2fc   :  { %v6554_v51 = vpop.permute.xlu0 %1118 }
 0x2fd   :  { %8856 = vst [vmem:[#allocation117_spill] sm:$0xff] %v6554_v51  ;;  %v6559_v45 = vpop.permute.xlu1 %1238  ;;  %v2809_v51 = vmul.f32 %v6564_v5, %v5497_v26  ;;  %v2704_v38 = vsel %vm307_vm6, %v2701_v33, %v2703_v61  ;;  %v2823_v53 = vrot.slane %v2810_v58, 2 }
 0x2fe   :  { %8857 = vst [vmem:[#allocation118_spill] sm:$0xff] %v6559_v45  ;;  %2672 = vrot.lane.b32.xlu0 %v2664_v50, %s5018_s20  ;;  %v2700_v45 = vrot.slane %v2688_v43, 1  ;;  %v2653_v50 = vmul.f32 %v2647_v4, %v5558_v9 }
 0x2ff   :  { %2442 = vrot.lane.b32.xlu1 %v2431_v48, %s5014_s24  ;;  %v2821_v44 = vrot.slane %v2809_v51, 2  ;;  %v6596_v51 = vmul.f32 %v6564_v5, %v5521_v34 }
 0x300   :  { %v6570_v36 = vpop.permute.xlu0 %1276  ;;  %v2702_v48 = vsel %vm307_vm6, %v2700_v45, %v2701_v33  ;;  %v2668_v4 = vrot.slane %v2653_v50, 1  ;;  %v2811_v33 = vmul.f32 %v6564_v5, %v5506_v63 }
 0x301   :  { %8858 = vst [vmem:[#allocation119_spill] sm:$0xff] %v6570_v36  ;;  %v6574_v32 = vpop.permute.xlu1 %1396  ;;  %v2820_v36 = vrot.slane %v2808_v8, 2  ;;  %v2691_v8 = vmul.f32 %v6546_v11, %v5506_v63 }
 0x302   :  { %8859 = vst [vmem:[#allocation120_spill] sm:$0xff] %v6574_v32  ;;  %2674 = vrot.lane.b32.xlu0 %v2667_v20, %s5018_s20  ;;  %v6605_v20 = vstv %s4728_s27  ;;  %s7129_s27 = sld [smem:[#allocation6 + $0x57]] }
 0x303   :  { %2710 = vrot.lane.b32.xlu1 %v2702_v48, %s5018_s20  ;;  %v2822_v45 = vsel %vm304_vm5, %v2820_v36, %v2821_v44  ;;  %v2824_v36 = vsel %vm304_vm5, %v2821_v44, %v2823_v53  ;;  %v2706_v48 = vrot.slane %v6590_v59, 1  ;;  %v2849_v50 = vmul.f32 %v6605_v20, %v5497_v26 }
 0x304   :  { %v6583_v43 = vpop.permute.xlu0 %1432  ;;  %v2848_v44 = vmul.f32 %v6605_v20, %v5490_v31  ;;  %v2825_v59 = vrot.slane %v2811_v33, 2 }
 0x305   :  { %8860 = vst [vmem:[#allocation121_spill] sm:$0xff] %v6583_v43  ;;  %v6585_v32 = vpop.permute.xlu1 %1434 }
 0x306   :  { %8861 = vst [vmem:[#allocation122_spill] sm:$0xff] %v6585_v32  ;;  %2712 = vrot.lane.b32.xlu0 %v2704_v38, %s5018_s20  ;;  %v2669_v38 = vsel %vm307_vm6, %v2666_v28, %v2668_v4  ;;  %v2705_v32 = vrot.slane %v2691_v8, 1  ;;  %v2861_v4 = vrot.slane %v2849_v50, 2  ;;  %v2860_v33 = vrot.slane %v2848_v44, 2 }
 0x307   :  { %2830 = vrot.lane.b32.xlu1 %v2822_v45, %s5015_s29  ;;  %v2826_v45 = vrot.slane %v6596_v51, 2  ;;  %v2813_v44 = vmul.f32 %v6564_v5, %v5558_v9 }
 0x308   :  { %v6601_v61 = vpop.permute.xlu0 %1278  ;;  %v2707_v28 = vsel %vm307_vm6, %v2705_v32, %v2706_v48  ;;  %v2862_v50 = vsel %vm304_vm5, %v2860_v33, %v2861_v4 }
 0x309   :  { %8862 = vst [vmem:[#allocation123_spill] sm:$0xff] %v6601_v61  ;;  %v6607_v58 = vpop.permute.xlu1 %1398  ;;  %v2850_v61 = vmul.f32 %v6605_v20, %v5517_v18  ;;  %v2827_v8 = vsel %vm304_vm5, %v2825_v59, %v2826_v45  ;;  %v2828_v5 = vrot.slane %v2813_v44, 2 }
 0x30a   :  { %8863 = vst [vmem:[#allocation124_spill] sm:$0xff] %v6607_v58  ;;  %2832 = vrot.lane.b32.xlu0 %v2824_v36, %s5015_s29  ;;  %v6623_v58 = vstv %s4731_s28  ;;  %s7132_s28 = sld [smem:[#allocation6 + $0x61]] }
 0x30b   :  { %2676 = vrot.lane.b32.xlu1 %v2669_v38, %s5018_s20  ;;  %v2969_v51 = vmul.f32 %v6623_v58, %v5497_v26  ;;  %v2863_v36 = vrot.slane %v2850_v61, 2  ;;  %v2970_v38 = vmul.f32 %v6623_v58, %v5517_v18  ;;  %v2693_v61 = vmul.f32 %v6546_v11, %v5558_v9 }
 0x30c   :  { %v6621_v53 = vpop.permute.xlu0 %1436  ;;  %v6656_v11 = vmul.f32 %v6605_v20, %v5521_v34  ;;  %v2829_v44 = vsel %vm304_vm5, %v2826_v45, %v2828_v5 }
 0x30d   :  { %8864 = vst [vmem:[#allocation125_spill] sm:$0xff] %v6621_v53  ;;  %v6625_v43 = vpop.permute.xlu1 %1680  ;;  %v2864_v59 = vsel %vm304_vm5, %v2861_v4, %v2863_v36  ;;  %v2708_v33 = vrot.slane %v2693_v61, 1  ;;  %v2851_v36 = vmul.f32 %v6605_v20, %v5506_v63 }
 0x30e   :  { %8865 = vst [vmem:[#allocation126_spill] sm:$0xff] %v6625_v43  ;;  %2714 = vrot.lane.b32.xlu0 %v2707_v28, %s5018_s20  ;;  %v2968_v43 = vmul.f32 %v6623_v58, %v5490_v31  ;;  %v2981_v28 = vrot.slane %v2969_v51, 2 }
 0x30f   :  { %2834 = vrot.lane.b32.xlu1 %v2827_v8, %s5015_s29  ;;  %v2983_v8 = vrot.slane %v2970_v38, 2  ;;  %v2971_v38 = vmul.f32 %v6623_v58, %v5506_v63 }
 0x310   :  { %v6637_v53 = vpop.permute.xlu0 %1682 }
 0x311   :  { %8866 = vst [vmem:[#allocation127_spill] sm:$0xff] %v6637_v53  ;;  %v6639_v32 = vpop.permute.xlu1 %1438  ;;  %v2980_v53 = vrot.slane %v2968_v43, 2  ;;  %v2984_v4 = vsel %vm304_vm5, %v2981_v28, %v2983_v8  ;;  %v6662_v43 = vmul.f32 %v6623_v58, %v5521_v34 }
 0x312   :  { %8867 = vst [vmem:[#allocation128_spill] sm:$0xff] %v6639_v32  ;;  %2870 = vrot.lane.b32.xlu0 %v2862_v50, %s5015_s29  ;;  %v6671_v50 = vstv %s4732_s30  ;;  %s4666_s30 = sld [smem:[#allocation6 + $0x4]] }
 0x313   :  { %2872 = vrot.lane.b32.xlu1 %v2864_v59, %s5015_s29  ;;  %v2982_v51 = vsel %vm304_vm5, %v2980_v53, %v2981_v28  ;;  %v2709_v28 = vsel %vm307_vm6, %v2706_v48, %v2708_v33  ;;  %v2866_v59 = vrot.slane %v6656_v11, 2  ;;  %v3009_v8 = vmul.f32 %v6671_v50, %v5497_v26 }
 0x314   :  { %v6649_v3 = vpop.permute.xlu0 %1684  ;;  %v3008_v48 = vmul.f32 %v6671_v50, %v5490_v31  ;;  %v2985_v11 = vrot.slane %v2971_v38, 2 }
 0x315   :  { %8868 = vst [vmem:[#allocation129_spill] sm:$0xff] %v6649_v3  ;;  %v6651_v32 = vpop.permute.xlu1 %1720  ;;  %v3021_v5 = vrot.slane %v3009_v8, 3 }
 0x316   :  { %8869 = vst [vmem:[#allocation130_spill] sm:$0xff] %v6651_v32  ;;  %2990 = vrot.lane.b32.xlu0 %v2982_v51, %s5019_s13  ;;  %v2986_v51 = vrot.slane %v6662_v43, 2  ;;  %v3020_v38 = vrot.slane %v3008_v48, 3  ;;  %v2973_v48 = vmul.f32 %v6623_v58, %v5558_v9 }
 0x317   :  { %2992 = vrot.lane.b32.xlu1 %v2984_v4, %s5019_s13  ;;  %v3010_v4 = vmul.f32 %v6671_v50, %v5517_v18 }
 0x318   :  { %v6667_v53 = vpop.permute.xlu0 %1722  ;;  %v3022_v8 = vsel %vm301_vm4, %v3020_v38, %v3021_v5 }
 0x319   :  { %8870 = vst [vmem:[#allocation131_spill] sm:$0xff] %v6667_v53  ;;  %v6673_v61 = vpop.permute.xlu1 %1840  ;;  %v2865_v53 = vrot.slane %v2851_v36, 2  ;;  %v2987_v36 = vsel %vm304_vm5, %v2985_v11, %v2986_v51 }
 0x31a   :  { %8871 = vst [vmem:[#allocation132_spill] sm:$0xff] %v6673_v61  ;;  %2716 = vrot.lane.b32.xlu0 %v2709_v28, %s5018_s20  ;;  %v6689_v61 = vstv %s4735_s7  ;;  %v3023_v28 = vrot.slane %v3010_v4, 3  ;;  %v2853_v4 = vmul.f32 %v6605_v20, %v5558_v9  ;;  %s4670_s7 = sld [smem:[#allocation6 + $0x8]] }
 0x31b   :  { %2836 = vrot.lane.b32.xlu1 %v2829_v44, %s5015_s29  ;;  %v2867_v45 = vsel %vm304_vm5, %v2865_v53, %v2866_v59  ;;  %v3129_v43 = vmul.f32 %v6689_v61, %v5497_v26  ;;  %v3130_v44 = vmul.f32 %v6689_v61, %v5517_v18 }
 0x31c   :  { %v6687_v33 = vpop.permute.xlu0 %1842  ;;  %v3024_v11 = vsel %vm301_vm4, %v3021_v5, %v3023_v28  ;;  %v2868_v20 = vrot.slane %v2853_v4, 2  ;;  %v2988_v5 = vrot.slane %v2973_v48, 2  ;;  %v3011_v28 = vmul.f32 %v6671_v50, %v5506_v63 }
 0x31d   :  { %8872 = vst [vmem:[#allocation133_spill] sm:$0xff] %v6687_v33  ;;  %v6691_v32 = vpop.permute.xlu1 %1686  ;;  %v6737_v4 = vstv %s4736_s9  ;;  %s4674_s9 = sld [smem:[#allocation6 + $0xc]] }
 0x31e   :  { %8873 = vst [vmem:[#allocation134_spill] sm:$0xff] %v6691_v32  ;;  %2874 = vrot.lane.b32.xlu0 %v2867_v45, %s5015_s29  ;;  %v3128_v32 = vmul.f32 %v6689_v61, %v5490_v31  ;;  %v3141_v45 = vrot.slane %v3129_v43, 3  ;;  %v3169_v48 = vmul.f32 %v6737_v4, %v5497_v26 }
 0x31f   :  { %2994 = vrot.lane.b32.xlu1 %v2987_v36, %s5019_s13  ;;  %v3143_v36 = vrot.slane %v3130_v44, 3  ;;  %v3131_v44 = vmul.f32 %v6689_v61, %v5506_v63 }
 0x320   :  { %v6703_v33 = vpop.permute.xlu0 %1724 }
 0x321   :  { %8874 = vst [vmem:[#allocation135_spill] sm:$0xff] %v6703_v33  ;;  %v6705_v53 = vpop.permute.xlu1 %1844  ;;  %v3140_v33 = vrot.slane %v3128_v32, 3  ;;  %v3144_v58 = vsel %vm301_vm4, %v3141_v45, %v3143_v36  ;;  %v6728_v32 = vmul.f32 %v6689_v61, %v5521_v34  ;;  %v3145_v36 = vrot.slane %v3131_v44, 3 }
 0x322   :  { %8875 = vst [vmem:[#allocation136_spill] sm:$0xff] %v6705_v53  ;;  %3030 = vrot.lane.b32.xlu0 %v3022_v8, %s5016_s1  ;;  %v6722_v8 = vmul.f32 %v6671_v50, %v5521_v34 }
 0x323   :  { %3032 = vrot.lane.b32.xlu1 %v3024_v11, %s5016_s1  ;;  %v3142_v43 = vsel %vm301_vm4, %v3140_v33, %v3141_v45  ;;  %v2869_v11 = vsel %vm304_vm5, %v2866_v59, %v2868_v20  ;;  %v3168_v59 = vmul.f32 %v6737_v4, %v5490_v31 }
 0x324   :  { %v6715_v3 = vpop.permute.xlu0 %1880 }
 0x325   :  { %8876 = vst [vmem:[#allocation137_spill] sm:$0xff] %v6715_v3  ;;  %v6717_v38 = vpop.permute.xlu1 %1882  ;;  %v6759_v3 = vstv %s4739_s10  ;;  %v3180_v16 = vrot.slane %v3168_v59, 3  ;;  %v3013_v59 = vmul.f32 %v6671_v50, %v5558_v9  ;;  %s4663_s10 = sld [smem:[#allocation6 + $0x1]] }
 0x326   :  { %8877 = vst [vmem:[#allocation138_spill] sm:$0xff] %v6717_v38  ;;  %3150 = vrot.lane.b32.xlu0 %v3142_v43, %s5017_s8  ;;  %v2989_v43 = vsel %vm304_vm5, %v2986_v51, %v2988_v5  ;;  %v3170_v38 = vmul.f32 %v6737_v4, %v5517_v18  ;;  %v8882_v5 = vrot.slane %v6722_v8, 3  ;;  %v3290_v53 = vmul.f32 %v6759_v3, %v5517_v18 }
 0x327   :  { %3152 = vrot.lane.b32.xlu1 %v3144_v58, %s5017_s8 }
 0x328   :  { %v6733_v33 = vpop.permute.xlu0 %2000  ;;  %v3303_v24 = vrot.slane %v3290_v53, 4 }
 0x329   :  { %8878 = vst [vmem:[#allocation139_spill] sm:$0xff] %v6733_v33  ;;  %v6741_v45 = vpop.permute.xlu1 %2002  ;;  %v3181_v33 = vrot.slane %v3169_v48, 3 }
 0x32a   :  { %8879 = vst [vmem:[#allocation140_spill] sm:$0xff] %v6741_v45  ;;  %2876 = vrot.lane.b32.xlu0 %v2869_v11, %s5015_s29  ;;  %v3025_v45 = vrot.slane %v3011_v28, 3  ;;  %v1585_v11 = vstv %s4693_s11  ;;  %v3289_v28 = vmul.f32 %v6759_v3, %v5497_v26  ;;  %s4664_s11 = sld [smem:[#allocation6 + $0x2]] }
 0x32b   :  { %2996 = vrot.lane.b32.xlu1 %v2989_v43, %s5019_s13  ;;  %v8883_v43 = vrot.slane %v6728_v32, 3  ;;  %v1586_v48 = vmul.f32 %v1585_v11, %v5673_v29  ;;  %v1589_v53 = vmul.f32 %v1585_v11, %v5688_v30 }
 0x32c   :  { %v6757_v20 = vpop.permute.xlu0 %1726  ;;  %v3027_v58 = vsel %vm301_vm4, %v3025_v45, %v8882_v5  ;;  %v3288_v45 = vmul.f32 %v6759_v3, %v5490_v31  ;;  %v3301_v0 = vrot.slane %v3289_v28, 4 }
 0x32d   :  { %8880 = vst [vmem:[#allocation141_spill] sm:$0xff] %v6757_v20  ;;  %v6761_v51 = vpop.permute.xlu1 %1846  ;;  %v3147_v44 = vsel %vm301_vm4, %v3145_v36, %v8883_v43  ;;  %v3183_v20 = vrot.slane %v3170_v38, 3  ;;  %v561_v38 = vstv %s6739_s12  ;;  %v3182_v43 = vsel %vm301_vm4, %v3180_v16, %v3181_v33  ;;  %s4691_s12 = sld [smem:[#allocation6 + $0x1d]] }
 0x32e   :  { %8881 = vst [vmem:[#allocation142_spill] sm:$0xff] %v6761_v51  ;;  %3034 = vrot.lane.b32.xlu0 %v3027_v58, %s5016_s1  ;;  %v1587_v51 = vmul.f32 %v1585_v11, %v5544_v47  ;;  %v1588_v58 = vmul.f32 %v1585_v11, %v5665_v12  ;;  %v3133_v12 = vmul.f32 %v6689_v61, %v5558_v9  ;;  %v1598_v41 = vrot.slane %v1586_v48, 4 }
 0x32f   :  { %3154 = vrot.lane.b32.xlu1 %v3147_v44, %s5017_s8  ;;  %v3184_v44 = vsel %vm301_vm4, %v3181_v33, %v3183_v20  ;;  %v562_v16 = vmul.f32 %v561_v38, %v5673_v29  ;;  %v563_v28 = vmul.f32 %v561_v38, %v5544_v47  ;;  %v3028_v20 = vrot.slane %v3013_v59, 3 }
 0x330   :  { %v6780_v5 = vpop.permute.xlu0 %1884  ;;  %v1601_v50 = vrot.slane %v1588_v58, 4  ;;  %v3304_v48 = vsel %vm298_vm3, %v3301_v0, %v3303_v24  ;;  %v3148_v58 = vrot.slane %v3133_v12, 3  ;;  %v1590_v59 = vmul.f32 %v1585_v11, %v5567_v52 }
 0x331   :  { %8884 = vst [vmem:[#allocation143_spill] sm:$0xff] %v6780_v5  ;;  %v6785_v36 = vpop.permute.xlu1 %2004  ;;  %v1599_v5 = vrot.slane %v1587_v51, 4  ;;  %v6810_v51 = vmul.f32 %v6737_v4, %v5521_v34  ;;  %v1591_v12 = vmul.f32 %v1585_v11, %v5702_v10  ;;  %v3291_v24 = vmul.f32 %v6759_v3, %v5506_v63 }
 0x332   :  { %8885 = vst [vmem:[#allocation144_spill] sm:$0xff] %v6785_v36  ;;  %3190 = vrot.lane.b32.xlu0 %v3182_v43, %s5017_s8  ;;  %v3300_v36 = vrot.slane %v3288_v45, 4  ;;  %v564_v45 = vmul.f32 %v561_v38, %v5688_v30  ;;  %v6817_v43 = vmul.f32 %v6759_v3, %v5521_v34 }
 0x333   :  { %3192 = vrot.lane.b32.xlu1 %v3184_v44, %s5017_s8  ;;  %v565_v44 = vmul.f32 %v561_v38, %v5567_v52  ;;  %v6836_v38 = vstv %s6782_s0  ;;  %s7340_s0 = sld [smem:[#allocation6 + $0x1e]] }
 0x334   :  { %v6800_v49 = vpop.permute.xlu0 %2040  ;;  %v3302_v61 = vsel %vm298_vm3, %v3300_v36, %v3301_v0  ;;  %v6821_v36 = vsel %vm298_vm3, %v1598_v41, %v1599_v5  ;;  %v1603_v41 = vrot.slane %v1589_v53, 4  ;;  %v3329_v11 = vmul.f32 %v6836_v38, %v5497_v26 }
 0x335   :  { %8886 = vst [vmem:[#allocation145_spill] sm:$0xff] %v6800_v49  ;;  %v6805_v33 = vpop.permute.xlu1 %2042 }
 0x336   :  { %8887 = vst [vmem:[#allocation146_spill] sm:$0xff] %v6805_v33  ;;  %3310 = vrot.lane.b32.xlu0 %v3302_v61, %s5013_s23  ;;  %v3171_v33 = vmul.f32 %v6737_v4, %v5506_v63  ;;  %v6828_v61 = vsel %vm298_vm3, %v1599_v5, %v1601_v50  ;;  %v684_v5 = vadd.f32 %v5998_v39, %v562_v16  ;;  %v8891_v50 = vrot.slane %v6728_v32, 3 }
 0x337   :  { %3312 = vrot.lane.b32.xlu1 %v3304_v48, %s5013_s23  ;;  %v8890_v48 = vrot.slane %v6722_v8, 3  ;;  %v3330_v8 = vmul.f32 %v6836_v38, %v5517_v18  ;;  %v3328_v39 = vmul.f32 %v6836_v38, %v5490_v31  ;;  %v1606_v16 = vrot.slane %v1591_v12, 4 }
 0x338   :  { %v6831_v0 = vpop.permute.xlu0 %2160  ;;  %v3149_v53 = vsel %vm301_vm4, %v8891_v50, %v3148_v58  ;;  %v3185_v30 = vrot.slane %v3171_v33, 3  ;;  %v3305_v58 = vrot.slane %v3291_v24, 4  ;;  %v6862_v50 = vstv %s6802_s21  ;;  %s7400_s21 = sld [smem:[#allocation6 + $0x14]] }
 0x339   :  { %8888 = vst [vmem:[#allocation147_spill] sm:$0xff] %v6831_v0  ;;  %v6838_v49 = vpop.permute.xlu1 %2162  ;;  %v3029_v52 = vsel %vm301_vm4, %v8890_v48, %v3028_v20  ;;  %v685_v20 = vadd.f32 %v6006_v1, %v563_v28  ;;  %v1604_v48 = vrot.slane %v1590_v59, 4  ;;  %v8892_v1 = vrot.slane %v6810_v51, 3 }
 0x33a   :  { %8889 = vst [vmem:[#allocation148_spill] sm:$0xff] %v6838_v49  ;;  %3036 = vrot.lane.b32.xlu0 %v3029_v52, %s5016_s1  ;;  %v844_v52 = vadd.f32 %v6023_v21, %v684_v5  ;;  %v3341_v33 = vrot.slane %v3329_v11, 4  ;;  %v3449_v59 = vmul.f32 %v6862_v50, %v5497_v26  ;;  %v8893_v12 = vrot.slane %v6817_v43, 4  ;;  %s6884_s1 = sld [smem:[#allocation6 + $0x52]] }
 0x33b   :  { %3156 = vrot.lane.b32.xlu1 %v3149_v53, %s5017_s8  ;;  %v845_v49 = vadd.f32 %v6035_v35, %v685_v20  ;;  %v3187_v28 = vsel %vm301_vm4, %v3185_v30, %v8892_v1  ;;  %v3343_v5 = vrot.slane %v3330_v8, 4  ;;  %v3450_v35 = vmul.f32 %v6862_v50, %v5517_v18 }
 0x33c   :  { %v6859_v32 = vpop.permute.xlu0 %1886  ;;  %v1004_v21 = vadd.f32 %v6049_v27, %v844_v52  ;;  %v3307_v24 = vsel %vm298_vm3, %v3305_v58, %v8893_v12  ;;  %v686_v53 = vadd.f32 %v6019_v25, %v564_v45  ;;  %v3340_v11 = vrot.slane %v3328_v39, 4 }
 0x33d   :  { %v6865_v0 = vpop.permute.xlu1 %2006  ;;  %v1005_v30 = vadd.f32 %v6065_v19, %v845_v49  ;;  %v3448_v27 = vmul.f32 %v6862_v50, %v5490_v31  ;;  %v687_v20 = vadd.f32 %v6037_v22, %v565_v44  ;;  %v6889_v8 = vsel %vm298_vm3, %v1603_v41, %v1604_v48 }
 0x33e   :  { %3194 = vrot.lane.b32.xlu0 %v3187_v28, %s5017_s8  ;;  %v1164_v52 = vadd.f32 %v6089_v42, %v1004_v21  ;;  %v3173_v25 = vmul.f32 %v6737_v4, %v5558_v9  ;;  %v846_v19 = vadd.f32 %v6047_v23, %v686_v53  ;;  %v3342_v39 = vsel %vm298_vm3, %v3340_v11, %v3341_v33 }
 0x33f   :  { %3314 = vrot.lane.b32.xlu1 %v3307_v24, %s5013_s23  ;;  %v1165_v49 = vadd.f32 %v6101_v55, %v1005_v30  ;;  %v3461_v1 = vrot.slane %v3449_v59, 4  ;;  %v3344_v42 = vsel %vm298_vm3, %v3341_v33, %v3343_v5  ;;  %v3463_v44 = vrot.slane %v3450_v35, 4 }
 0x340   :  { %v6891_v58 = vpop.permute.xlu0 %2044  ;;  %v1324_v22 = vadd.f32 %v6115_v6, %v1164_v52  ;;  %v3293_v41 = vmul.f32 %v6759_v3, %v5558_v9  ;;  %v6907_v23 = vsel %vm298_vm3, %v1604_v48, %v1606_v16  ;;  %v6911_v55 = vmul.f32 %v6795_v7, %v5490_v31 }
 0x341   :  { %v6897_v45 = vpop.permute.xlu1 %2164  ;;  %v1325_v4 = vadd.f32 %v6131_v40, %v1165_v49  ;;  %v3460_v6 = vrot.slane %v3448_v27, 4  ;;  %v847_v28 = vadd.f32 %v6071_v15, %v687_v20  ;;  %v1006_v33 = vadd.f32 %v6085_v54, %v846_v19 }
 0x342   :  { %3350 = vrot.lane.b32.xlu0 %v3342_v39, %s5013_s23  ;;  %v1484_v59 = vadd.f32 %v6153_v2, %v1324_v22  ;;  %v3188_v3 = vrot.slane %v3173_v25, 3  ;;  %v6925_v12 = vmul.f32 %v6836_v38, %v5521_v34  ;;  %v6929_v15 = vmul.f32 %v6862_v50, %v5521_v34 }
 0x343   :  { %3352 = vrot.lane.b32.xlu1 %v3344_v42, %s5013_s23  ;;  %v1485_v40 = vadd.f32 %v6162_v37, %v1325_v4  ;;  %v3462_v16 = vsel %vm298_vm3, %v3460_v6, %v3461_v1  ;;  %v1007_v2 = vadd.f32 %v6103_v56, %v847_v28  ;;  %v6934_v54 = vmul.f32 %v6795_v7, %v5497_v26  ;;  %v8897_v4 = vld [vmem:[#allocation62_spill] sm:$0xff] }
 0x344   :  { %v6917_v21 = vpop.permute.xlu0 %2200  ;;  %v3464_v37 = vsel %vm298_vm3, %v3461_v1, %v3463_v44  ;;  %v3308_v24 = vrot.slane %v3293_v41, 4  ;;  %v1166_v5 = vadd.f32 %v6113_v60, %v1006_v33  ;;  %v3331_v35 = vmul.f32 %v6836_v38, %v5506_v63 }
 0x345   :  { %v6920_v48 = vpop.permute.xlu1 %2202  ;;  %v3451_v53 = vmul.f32 %v6862_v50, %v5506_v63  ;;  %v6945_v56 = vstv %s6884_s1  ;;  %v1167_v30 = vadd.f32 %v6137_v14, %v1007_v2  ;;  %v1612_v11 = vadd.f32 %v6821_v36, %v1484_v59  ;;  %v8899_v59 = vld [vmem:[#allocation60_spill] sm:$0xff]  ;;  %v8902_v2 = vld [vmem:[#allocation66_spill] sm:$0xff]  ;;  %s7426_s1 = sld [smem:[#allocation6 + $0x39]] }
 0x346   :  { %8894 = vst [vmem:[#allocation149_spill] sm:$0xff] %v6920_v48  ;;  %3470 = vrot.lane.b32.xlu0 %v3462_v16, %s5014_s24  ;;  %v8895_v20 = vrot.slane %v6810_v51, 3  ;;  %v3489_v52 = vmul.f32 %v6945_v56, %v5497_v26  ;;  %v1326_v25 = vadd.f32 %v6151_v13, %v1166_v5  ;;  %v1613_v19 = vadd.f32 %v6828_v61, %v1485_v40  ;;  %v8900_v40 = vld [vmem:[#allocation63_spill] sm:$0xff] }
 0x347   :  { %3472 = vrot.lane.b32.xlu1 %v3464_v37, %s5014_s24  ;;  %v3346_v39 = vrot.slane %v6925_v12, 4  ;;  %v3466_v14 = vrot.slane %v6929_v15, 4  ;;  %v1772_v36 = vadd.f32 %v6187_v62, %v1612_v11  ;;  %v8896_v51 = vrot.slane %v6817_v43, 4 }
 0x348   :  { %v6949_v27 = vpop.permute.xlu0 %2306  ;;  %v3189_v60 = vsel %vm301_vm4, %v8895_v20, %v3188_v3  ;;  %v3488_v13 = vmul.f32 %v6945_v56, %v5490_v31  ;;  %v3490_v61 = vmul.f32 %v6945_v56, %v5517_v18  ;;  %v1327_v22 = vadd.f32 %v6164_v57, %v1167_v30 }
 0x349   :  { %v6958_v49 = vpop.permute.xlu1 %2308  ;;  %v3309_v1 = vsel %vm298_vm3, %v8896_v51, %v3308_v24  ;;  %v1773_v42 = vadd.f32 %v6190_v17, %v1613_v19  ;;  %v3345_v44 = vrot.slane %v3331_v35, 4  ;;  %v3465_v62 = vrot.slane %v3451_v53, 4  ;;  %v8903_v35 = vld [vmem:[#allocation67_spill] sm:$0xff] }
 0x34a   :  { %3196 = vrot.lane.b32.xlu0 %v3189_v60, %s5017_s8  ;;  %v1486_v41 = vadd.f32 %v6174_v46, %v1326_v25  ;;  %v1932_v43 = vadd.f32 %v8897_v4, %v1772_v36  ;;  %v3501_v28 = vrot.slane %v3489_v52, 4  ;;  %v3333_v33 = vmul.f32 %v6836_v38, %v5558_v9  ;;  %v8904_v52 = vld [vmem:[#allocation70_spill] sm:$0xff] }
 0x34b   :  { %3316 = vrot.lane.b32.xlu1 %v3309_v1, %s5013_s23  ;;  %v1487_v3 = vadd.f32 %v8899_v59, %v1327_v22  ;;  %v1933_v57 = vadd.f32 %v8900_v40, %v1773_v42  ;;  %v3347_v17 = vsel %vm298_vm3, %v3345_v44, %v3346_v39  ;;  %v3467_v46 = vsel %vm298_vm3, %v3465_v62, %v3466_v14  ;;  %v8906_v1 = vld [vmem:[#allocation71_spill] sm:$0xff]  ;;  %v8909_v62 = vld [vmem:[#allocation64_spill] sm:$0xff]  ;;  %v8910_v59 = vld [vmem:[#allocation65_spill] sm:$0xff] }
 0x34c   :  { %v6978_v6 = vpop.permute.xlu0 %2046  ;;  %v2092_v37 = vadd.f32 %v8902_v2, %v1932_v43  ;;  %v3500_v24 = vrot.slane %v3488_v13, 4  ;;  %v3503_v38 = vrot.slane %v3490_v61, 4  ;;  %v3453_v5 = vmul.f32 %v6862_v50, %v5558_v9  ;;  %v8913_v2 = vld [vmem:[#allocation68_spill] sm:$0xff] }
 0x34d   :  { %8898 = vst [vmem:[#allocation62_spill] sm:$0xff] %v6978_v6  ;;  %v6984_v16 = vpop.permute.xlu1 %2166  ;;  %v2093_v53 = vadd.f32 %v8903_v35, %v1933_v57  ;;  %v2588_v30 = vrot.slane %v6911_v55, 1  ;;  %v2589_v11 = vrot.slane %v6934_v54, 1  ;;  %v2578_v20 = vmul.f32 %v6795_v7, %v5517_v18 }
 0x34e   :  { %8901 = vst [vmem:[#allocation60_spill] sm:$0xff] %v6984_v16  ;;  %3354 = vrot.lane.b32.xlu0 %v3347_v17, %s5013_s23  ;;  %v1614_v60 = vadd.f32 %v6889_v8, %v1486_v41  ;;  %v2252_v25 = vadd.f32 %v8904_v52, %v2092_v37  ;;  %v3502_v36 = vsel %vm298_vm3, %v3500_v24, %v3501_v28  ;;  %v3348_v50 = vrot.slane %v3333_v33, 4  ;;  %v8908_v8 = vld [vmem:[#allocation61_spill] sm:$0xff] }
 0x34f   :  { %3474 = vrot.lane.b32.xlu1 %v3467_v46, %s5014_s24  ;;  %v1615_v51 = vadd.f32 %v6907_v23, %v1487_v3  ;;  %v2253_v55 = vadd.f32 %v8906_v1, %v2093_v53  ;;  %v7013_v54 = vmul.f32 %v6945_v56, %v5521_v34  ;;  %v7016_v61 = vstv %s6962_s22  ;;  %v8914_v24 = vld [vmem:[#allocation25_spill] sm:$0xff]  ;;  %v8918_v1 = vld [vmem:[#allocation27_spill] sm:$0xff]  ;;  %s7453_s22 = sld [smem:[#allocation6 + $0x18]] }
 0x350   :  { %v7004_v19 = vpop.permute.xlu0 %2204  ;;  %v1774_v22 = vadd.f32 %v8908_v8, %v1614_v60  ;;  %v3504_v42 = vsel %vm298_vm3, %v3501_v28, %v3503_v38  ;;  %v3468_v44 = vrot.slane %v3453_v5, 4  ;;  %v3737_v23 = vmul.f32 %v7016_v61, %v5497_v26  ;;  %v8911_v28 = vld [vmem:[#allocation24_spill] sm:$0xff] }
 0x351   :  { %8905 = vst [vmem:[#allocation63_spill] sm:$0xff] %v7004_v19  ;;  %v7009_v13 = vpop.permute.xlu1 %2310  ;;  %v1775_v41 = vadd.f32 %v8909_v62, %v1615_v51  ;;  %v2591_v4 = vrot.slane %v2578_v20, 1  ;;  %v3491_v43 = vmul.f32 %v6945_v56, %v5506_v63  ;;  %v3738_v33 = vmul.f32 %v7016_v61, %v5517_v18 }
 0x352   :  { %8907 = vst [vmem:[#allocation66_spill] sm:$0xff] %v7009_v13  ;;  %3510 = vrot.lane.b32.xlu0 %v3502_v36, %s5014_s24  ;;  %v1934_v3 = vadd.f32 %v8910_v59, %v1774_v22  ;;  %v2590_v40 = vsel %vm307_vm6, %v2588_v30, %v2589_v11  ;;  %v2370_v57 = vadd.f32 %v8911_v28, %v2252_v25  ;;  %v3506_v53 = vrot.slane %v7013_v54, 4  ;;  %v8916_v30 = vld [vmem:[#allocation69_spill] sm:$0xff] }
 0x353   :  { %3512 = vrot.lane.b32.xlu1 %v3504_v42, %s5014_s24  ;;  %v3736_v46 = vmul.f32 %v7016_v61, %v5490_v31  ;;  %v1935_v37 = vadd.f32 %v8913_v2, %v1775_v41  ;;  %v2371_v38 = vadd.f32 %v8914_v24, %v2253_v55  ;;  %v3349_v35 = vsel %vm298_vm3, %v3346_v39, %v3348_v50  ;;  %v8917_v39 = vld [vmem:[#allocation72_spill] sm:$0xff]  ;;  %v8919_v54 = vld [vmem:[#allocation73_spill] sm:$0xff] }
 0x354   :  { %v7034_v17 = vpop.permute.xlu0 %2332  ;;  %v2094_v20 = vadd.f32 %v8916_v30, %v1934_v3  ;;  %v3469_v60 = vsel %vm298_vm3, %v3466_v14, %v3468_v44  ;;  %v3749_v52 = vrot.slane %v3737_v23, 5  ;;  %v3493_v25 = vmul.f32 %v6945_v56, %v5558_v9  ;;  %v8920_v56 = vld [vmem:[#allocation28_spill] sm:$0xff] }
 0x355   :  { %8912 = vst [vmem:[#allocation67_spill] sm:$0xff] %v7034_v17  ;;  %v7040_v5 = vpop.permute.xlu1 %2334  ;;  %v2592_v12 = vsel %vm307_vm6, %v2589_v11, %v2591_v4  ;;  %v2095_v36 = vadd.f32 %v8917_v39, %v1935_v37  ;;  %v3505_v50 = vrot.slane %v3491_v43, 4  ;;  %v3751_v51 = vrot.slane %v3738_v33, 5  ;;  %v8921_v11 = vld [vmem:[#allocation74_spill] sm:$0xff] }
 0x356   :  { %8915 = vst [vmem:[#allocation70_spill] sm:$0xff] %v7040_v5  ;;  %3356 = vrot.lane.b32.xlu0 %v3349_v35, %s5013_s23  ;;  %v2474_v55 = vadd.f32 %v8918_v1, %v2370_v57  ;;  %v2254_v8 = vadd.f32 %v8919_v54, %v2094_v20  ;;  %v3748_v14 = vrot.slane %v3736_v46, 5  ;;  %v7064_v22 = vmul.f32 %v7016_v61, %v5521_v34  ;;  %v8923_v37 = vld [vmem:[#allocation26_spill] sm:$0xff]  ;;  %s7115_s23 = sld [smem:[#allocation6 + $0x5e]] }
 0x357   :  { %3476 = vrot.lane.b32.xlu1 %v3469_v60, %s5014_s24  ;;  %v2475_v42 = vadd.f32 %v8920_v56, %v2371_v38  ;;  %v2255_v44 = vadd.f32 %v8921_v11, %v2095_v36  ;;  %v3507_v62 = vsel %vm298_vm3, %v3505_v50, %v3506_v53  ;;  %v7072_v41 = vstv %s7018_s25  ;;  %v8925_v60 = vld [vmem:[#allocation29_spill] sm:$0xff]  ;;  %v8928_v56 = vld [vmem:[#allocation30_spill] sm:$0xff]  ;;  %s7512_s25 = sld [smem:[#allocation6 + $0x3a]] }
 0x358   :  { %v7060_v15 = vpop.permute.xlu0 %2410  ;;  %v2579_v4 = vmul.f32 %v6795_v7, %v5506_v63  ;;  %v3750_v43 = vsel %vm295_vm2, %v3748_v14, %v3749_v52  ;;  %v3508_v33 = vrot.slane %v3493_v25, 4  ;;  %v3777_v59 = vmul.f32 %v7072_v41, %v5497_v26 }
 0x359   :  { %v7068_v23 = vpop.permute.xlu1 %2412  ;;  %v2580_v3 = vmul.f32 %v6795_v7, %v5521_v34  ;;  %v2581_v28 = vmul.f32 %v6795_v7, %v5558_v9  ;;  %v3752_v57 = vsel %vm295_vm2, %v3749_v52, %v3751_v51  ;;  %v3739_v46 = vmul.f32 %v7016_v61, %v5506_v63 }
 0x35a   :  { %8922 = vst [vmem:[#allocation71_spill] sm:$0xff] %v7068_v23  ;;  %3514 = vrot.lane.b32.xlu0 %v3507_v62, %s5014_s24  ;;  %v2602_v2 = vadd.f32 %v2590_v40, %v2474_v55  ;;  %v2372_v24 = vadd.f32 %v8923_v37, %v2254_v8  ;;  %v3754_v35 = vrot.slane %v7064_v22, 5  ;;  %v3776_v30 = vmul.f32 %v7072_v41, %v5490_v31  ;;  %v8927_v8 = vld [vmem:[#allocation32_spill] sm:$0xff]  ;;  %v8930_v62 = vld [vmem:[#allocation33_spill] sm:$0xff] }
 0x35b   :  { %3758 = vrot.lane.b32.xlu1 %v3750_v43, %s5018_s20  ;;  %v2603_v20 = vadd.f32 %v2592_v12, %v2475_v42  ;;  %v2373_v7 = vadd.f32 %v8925_v60, %v2255_v44  ;;  %v3778_v52 = vmul.f32 %v7072_v41, %v5517_v18  ;;  %v7100_v39 = vstv %s7046_s26  ;;  %v8931_v43 = vld [vmem:[#allocation31_spill] sm:$0xff]  ;;  %s5020_s26 = smov 122  }
 0x35c   :  { %v7089_v38 = vpop.permute.xlu0 %2206  ;;  %v2593_v40 = vrot.slane %v2579_v4, 1  ;;  %v3509_v36 = vsel %vm298_vm3, %v3506_v53, %v3508_v33  ;;  %v3789_v50 = vrot.slane %v3777_v59, 5  ;;  %v3897_v51 = vmul.f32 %v7100_v39, %v5497_v26 }
 0x35d   :  { %8924 = vst [vmem:[#allocation61_spill] sm:$0xff] %v7089_v38  ;;  %v7095_v25 = vpop.permute.xlu1 %2312  ;;  %v2594_v1 = vrot.slane %v2580_v3, 1  ;;  %v2596_v12 = vrot.slane %v2581_v28, 1  ;;  %v3753_v55 = vrot.slane %v3739_v46, 5  ;;  %v3898_v54 = vmul.f32 %v7100_v39, %v5517_v18 }
 0x35e   :  { %8926 = vst [vmem:[#allocation64_spill] sm:$0xff] %v7095_v25  ;;  %3760 = vrot.lane.b32.xlu0 %v3752_v57, %s5018_s20  ;;  %v2762_v14 = vadd.f32 %v8927_v8, %v2602_v2  ;;  %v2476_v42 = vadd.f32 %v8928_v56, %v2372_v24  ;;  %v3788_v44 = vrot.slane %v3776_v30, 5  ;;  %v3896_v53 = vmul.f32 %v7100_v39, %v5490_v31  ;;  %v8933_v30 = vld [vmem:[#allocation35_spill] sm:$0xff] }
 0x35f   :  { %3516 = vrot.lane.b32.xlu1 %v3509_v36, %s5014_s24  ;;  %v2763_v4 = vadd.f32 %v8930_v62, %v2603_v20  ;;  %v2477_v33 = vadd.f32 %v8931_v43, %v2373_v7  ;;  %v3755_v3 = vsel %vm295_vm2, %v3753_v55, %v3754_v35  ;;  %v3791_v28 = vrot.slane %v3778_v52, 5 }
 0x360   :  { %v7111_v11 = vpop.permute.xlu0 %2336  ;;  %v3790_v57 = vsel %vm295_vm2, %v3788_v44, %v3789_v50  ;;  %v3909_v46 = vrot.slane %v3897_v51, 6  ;;  %v3741_v2 = vmul.f32 %v7016_v61, %v5558_v9  ;;  %v2595_v37 = vsel %vm307_vm6, %v2593_v40, %v2594_v1  ;;  %v8935_v51 = vld [vmem:[#allocation36_spill] sm:$0xff] }
 0x361   :  { %8929 = vst [vmem:[#allocation65_spill] sm:$0xff] %v7111_v11  ;;  %v7119_v59 = vpop.permute.xlu1 %2414  ;;  %v3911_v24 = vrot.slane %v3898_v54, 6  ;;  %v2922_v20 = vadd.f32 %v8933_v30, %v2762_v14  ;;  %v2604_v60 = vadd.f32 %v2595_v37, %v2476_v42  ;;  %v2597_v7 = vsel %vm307_vm6, %v2594_v1, %v2596_v12  ;;  %v8937_v42 = vld [vmem:[#allocation39_spill] sm:$0xff] }
 0x362   :  { %8932 = vst [vmem:[#allocation24_spill] sm:$0xff] %v7119_v59  ;;  %3762 = vrot.lane.b32.xlu0 %v3755_v3, %s5018_s20  ;;  %v3908_v36 = vrot.slane %v3896_v53, 6  ;;  %v2923_v55 = vadd.f32 %v8935_v51, %v2763_v4  ;;  %v2605_v61 = vadd.f32 %v2597_v7, %v2477_v33  ;;  %v3792_v8 = vsel %vm295_vm2, %v3789_v50, %v3791_v28  ;;  %v8938_v53 = vld [vmem:[#allocation34_spill] sm:$0xff]  ;;  %v8940_v3 = vld [vmem:[#allocation37_spill] sm:$0xff] }
 0x363   :  { %3798 = vrot.lane.b32.xlu1 %v3790_v57, %s5018_s20  ;;  %v7144_v54 = vmul.f32 %v7072_v41, %v5521_v34  ;;  %v3756_v1 = vrot.slane %v3741_v2, 5  ;;  %v7150_v12 = vmul.f32 %v7100_v39, %v5521_v34  ;;  %v3912_v56 = vsel %vm292_vm1, %v3909_v46, %v3911_v24  ;;  %v8941_v57 = vld [vmem:[#allocation40_spill] sm:$0xff] }
 0x364   :  { %v7136_v52 = vpop.permute.xlu0 %2436  ;;  %v3910_v14 = vsel %vm292_vm1, %v3908_v36, %v3909_v46  ;;  %v3779_v50 = vmul.f32 %v7072_v41, %v5506_v63  ;;  %v3082_v44 = vadd.f32 %v8937_v42, %v2922_v20  ;;  %v2764_v62 = vadd.f32 %v8938_v53, %v2604_v60  ;;  %v8946_v42 = vld [vmem:[#allocation41_spill] sm:$0xff] }
 0x365   :  { %8934 = vst [vmem:[#allocation68_spill] sm:$0xff] %v7136_v52  ;;  %v7139_v40 = vpop.permute.xlu1 %2438  ;;  %v3899_v43 = vmul.f32 %v7100_v39, %v5506_v63  ;;  %v7163_v33 = vstv %s7115_s23  ;;  %v2765_v28 = vadd.f32 %v8940_v3, %v2605_v61  ;;  %v3083_v46 = vadd.f32 %v8941_v57, %v2923_v55  ;;  %v8943_v61 = vld [vmem:[#allocation43_spill] sm:$0xff]  ;;  %v8947_v3 = vld [vmem:[#allocation44_spill] sm:$0xff]  ;;  %s7533_s23 = sld [smem:[#allocation6 + $0x20]] }
 0x366   :  { %8936 = vst [vmem:[#allocation25_spill] sm:$0xff] %v7139_v40  ;;  %3800 = vrot.lane.b32.xlu0 %v3792_v8, %s5018_s20  ;;  %v8735_v37 = vrot.slane %v7144_v54, 5  ;;  %v3937_v24 = vmul.f32 %v7163_v33, %v5497_v26  ;;  %v3757_v30 = vsel %vm295_vm2, %v3754_v35, %v3756_v1  ;;  %v3938_v60 = vmul.f32 %v7163_v33, %v5517_v18 }
 0x367   :  { %3918 = vrot.lane.b32.xlu1 %v3910_v14, %s5015_s29  ;;  %v3663_v7 = vstv %s7129_s27  ;;  %v3793_v36 = vrot.slane %v3779_v50, 5  ;;  %v3936_v51 = vmul.f32 %v7163_v33, %v5490_v31  ;;  %v7184_v55 = vstv %s7132_s28  ;;  %v8944_v14 = vld [vmem:[#allocation38_spill] sm:$0xff]  ;;  %s7576_s27 = sld [smem:[#allocation6 + $0x24]]  ;;  %s7617_s28 = sld [smem:[#allocation6 + $0x28]] }
 0x368   :  { %v7158_v4 = vpop.permute.xlu0 %2338  ;;  %v3242_v8 = vadd.f32 %v8943_v61, %v3082_v44  ;;  %v2924_v22 = vadd.f32 %v8944_v14, %v2764_v62  ;;  %v3913_v35 = vrot.slane %v3899_v43, 6  ;;  %v4057_v1 = vmul.f32 %v7184_v55, %v5497_v26 }
 0x369   :  { %8939 = vst [vmem:[#allocation69_spill] sm:$0xff] %v7158_v4  ;;  %v7167_v2 = vpop.permute.xlu1 %2416  ;;  %v2925_v53 = vadd.f32 %v8946_v42, %v2765_v28  ;;  %v3243_v57 = vadd.f32 %v8947_v3, %v3083_v46  ;;  %v3949_v20 = vrot.slane %v3937_v24, 6  ;;  %v8949_v44 = vrot.slane %v7150_v12, 6 }
 0x36a   :  { %8942 = vst [vmem:[#allocation72_spill] sm:$0xff] %v7167_v2  ;;  %3920 = vrot.lane.b32.xlu0 %v3912_v56, %s5015_s29  ;;  %v3951_v43 = vrot.slane %v3938_v60, 6  ;;  %v4056_v61 = vmul.f32 %v7184_v55, %v5490_v31  ;;  %v4058_v28 = vmul.f32 %v7184_v55, %v5517_v18  ;;  %v3665_v46 = vmul.f32 %v3663_v7, %v5497_v26  ;;  %v8954_v2 = vld [vmem:[#allocation45_spill] sm:$0xff] }
 0x36b   :  { %3764 = vrot.lane.b32.xlu1 %v3757_v30, %s5018_s20  ;;  %v3795_v30 = vsel %vm295_vm2, %v3793_v36, %v8735_v37  ;;  %v3915_v62 = vsel %vm292_vm1, %v3913_v35, %v8949_v44  ;;  %v3666_v14 = vmul.f32 %v3663_v7, %v5517_v18  ;;  %v3948_v24 = vrot.slane %v3936_v51, 6  ;;  %v8950_v36 = vld [vmem:[#allocation42_spill] sm:$0xff]  ;;  %v8952_v35 = vld [vmem:[#allocation47_spill] sm:$0xff]  ;;  %v8953_v37 = vld [vmem:[#allocation48_spill] sm:$0xff] }
 0x36c   :  { %v7188_v56 = vpop.permute.xlu0 %2440  ;;  %v3084_v42 = vadd.f32 %v8950_v36, %v2924_v22  ;;  %v3781_v60 = vmul.f32 %v7072_v41, %v5558_v9  ;;  %v3402_v44 = vadd.f32 %v8952_v35, %v3242_v8  ;;  %v3085_v4 = vadd.f32 %v8954_v2, %v2925_v53  ;;  %v8956_v2 = vld [vmem:[#allocation46_spill] sm:$0xff]  ;;  %v8958_v35 = vld [vmem:[#allocation51_spill] sm:$0xff] }
 0x36d   :  { %8945 = vst [vmem:[#allocation27_spill] sm:$0xff] %v7188_v56  ;;  %v7194_v50 = vpop.permute.xlu1 %2670  ;;  %v3403_v56 = vadd.f32 %v8953_v37, %v3243_v57  ;;  %v3950_v11 = vsel %vm292_vm1, %v3948_v24, %v3949_v20  ;;  %v3664_v51 = vmul.f32 %v3663_v7, %v5490_v31  ;;  %v3952_v22 = vsel %vm292_vm1, %v3949_v20, %v3951_v43  ;;  %v8960_v43 = vld [vmem:[#allocation49_spill] sm:$0xff] }
 0x36e   :  { %8948 = vst [vmem:[#allocation73_spill] sm:$0xff] %v7194_v50  ;;  %3802 = vrot.lane.b32.xlu0 %v3795_v30, %s5018_s20  ;;  %v4069_v30 = vrot.slane %v4057_v1, 6  ;;  %v4068_v1 = vrot.slane %v4056_v61, 6  ;;  %v3901_v41 = vmul.f32 %v7100_v39, %v5558_v9  ;;  %v3677_v8 = vrot.slane %v3665_v46, 5 }
 0x36f   :  { %3922 = vrot.lane.b32.xlu1 %v3915_v62, %s5015_s29  ;;  %v4071_v62 = vrot.slane %v4058_v28, 6  ;;  %v3679_v36 = vrot.slane %v3666_v14, 5  ;;  %v3244_v37 = vadd.f32 %v8956_v2, %v3084_v42  ;;  %v3796_v24 = vrot.slane %v3781_v60, 5 }
 0x370   :  { %v7211_v3 = vpop.permute.xlu0 %2672  ;;  %v4070_v57 = vsel %vm292_vm1, %v4068_v1, %v4069_v30  ;;  %v3245_v61 = vadd.f32 %v8960_v43, %v3085_v4  ;;  %v7238_v39 = vmul.f32 %v7163_v33, %v5521_v34  ;;  %v3676_v46 = vrot.slane %v3664_v51, 5  ;;  %v8962_v1 = vld [vmem:[#allocation50_spill] sm:$0xff] }
 0x371   :  { %8951 = vst [vmem:[#allocation28_spill] sm:$0xff] %v7211_v3  ;;  %v7218_v40 = vpop.permute.xlu1 %2442  ;;  %v3668_v14 = vmul.f32 %v3663_v7, %v5521_v34  ;;  %v4072_v42 = vsel %vm292_vm1, %v4069_v30, %v4071_v62  ;;  %v3916_v60 = vrot.slane %v3901_v41, 6  ;;  %v3667_v4 = vmul.f32 %v3663_v7, %v5506_v63 }
 0x372   :  { %8955 = vst [vmem:[#allocation74_spill] sm:$0xff] %v7218_v40  ;;  %3958 = vrot.lane.b32.xlu0 %v3950_v11, %s5015_s29  ;;  %v3562_v11 = vadd.f32 %v8958_v35, %v3402_v44  ;;  %v8959_v40 = vld [vmem:[#allocation52_spill] sm:$0xff]  ;;  %v4060_v44 = vmul.f32 %v7184_v55, %v5521_v34  ;;  %v3678_v51 = vsel %vm295_vm2, %v3676_v46, %v3677_v8  ;;  %v8964_v35 = vld [vmem:[#allocation53_spill] sm:$0xff]  ;;  %v3954_v46 = vrot.slane %v7238_v39, 6 }
 0x373   :  { %3960 = vrot.lane.b32.xlu1 %v3952_v22, %s5015_s29  ;;  %v3563_v20 = vadd.f32 %v8959_v40, %v3403_v56  ;;  %v3669_v40 = vmul.f32 %v3663_v7, %v5558_v9  ;;  %v3939_v56 = vmul.f32 %v7163_v33, %v5506_v63  ;;  %v3680_v22 = vsel %vm295_vm2, %v3677_v8, %v3679_v36 }
 0x374   :  { %v7228_v53 = vpop.permute.xlu0 %2674  ;;  %v3404_v2 = vadd.f32 %v8962_v1, %v3244_v37  ;;  %v4059_v62 = vmul.f32 %v7184_v55, %v5506_v63  ;;  %v3690_v41 = vadd.f32 %v3678_v51, %v3562_v11  ;;  %v3405_v7 = vadd.f32 %v8964_v35, %v3245_v61  ;;  %v8968_v61 = vld [vmem:[#allocation54_spill] sm:$0xff]  ;;  %v8970_v35 = vld [vmem:[#allocation56_spill] sm:$0xff] }
 0x375   :  { %8957 = vst [vmem:[#allocation26_spill] sm:$0xff] %v7228_v53  ;;  %v7234_v28 = vpop.permute.xlu1 %2710  ;;  %v8967_v8 = vrot.slane %v7150_v12, 6  ;;  %v4074_v37 = vrot.slane %v4060_v44, 6  ;;  %v3682_v1 = vrot.slane %v3668_v14, 5  ;;  %v3684_v11 = vrot.slane %v3669_v40, 5 }
 0x376   :  { %8961 = vst [vmem:[#allocation29_spill] sm:$0xff] %v7234_v28  ;;  %4078 = vrot.lane.b32.xlu0 %v4070_v57, %s5019_s13  ;;  %v3691_v57 = vadd.f32 %v3680_v22, %v3563_v20  ;;  %v3953_v20 = vrot.slane %v3939_v56, 6  ;;  %v3564_v51 = vadd.f32 %v8968_v61, %v3404_v2  ;;  %v3681_v22 = vrot.slane %v3667_v4, 5  ;;  %v8980_v61 = vld [vmem:[#allocation76_spill] sm:$0xff] }
 0x377   :  { %4080 = vrot.lane.b32.xlu1 %v4072_v42, %s5019_s13  ;;  %v8966_v42 = vrot.slane %v7144_v54, 5  ;;  %v3917_v36 = vsel %vm292_vm1, %v8967_v8, %v3916_v60  ;;  %v3850_v39 = vadd.f32 %v8970_v35, %v3690_v41  ;;  %v3941_v60 = vmul.f32 %v7163_v33, %v5558_v9 }
 0x378   :  { %v7253_v30 = vpop.permute.xlu0 %2712  ;;  %v3955_v14 = vsel %vm292_vm1, %v3953_v20, %v3954_v46  ;;  %v4061_v40 = vmul.f32 %v7184_v55, %v5558_v9  ;;  %v3683_v4 = vsel %vm295_vm2, %v3681_v22, %v3682_v1  ;;  %v3685_v56 = vsel %vm295_vm2, %v3682_v1, %v3684_v11  ;;  %v8978_v20 = vld [vmem:[#allocation58_spill] sm:$0xff] }
 0x379   :  { %8963 = vst [vmem:[#allocation32_spill] sm:$0xff] %v7253_v30  ;;  %v7258_v43 = vpop.permute.xlu1 %2830  ;;  %v3797_v28 = vsel %vm295_vm2, %v8966_v42, %v3796_v24  ;;  %v4073_v24 = vrot.slane %v4059_v62, 6  ;;  %v8971_v42 = vld [vmem:[#allocation57_spill] sm:$0xff]  ;;  %v8972_v30 = vld [vmem:[#allocation55_spill] sm:$0xff]  ;;  %v3692_v2 = vadd.f32 %v3683_v4, %v3564_v51 }
 0x37a   :  { %8965 = vst [vmem:[#allocation30_spill] sm:$0xff] %v7258_v43  ;;  %3804 = vrot.lane.b32.xlu0 %v3797_v28, %s5018_s20  ;;  %v3851_v28 = vadd.f32 %v8971_v42, %v3691_v57  ;;  %v3565_v12 = vadd.f32 %v8972_v30, %v3405_v7  ;;  %v8975_v62 = vld [vmem:[#allocation59_spill] sm:$0xff]  ;;  %v4076_v55 = vrot.slane %v4061_v40, 6  ;;  %v689_v40 = vstv %s4670_s7  ;;  %s7682_s7 = sld [smem:[#allocation6 + $0x2c]] }
 0x37b   :  { %3924 = vrot.lane.b32.xlu1 %v3917_v36, %s5015_s29  ;;  %v4075_v44 = vsel %vm292_vm1, %v4073_v24, %v4074_v37  ;;  %v4010_v41 = vadd.f32 %v8975_v62, %v3850_v39  ;;  %v8976_v57 = vld [vmem:[#allocation75_spill] sm:$0xff]  ;;  %v3956_v36 = vrot.slane %v3941_v60, 6  ;;  %v3852_v1 = vadd.f32 %v8978_v20, %v3692_v2  ;;  %v8982_v39 = vld [vmem:[#allocation77_spill] sm:$0xff] }
 0x37c   :  { %v7270_v54 = vpop.permute.xlu0 %2832  ;;  %v4011_v33 = vadd.f32 %v8976_v57, %v3851_v28  ;;  %v3693_v7 = vadd.f32 %v3685_v56, %v3565_v12  ;;  %v4077_v35 = vsel %vm292_vm1, %v4074_v37, %v4076_v55  ;;  %v8984_v12 = vld [vmem:[#allocation78_spill] sm:$0xff]  ;;  %v690_v56 = vmul.f32 %v689_v40, %v5673_v29 }
 0x37d   :  { %8969 = vst [vmem:[#allocation33_spill] sm:$0xff] %v7270_v54  ;;  %v7275_v53 = vpop.permute.xlu1 %2676  ;;  %v3957_v24 = vsel %vm292_vm1, %v3954_v46, %v3956_v36  ;;  %v4012_v42 = vadd.f32 %v8982_v39, %v3852_v1  ;;  %v691_v46 = vmul.f32 %v689_v40, %v5544_v47  ;;  %v8990_v36 = vld [vmem:[#allocation22_spill] sm:$0xff] }
 0x37e   :  { %8973 = vst [vmem:[#allocation31_spill] sm:$0xff] %v7275_v53  ;;  %3962 = vrot.lane.b32.xlu0 %v3955_v14, %s5015_s29  ;;  %v3853_v51 = vadd.f32 %v8980_v61, %v3693_v7  ;;  %v702_v20 = vrot.slane %v690_v56, 1 }
 0x37f   :  { %4082 = vrot.lane.b32.xlu1 %v4075_v44, %s5019_s13  ;;  %v571_v44 = vstv %s4666_s30  ;;  %s7657_s30 = sld [smem:[#allocation6 + $0x55]] }
 0x380   :  { %v7287_v30 = vpop.permute.xlu0 %2714  ;;  %v4013_v14 = vadd.f32 %v8984_v12, %v3853_v51  ;;  %v572_v4 = vmul.f32 %v571_v44, %v5673_v29  ;;  %v573_v62 = vmul.f32 %v571_v44, %v5544_v47  ;;  %v574_v55 = vmul.f32 %v571_v44, %v8990_v36  ;;  %v8992_v51 = vld [vmem:[#allocation20_spill] sm:$0xff] }
 0x381   :  { %8974 = vst [vmem:[#allocation35_spill] sm:$0xff] %v7287_v30  ;;  %v7291_v8 = vpop.permute.xlu1 %2834  ;;  %v541_v12 = vstv %s4663_s10  ;;  %s7744_s10 = sld [smem:[#allocation6 + $0x30]] }
 0x382   :  { %8977 = vst [vmem:[#allocation36_spill] sm:$0xff] %v7291_v8  ;;  %4118 = vrot.lane.b32.xlu0 %v4010_v41, %s5015_s29  ;;  %v8988_v41 = vld [vmem:[#allocation21_spill] sm:$0xff] }
 0x383   :  { %4120 = vrot.lane.b32.xlu1 %v4011_v33, %s5015_s29  ;;  %v692_v57 = vmul.f32 %v689_v40, %v8988_v41  ;;  %v703_v33 = vrot.slane %v691_v46, 1  ;;  %v7344_v46 = vstv %s4664_s11  ;;  %s7819_s11 = sld [smem:[#allocation6 + $0x34]] }
 0x384   :  { %v7296_v11 = vpop.permute.xlu0 %2870 }
 0x385   :  { %8979 = vst [vmem:[#allocation39_spill] sm:$0xff] %v7296_v11  ;;  %v7299_v22 = vpop.permute.xlu1 %2872  ;;  %v705_v61 = vrot.slane %v692_v57, 1  ;;  %v704_v39 = vsel %vm307_vm6, %v702_v20, %v703_v33  ;;  %v575_v20 = vmul.f32 %v571_v44, %v8992_v51  ;;  %v7372_v44 = vmul.f32 %v7344_v46, %v5673_v29 }
 0x386   :  { %8981 = vst [vmem:[#allocation34_spill] sm:$0xff] %v7299_v22  ;;  %3964 = vrot.lane.b32.xlu0 %v3957_v24, %s5015_s29  ;;  %v7330_v24 = vmul.f32 %v689_v40, %v8992_v51 }
 0x387   :  { %4084 = vrot.lane.b32.xlu1 %v4077_v35, %s5019_s13  ;;  %v7332_v35 = vstv %s4674_s9  ;;  %s7736_s9 = sld [smem:[#allocation6 + $0x56]] }
 0x388   :  { %v7306_v28 = vpop.permute.xlu0 %2990 }
 0x389   :  { %8983 = vst [vmem:[#allocation37_spill] sm:$0xff] %v7306_v28  ;;  %v7309_v60 = vpop.permute.xlu1 %2992 }
 0x38a   :  { %8985 = vst [vmem:[#allocation40_spill] sm:$0xff] %v7309_v60  ;;  %4122 = vrot.lane.b32.xlu0 %v4012_v42, %s5015_s29  ;;  %v851_v42 = vmul.f32 %v7332_v35, %v5544_v47  ;;  %v1553_v60 = vstv %s7340_s0  ;;  %s7912_s0 = sld [smem:[#allocation6 + $0x44]] }
 0x38b   :  { %4124 = vrot.lane.b32.xlu1 %v4013_v14, %s5015_s29  ;;  %v693_v14 = vmul.f32 %v689_v40, %v8990_v36  ;;  %v1554_v59 = vmul.f32 %v1553_v60, %v5673_v29 }
 0x38c   :  { %v7314_v37 = vpop.permute.xlu0 %2716 }
 0x38d   :  { %8986 = vst [vmem:[#allocation43_spill] sm:$0xff] %v7314_v37  ;;  %v7318_v2 = vpop.permute.xlu1 %2836  ;;  %v7363_v37 = vmul.f32 %v541_v12, %v5544_v47 }
 0x38e   :  { %8987 = vst [vmem:[#allocation38_spill] sm:$0xff] %v7318_v2  ;;  %580 = vrot.lane.b32.xlu0 %v572_v4, %s5018_s20  ;;  %v7346_v4 = vstv %s4691_s12  ;;  %v7360_v2 = vmul.f32 %v541_v12, %v5673_v29  ;;  %s7836_s12 = sld [smem:[#allocation6 + $0x3c]] }
 0x38f   :  { %582 = vrot.lane.b32.xlu1 %v573_v62, %s5018_s20  ;;  %v850_v62 = vmul.f32 %v7332_v35, %v5673_v29  ;;  %v1523_v11 = vmul.f32 %v7346_v4, %v5544_v47 }
 0x390   :  { %v7324_v7 = vpop.permute.xlu0 %2874 }
 0x391   :  { %8989 = vst [vmem:[#allocation41_spill] sm:$0xff] %v7324_v7  ;;  %v7327_v1 = vpop.permute.xlu1 %2994  ;;  %v708_v7 = vrot.slane %v7330_v24, 1  ;;  %v707_v24 = vrot.slane %v693_v14, 1  ;;  %v7398_v14 = vstv %s7334_s14  ;;  %v1535_v50 = vrot.slane %v1523_v11, 4  ;;  %s7852_s14 = sld [smem:[#allocation6 + $0x40]] }
 0x392   :  { %8991 = vst [vmem:[#allocation44_spill] sm:$0xff] %v7327_v1  ;;  %584 = vrot.lane.b32.xlu0 %v574_v55, %s5018_s20  ;;  %v706_v55 = vsel %vm307_vm6, %v703_v33, %v705_v61  ;;  %v7368_v33 = vmul.f32 %v541_v12, %v8990_v36  ;;  %v7376_v61 = vmul.f32 %v7344_v46, %v5544_v47  ;;  %v862_v1 = vrot.slane %v850_v62, 1 }
 0x393   :  { %712 = vrot.lane.b32.xlu1 %v704_v39, %s5015_s29  ;;  %v852_v39 = vmul.f32 %v7332_v35, %v8988_v41  ;;  %v709_v53 = vsel %vm307_vm6, %v707_v24, %v708_v7  ;;  %v1011_v24 = vmul.f32 %v7398_v14, %v5544_v47  ;;  %v1010_v28 = vmul.f32 %v7398_v14, %v5673_v29 }
 0x394   :  { %v7348_v56 = vpop.permute.xlu0 %3030  ;;  %v1012_v25 = vmul.f32 %v7398_v14, %v8988_v41  ;;  %v7448_v11 = vmul.f32 %v7398_v14, %v8992_v51 }
 0x395   :  { %8993 = vst [vmem:[#allocation42_spill] sm:$0xff] %v7348_v56  ;;  %v7352_v57 = vpop.permute.xlu1 %3032  ;;  %v863_v56 = vrot.slane %v851_v42, 1  ;;  %v1522_v42 = vmul.f32 %v7346_v4, %v5673_v29  ;;  %v1023_v38 = vrot.slane %v1011_v24, 2 }
 0x396   :  { %8994 = vst [vmem:[#allocation47_spill] sm:$0xff] %v7352_v57  ;;  %714 = vrot.lane.b32.xlu0 %v706_v55, %s5015_s29  ;;  %v695_v57 = vmul.f32 %v689_v40, %v5702_v10  ;;  %v7380_v55 = vmul.f32 %v541_v12, %v8992_v51  ;;  %v7384_v40 = vmul.f32 %v7344_v46, %v8990_v36 }
 0x397   :  { %586 = vrot.lane.b32.xlu1 %v575_v20, %s5018_s20  ;;  %v865_v20 = vrot.slane %v852_v39, 1  ;;  %v7395_v12 = vmul.f32 %v7332_v35, %v8992_v51  ;;  %v864_v62 = vsel %vm307_vm6, %v862_v1, %v863_v56  ;;  %v1524_v39 = vmul.f32 %v7346_v4, %v8988_v41 }
 0x398   :  { %v7388_v22 = vpop.permute.xlu0 %3150  ;;  %v710_v8 = vrot.slane %v695_v57, 1  ;;  %v1555_v1 = vmul.f32 %v1553_v60, %v5544_v47  ;;  %v1556_v57 = vmul.f32 %v1553_v60, %v8988_v41  ;;  %v1534_v3 = vrot.slane %v1522_v42, 4 }
 0x399   :  { %8995 = vst [vmem:[#allocation48_spill] sm:$0xff] %v7388_v22  ;;  %v7390_v30 = vpop.permute.xlu1 %3152  ;;  %v853_v22 = vmul.f32 %v7332_v35, %v8990_v36  ;;  %v866_v43 = vsel %vm307_vm6, %v863_v56, %v865_v20  ;;  %v868_v52 = vrot.slane %v7395_v12, 1  ;;  %v855_v42 = vmul.f32 %v7332_v35, %v5702_v10 }
 0x39a   :  { %8996 = vst [vmem:[#allocation45_spill] sm:$0xff] %v7390_v30  ;;  %716 = vrot.lane.b32.xlu0 %v709_v53, %s5015_s29  ;;  %v1525_v30 = vmul.f32 %v7346_v4, %v8990_v36  ;;  %v7418_v53 = vmul.f32 %v7346_v4, %v8992_v51  ;;  %v1567_v12 = vrot.slane %v1555_v1, 4  ;;  %v1569_v17 = vrot.slane %v1556_v57, 4 }
 0x39b   :  { %872 = vrot.lane.b32.xlu1 %v864_v62, %s5019_s13  ;;  %v867_v56 = vrot.slane %v853_v22, 1  ;;  %v7464_v24 = vsel %vm298_vm3, %v1534_v3, %v1535_v50 }
 0x39c   :  { %v7422_v54 = vpop.permute.xlu0 %2876  ;;  %v1539_v5 = vrot.slane %v1525_v30, 4  ;;  %v8736_v20 = vrot.slane %v7418_v53, 4  ;;  %v7451_v30 = vstv %s7400_s21  ;;  %s7947_s21 = sld [smem:[#allocation6]] }
 0x39d   :  { %8997 = vst [vmem:[#allocation46_spill] sm:$0xff] %v7422_v54  ;;  %v7428_v62 = vpop.permute.xlu1 %2996  ;;  %v711_v54 = vsel %vm307_vm6, %v708_v7, %v710_v8  ;;  %v869_v8 = vsel %vm307_vm6, %v867_v56, %v868_v52  ;;  %v1025_v7 = vrot.slane %v1012_v25, 2  ;;  %v1171_v35 = vmul.f32 %v7451_v30, %v5544_v47 }
 0x39e   :  { %8998 = vst [vmem:[#allocation51_spill] sm:$0xff] %v7428_v62  ;;  %874 = vrot.lane.b32.xlu0 %v866_v43, %s5019_s13  ;;  %v1537_v62 = vrot.slane %v1524_v39, 4  ;;  %v1022_v43 = vrot.slane %v1010_v28, 2  ;;  %v870_v28 = vrot.slane %v855_v42, 1  ;;  %v7461_v25 = vmul.f32 %v7344_v46, %v8992_v51 }
 0x39f   :  { %718 = vrot.lane.b32.xlu1 %v711_v54, %s5015_s29  ;;  %v1566_v54 = vrot.slane %v1554_v59, 4  ;;  %v1013_v59 = vmul.f32 %v7398_v14, %v8990_v36  ;;  %v7475_v1 = vsel %vm298_vm3, %v1539_v5, %v8736_v20  ;;  %v7481_v46 = vsel %vm298_vm3, %v1567_v12, %v1569_v17 }
 0x3a0   :  { %v7441_v13 = vpop.permute.xlu0 %3034  ;;  %v1024_v22 = vsel %vm304_vm5, %v1022_v43, %v1023_v38  ;;  %v7467_v39 = vsel %vm298_vm3, %v1535_v50, %v1537_v62  ;;  %v1170_v50 = vmul.f32 %v7451_v30, %v5673_v29  ;;  %v7488_v62 = vstv %s7426_s1  ;;  %s7949_s1 = sld [smem:[#allocation6 + $0x48]] }
 0x3a1   :  { %8999 = vst [vmem:[#allocation52_spill] sm:$0xff] %v7441_v13  ;;  %v7443_v19 = vpop.permute.xlu1 %3154  ;;  %v7478_v57 = vsel %vm298_vm3, %v1566_v54, %v1567_v12  ;;  %v1026_v56 = vsel %vm304_vm5, %v1023_v38, %v1025_v7  ;;  %v1028_v5 = vrot.slane %v7448_v11, 2  ;;  %v1172_v43 = vmul.f32 %v7451_v30, %v8988_v41 }
 0x3a2   :  { %9000 = vst [vmem:[#allocation49_spill] sm:$0xff] %v7443_v19  ;;  %876 = vrot.lane.b32.xlu0 %v869_v8, %s5019_s13  ;;  %v1527_v17 = vmul.f32 %v7346_v4, %v5702_v10  ;;  %v871_v12 = vsel %vm307_vm6, %v868_v52, %v870_v28  ;;  %v1183_v8 = vrot.slane %v1171_v35, 2  ;;  %v1015_v54 = vmul.f32 %v7398_v14, %v5702_v10 }
 0x3a3   :  { %1032 = vrot.lane.b32.xlu1 %v1024_v22, %s5017_s8  ;;  %v1557_v22 = vmul.f32 %v1553_v60, %v8990_v36  ;;  %v1558_v38 = vmul.f32 %v1553_v60, %v8992_v51  ;;  %v1559_v7 = vmul.f32 %v1553_v60, %v5702_v10  ;;  %v1027_v11 = vrot.slane %v1013_v59, 2 }
 0x3a4   :  { %v7483_v3 = vpop.permute.xlu0 %3190  ;;  %v2512_v4 = vmul.f32 %v7488_v62, %v5490_v31  ;;  %v2513_v52 = vmul.f32 %v7488_v62, %v5497_v26  ;;  %v2514_v28 = vmul.f32 %v7488_v62, %v5517_v18  ;;  %v1182_v35 = vrot.slane %v1170_v50, 2 }
 0x3a5   :  { %9001 = vst [vmem:[#allocation50_spill] sm:$0xff] %v7483_v3  ;;  %v7490_v42 = vpop.permute.xlu1 %3192  ;;  %v1029_v60 = vsel %vm304_vm5, %v1027_v11, %v1028_v5  ;;  %v7521_v59 = vmul.f32 %v7451_v30, %v8992_v51  ;;  %v1329_v20 = vstv %s7453_s22  ;;  %v1030_v3 = vrot.slane %v1015_v54, 2  ;;  %s7978_s22 = sld [smem:[#allocation6 + $0x4c]] }
 0x3a6   :  { %9002 = vst [vmem:[#allocation53_spill] sm:$0xff] %v7490_v42  ;;  %1034 = vrot.lane.b32.xlu0 %v1026_v56, %s5017_s8  ;;  %v1542_v42 = vrot.slane %v1527_v17, 4  ;;  %v1184_v13 = vsel %vm304_vm5, %v1182_v35, %v1183_v8  ;;  %v1331_v19 = vmul.f32 %v1329_v20, %v5544_v47  ;;  %v1572_v50 = vrot.slane %v1558_v38, 4 }
 0x3a7   :  { %878 = vrot.lane.b32.xlu1 %v871_v12, %s5019_s13  ;;  %v1185_v12 = vrot.slane %v1172_v43, 2  ;;  %v1574_v16 = vrot.slane %v1559_v7, 4  ;;  %v1173_v43 = vmul.f32 %v7451_v30, %v8990_v36  ;;  %v2524_v11 = vrot.slane %v2512_v4, 1 }
 0x3a8   :  { %v7514_v14 = vpop.permute.xlu0 %3310  ;;  %v2527_v6 = vrot.slane %v2514_v28, 1  ;;  %v7537_v54 = vmul.f32 %v7488_v62, %v5521_v34  ;;  %v1188_v38 = vrot.slane %v7521_v59, 2  ;;  %v1332_v7 = vmul.f32 %v1329_v20, %v8988_v41 }
 0x3a9   :  { %9003 = vst [vmem:[#allocation54_spill] sm:$0xff] %v7514_v14  ;;  %v7516_v56 = vpop.permute.xlu1 %3312  ;;  %v1571_v14 = vrot.slane %v1557_v22, 4  ;;  %v2515_v4 = vmul.f32 %v7488_v62, %v5506_v63  ;;  %v1343_v28 = vrot.slane %v1331_v19, 3  ;;  %v1175_v35 = vmul.f32 %v7451_v30, %v5702_v10 }
 0x3aa   :  { %9004 = vst [vmem:[#allocation56_spill] sm:$0xff] %v7516_v56  ;;  %1036 = vrot.lane.b32.xlu0 %v1029_v60, %s5017_s8  ;;  %v2525_v56 = vrot.slane %v2513_v52, 1  ;;  %v1330_v60 = vmul.f32 %v1329_v20, %v5673_v29  ;;  %v1031_v52 = vsel %vm304_vm5, %v1028_v5, %v1030_v3  ;;  %v1187_v59 = vrot.slane %v1173_v43, 2 }
 0x3ab   :  { %1192 = vrot.lane.b32.xlu1 %v1184_v13, %s5020_s26  ;;  %v1186_v13 = vsel %vm304_vm5, %v1183_v8, %v1185_v12  ;;  %v7556_v8 = vsel %vm298_vm3, %v1571_v14, %v1572_v50  ;;  %v7559_v12 = vsel %vm298_vm3, %v1572_v50, %v1574_v16  ;;  %v2543_v30 = vstv %s7512_s25  ;;  %s8024_s25 = sld [smem:[#allocation6 + $0x50]] }
 0x3ac   :  { %v7530_v17 = vpop.permute.xlu0 %3036  ;;  %v7563_v3 = vsel %vm307_vm6, %v2524_v11, %v2525_v56  ;;  %v7566_v19 = vsel %vm307_vm6, %v2525_v56, %v2527_v6  ;;  %v2530_v5 = vrot.slane %v7537_v54, 1  ;;  %v1189_v16 = vsel %vm304_vm5, %v1187_v59, %v1188_v38 }
 0x3ad   :  { %9005 = vst [vmem:[#allocation57_spill] sm:$0xff] %v7530_v17  ;;  %v7539_v22 = vpop.permute.xlu1 %3156  ;;  %v9007_v17 = vrot.slane %v7418_v53, 4  ;;  %9008 = vst [vmem:[#allocation59_spill] sm:$0xff] %v7563_v3  ;;  %v1345_v50 = vrot.slane %v1332_v7, 3  ;;  %v2529_v43 = vrot.slane %v2515_v4, 1  ;;  %v1190_v56 = vrot.slane %v1175_v35, 2 }
 0x3ae   :  { %9006 = vst [vmem:[#allocation55_spill] sm:$0xff] %v7539_v22  ;;  %1194 = vrot.lane.b32.xlu0 %v1186_v13, %s5020_s26  ;;  %9009 = vst [vmem:[#allocation75_spill] sm:$0xff] %v7566_v19  ;;  %v1335_v11 = vmul.f32 %v1329_v20, %v5702_v10  ;;  %v2545_v54 = vmul.f32 %v2543_v30, %v5497_v26  ;;  %v2546_v13 = vmul.f32 %v2543_v30, %v5517_v18 }
 0x3af   :  { %v7553_v22 = vsel %vm298_vm3, %v9007_v17, %v1542_v42  ;;  %1038 = vrot.lane.b32.xlu1 %v1031_v52, %s5017_s8  ;;  %v1342_v42 = vrot.slane %v1330_v60, 3  ;;  %v1334_v17 = vmul.f32 %v1329_v20, %v8992_v51  ;;  %v2544_v60 = vmul.f32 %v2543_v30, %v5490_v31 }
 0x3b0   :  { %v7569_v53 = vpop.permute.xlu0 %3194  ;;  %v1333_v7 = vmul.f32 %v1329_v20, %v8990_v36  ;;  %v2517_v4 = vmul.f32 %v7488_v62, %v5558_v9  ;;  %v2547_v52 = vmul.f32 %v2543_v30, %v5506_v63  ;;  %v2548_v59 = vmul.f32 %v2543_v30, %v5521_v34 }
 0x3b1   :  { %9010 = vst [vmem:[#allocation58_spill] sm:$0xff] %v7569_v53  ;;  %v7572_v14 = vpop.permute.xlu1 %3314  ;;  %v1344_v6 = vsel %vm301_vm4, %v1342_v42, %v1343_v28  ;;  %v1617_v42 = vstv %s7533_s23  ;;  %v2549_v19 = vmul.f32 %v2543_v30, %v5558_v9  ;;  %v1191_v62 = vsel %vm304_vm5, %v1188_v38, %v1190_v56  ;;  %s8076_s23 = sld [smem:[#allocation6 + $0x58]] }
 0x3b2   :  { %9011 = vst [vmem:[#allocation76_spill] sm:$0xff] %v7572_v14  ;;  %1196 = vrot.lane.b32.xlu0 %v1189_v16, %s5020_s26  ;;  %v7594_v16 = vsel %vm307_vm6, %v2529_v43, %v2530_v5  ;;  %v1346_v14 = vsel %vm301_vm4, %v1343_v28, %v1345_v50  ;;  %v1619_v20 = vmul.f32 %v1617_v42, %v5544_v47  ;;  %v1350_v3 = vrot.slane %v1335_v11, 3 }
 0x3b3   :  { %1352 = vrot.lane.b32.xlu1 %v1344_v6, %s5014_s24  ;;  %9013 = vst [vmem:[#allocation78_spill] sm:$0xff] %v7594_v16  ;;  %v1348_v6 = vrot.slane %v1334_v17, 3  ;;  %v2557_v23 = vrot.slane %v2545_v54, 1  ;;  %v2559_v43 = vrot.slane %v2546_v13, 1  ;;  %v1618_v28 = vmul.f32 %v1617_v42, %v5673_v29 }
 0x3b4   :  { %v7590_v35 = vpop.permute.xlu0 %3350  ;;  %v2556_v50 = vrot.slane %v2544_v60, 1  ;;  %v2532_v17 = vrot.slane %v2517_v4, 1  ;;  %v2561_v16 = vrot.slane %v2547_v52, 1  ;;  %v2562_v48 = vrot.slane %v2548_v59, 1 }
 0x3b5   :  { %9012 = vst [vmem:[#allocation77_spill] sm:$0xff] %v7590_v35  ;;  %v7596_v53 = vpop.permute.xlu1 %3352  ;;  %v1620_v35 = vmul.f32 %v1617_v42, %v8988_v41  ;;  %v1631_v56 = vrot.slane %v1619_v20, 4  ;;  %v7612_v11 = vmul.f32 %v1617_v42, %v8992_v51  ;;  %v7615_v54 = vstv %s7576_s27  ;;  %s8107_s27 = sld [smem:[#allocation6 + $0x5c]] }
 0x3b6   :  { %9014 = vst [vmem:[#allocation21_spill] sm:$0xff] %v7596_v53  ;;  %1354 = vrot.lane.b32.xlu0 %v1346_v14, %s5014_s24  ;;  %v1347_v53 = vrot.slane %v1333_v7, 3  ;;  %v2564_v13 = vrot.slane %v2549_v19, 1  ;;  %v1351_v60 = vsel %vm301_vm4, %v1348_v6, %v1350_v3  ;;  %v1779_v4 = vmul.f32 %v7615_v54, %v5544_v47  ;;  %v9019_v19 = vld [vmem:[#allocation79_spill] sm:$0xff] }
 0x3b7   :  { %1198 = vrot.lane.b32.xlu1 %v1191_v62, %s5020_s26  ;;  %v1633_v7 = vrot.slane %v1620_v35, 4  ;;  %v7624_v52 = vsel %vm307_vm6, %v2556_v50, %v2557_v23  ;;  %v1630_v59 = vrot.slane %v1618_v28, 4  ;;  %v1621_v20 = vmul.f32 %v1617_v42, %v8990_v36 }
 0x3b8   :  { %v7606_v30 = vpop.permute.xlu0 %3470  ;;  %v1349_v38 = vsel %vm301_vm4, %v1347_v53, %v1348_v6  ;;  %9017 = vst [vmem:[#allocation150_spill] sm:$0xff] %v7624_v52  ;;  %v7627_v53 = vsel %vm307_vm6, %v2557_v23, %v2559_v43  ;;  %v618_v62 = vadd.f32 %v9019_v19, %v7360_v2  ;;  %v7634_v3 = vsel %vm307_vm6, %v2530_v5, %v2532_v17  ;;  %v9023_v43 = vld [vmem:[#allocation80_spill] sm:$0xff] }
 0x3b9   :  { %9015 = vst [vmem:[#allocation22_spill] sm:$0xff] %v7606_v30  ;;  %v7608_v14 = vpop.permute.xlu1 %3472  ;;  %9018 = vst [vmem:[#allocation151_spill] sm:$0xff] %v7627_v53  ;;  %v7637_v35 = vsel %vm307_vm6, %v2561_v16, %v2562_v48  ;;  %v1778_v23 = vmul.f32 %v7615_v54, %v5673_v29  ;;  %v619_v50 = vadd.f32 %v9023_v43, %v7363_v37  ;;  %v1636_v2 = vrot.slane %v7612_v11, 4  ;;  %v9026_v37 = vld [vmem:[#allocation81_spill] sm:$0xff]  ;;  %v9027_v11 = vld [vmem:[#allocation82_spill] sm:$0xff] }
 0x3ba   :  { %9016 = vst [vmem:[#allocation20_spill] sm:$0xff] %v7608_v14  ;;  %1356 = vrot.lane.b32.xlu0 %v1349_v38, %s5014_s24  ;;  %9020 = vst [vmem:[#allocation79_spill] sm:$0xff] %v7634_v3  ;;  %v1632_v38 = vsel %vm298_vm3, %v1630_v59, %v1631_v56  ;;  %v1780_v5 = vmul.f32 %v7615_v54, %v8988_v41  ;;  %v7652_v16 = vsel %vm307_vm6, %v2562_v48, %v2564_v13 }
 0x3bb   :  { %1358 = vrot.lane.b32.xlu1 %v1351_v60, %s5014_s24  ;;  %9021 = vst [vmem:[#allocation152_spill] sm:$0xff] %v7637_v35  ;;  %9025 = vst [vmem:[#allocation154_spill] sm:$0xff] %v7652_v16  ;;  %v1634_v17 = vsel %vm298_vm3, %v1631_v56, %v1633_v7  ;;  %v1791_v60 = vrot.slane %v1779_v4, 5  ;;  %v1623_v19 = vmul.f32 %v1617_v42, %v5702_v10  ;;  %v1635_v13 = vrot.slane %v1621_v20, 4  ;;  %v9030_v7 = vld [vmem:[#allocation85_spill] sm:$0xff]  ;;  %v9031_v42 = vld [vmem:[#allocation86_spill] sm:$0xff] }
 0x3bc   :  { %v7639_v6 = vpop.permute.xlu0 %3196  ;;  %v620_v59 = vadd.f32 %v9026_v37, %v7368_v33  ;;  %v644_v43 = vadd.f32 %v9027_v11, %v7372_v44  ;;  %v765_v4 = vadd.f32 %v9030_v7, %v619_v50  ;;  %v1790_v30 = vrot.slane %v1778_v23, 5  ;;  %v9036_v11 = vld [vmem:[#allocation89_spill] sm:$0xff]  ;;  %v9051_v16 = vld [vmem:[#allocation100_spill] sm:$0xff] }
 0x3bd   :  { %9022 = vst [vmem:[#allocation153_spill] sm:$0xff] %v7639_v6  ;;  %v7645_v28 = vpop.permute.xlu1 %3316  ;;  %v9028_v6 = vld [vmem:[#allocation83_spill] sm:$0xff]  ;;  %v1637_v44 = vsel %vm298_vm3, %v1635_v13, %v1636_v2  ;;  %v1793_v37 = vrot.slane %v1780_v5, 5  ;;  %v7680_v20 = vstv %s7617_s28  ;;  %v1638_v23 = vrot.slane %v1623_v19, 4  ;;  %v9035_v5 = vld [vmem:[#allocation88_spill] sm:$0xff]  ;;  %v9040_v19 = vld [vmem:[#allocation93_spill] sm:$0xff] }
 0x3be   :  { %9024 = vst [vmem:[#allocation80_spill] sm:$0xff] %v7645_v28  ;;  %1640 = vrot.lane.b32.xlu0 %v1632_v38, %s5018_s20  ;;  %v645_v48 = vadd.f32 %v9028_v6, %v7376_v61  ;;  %v9029_v38 = vld [vmem:[#allocation84_spill] sm:$0xff]  ;;  %v621_v28 = vadd.f32 %v9031_v42, %v7380_v55  ;;  %v7677_v61 = vmul.f32 %v7615_v54, %v8992_v51  ;;  %v9038_v42 = vld [vmem:[#allocation91_spill] sm:$0xff]  ;;  %s8151_s28 = sld [smem:[#allocation6 + $0x60]] }
 0x3bf   :  { %1642 = vrot.lane.b32.xlu1 %v1634_v17, %s5018_s20  ;;  %v764_v56 = vadd.f32 %v9029_v38, %v618_v62  ;;  %v9034_v62 = vld [vmem:[#allocation87_spill] sm:$0xff]  ;;  %v1792_v55 = vsel %vm295_vm2, %v1790_v30, %v1791_v60  ;;  %v1939_v50 = vmul.f32 %v7680_v20, %v5544_v47  ;;  %v766_v17 = vadd.f32 %v9035_v5, %v620_v59  ;;  %v9037_v38 = vld [vmem:[#allocation90_spill] sm:$0xff] }
 0x3c0   :  { %v7670_v14 = vpop.permute.xlu0 %3354  ;;  %v646_v6 = vadd.f32 %v9034_v62, %v7384_v40  ;;  %v804_v13 = vadd.f32 %v9036_v11, %v644_v43  ;;  %v805_v7 = vadd.f32 %v9037_v38, %v645_v48  ;;  %v1781_v40 = vmul.f32 %v7615_v54, %v8990_v36  ;;  %v9039_v62 = vld [vmem:[#allocation92_spill] sm:$0xff]  ;;  %v9042_v43 = vld [vmem:[#allocation94_spill] sm:$0xff] }
 0x3c1   :  { %9032 = vst [vmem:[#allocation81_spill] sm:$0xff] %v7670_v14  ;;  %v7672_v33 = vpop.permute.xlu1 %3474  ;;  %v925_v30 = vadd.f32 %v9039_v62, %v765_v4  ;;  %v647_v14 = vadd.f32 %v9040_v19, %v7461_v25  ;;  %v1938_v59 = vmul.f32 %v7680_v20, %v5673_v29  ;;  %v767_v48 = vadd.f32 %v9042_v43, %v621_v28  ;;  %v9044_v28 = vld [vmem:[#allocation95_spill] sm:$0xff]  ;;  %v9045_v19 = vld [vmem:[#allocation96_spill] sm:$0xff] }
 0x3c2   :  { %9033 = vst [vmem:[#allocation82_spill] sm:$0xff] %v7672_v33  ;;  %1644 = vrot.lane.b32.xlu0 %v1637_v44, %s5018_s20  ;;  %v924_v44 = vadd.f32 %v9038_v42, %v764_v56  ;;  %v1796_v11 = vrot.slane %v7677_v61, 5  ;;  %v1940_v56 = vmul.f32 %v7680_v20, %v8988_v41  ;;  %v1639_v25 = vsel %vm298_vm3, %v1636_v2, %v1638_v23  ;;  %v9046_v23 = vld [vmem:[#allocation97_spill] sm:$0xff] }
 0x3c3   :  { %1800 = vrot.lane.b32.xlu1 %v1792_v55, %s5015_s29  ;;  %v1794_v55 = vsel %vm295_vm2, %v1791_v60, %v1793_v37  ;;  %v1951_v4 = vrot.slane %v1939_v50, 5  ;;  %v7714_v38 = vstv %s7657_s30  ;;  %v1783_v42 = vmul.f32 %v7615_v54, %v5702_v10  ;;  %s8161_s30 = sld [smem:[#allocation6 + $0x1c]] }
 0x3c4   :  { %v7700_v33 = vpop.permute.xlu0 %3510  ;;  %v806_v62 = vadd.f32 %v9044_v28, %v646_v6  ;;  %v1795_v60 = vrot.slane %v1781_v40, 5  ;;  %v3601_v37 = vmul.f32 %v7714_v38, %v5497_v26  ;;  %v3602_v61 = vmul.f32 %v7714_v38, %v5517_v18 }
 0x3c5   :  { %9041 = vst [vmem:[#allocation83_spill] sm:$0xff] %v7700_v33  ;;  %v7705_v5 = vpop.permute.xlu1 %3512  ;;  %v7725_v2 = vadd.f32 %v9045_v19, %v766_v17  ;;  %v7728_v50 = vadd.f32 %v9046_v23, %v804_v13  ;;  %v1950_v54 = vrot.slane %v1938_v59, 5  ;;  %v7734_v6 = vmul.f32 %v7680_v20, %v8992_v51 }
 0x3c6   :  { %9043 = vst [vmem:[#allocation84_spill] sm:$0xff] %v7705_v5  ;;  %1802 = vrot.lane.b32.xlu0 %v1794_v55, %s5015_s29  ;;  %v1797_v55 = vsel %vm295_vm2, %v1795_v60, %v1796_v11  ;;  %v3600_v17 = vmul.f32 %v7714_v38, %v5490_v31  ;;  %v2097_v28 = vstv %s7682_s7  ;;  %v1798_v59 = vrot.slane %v1783_v42, 5  ;;  %v9050_v60 = vld [vmem:[#allocation99_spill] sm:$0xff] }
 0x3c7   :  { %1646 = vrot.lane.b32.xlu1 %v1639_v25, %s5018_s20  ;;  %v1953_v25 = vrot.slane %v1940_v56, 5  ;;  %v1952_v13 = vsel %vm295_vm2, %v1950_v54, %v1951_v4  ;;  %v1941_v19 = vmul.f32 %v7680_v20, %v8990_v36  ;;  %v2099_v23 = vmul.f32 %v2097_v28, %v5544_v47 }
 0x3c8   :  { %v7730_v43 = vpop.permute.xlu0 %3356  ;;  %v7755_v5 = vadd.f32 %v9050_v60, %v924_v44  ;;  %v3613_v56 = vrot.slane %v3601_v37, 5  ;;  %v3615_v33 = vrot.slane %v3602_v61, 5  ;;  %v1956_v42 = vrot.slane %v7734_v6, 5 }
 0x3c9   :  { %9047 = vst [vmem:[#allocation85_spill] sm:$0xff] %v7730_v43  ;;  %v7738_v40 = vpop.permute.xlu1 %3476  ;;  %v9049_v43 = vld [vmem:[#allocation98_spill] sm:$0xff]  ;;  %v2098_v35 = vmul.f32 %v2097_v28, %v5673_v29  ;;  %v3612_v60 = vrot.slane %v3600_v17, 5  ;;  %v1954_v37 = vsel %vm295_vm2, %v1951_v4, %v1953_v25  ;;  %v1955_v61 = vrot.slane %v1941_v19, 5 }
 0x3ca   :  { %9048 = vst [vmem:[#allocation86_spill] sm:$0xff] %v7738_v40  ;;  %1804 = vrot.lane.b32.xlu0 %v1797_v55, %s5015_s29  ;;  %v7752_v40 = vadd.f32 %v9049_v43, %v805_v7  ;;  %v7759_v55 = vadd.f32 %v9051_v16, %v925_v30  ;;  %v7767_v7 = vmul.f32 %v7714_v38, %v5521_v34  ;;  %v9053_v43 = vld [vmem:[#allocation101_spill] sm:$0xff]  ;;  %v2111_v6 = vrot.slane %v2099_v23, 6 }
 0x3cb   :  { %1960 = vrot.lane.b32.xlu1 %v1952_v13, %s5019_s13  ;;  %v7770_v44 = vadd.f32 %v9053_v43, %v647_v14  ;;  %v2100_v16 = vmul.f32 %v2097_v28, %v8988_v41  ;;  %v1799_v30 = vsel %vm295_vm2, %v1796_v11, %v1798_v59  ;;  %v9055_v14 = vld [vmem:[#allocation102_spill] sm:$0xff]  ;;  %v7784_v17 = vsel %vm295_vm2, %v3612_v60, %v3613_v56 }
 0x3cc   :  { %v7761_v54 = vpop.permute.xlu0 %3514  ;;  %v7781_v43 = vadd.f32 %v9055_v14, %v767_v48  ;;  %9056 = vst [vmem:[#allocation89_spill] sm:$0xff] %v7784_v17  ;;  %v7788_v4 = vsel %vm295_vm2, %v3613_v56, %v3615_v33  ;;  %v3603_v11 = vmul.f32 %v7714_v38, %v5506_v63  ;;  %v1957_v59 = vsel %vm295_vm2, %v1955_v61, %v1956_v42 }
 0x3cd   :  { %9052 = vst [vmem:[#allocation87_spill] sm:$0xff] %v7761_v54  ;;  %v7772_v13 = vpop.permute.xlu1 %3758  ;;  %v1943_v54 = vmul.f32 %v7680_v20, %v5702_v10  ;;  %9057 = vst [vmem:[#allocation90_spill] sm:$0xff] %v7788_v4  ;;  %v2110_v19 = vrot.slane %v2098_v35, 6  ;;  %v7797_v48 = vstv %s7736_s9  ;;  %v7804_v33 = vmul.f32 %v2097_v28, %v8992_v51  ;;  %v9060_v20 = vld [vmem:[#allocation103_spill] sm:$0xff]  ;;  %s4211_s9 = sld [smem:[#allocation7]] }
 0x3ce   :  { %9054 = vst [vmem:[#allocation88_spill] sm:$0xff] %v7772_v13  ;;  %1962 = vrot.lane.b32.xlu0 %v1954_v37, %s5019_s13  ;;  %v3633_v60 = vmul.f32 %v7797_v48, %v5497_v26  ;;  %v2113_v37 = vrot.slane %v2100_v16, 6  ;;  %v2257_v56 = vstv %s7744_s10  ;;  %v3634_v35 = vmul.f32 %v7797_v48, %v5517_v18  ;;  %s4760_s10 = sld [smem:[#allocation7 + $0x1]] }
 0x3cf   :  { %1806 = vrot.lane.b32.xlu1 %v1799_v30, %s5015_s29  ;;  %v2112_v30 = vsel %vm292_vm1, %v2110_v19, %v2111_v6  ;;  %v1958_v61 = vrot.slane %v1943_v54, 5  ;;  %v2259_v14 = vmul.f32 %v2257_v56, %v5544_v47  ;;  %v3617_v16 = vrot.slane %v3603_v11, 5  ;;  %v9061_v54 = vld [vmem:[#allocation104_spill] sm:$0xff] }
 0x3d0   :  { %v7792_v25 = vpop.permute.xlu0 %3760  ;;  %v2101_v4 = vmul.f32 %v2097_v28, %v8990_v36  ;;  %v2258_v13 = vmul.f32 %v2257_v56, %v5673_v29  ;;  %v2260_v11 = vmul.f32 %v2257_v56, %v8988_v41  ;;  %v2114_v17 = vsel %vm292_vm1, %v2111_v6, %v2113_v37  ;;  %v9067_v37 = vld [vmem:[#allocation106_spill] sm:$0xff] }
 0x3d1   :  { %9058 = vst [vmem:[#allocation91_spill] sm:$0xff] %v7792_v25  ;;  %v7799_v23 = vpop.permute.xlu1 %3516  ;;  %v3632_v25 = vmul.f32 %v7797_v48, %v5490_v31  ;;  %v2116_v3 = vrot.slane %v7804_v33, 6  ;;  %v2103_v53 = vmul.f32 %v2097_v28, %v5702_v10  ;;  %v7849_v33 = vadd.f32 %v9067_v37, %v7752_v40  ;;  %v9076_v37 = vld [vmem:[#allocation109_spill] sm:$0xff] }
 0x3d2   :  { %9059 = vst [vmem:[#allocation92_spill] sm:$0xff] %v7799_v23  ;;  %1964 = vrot.lane.b32.xlu0 %v1957_v59, %s5019_s13  ;;  %v7813_v23 = vadd.f32 %v9060_v20, %v806_v62  ;;  %v7823_v59 = vadd.f32 %v9061_v54, %v7725_v2  ;;  %v3605_v62 = vmul.f32 %v7714_v38, %v5558_v9  ;;  %v3645_v20 = vrot.slane %v3633_v60, 5 }
 0x3d3   :  { %2120 = vrot.lane.b32.xlu1 %v2112_v30, %s5017_s8  ;;  %v9064_v2 = vrot.slane %v7767_v7, 5  ;;  %v1959_v38 = vsel %vm295_vm2, %v1956_v42, %v1958_v61  ;;  %v3647_v60 = vrot.slane %v3634_v35, 5  ;;  %v3644_v28 = vrot.slane %v3632_v25, 5 }
 0x3d4   :  { %v7825_v19 = vpop.permute.xlu0 %3762  ;;  %v2115_v52 = vrot.slane %v2101_v4, 6  ;;  %v2273_v42 = vrot.slane %v2260_v11, 6  ;;  %v7858_v61 = vmul.f32 %v7797_v48, %v5506_v63  ;;  %v2118_v4 = vrot.slane %v2103_v53, 6  ;;  %v9075_v53 = vld [vmem:[#allocation108_spill] sm:$0xff] }
 0x3d5   :  { %9062 = vst [vmem:[#allocation93_spill] sm:$0xff] %v7825_v19  ;;  %v7831_v30 = vpop.permute.xlu1 %3798  ;;  %v7841_v54 = vsel %vm295_vm2, %v3617_v16, %v9064_v2  ;;  %v2271_v19 = vrot.slane %v2259_v14, 6  ;;  %v3620_v2 = vrot.slane %v3605_v62, 5  ;;  %v2262_v35 = vmul.f32 %v2257_v56, %v8992_v51 }
 0x3d6   :  { %9063 = vst [vmem:[#allocation94_spill] sm:$0xff] %v7831_v30  ;;  %9065 = vst [vmem:[#allocation95_spill] sm:$0xff] %v7841_v54  ;;  %2122 = vrot.lane.b32.xlu0 %v2114_v17, %s5017_s8  ;;  %v9066_v30 = vld [vmem:[#allocation105_spill] sm:$0xff]  ;;  %v2270_v17 = vrot.slane %v2258_v13, 6  ;;  %v2117_v25 = vsel %vm292_vm1, %v2115_v52, %v2116_v3  ;;  %v7868_v14 = vsel %vm295_vm2, %v3645_v20, %v3647_v60 }
 0x3d7   :  { %v1124_v6 = vadd.f32 %v9066_v30, %v7728_v50  ;;  %1966 = vrot.lane.b32.xlu1 %v1959_v38, %s5019_s13  ;;  %9069 = vst [vmem:[#allocation97_spill] sm:$0xff] %v7858_v61  ;;  %v7861_v50 = vsel %vm295_vm2, %v3644_v28, %v3645_v20  ;;  %9072 = vst [vmem:[#allocation100_spill] sm:$0xff] %v7868_v14  ;;  %v7874_v62 = vmul.f32 %v7797_v48, %v5521_v34  ;;  %v9074_v30 = vld [vmem:[#allocation107_spill] sm:$0xff] }
 0x3d8   :  { %v7854_v16 = vpop.permute.xlu0 %3800  ;;  %9070 = vst [vmem:[#allocation98_spill] sm:$0xff] %v7861_v50  ;;  %v2272_v13 = vsel %vm292_vm1, %v2270_v17, %v2271_v19  ;;  %v2261_v11 = vmul.f32 %v2257_v56, %v8990_v36  ;;  %v1244_v52 = vadd.f32 %v9074_v30, %v7755_v5  ;;  %v1245_v38 = vadd.f32 %v9075_v53, %v7759_v55  ;;  %v9084_v55 = vld [vmem:[#allocation111_spill] sm:$0xff] }
 0x3d9   :  { %9068 = vst [vmem:[#allocation96_spill] sm:$0xff] %v7854_v16  ;;  %v7863_v40 = vpop.permute.xlu1 %3918  ;;  %9073 = vst [vmem:[#allocation101_spill] sm:$0xff] %v7874_v62  ;;  %v2375_v20 = vstv %s7819_s11  ;;  %v2263_v60 = vmul.f32 %v2257_v56, %v5702_v10  ;;  %v7886_v28 = vadd.f32 %v9076_v37, %v7770_v44  ;;  %v2274_v5 = vsel %vm292_vm1, %v2271_v19, %v2273_v42  ;;  %v9086_v62 = vld [vmem:[#allocation112_spill] sm:$0xff] }
 0x3da   :  { %9071 = vst [vmem:[#allocation99_spill] sm:$0xff] %v7863_v40  ;;  %2124 = vrot.lane.b32.xlu0 %v2117_v25, %s5017_s8  ;;  %v9078_v25 = vrot.slane %v7767_v7, 5  ;;  %v2119_v44 = vsel %vm292_vm1, %v2116_v3, %v2118_v4  ;;  %v2276_v53 = vrot.slane %v2262_v35, 6  ;;  %v2607_v37 = vstv %s7836_s12 }
 0x3db   :  { %2280 = vrot.lane.b32.xlu1 %v2272_v13, %s5020_s26  ;;  %v9080_v13 = vld [vmem:[#allocation110_spill] sm:$0xff]  ;;  %v2376_v19 = vmul.f32 %v2375_v20, %v5490_v31  ;;  %v7910_v42 = vmul.f32 %v7797_v48, %v5558_v9  ;;  %v2278_v3 = vrot.slane %v2263_v60, 6  ;;  %v2609_v4 = vmul.f32 %v2607_v37, %v5497_v26 }
 0x3dc   :  { %v7888_v17 = vpop.permute.xlu0 %3920  ;;  %v7893_v16 = vsel %vm295_vm2, %v9078_v25, %v3620_v2  ;;  %v7899_v30 = vadd.f32 %v9080_v13, %v7781_v43  ;;  %v2275_v2 = vrot.slane %v2261_v11, 6  ;;  %v2377_v43 = vmul.f32 %v2375_v20, %v5497_v26 }
 0x3dd   :  { %9077 = vst [vmem:[#allocation102_spill] sm:$0xff] %v7888_v17  ;;  %9079 = vst [vmem:[#allocation103_spill] sm:$0xff] %v7893_v16  ;;  %v7901_v56 = vpop.permute.xlu1 %3764  ;;  %v2767_v35 = vstv %s7852_s14  ;;  %v2608_v11 = vmul.f32 %v2607_v37, %v5490_v31  ;;  %v2611_v13 = vmul.f32 %v2607_v37, %v5506_v63  ;;  %v2612_v48 = vmul.f32 %v2607_v37, %v5521_v34 }
 0x3de   :  { %9081 = vst [vmem:[#allocation104_spill] sm:$0xff] %v7901_v56  ;;  %2282 = vrot.lane.b32.xlu0 %v2274_v5, %s5020_s26  ;;  %9082 = vst [vmem:[#allocation105_spill] sm:$0xff] %v7910_v42  ;;  %v2610_v5 = vmul.f32 %v2607_v37, %v5517_v18  ;;  %v7926_v7 = vadd.f32 %v9084_v55, %v7813_v23  ;;  %v2277_v60 = vsel %vm292_vm1, %v2275_v2, %v2276_v53  ;;  %v9087_v55 = vld [vmem:[#allocation113_spill] sm:$0xff] }
 0x3df   :  { %2126 = vrot.lane.b32.xlu1 %v2119_v44, %s5017_s8  ;;  %v2378_v61 = vmul.f32 %v2375_v20, %v5506_v63  ;;  %v7935_v56 = vadd.f32 %v9086_v62, %v7823_v59  ;;  %v2379_v16 = vmul.f32 %v2375_v20, %v5521_v34  ;;  %v2770_v14 = vmul.f32 %v2767_v35, %v5517_v18 }
 0x3e0   :  { %v7918_v25 = vpop.permute.xlu0 %3802  ;;  %v2613_v23 = vmul.f32 %v2607_v37, %v5558_v9  ;;  %v2279_v2 = vsel %vm292_vm1, %v2276_v53, %v2278_v3  ;;  %v2621_v42 = vrot.slane %v2609_v4, 1  ;;  %v2768_v50 = vmul.f32 %v2767_v35, %v5490_v31  ;;  %v9091_v4 = vld [vmem:[#allocation116_spill] sm:$0xff] }
 0x3e1   :  { %9083 = vst [vmem:[#allocation106_spill] sm:$0xff] %v7918_v25  ;;  %v7928_v44 = vpop.permute.xlu1 %3922  ;;  %v2769_v25 = vmul.f32 %v2767_v35, %v5497_v26  ;;  %v2620_v62 = vrot.slane %v2608_v11, 1  ;;  %v2623_v20 = vrot.slane %v2610_v5, 1  ;;  %v2625_v37 = vrot.slane %v2611_v13, 1  ;;  %v9092_v11 = vld [vmem:[#allocation114_spill] sm:$0xff] }
 0x3e2   :  { %9085 = vst [vmem:[#allocation107_spill] sm:$0xff] %v7928_v44  ;;  %2284 = vrot.lane.b32.xlu0 %v2277_v60, %s5020_s26  ;;  %v7942_v44 = vadd.f32 %v9087_v55, %v1124_v6  ;;  %v2626_v60 = vrot.slane %v2612_v48, 1  ;;  %v9089_v6 = vld [vmem:[#allocation115_spill] sm:$0xff]  ;;  %v2771_v53 = vmul.f32 %v2767_v35, %v5506_v63  ;;  %v2772_v3 = vmul.f32 %v2767_v35, %v5521_v34 }
 0x3e3   :  { %2384 = vrot.lane.b32.xlu1 %v2376_v19, %s5014_s24  ;;  %v1404_v55 = vadd.f32 %v9089_v6, %v1244_v52  ;;  %v2781_v19 = vrot.slane %v2769_v25, 2  ;;  %v1405_v54 = vadd.f32 %v9091_v4, %v1245_v38  ;;  %v2783_v40 = vrot.slane %v2770_v14, 2 }
 0x3e4   :  { %v7951_v59 = vpop.permute.xlu0 %3958  ;;  %v2628_v10 = vrot.slane %v2613_v23, 1  ;;  %v7963_v5 = vadd.f32 %v9092_v11, %v7849_v33  ;;  %v2622_v52 = vsel %vm307_vm6, %v2620_v62, %v2621_v42  ;;  %v2780_v25 = vrot.slane %v2768_v50, 2 }
 0x3e5   :  { %9088 = vst [vmem:[#allocation108_spill] sm:$0xff] %v7951_v59  ;;  %v7954_v17 = vpop.permute.xlu1 %3960  ;;  %v2927_v59 = vstv %s7912_s0  ;;  %v2624_v38 = vsel %vm307_vm6, %v2621_v42, %v2623_v20  ;;  %v2773_v23 = vmul.f32 %v2767_v35, %v5558_v9  ;;  %v2785_v62 = vrot.slane %v2771_v53, 2 }
 0x3e6   :  { %9090 = vst [vmem:[#allocation109_spill] sm:$0xff] %v7954_v17  ;;  %2386 = vrot.lane.b32.xlu0 %v2377_v43, %s5014_s24  ;;  %v2929_v13 = vmul.f32 %v2927_v59, %v5497_v26  ;;  %v2627_v43 = vsel %vm307_vm6, %v2625_v37, %v2626_v60  ;;  %v2930_v14 = vmul.f32 %v2927_v59, %v5517_v18  ;;  %v2786_v50 = vrot.slane %v2772_v3, 2 }
 0x3e7   :  { %2286 = vrot.lane.b32.xlu1 %v2279_v2, %s5020_s26  ;;  %v2782_v2 = vsel %vm304_vm5, %v2780_v25, %v2781_v19  ;;  %v2928_v6 = vmul.f32 %v2927_v59, %v5490_v31  ;;  %v7981_v42 = vadd.f32 %v7464_v24, %v1404_v55  ;;  %v7984_v20 = vadd.f32 %v7467_v39, %v1405_v54  ;;  %v9095_v24 = vld [vmem:[#allocation117_spill] sm:$0xff] }
 0x3e8   :  { %v7968_v48 = vpop.permute.xlu0 %4078  ;;  %v2784_v35 = vsel %vm304_vm5, %v2781_v19, %v2783_v40  ;;  %v7989_v37 = vsel %vm307_vm6, %v2626_v60, %v2628_v10  ;;  %v2941_v53 = vrot.slane %v2929_v13, 2  ;;  %v531_v3 = vstv %s7947_s21  ;;  %v9097_v10 = vld [vmem:[#allocation118_spill] sm:$0xff] }
 0x3e9   :  { %9093 = vst [vmem:[#allocation110_spill] sm:$0xff] %v7968_v48  ;;  %v7974_v33 = vpop.permute.xlu1 %4080  ;;  %v2932_v4 = vmul.f32 %v2927_v59, %v5521_v34  ;;  %v3087_v11 = vstv %s7949_s1  ;;  %v7997_v55 = vadd.f32 %v9095_v24, %v7886_v28  ;;  %v2943_v54 = vrot.slane %v2930_v14, 2 }
 0x3ea   :  { %9094 = vst [vmem:[#allocation111_spill] sm:$0xff] %v7974_v33  ;;  %2388 = vrot.lane.b32.xlu0 %v2378_v61, %s5014_s24  ;;  %v2788_v61 = vrot.slane %v2773_v23, 2  ;;  %v2931_v40 = vmul.f32 %v2927_v59, %v5506_v63  ;;  %v1247_v60 = vadd.f32 %v9097_v10, %v7899_v30  ;;  %v2940_v25 = vrot.slane %v2928_v6, 2  ;;  %v9099_v30 = vld [vmem:[#allocation120_spill] sm:$0xff] }
 0x3eb   :  { %2390 = vrot.lane.b32.xlu1 %v2379_v16, %s5014_s24  ;;  %v8007_v16 = vsel %vm304_vm5, %v2785_v62, %v2786_v50  ;;  %v3089_v13 = vmul.f32 %v3087_v11, %v5497_v26  ;;  %v8012_v28 = vmul.f32 %v531_v3, %v5673_v29  ;;  %v3088_v14 = vmul.f32 %v3087_v11, %v5490_v31 }
 0x3ec   :  { %v7999_v39 = vpop.permute.xlu0 %3804  ;;  %v3090_v23 = vmul.f32 %v3087_v11, %v5517_v18  ;;  %v2933_v24 = vmul.f32 %v2927_v59, %v5558_v9  ;;  %v1406_v10 = vadd.f32 %v9099_v30, %v7935_v56  ;;  %v2942_v62 = vsel %vm304_vm5, %v2940_v25, %v2941_v53  ;;  %v9103_v25 = vld [vmem:[#allocation121_spill] sm:$0xff] }
 0x3ed   :  { %9096 = vst [vmem:[#allocation112_spill] sm:$0xff] %v7999_v39  ;;  %v8004_v19 = vpop.permute.xlu1 %3924  ;;  %v8022_v6 = vmul.f32 %v531_v3, %v5544_v47  ;;  %v9101_v39 = vld [vmem:[#allocation119_spill] sm:$0xff]  ;;  %v8031_v59 = vsel %vm304_vm5, %v2941_v53, %v2943_v54  ;;  %v8034_v56 = vsel %vm304_vm5, %v2786_v50, %v2788_v61  ;;  %v1444_v30 = vadd.f32 %v9103_v25, %v7942_v44 }
 0x3ee   :  { %9098 = vst [vmem:[#allocation113_spill] sm:$0xff] %v8004_v19  ;;  %2630 = vrot.lane.b32.xlu0 %v2622_v52, %s5018_s20  ;;  %v2946_v52 = vrot.slane %v2932_v4, 2  ;;  %v1286_v19 = vadd.f32 %v9101_v39, %v7926_v7  ;;  %v3101_v4 = vrot.slane %v3089_v13, 3  ;;  %v8041_v48 = vmul.f32 %v3087_v11, %v5521_v34 }
 0x3ef   :  { %2632 = vrot.lane.b32.xlu1 %v2624_v38, %s5018_s20  ;;  %9100 = vst [vmem:[#allocation115_spill] sm:$0xff] %v8022_v6  ;;  %v2945_v38 = vrot.slane %v2931_v40, 2  ;;  %v3247_v6 = vstv %s7978_s22  ;;  %v3100_v7 = vrot.slane %v3088_v14, 3  ;;  %v3103_v39 = vrot.slane %v3090_v23, 3 }
 0x3f0   :  { %v8028_v17 = vpop.permute.xlu0 %3962  ;;  %v2948_v53 = vrot.slane %v2933_v24, 2  ;;  %v3249_v54 = vmul.f32 %v3247_v6, %v5497_v26  ;;  %v8047_v50 = vadd.f32 %v7475_v1, %v1406_v10  ;;  %v8054_v61 = vmul.f32 %v531_v3, %v8990_v36 }
 0x3f1   :  { %9102 = vst [vmem:[#allocation116_spill] sm:$0xff] %v8028_v17  ;;  %v8038_v33 = vpop.permute.xlu1 %4082  ;;  %v8051_v44 = vsel %vm304_vm5, %v2945_v38, %v2946_v52  ;;  %v3091_v40 = vmul.f32 %v3087_v11, %v5506_v63  ;;  %v8062_v23 = vmul.f32 %v531_v3, %v8992_v51  ;;  %v3248_v1 = vmul.f32 %v3247_v6, %v5490_v31  ;;  %v9109_v3 = vld [vmem:[#allocation124_spill] sm:$0xff] }
 0x3f2   :  { %9104 = vst [vmem:[#allocation114_spill] sm:$0xff] %v8038_v33  ;;  %2634 = vrot.lane.b32.xlu0 %v2627_v43, %s5018_s20  ;;  %v9105_v43 = vld [vmem:[#allocation122_spill] sm:$0xff]  ;;  %v8067_v24 = vadd.f32 %v7478_v57, %v1444_v30  ;;  %v8072_v38 = vsel %vm301_vm4, %v3100_v7, %v3101_v4  ;;  %v3093_v25 = vmul.f32 %v3087_v11, %v5558_v9  ;;  %v3261_v30 = vrot.slane %v3249_v54, 3 }
 0x3f3   :  { %2790 = vrot.lane.b32.xlu1 %v2782_v2, %s5015_s29  ;;  %v1445_v13 = vadd.f32 %v9105_v43, %v7963_v5  ;;  %9107 = vst [vmem:[#allocation118_spill] sm:$0xff] %v8062_v23  ;;  %v3250_v2 = vmul.f32 %v3247_v6, %v5517_v18  ;;  %v3106_v5 = vrot.slane %v8041_v48, 3  ;;  %v1407_v43 = vadd.f32 %v9109_v3, %v1247_v60 }
 0x3f4   :  { %v8059_v14 = vpop.permute.xlu0 %4118  ;;  %v8081_v17 = vsel %vm301_vm4, %v3101_v4, %v3103_v39  ;;  %v8084_v57 = vsel %vm304_vm5, %v2946_v52, %v2948_v53  ;;  %v3105_v7 = vrot.slane %v3091_v40, 3  ;;  %v3251_v48 = vmul.f32 %v3247_v6, %v5506_v63  ;;  %v9111_v53 = vld [vmem:[#allocation123_spill] sm:$0xff] }
 0x3f5   :  { %9106 = vst [vmem:[#allocation117_spill] sm:$0xff] %v8059_v14  ;;  %v8069_v10 = vpop.permute.xlu1 %4120  ;;  %v8090_v11 = vmul.f32 %v3247_v6, %v5521_v34  ;;  %v8094_v60 = vadd.f32 %v7481_v46, %v1445_v13  ;;  %v3260_v4 = vrot.slane %v3248_v1, 3  ;;  %v3263_v39 = vrot.slane %v3250_v2, 3 }
 0x3f6   :  { %9108 = vst [vmem:[#allocation120_spill] sm:$0xff] %v8069_v10  ;;  %2792 = vrot.lane.b32.xlu0 %v2784_v35, %s5015_s29  ;;  %v3407_v10 = vstv %s8024_s25  ;;  %v1287_v54 = vadd.f32 %v9111_v53, %v7997_v55  ;;  %v8105_v14 = vsel %vm301_vm4, %v3105_v7, %v3106_v5  ;;  %v3108_v33 = vrot.slane %v3093_v25, 3 }
 0x3f7   :  { %2636 = vrot.lane.b32.xlu1 %v7989_v37, %s5018_s20  ;;  %v3409_v52 = vmul.f32 %v3407_v10, %v5497_v26  ;;  %v9112_v37 = vld [vmem:[#allocation125_spill] sm:$0xff]  ;;  %v8110_v46 = vadd.f32 %v7553_v22, %v1407_v43  ;;  %v8115_v13 = vsel %vm301_vm4, %v3260_v4, %v3261_v30  ;;  %v3408_v55 = vmul.f32 %v3407_v10, %v5490_v31  ;;  %v9114_v43 = vld [vmem:[#allocation126_spill] sm:$0xff] }
 0x3f8   :  { %v8096_v35 = vpop.permute.xlu0 %3964  ;;  %v1446_v40 = vadd.f32 %v9112_v37, %v1286_v19  ;;  %v3410_v19 = vmul.f32 %v3407_v10, %v5517_v18  ;;  %v3265_v1 = vrot.slane %v3251_v48, 3  ;;  %v3266_v2 = vrot.slane %v8090_v11, 3 }
 0x3f9   :  { %9110 = vst [vmem:[#allocation119_spill] sm:$0xff] %v8096_v35  ;;  %v8102_v3 = vpop.permute.xlu1 %4084  ;;  %v3253_v25 = vmul.f32 %v3247_v6, %v5558_v9  ;;  %v3412_v22 = vmul.f32 %v3407_v10, %v5521_v34  ;;  %v8128_v4 = vsel %vm301_vm4, %v3261_v30, %v3263_v39  ;;  %v3421_v53 = vrot.slane %v3409_v52, 4 }
 0x3fa   :  { %9113 = vst [vmem:[#allocation121_spill] sm:$0xff] %v8102_v3  ;;  %2794 = vrot.lane.b32.xlu0 %v8007_v16, %s5015_s29  ;;  %v1692_v16 = vadd.f32 %v9114_v43, %v7981_v42  ;;  %v3411_v37 = vmul.f32 %v3407_v10, %v5506_v63  ;;  %v8137_v6 = vsel %vm301_vm4, %v3106_v5, %v3108_v33  ;;  %v3695_v35 = vstv %s8076_s23  ;;  %v9117_v42 = vld [vmem:[#allocation128_spill] sm:$0xff] }
 0x3fb   :  { %2950 = vrot.lane.b32.xlu1 %v2942_v62, %s5019_s13  ;;  %v8132_v62 = vadd.f32 %v7556_v8, %v1446_v40  ;;  %v3413_v11 = vmul.f32 %v3407_v10, %v5558_v9  ;;  %v1447_v43 = vadd.f32 %v9117_v42, %v1287_v54  ;;  %v3420_v30 = vrot.slane %v3408_v55, 4  ;;  %v9118_v54 = vld [vmem:[#allocation127_spill] sm:$0xff] }
 0x3fc   :  { %v8125_v7 = vpop.permute.xlu0 %4122  ;;  %v3423_v39 = vrot.slane %v3410_v19, 4  ;;  %v3697_v52 = vmul.f32 %v3695_v35, %v5497_v26  ;;  %v8148_v8 = vsel %vm301_vm4, %v3265_v1, %v3266_v2  ;;  %v3268_v33 = vrot.slane %v3253_v25, 3 }
 0x3fd   :  { %9115 = vst [vmem:[#allocation122_spill] sm:$0xff] %v8125_v7  ;;  %v8134_v48 = vpop.permute.xlu1 %4124  ;;  %v3426_v5 = vrot.slane %v3412_v22, 4  ;;  %v3698_v10 = vmul.f32 %v3695_v35, %v5517_v18  ;;  %v8158_v55 = vsel %vm298_vm3, %v3420_v30, %v3421_v53  ;;  %v3425_v19 = vrot.slane %v3411_v37, 4 }
 0x3fe   :  { %9116 = vst [vmem:[#allocation124_spill] sm:$0xff] %v8134_v48  ;;  %2952 = vrot.lane.b32.xlu0 %v8031_v59, %s5019_s13  ;;  %v1693_v59 = vadd.f32 %v9118_v54, %v7984_v20  ;;  %v3428_v25 = vrot.slane %v3413_v11, 4  ;;  %v3699_v22 = vmul.f32 %v3695_v35, %v5506_v63  ;;  %v3700_v42 = vmul.f32 %v3695_v35, %v5521_v34 }
 0x3ff   :  { %2796 = vrot.lane.b32.xlu1 %v8034_v56, %s5015_s29  ;;  %v3696_v56 = vmul.f32 %v3695_v35, %v5490_v31  ;;  %v3855_v48 = vstv %s8107_s27  ;;  %v8169_v20 = vadd.f32 %v7559_v12, %v1447_v43  ;;  %v8174_v37 = vsel %vm298_vm3, %v3421_v53, %v3423_v39  ;;  %v9122_v53 = vld [vmem:[#allocation130_spill] sm:$0xff] }
 0x400   :  { %v8155_v40 = vpop.permute.xlu0 %580  ;;  %v3709_v30 = vrot.slane %v3697_v52, 5  ;;  %v3857_v54 = vmul.f32 %v3855_v48, %v5497_v26  ;;  %v8180_v11 = vsel %vm301_vm4, %v3266_v2, %v3268_v33  ;;  %v8183_v7 = vsel %vm298_vm3, %v3425_v19, %v3426_v5 }
 0x401   :  { %v8163_v1 = vpop.permute.xlu1 %582  ;;  %9120 = vst [vmem:[#allocation125_spill] sm:$0xff] %v8183_v7  ;;  %v3711_v12 = vrot.slane %v3698_v10, 5  ;;  %v3858_v43 = vmul.f32 %v3855_v48, %v5517_v18  ;;  %v8190_v39 = vadd.f32 %v9122_v53, %v8067_v24  ;;  %v3708_v23 = vrot.slane %v3696_v56, 5 }
 0x402   :  { %9119 = vst [vmem:[#allocation123_spill] sm:$0xff] %v8163_v1  ;;  %2954 = vrot.lane.b32.xlu0 %v8051_v44, %s5019_s13  ;;  %v9121_v44 = vld [vmem:[#allocation129_spill] sm:$0xff]  ;;  %v8198_v33 = vsel %vm298_vm3, %v3426_v5, %v3428_v25  ;;  %v3713_v10 = vrot.slane %v3699_v22, 5  ;;  %v3714_v19 = vrot.slane %v3700_v42, 5  ;;  %v3869_v53 = vrot.slane %v3857_v54, 6  ;;  %v9124_v1 = vld [vmem:[#allocation132_spill] sm:$0xff] }
 0x403   :  { %3110 = vrot.lane.b32.xlu1 %v8072_v38, %s5017_s8  ;;  %v1694_v3 = vadd.f32 %v9121_v44, %v8047_v50  ;;  %v3856_v38 = vmul.f32 %v3855_v48, %v5490_v31  ;;  %v3701_v50 = vmul.f32 %v3695_v35, %v5558_v9  ;;  %v9123_v44 = vld [vmem:[#allocation131_spill] sm:$0xff]  ;;  %v8206_v56 = vsel %vm295_vm2, %v3708_v23, %v3709_v30 }
 0x404   :  { %v8192_v52 = vpop.permute.xlu0 %584  ;;  %v1733_v24 = vadd.f32 %v9123_v44, %v8094_v60  ;;  %v3860_v7 = vmul.f32 %v3855_v48, %v5521_v34  ;;  %v1852_v5 = vadd.f32 %v9124_v1, %v1692_v16  ;;  %v8213_v25 = vsel %vm295_vm2, %v3709_v30, %v3711_v12 }
 0x405   :  { %v8195_v2 = vpop.permute.xlu1 %712  ;;  %9125 = vst [vmem:[#allocation126_spill] sm:$0xff] %v8213_v25  ;;  %v3871_v35 = vrot.slane %v3858_v43, 6  ;;  %v4015_v22 = vstv %s8151_s28  ;;  %v3868_v42 = vrot.slane %v3856_v38, 6  ;;  %v3861_v23 = vmul.f32 %v3855_v48, %v5558_v9 }
 0x406   :  { %3112 = vrot.lane.b32.xlu0 %v8081_v17, %s5017_s8  ;;  %v3859_v17 = vmul.f32 %v3855_v48, %v5506_v63  ;;  %v8221_v54 = vstv %s8161_s30  ;;  %v3716_v16 = vrot.slane %v3701_v50, 5  ;;  %v4017_v1 = vmul.f32 %v4015_v22, %v5497_v26  ;;  %v9126_v50 = vld [vmem:[#allocation133_spill] sm:$0xff] }
 0x407   :  { %2956 = vrot.lane.b32.xlu1 %v8084_v57, %s5019_s13  ;;  %v4018_v57 = vmul.f32 %v4015_v22, %v5517_v18  ;;  %v1491_v30 = vmul.f32 %v8221_v54, %v5544_v47  ;;  %v8232_v12 = vsel %vm295_vm2, %v3713_v10, %v3714_v19  ;;  %v8235_v48 = vsel %vm292_vm1, %v3868_v42, %v3869_v53  ;;  %v9127_v10 = vld [vmem:[#allocation134_spill] sm:$0xff] }
 0x408   :  { %v8216_v60 = vpop.permute.xlu0 %714  ;;  %v3874_v43 = vrot.slane %v3860_v7, 6  ;;  %v4016_v38 = vmul.f32 %v4015_v22, %v5490_v31  ;;  %v1853_v25 = vadd.f32 %v9126_v50, %v1693_v59  ;;  %v8242_v18 = vsel %vm292_vm1, %v3869_v53, %v3871_v35 }
 0x409   :  { %v8223_v44 = vpop.permute.xlu1 %586  ;;  %v1490_v47 = vmul.f32 %v8221_v54, %v5673_v29  ;;  %v1695_v42 = vadd.f32 %v9127_v10, %v8110_v46  ;;  %v3873_v31 = vrot.slane %v3859_v17, 6  ;;  %v3876_v26 = vrot.slane %v3861_v23, 6  ;;  %v9128_v10 = vld [vmem:[#allocation135_spill] sm:$0xff] }
 0x40a   :  { %3114 = vrot.lane.b32.xlu0 %v8105_v14, %s5017_s8  ;;  %v1492_v14 = vmul.f32 %v8221_v54, %v8988_v41  ;;  %v8253_v59 = vmul.f32 %v4015_v22, %v5521_v34  ;;  %v8258_v53 = vsel %vm295_vm2, %v3714_v19, %v3716_v16  ;;  %v4029_v35 = vrot.slane %v4017_v1, 6 }
 0x40b   :  { %3270 = vrot.lane.b32.xlu1 %v8115_v13, %s5020_s26  ;;  %v4031_v29 = vrot.slane %v4018_v57, 6  ;;  %v1503_v50 = vrot.slane %v1491_v30, 4  ;;  %v8263_v41 = vsel %vm292_vm1, %v3873_v31, %v3874_v43  ;;  %v4028_v46 = vrot.slane %v4016_v38, 6  ;;  %v9129_v31 = vld [vmem:[#allocation136_spill] sm:$0xff] }
 0x40c   :  { %v8250_v7 = vpop.permute.xlu0 %716  ;;  %v4019_v17 = vmul.f32 %v4015_v22, %v5506_v63  ;;  %v8268_v23 = vmul.f32 %v8221_v54, %v8990_v36  ;;  %v1734_v19 = vadd.f32 %v9128_v10, %v8132_v62  ;;  %v1502_v16 = vrot.slane %v1490_v47, 4  ;;  %v9130_v10 = vld [vmem:[#allocation139_spill] sm:$0xff] }
 0x40d   :  { %v8255_v13 = vpop.permute.xlu1 %872  ;;  %v1505_v1 = vrot.slane %v1492_v14, 4  ;;  %v1854_v57 = vadd.f32 %v9129_v31, %v1694_v3  ;;  %v8282_v38 = vsel %vm292_vm1, %v3874_v43, %v3876_v26  ;;  %v8286_v62 = vmul.f32 %v4015_v22, %v5558_v9  ;;  %v9131_v26 = vld [vmem:[#allocation137_spill] sm:$0xff]  ;;  %v9132_v31 = vld [vmem:[#allocation138_spill] sm:$0xff]  ;;  %v9134_v63 = vld [vmem:[#allocation147_spill] sm:$0xff] }
 0x40e   :  { %3272 = vrot.lane.b32.xlu0 %v8128_v4, %s5020_s26  ;;  %v8276_v4 = vmul.f32 %v8221_v54, %v8992_v51  ;;  %v8292_v14 = vsel %vm292_vm1, %v4028_v46, %v4029_v35  ;;  %v8295_v51 = vsel %vm292_vm1, %v4029_v35, %v4031_v29  ;;  %v8298_v3 = vsel %vm298_vm3, %v1502_v16, %v1503_v50  ;;  %v9136_v16 = vld [vmem:[#allocation142_spill] sm:$0xff] }
 0x40f   :  { %3116 = vrot.lane.b32.xlu1 %v8137_v6, %s5017_s8  ;;  %v2012_v6 = vadd.f32 %v9130_v10, %v1852_v5  ;;  %v1892_v43 = vadd.f32 %v9131_v26, %v8190_v39  ;;  %v1893_v36 = vadd.f32 %v9132_v31, %v1733_v24  ;;  %v4033_v5 = vrot.slane %v4019_v17, 6  ;;  %v9133_v10 = vld [vmem:[#allocation140_spill] sm:$0xff]  ;;  %v9135_v24 = vld [vmem:[#allocation141_spill] sm:$0xff] }
 0x410   :  { %v8279_v30 = vpop.permute.xlu0 %874  ;;  %v2013_v46 = vadd.f32 %v9133_v10, %v1853_v25  ;;  %v8311_v35 = vsel %vm298_vm3, %v1503_v50, %v1505_v1  ;;  %v1735_v29 = vadd.f32 %v9135_v24, %v8169_v20  ;;  %v9137_v26 = vrot.slane %v8253_v59, 6  ;;  %v9139_v31 = vld [vmem:[#allocation144_spill] sm:$0xff]  ;;  %v9141_v20 = vld [vmem:[#allocation145_spill] sm:$0xff] }
 0x411   :  { %v8289_v47 = vpop.permute.xlu1 %718  ;;  %v2172_v9 = vadd.f32 %v9134_v63, %v2012_v6  ;;  %v4036_v63 = vrot.slane %v8286_v62, 6  ;;  %v9138_v6 = vld [vmem:[#allocation143_spill] sm:$0xff]  ;;  %v2014_v50 = vadd.f32 %v9139_v31, %v1854_v57  ;;  %v9140_v1 = vld [vmem:[#allocation148_spill] sm:$0xff]  ;;  %v2052_v24 = vadd.f32 %v9141_v20, %v1892_v43 }
 0x412   :  { %3274 = vrot.lane.b32.xlu0 %v8148_v8, %s5020_s26  ;;  %v1855_v8 = vadd.f32 %v9136_v16, %v1695_v42  ;;  %v8320_v25 = vsel %vm292_vm1, %v4033_v5, %v9137_v26  ;;  %v2173_v10 = vadd.f32 %v9140_v1, %v2013_v46  ;;  %v9142_v42 = vld [vmem:[#allocation146_spill] sm:$0xff]  ;;  %v1895_v34 = vadd.f32 %v6859_v32, %v1735_v29 }
 0x413   :  { %3430 = vrot.lane.b32.xlu1 %v8158_v55, %s5014_s24  ;;  %v1894_v55 = vadd.f32 %v9138_v6, %v1734_v19  ;;  %v2318_v22 = vadd.f32 %v6949_v27, %v2172_v9  ;;  %v2053_v16 = vadd.f32 %v9142_v42, %v1893_v36  ;;  %v592_v5 = vadd.f32 %v8155_v40, %v8012_v28 }
 0x414   :  { %v877_v17 = vpop.permute.xlu0 %876  ;;  %v2015_v19 = vadd.f32 %v6865_v0, %v1855_v8  ;;  %v2319_v57 = vadd.f32 %v6958_v49, %v2173_v10  ;;  %v594_v9 = vadd.f32 %v8192_v52, %v8054_v61  ;;  %v2174_v27 = vadd.f32 %v6897_v45, %v2014_v50  ;;  %v9143_v0 = vld [vmem:[#allocation149_spill] sm:$0xff]  ;;  %v9144_v49 = vld [vmem:[#allocation71_spill] sm:$0xff] }
 0x415   :  { %v1033_v39 = vpop.permute.xlu1 %1032  ;;  %v2422_v46 = vadd.f32 %v7060_v15, %v2318_v22  ;;  %v2054_v32 = vadd.f32 %v6891_v58, %v1894_v55  ;;  %v2212_v28 = vadd.f32 %v6917_v21, %v2052_v24  ;;  %v724_v40 = vadd.f32 %v8195_v2, %v592_v5  ;;  %v9145_v15 = vld [vmem:[#allocation115_spill] sm:$0xff]  ;;  %v9148_v58 = vld [vmem:[#allocation60_spill] sm:$0xff]  ;;  %v9150_v2 = vld [vmem:[#allocation125_spill] sm:$0xff] }
 0x416   :  { %3432 = vrot.lane.b32.xlu0 %v8174_v37, %s5014_s24  ;;  %v2213_v36 = vadd.f32 %v9143_v0, %v2053_v16  ;;  %v2423_v43 = vadd.f32 %v9144_v49, %v2319_v57  ;;  %v9146_v22 = vld [vmem:[#allocation123_spill] sm:$0xff]  ;;  %v726_v61 = vadd.f32 %v8250_v7, %v594_v9  ;;  %v2175_v26 = vadd.f32 %v9148_v58, %v2015_v19  ;;  %v9151_v55 = vld [vmem:[#allocation66_spill] sm:$0xff]  ;;  %v9156_v57 = vld [vmem:[#allocation73_spill] sm:$0xff] }
 0x417   :  { %3276 = vrot.lane.b32.xlu1 %v8180_v11, %s5020_s26  ;;  %v593_v29 = vadd.f32 %v9146_v22, %v9145_v15  ;;  %v9147_v11 = vld [vmem:[#allocation62_spill] sm:$0xff]  ;;  %v9149_v45 = vld [vmem:[#allocation63_spill] sm:$0xff]  ;;  %v884_v21 = vadd.f32 %v8255_v13, %v724_v40  ;;  %v2320_v31 = vadd.f32 %v9151_v55, %v2174_v27  ;;  %v9158_v40 = vld [vmem:[#allocation61_spill] sm:$0xff] }
 0x418   :  { %v1035_v37 = vpop.permute.xlu0 %1034  ;;  %v2055_v8 = vadd.f32 %v9147_v11, %v1895_v34  ;;  %v2214_v6 = vadd.f32 %v9149_v45, %v2054_v32  ;;  %v9152_v50 = vld [vmem:[#allocation59_spill] sm:$0xff]  ;;  %v886_v20 = vadd.f32 %v877_v17, %v726_v61  ;;  %v9154_v24 = vld [vmem:[#allocation70_spill] sm:$0xff]  ;;  %v9161_v15 = vld [vmem:[#allocation68_spill] sm:$0xff] }
 0x419   :  { %v879_v52 = vpop.permute.xlu1 %878  ;;  %v2538_v1 = vadd.f32 %v9152_v50, %v2422_v46  ;;  %v725_v10 = vadd.f32 %v8216_v60, %v593_v29  ;;  %v9153_v34 = vld [vmem:[#allocation67_spill] sm:$0xff]  ;;  %v2345_v42 = vadd.f32 %v9154_v24, %v2213_v36  ;;  %v9155_v16 = vld [vmem:[#allocation118_spill] sm:$0xff]  ;;  %v1044_v5 = vadd.f32 %v1033_v39, %v884_v21  ;;  %v9164_v11 = vld [vmem:[#allocation65_spill] sm:$0xff] }
 0x41a   :  { %3434 = vrot.lane.b32.xlu0 %v9150_v2, %s5014_s24  ;;  %v2344_v7 = vadd.f32 %v9153_v34, %v2212_v28  ;;  %v595_v13 = vadd.f32 %v8223_v44, %v9155_v16  ;;  %v9157_v32 = vld [vmem:[#allocation75_spill] sm:$0xff]  ;;  %v2215_v0 = vadd.f32 %v9158_v40, %v2055_v8  ;;  %v9160_v44 = vld [vmem:[#allocation64_spill] sm:$0xff]  ;;  %v9162_v29 = vld [vmem:[#allocation30_spill] sm:$0xff]  ;;  %v2346_v8 = vadd.f32 %v9164_v11, %v2214_v6 }
 0x41b   :  { %3436 = vrot.lane.b32.xlu1 %v8198_v33, %s5014_s24  ;;  %v2682_v9 = vadd.f32 %v9156_v57, %v2538_v1  ;;  %v2539_v27 = vadd.f32 %v9157_v32, %v2423_v43  ;;  %v885_v46 = vadd.f32 %v8279_v30, %v725_v10  ;;  %v9159_v33 = vld [vmem:[#allocation24_spill] sm:$0xff]  ;;  %v2321_v39 = vadd.f32 %v9160_v44, %v2175_v26  ;;  %v9163_v30 = vld [vmem:[#allocation126_spill] sm:$0xff]  ;;  %v9165_v58 = vld [vmem:[#allocation25_spill] sm:$0xff]  ;;  %s4718_s24 = sld [smem:[#allocation6 + $0x38]] }
 0x41c   :  { %v1037_v19 = vpop.permute.xlu0 %1036  ;;  %v2424_v49 = vadd.f32 %v9159_v33, %v2320_v31  ;;  %v727_v28 = vadd.f32 %v8289_v47, %v595_v13  ;;  %v2448_v22 = vadd.f32 %v9161_v15, %v2344_v7  ;;  %v2449_v45 = vadd.f32 %v9165_v58, %v2345_v42  ;;  %v9166_v21 = vld [vmem:[#allocation28_spill] sm:$0xff]  ;;  %v9167_v31 = vld [vmem:[#allocation69_spill] sm:$0xff]  ;;  %v9171_v24 = vld [vmem:[#allocation78_spill] sm:$0xff] }
 0x41d   :  { %v1046_v60 = vadd.f32 %v1037_v19, %v886_v20  ;;  %v1193_v17 = vpop.permute.xlu1 %1192  ;;  %v2842_v43 = vadd.f32 %v9162_v29, %v2682_v9  ;;  %v1045_v61 = vadd.f32 %v1035_v37, %v885_v46  ;;  %v2683_v47 = vadd.f32 %v9166_v21, %v2539_v27  ;;  %v9168_v50 = vld [vmem:[#allocation72_spill] sm:$0xff]  ;;  %v9169_v1 = vld [vmem:[#allocation37_spill] sm:$0xff]  ;;  %v9170_v37 = vld [vmem:[#allocation27_spill] sm:$0xff] }
 0x41e   :  { %v1204_v36 = vadd.f32 %v1193_v17, %v1044_v5  ;;  %3718 = vrot.lane.b32.xlu0 %v8206_v56, %s5018_s20  ;;  %v887_v2 = vadd.f32 %v879_v52, %v727_v28  ;;  %v2347_v56 = vadd.f32 %v9167_v31, %v2215_v0  ;;  %v2425_v26 = vadd.f32 %v9168_v50, %v2321_v39  ;;  %v9172_v13 = vld [vmem:[#allocation33_spill] sm:$0xff]  ;;  %v9173_v52 = vld [vmem:[#allocation74_spill] sm:$0xff]  ;;  %v9175_v9 = vld [vmem:[#allocation48_spill] sm:$0xff] }
 0x41f   :  { %3720 = vrot.lane.b32.xlu1 %v9163_v30, %s5018_s20  ;;  %v3002_v10 = vadd.f32 %v9169_v1, %v2842_v43  ;;  %v2450_v7 = vadd.f32 %v9170_v37, %v2346_v8  ;;  %v2540_v16 = vadd.f32 %v9171_v24, %v2424_v49  ;;  %v2843_v6 = vadd.f32 %v9172_v13, %v2683_v47  ;;  %v9174_v19 = vld [vmem:[#allocation150_spill] sm:$0xff]  ;;  %v9176_v27 = vld [vmem:[#allocation23_spill] sm:$0xff]  ;;  %v9179_v49 = vld [vmem:[#allocation40_spill] sm:$0xff] }
 0x420   :  { %v1195_v55 = vpop.permute.xlu0 %1194  ;;  %v2451_v42 = vadd.f32 %v9173_v52, %v2347_v56  ;;  %v2570_v57 = vadd.f32 %v9174_v19, %v2448_v22  ;;  %v8396_v46 = vmul.f32 %v8221_v54, %v9176_v27  ;;  %v9177_v17 = vld [vmem:[#allocation26_spill] sm:$0xff]  ;;  %v9178_v0 = vld [vmem:[#allocation151_spill] sm:$0xff]  ;;  %v9180_v44 = vrot.slane %v8276_v4, 4  ;;  %v9182_v22 = vld [vmem:[#allocation29_spill] sm:$0xff] }
 0x421   :  { %v1205_v20 = vadd.f32 %v1195_v55, %v1045_v61  ;;  %v1039_v34 = vpop.permute.xlu1 %1038  ;;  %v3162_v32 = vadd.f32 %v9175_v9, %v3002_v10  ;;  %v2684_v40 = vadd.f32 %v9177_v17, %v2540_v16  ;;  %v2571_v33 = vadd.f32 %v9178_v0, %v2449_v45  ;;  %v9183_v29 = vld [vmem:[#allocation79_spill] sm:$0xff]  ;;  %v9184_v54 = vld [vmem:[#allocation54_spill] sm:$0xff]  ;;  %v9185_v8 = vld [vmem:[#allocation152_spill] sm:$0xff] }
 0x422   :  { %v1047_v5 = vadd.f32 %v1039_v34, %v887_v2  ;;  %3722 = vrot.lane.b32.xlu0 %v8232_v12, %s5018_s20  ;;  %v3003_v28 = vadd.f32 %v9179_v49, %v2843_v6  ;;  %v9181_v39 = vrot.slane %v8268_v23, 4  ;;  %v2541_v43 = vadd.f32 %v9183_v29, %v2425_v26  ;;  %v9186_v45 = vld [vmem:[#allocation36_spill] sm:$0xff]  ;;  %v9187_v47 = vld [vmem:[#allocation45_spill] sm:$0xff]  ;;  %v9189_v56 = vld [vmem:[#allocation39_spill] sm:$0xff] }
 0x423   :  { %3878 = vrot.lane.b32.xlu1 %v8235_v48, %s5015_s29  ;;  %v2722_v48 = vadd.f32 %v9182_v22, %v2570_v57  ;;  %v3322_v61 = vadd.f32 %v9184_v54, %v3162_v32  ;;  %v2572_v58 = vadd.f32 %v9185_v8, %v2450_v7  ;;  %v2844_v21 = vadd.f32 %v9186_v45, %v2684_v40  ;;  %v9188_v23 = vld [vmem:[#allocation32_spill] sm:$0xff]  ;;  %v9190_v1 = vld [vmem:[#allocation154_spill] sm:$0xff]  ;;  %v9193_v7 = vld [vmem:[#allocation35_spill] sm:$0xff] }
 0x424   :  { %v1197_v12 = vpop.permute.xlu0 %1196  ;;  %v8406_v15 = vsel %vm298_vm3, %v9181_v39, %v9180_v44  ;;  %v3163_v2 = vadd.f32 %v9187_v47, %v3003_v28  ;;  %v2723_v31 = vadd.f32 %v9188_v23, %v2571_v33  ;;  %v2573_v26 = vadd.f32 %v9190_v1, %v2451_v42  ;;  %v9191_v10 = vld [vmem:[#allocation22_spill] sm:$0xff]  ;;  %v9194_v16 = vld [vmem:[#allocation44_spill] sm:$0xff]  ;;  %v9197_v57 = vld [vmem:[#allocation43_spill] sm:$0xff] }
 0x425   :  { %v1206_v30 = vadd.f32 %v1197_v12, %v1046_v60  ;;  %v1353_v11 = vpop.permute.xlu1 %1352  ;;  %v2882_v50 = vadd.f32 %v9189_v56, %v2722_v48  ;;  %v3482_v34 = vadd.f32 %v9191_v10, %v3322_v61  ;;  %v9192_v60 = vld [vmem:[#allocation31_spill] sm:$0xff]  ;;  %v2724_v24 = vadd.f32 %v9193_v7, %v2572_v58  ;;  %v9195_v13 = vld [vmem:[#allocation56_spill] sm:$0xff]  ;;  %v9196_v52 = vld [vmem:[#allocation34_spill] sm:$0xff] }
 0x426   :  { %v1364_v55 = vadd.f32 %v1353_v11, %v1204_v36  ;;  %3880 = vrot.lane.b32.xlu0 %v8242_v18, %s5015_s29  ;;  %v2685_v37 = vadd.f32 %v9192_v60, %v2541_v43  ;;  %v3004_v36 = vadd.f32 %v9194_v16, %v2844_v21  ;;  %v3323_v6 = vadd.f32 %v9195_v13, %v3163_v2  ;;  %v9198_v32 = vld [vmem:[#allocation42_spill] sm:$0xff]  ;;  %v9201_v49 = vld [vmem:[#allocation20_spill] sm:$0xff]  ;;  %v9202_v44 = vld [vmem:[#allocation41_spill] sm:$0xff] }
 0x427   :  { %3724 = vrot.lane.b32.xlu1 %v8258_v53, %s5018_s20  ;;  %v2883_v19 = vadd.f32 %v9196_v52, %v2723_v31  ;;  %v2725_v9 = vadd.f32 %v9197_v57, %v2573_v26  ;;  %v3042_v42 = vadd.f32 %v9198_v32, %v2882_v50  ;;  %v9199_v40 = vld [vmem:[#allocation38_spill] sm:$0xff]  ;;  %v9200_v53 = vld [vmem:[#allocation49_spill] sm:$0xff]  ;;  %v2884_v39 = vadd.f32 %v9202_v44, %v2724_v24  ;;  %v9205_v54 = vld [vmem:[#allocation47_spill] sm:$0xff] }
 0x428   :  { %v1355_v18 = vpop.permute.xlu0 %1354  ;;  %v2845_v0 = vadd.f32 %v9199_v40, %v2685_v37  ;;  %v3164_v33 = vadd.f32 %v9200_v53, %v3004_v36  ;;  %v3483_v28 = vadd.f32 %v9201_v49, %v3323_v6  ;;  %v9203_v22 = vld [vmem:[#allocation50_spill] sm:$0xff]  ;;  %v9204_v29 = vld [vmem:[#allocation89_spill] sm:$0xff]  ;;  %v9207_v58 = vld [vmem:[#allocation51_spill] sm:$0xff] }
 0x429   :  { %v1365_v27 = vadd.f32 %v1355_v18, %v1205_v20  ;;  %v1199_v17 = vpop.permute.xlu1 %1198  ;;  %v3202_v48 = vadd.f32 %v9203_v22, %v3042_v42  ;;  %v3626_v43 = vadd.f32 %v9204_v29, %v3482_v34  ;;  %v1510_v20 = vrot.slane %v8396_v46, 4  ;;  %v9206_v11 = vld [vmem:[#allocation46_spill] sm:$0xff]  ;;  %v9208_v45 = vld [vmem:[#allocation76_spill] sm:$0xff]  ;;  %v9210_v23 = vld [vmem:[#allocation77_spill] sm:$0xff] }
 0x42a   :  { %v1207_v12 = vadd.f32 %v1199_v17, %v1047_v5  ;;  %3882 = vrot.lane.b32.xlu0 %v8263_v41, %s5015_s29  ;;  %v3043_v61 = vadd.f32 %v9205_v54, %v2883_v19  ;;  %v2885_v8 = vadd.f32 %v9206_v11, %v2725_v9  ;;  %v3005_v5 = vadd.f32 %v9207_v58, %v2845_v0  ;;  %v9209_v47 = vld [vmem:[#allocation52_spill] sm:$0xff]  ;;  %v9213_v46 = vld [vmem:[#allocation82_spill] sm:$0xff]  ;;  %v9215_v24 = vld [vmem:[#allocation55_spill] sm:$0xff] }
 0x42b   :  { %4038 = vrot.lane.b32.xlu1 %v8292_v14, %s5019_s13  ;;  %v3324_v21 = vadd.f32 %v9208_v45, %v3164_v33  ;;  %v3044_v2 = vadd.f32 %v9209_v47, %v2884_v39  ;;  %v3362_v31 = vadd.f32 %v9210_v23, %v3202_v48  ;;  %v9211_v56 = vld [vmem:[#allocation88_spill] sm:$0xff]  ;;  %v9212_v14 = vld [vmem:[#allocation53_spill] sm:$0xff]  ;;  %v9214_v60 = vld [vmem:[#allocation90_spill] sm:$0xff] }
 0x42c   :  { %v1357_v41 = vpop.permute.xlu0 %1356  ;;  %v3770_v50 = vadd.f32 %v9211_v56, %v3626_v43  ;;  %v3203_v10 = vadd.f32 %v9212_v14, %v3043_v61  ;;  %v3627_v37 = vadd.f32 %v9214_v60, %v3483_v28  ;;  %v3165_v16 = vadd.f32 %v9215_v24, %v3005_v5  ;;  %v9216_v36 = vld [vmem:[#allocation83_spill] sm:$0xff]  ;;  %v9218_v52 = vld [vmem:[#allocation57_spill] sm:$0xff]  ;;  %v9221_v40 = vld [vmem:[#allocation58_spill] sm:$0xff] }
 0x42d   :  { %v1366_v1 = vadd.f32 %v1357_v41, %v1206_v30  ;;  %v1359_v26 = vpop.permute.xlu1 %1358  ;;  %v3484_v34 = vadd.f32 %v9213_v46, %v3324_v21  ;;  %v3522_v13 = vadd.f32 %v9216_v36, %v3362_v31  ;;  %v9217_v6 = vld [vmem:[#allocation99_spill] sm:$0xff]  ;;  %v1516_v30 = vadd.f32 %v8298_v3, %v1364_v55  ;;  %v9219_v57 = vld [vmem:[#allocation21_spill] sm:$0xff]  ;;  %v9222_v53 = vld [vmem:[#allocation80_spill] sm:$0xff] }
 0x42e   :  { %v1367_v7 = vadd.f32 %v1359_v26, %v1207_v12  ;;  %4040 = vrot.lane.b32.xlu0 %v8295_v51, %s5019_s13  ;;  %v3930_v18 = vadd.f32 %v9217_v6, %v3770_v50  ;;  %v3045_v19 = vadd.f32 %v9218_v52, %v2885_v8  ;;  %v3363_v9 = vadd.f32 %v9219_v57, %v3203_v10  ;;  %v9220_v32 = vld [vmem:[#allocation91_spill] sm:$0xff]  ;;  %v9223_v49 = vld [vmem:[#allocation110_spill] sm:$0xff]  ;;  %v9227_v43 = vld [vmem:[#allocation153_spill] sm:$0xff] }
 0x42f   :  { %3884 = vrot.lane.b32.xlu1 %v8282_v38, %s5015_s29  ;;  %v3771_v42 = vadd.f32 %v9220_v32, %v3627_v37  ;;  %v1517_v51 = vadd.f32 %v8311_v35, %v1365_v27  ;;  %v3204_v0 = vadd.f32 %v9221_v40, %v3044_v2  ;;  %v3325_v33 = vadd.f32 %v9222_v53, %v3165_v16  ;;  %v9224_v38 = vld [vmem:[#allocation84_spill] sm:$0xff]  ;;  %v9225_v3 = vld [vmem:[#allocation95_spill] sm:$0xff]  ;;  %v9226_v22 = vld [vmem:[#allocation102_spill] sm:$0xff] }
 0x430   :  { %v1641_v17 = vpop.permute.xlu0 %1640  ;;  %v4090_v28 = vadd.f32 %v9223_v49, %v3930_v18  ;;  %v3523_v39 = vadd.f32 %v9224_v38, %v3363_v9  ;;  %v3628_v55 = vadd.f32 %v9225_v3, %v3484_v34  ;;  %v3205_v35 = vadd.f32 %v9227_v43, %v3045_v19  ;;  %v9228_v27 = vld [vmem:[#allocation86_spill] sm:$0xff]  ;;  %v9230_v58 = vld [vmem:[#allocation81_spill] sm:$0xff]  ;;  %v9232_v41 = vld [vmem:[#allocation111_spill] sm:$0xff] }
 0x431   :  { %v1652_v12 = vadd.f32 %v1641_v17, %v1516_v30  ;;  %v1643_v44 = vpop.permute.xlu1 %1642  ;;  %v3931_v48 = vadd.f32 %v9226_v22, %v3771_v42  ;;  %v3485_v54 = vadd.f32 %v9228_v27, %v3325_v33  ;;  %v9229_v61 = vld [vmem:[#allocation98_spill] sm:$0xff]  ;;  %v1518_v8 = vadd.f32 %v8406_v15, %v1366_v1  ;;  %v9231_v45 = vld [vmem:[#allocation93_spill] sm:$0xff]  ;;  %v9237_v1 = vld [vmem:[#allocation87_spill] sm:$0xff] }
 0x432   :  { %v1653_v29 = vadd.f32 %v1643_v44, %v1517_v51  ;;  %4042 = vrot.lane.b32.xlu0 %v8320_v25, %s5019_s13  ;;  %v3658_v11 = vadd.f32 %v9229_v61, %v3522_v13  ;;  %v3364_v5 = vadd.f32 %v9230_v58, %v3204_v0  ;;  %v3772_v21 = vadd.f32 %v9231_v45, %v3628_v55  ;;  %v9233_v2 = vld [vmem:[#allocation105_spill] sm:$0xff]  ;;  %v9235_v50 = vld [vmem:[#allocation94_spill] sm:$0xff]  ;;  %v9238_v60 = vld [vmem:[#allocation100_spill] sm:$0xff] }
 0x433   :  { %4098 = vrot.lane.b32.xlu1 %v4090_v28, %s5015_s29  ;;  %v4091_v47 = vadd.f32 %v9232_v41, %v3931_v48  ;;  %v3652_v23 = vrot.slane %v9233_v2, 5  ;;  %v9234_v25 = vld [vmem:[#allocation85_spill] sm:$0xff]  ;;  %v9236_v46 = vrot.slane %v8253_v59, 6  ;;  %v3659_v37 = vadd.f32 %v9238_v60, %v3523_v39  ;;  %v9239_v24 = vld [vmem:[#allocation107_spill] sm:$0xff]  ;;  %v9240_v13 = vld [vmem:[#allocation92_spill] sm:$0xff] }
 0x434   :  { %v1645_v31 = vpop.permute.xlu0 %1644  ;;  %v3365_v56 = vadd.f32 %v9234_v25, %v3205_v35  ;;  %v3810_v26 = vadd.f32 %v9235_v50, %v3658_v11  ;;  %v3524_v34 = vadd.f32 %v9237_v1, %v3364_v5  ;;  %v3932_v16 = vadd.f32 %v9239_v24, %v3772_v21  ;;  %v9241_v18 = vld [vmem:[#allocation103_spill] sm:$0xff]  ;;  %v9242_v52 = vld [vmem:[#allocation108_spill] sm:$0xff]  ;;  %v9245_v9 = vld [vmem:[#allocation114_spill] sm:$0xff] }
 0x435   :  { %v1654_v14 = vadd.f32 %v1645_v31, %v1518_v8  ;;  %v1801_v10 = vpop.permute.xlu1 %1800  ;;  %v4037_v15 = vsel %vm292_vm1, %v9236_v46, %v4036_v63  ;;  %v3629_v30 = vadd.f32 %v9241_v18, %v3485_v54  ;;  %v9243_v59 = vrot.slane %v8276_v4, 4  ;;  %v9244_v63 = vld [vmem:[#allocation96_spill] sm:$0xff]  ;;  %v9247_v0 = vld [vmem:[#allocation101_spill] sm:$0xff]  ;;  %v9255_v27 = vld [vmem:[#allocation106_spill] sm:$0xff] }
 0x436   :  { %v1812_v36 = vadd.f32 %v1801_v10, %v1652_v12  ;;  %4100 = vrot.lane.b32.xlu0 %v4091_v47, %s5015_s29  ;;  %v3525_v6 = vadd.f32 %v9240_v13, %v3365_v56  ;;  %v3970_v19 = vadd.f32 %v9242_v52, %v3810_v26  ;;  %v3811_v57 = vadd.f32 %v9244_v63, %v3659_v37  ;;  %v9246_v51 = vld [vmem:[#allocation104_spill] sm:$0xff]  ;;  %v9249_v33 = vld [vmem:[#allocation97_spill] sm:$0xff]  ;;  %v9260_v31 = vld [vmem:[#allocation119_spill] sm:$0xff] }
 0x437   :  { %4044 = vrot.lane.b32.xlu1 %v4037_v15, %s5019_s13  ;;  %v1511_v62 = vsel %vm298_vm3, %v9243_v59, %v1510_v20  ;;  %v4092_v32 = vadd.f32 %v9245_v9, %v3932_v16  ;;  %v3773_v40 = vadd.f32 %v9246_v51, %v3629_v30  ;;  %v9248_v53 = vrot.slane %v9247_v0, 5  ;;  %v9251_v12 = vld [vmem:[#allocation117_spill] sm:$0xff]  ;;  %v9256_v61 = vld [vmem:[#allocation120_spill] sm:$0xff]  ;;  %v9261_v56 = vld [vmem:[#allocation122_spill] sm:$0xff] }
 0x438   :  { %v1803_v42 = vpop.permute.xlu0 %1802  ;;  %v1519_v17 = vadd.f32 %v1511_v62, %v1367_v7  ;;  %v9250_v49 = vrot.slane %v9249_v33, 5  ;;  %v4130_v44 = vadd.f32 %v9251_v12, %v3970_v19  ;;  %v9252_v20 = vld [vmem:[#allocation109_spill] sm:$0xff]  ;;  %v9257_v8 = vld [vmem:[#allocation112_spill] sm:$0xff]  ;;  %vm5023_vm1 = vmmov 0  }
 0x439   :  { %v1813_v38 = vadd.f32 %v1803_v42, %v1653_v29  ;;  %v1647_v4 = vpop.permute.xlu1 %1646  ;;  %v3971_v3 = vadd.f32 %v9252_v20, %v3811_v57  ;;  %v9253_v55 = vmov %v9248_v53  ;;  %v9254_v43 = vld [vmem:[#allocation113_spill] sm:$0xff]  ;;  %v9259_v47 = vld [vmem:[#allocation116_spill] sm:$0xff] }
 0x43a   :  { %v3651_v28 = vsel %vm295_vm2, %v9250_v49, %v9248_v53  ;;  %v3653_v22 = vsel %vm295_vm2, %v9253_v55, %v3652_v23  ;;  %v1655_v7 = vadd.f32 %v1647_v4, %v1519_v17  ;;  %4102 = vrot.lane.b32.xlu0 %v4092_v32, %s5015_s29  ;;  %v3933_v35 = vadd.f32 %v9254_v43, %v3773_v40  ;;  %v9258_v5 = vld [vmem:[#allocation121_spill] sm:$0xff]  ;;  %v9262_v10 = vld [vmem:[#allocation124_spill] sm:$0xff] }
 0x43b   :  { %v3660_v39 = vadd.f32 %v3651_v28, %v3524_v34  ;;  %v3661_v48 = vadd.f32 %v3653_v22, %v3525_v6  ;;  %4138 = vrot.lane.b32.xlu1 %v4130_v44, %s5017_s8  ;;  %v4131_v29 = vadd.f32 %v9256_v61, %v3971_v3 }
 0x43c   :  { %v1805_v11 = vpop.permute.xlu0 %1804  ;;  %v4093_v45 = vadd.f32 %v9258_v5, %v3933_v35 }
 0x43d   :  { %v3812_v54 = vadd.f32 %v9255_v27, %v3660_v39  ;;  %v3813_v58 = vadd.f32 %v9257_v8, %v3661_v48  ;;  %v1814_v21 = vadd.f32 %v1805_v11, %v1654_v14  ;;  %v1961_v41 = vpop.permute.xlu1 %1960 }
 0x43e   :  { %v1972_v23 = vadd.f32 %v1961_v41, %v1812_v36  ;;  %4140 = vrot.lane.b32.xlu0 %v4131_v29, %s5017_s8 }
 0x43f   :  { %v3972_v2 = vadd.f32 %v9259_v47, %v3812_v54  ;;  %v3973_v25 = vadd.f32 %v9260_v31, %v3813_v58  ;;  %4104 = vrot.lane.b32.xlu1 %v4093_v45, %s5015_s29  ;;  %v9263_v47 = vld [vmem:[#allocation15_spill] sm:$0xff]  ;;  %s4746_s29 = sld [smem:[#allocation6 + $0x54]] }
 0x440   :  { %v1963_v26 = vpop.permute.xlu0 %1962 }
 0x441   :  { %v4132_v50 = vadd.f32 %v9261_v56, %v3972_v2  ;;  %v4133_v46 = vadd.f32 %v9262_v10, %v3973_v25  ;;  %v1973_v15 = vadd.f32 %v1963_v26, %v1813_v38  ;;  %v1807_v1 = vpop.permute.xlu1 %1806  ;;  %v9265_v25 = vld [vmem:[#allocation14_spill] sm:$0xff] }
 0x442   :  { %v1815_v34 = vadd.f32 %v1807_v1, %v1655_v7 }
 0x443   :  { %4142 = vrot.lane.b32.xlu0 %v4132_v50, %s5017_s8  ;;  %4144 = vrot.lane.b32.xlu1 %v4133_v46, %s5017_s8 }
 0x444   :  { %v1965_v14 = vpop.permute.xlu0 %1964 }
 0x445   :  { %v1974_v60 = vadd.f32 %v1965_v14, %v1814_v21  ;;  %v2121_v37 = vpop.permute.xlu1 %2120  ;;  %v2479_v21 = vstv %s4718_s24 }
 0x446   :  { %v2132_v24 = vadd.f32 %v2121_v37, %v1972_v23  ;;  %v2481_v2 = vmul.f32 %v2479_v21, %v9263_v47  ;;  %v9264_v23 = vld [vmem:[#allocation17_spill] sm:$0xff]  ;;  %v2480_v56 = vmul.f32 %v2479_v21, %v9265_v25  ;;  %v9268_v37 = vld [vmem:[#allocation16_spill] sm:$0xff] }
 0x447   :  { %v2482_v31 = vmul.f32 %v2479_v21, %v9264_v23 }
 0x448   :  { %v2123_v16 = vpop.permute.xlu0 %2122  ;;  %v2493_v10 = vrot.slane %v2481_v2, 1 }
 0x449   :  { %v2133_v36 = vadd.f32 %v2123_v16, %v1973_v15  ;;  %v1967_v13 = vpop.permute.xlu1 %1966  ;;  %v2495_v46 = vrot.slane %v2482_v31, 1  ;;  %v9266_v15 = vld [vmem:[#allocation18_spill] sm:$0xff] }
 0x44a   :  { %v1975_v6 = vadd.f32 %v1967_v13, %v1815_v34  ;;  %v2484_v1 = vmul.f32 %v2479_v21, %v9266_v15  ;;  %v9267_v34 = vld [vmem:[#allocation19_spill] sm:$0xff] }
 0x44b   :  { %v2485_v14 = vmul.f32 %v2479_v21, %v9267_v34 }
 0x44c   :  { %v2125_v18 = vpop.permute.xlu0 %2124 }
 0x44d   :  { %v2134_v30 = vadd.f32 %v2125_v18, %v1974_v60  ;;  %v2281_v52 = vpop.permute.xlu1 %2280  ;;  %v2492_v60 = vrot.slane %v2480_v56, 1  ;;  %v2498_v18 = vrot.slane %v2484_v1, 1 }
 0x44e   :  { %v2292_v19 = vadd.f32 %v2281_v52, %v2132_v24  ;;  %v2483_v24 = vmul.f32 %v2479_v21, %v9268_v37 }
 0x44f   :  { %v2494_v13 = vsel %vm307_vm6, %v2492_v60, %v2493_v10 }
 0x450   :  { %v2283_v59 = vpop.permute.xlu0 %2282 }
 0x451   :  { %v2293_v62 = vadd.f32 %v2283_v59, %v2133_v36  ;;  %v2127_v63 = vpop.permute.xlu1 %2126  ;;  %v2500_v59 = vrot.slane %v2485_v14, 1 }
 0x452   :  { %v2135_v57 = vadd.f32 %v2127_v63, %v1975_v6  ;;  %v2496_v6 = vsel %vm307_vm6, %v2493_v10, %v2495_v46  ;;  %v2497_v63 = vrot.slane %v2483_v24, 1 }
 0x453   :  { %v2501_v56 = vsel %vm307_vm6, %v2498_v18, %v2500_v59 }
 0x454   :  { %v2285_v9 = vpop.permute.xlu0 %2284 }
 0x455   :  { %v2294_v32 = vadd.f32 %v2285_v9, %v2134_v30  ;;  %v2385_v42 = vpop.permute.xlu1 %2384 }
 0x456   :  { %v2396_v17 = vadd.f32 %v2385_v42, %v2292_v19 }
 0x458   :  { %v2387_v51 = vpop.permute.xlu0 %2386  ;;  %v2506_v52 = vadd.f32 %v2494_v13, %v2396_v17 }
 0x459   :  { %v2397_v40 = vadd.f32 %v2387_v51, %v2293_v62  ;;  %v2287_v0 = vpop.permute.xlu1 %2286 }
 0x45a   :  { %v2295_v53 = vadd.f32 %v2287_v0, %v2135_v57  ;;  %v2499_v0 = vsel %vm307_vm6, %v2497_v63, %v2498_v18 }
 0x45b   :  { %v2507_v19 = vadd.f32 %v2496_v6, %v2397_v40 }
 0x45c   :  { %v2389_v33 = vpop.permute.xlu0 %2388 }
 0x45d   :  { %v2391_v49 = vpop.permute.xlu1 %2390  ;;  %v2398_v30 = vadd.f32 %v2389_v33, %v2294_v32  ;;  %v3567_v33 = vstv %s4746_s29 }
 0x45e   :  { %v2399_v62 = vadd.f32 %v2391_v49, %v2295_v53 }
 0x45f   :  { %v2508_v21 = vadd.f32 %v2499_v0, %v2398_v30 }
 0x460   :  { %v2631_v28 = vpop.permute.xlu0 %2630  ;;  %v2509_v10 = vadd.f32 %v2501_v56, %v2399_v62 }
 0x461   :  { %v2633_v12 = vpop.permute.xlu1 %2632  ;;  %v2642_v9 = vadd.f32 %v2631_v28, %v2506_v52  ;;  %v3569_v28 = vmul.f32 %v3567_v33, %v9263_v47  ;;  %v3572_v47 = vmul.f32 %v3567_v33, %v9266_v15 }
 0x462   :  { %v2643_v42 = vadd.f32 %v2633_v12, %v2507_v19  ;;  %v3570_v12 = vmul.f32 %v3567_v33, %v9264_v23 }
 0x463   :  { %v3581_v18 = vrot.slane %v3569_v28, 5 }
 0x464   :  { %v2635_v44 = vpop.permute.xlu0 %2634 }
 0x465   :  { %v2791_v38 = vpop.permute.xlu1 %2790  ;;  %v2644_v32 = vadd.f32 %v2635_v44, %v2508_v21 }
 0x466   :  { %v2802_v2 = vadd.f32 %v2791_v38, %v2642_v9  ;;  %v3568_v38 = vmul.f32 %v3567_v33, %v9265_v25 }
 0x468   :  { %v2793_v4 = vpop.permute.xlu0 %2792 }
 0x469   :  { %v2637_v39 = vpop.permute.xlu1 %2636  ;;  %v2803_v31 = vadd.f32 %v2793_v4, %v2643_v42 }
 0x46a   :  { %v2645_v49 = vadd.f32 %v2637_v39, %v2509_v10  ;;  %v3583_v39 = vrot.slane %v3570_v12, 5 }
 0x46c   :  { %v2795_v20 = vpop.permute.xlu0 %2794 }
 0x46d   :  { %v2951_v3 = vpop.permute.xlu1 %2950  ;;  %v2804_v1 = vadd.f32 %v2795_v20, %v2644_v32 }
 0x46e   :  { %v2962_v17 = vadd.f32 %v2951_v3, %v2802_v2 }
 0x470   :  { %v2953_v55 = vpop.permute.xlu0 %2952 }
 0x471   :  { %v2797_v22 = vpop.permute.xlu1 %2796  ;;  %v2963_v40 = vadd.f32 %v2953_v55, %v2803_v31 }
 0x472   :  { %v2805_v24 = vadd.f32 %v2797_v22, %v2645_v49 }
 0x474   :  { %v8525_v7 = vpop.permute.xlu0 %2954 }
 0x475   :  { %v3111_v48 = vpop.permute.xlu1 %3110  ;;  %v2964_v13 = vadd.f32 %v8525_v7, %v2804_v1  ;;  %v3580_v7 = vrot.slane %v3568_v38, 5 }
 0x476   :  { %v3122_v14 = vadd.f32 %v3111_v48, %v2962_v17  ;;  %v3573_v48 = vmul.f32 %v3567_v33, %v9267_v34 }
 0x477   :  { %v3582_v15 = vsel %vm295_vm2, %v3580_v7, %v3581_v18 }
 0x478   :  { %v3113_v43 = vpop.permute.xlu0 %3112  ;;  %v3588_v19 = vrot.slane %v3573_v48, 5 }
 0x479   :  { %v8527_v35 = vpop.permute.xlu1 %2956  ;;  %v3123_v60 = vadd.f32 %v3113_v43, %v2963_v40 }
 0x47a   :  { %v2965_v55 = vadd.f32 %v8527_v35, %v2805_v24 }
 0x47c   :  { %v8529_v27 = vpop.permute.xlu0 %3114 }
 0x47d   :  { %v3271_v54 = vpop.permute.xlu1 %3270  ;;  %v3124_v23 = vadd.f32 %v8529_v27, %v2964_v13  ;;  %v3584_v27 = vsel %vm295_vm2, %v3581_v18, %v3583_v39 }
 0x47e   :  { %v3282_v6 = vadd.f32 %v3271_v54, %v3122_v14  ;;  %v3571_v54 = vmul.f32 %v3567_v33, %v9268_v37 }
 0x480   :  { %v3273_v61 = vpop.permute.xlu0 %3272  ;;  %v3585_v59 = vrot.slane %v3571_v54, 5 }
 0x481   :  { %v8531_v29 = vpop.permute.xlu1 %3116  ;;  %v3283_v44 = vadd.f32 %v3273_v61, %v3123_v60 }
 0x482   :  { %v3125_v43 = vadd.f32 %v8531_v29, %v2965_v55 }
 0x484   :  { %v8533_v11 = vpop.permute.xlu0 %3274 }
 0x485   :  { %v8535_v8 = vpop.permute.xlu1 %3430  ;;  %v3284_v35 = vadd.f32 %v8533_v11, %v3124_v23 }
 0x486   :  { %v3442_v20 = vadd.f32 %v8535_v8, %v3282_v6  ;;  %v3586_v8 = vrot.slane %v3572_v47, 5 }
 0x488   :  { %v8537_v58 = vpop.permute.xlu0 %3432  ;;  %v3594_v52 = vadd.f32 %v3582_v15, %v3442_v20 }
 0x489   :  { %v8539_v5 = vpop.permute.xlu1 %3276  ;;  %v3443_v22 = vadd.f32 %v8537_v58, %v3283_v44 }
 0x48a   :  { %v3285_v30 = vadd.f32 %v8539_v5, %v3125_v43  ;;  %v3587_v5 = vsel %vm295_vm2, %v3585_v59, %v3586_v8 }
 0x48b   :  { %v3595_v34 = vadd.f32 %v3584_v27, %v3443_v22 }
 0x48c   :  { %v8541_v45 = vpop.permute.xlu0 %3434 }
 0x48d   :  { %v8543_v41 = vpop.permute.xlu1 %3436  ;;  %v3444_v58 = vadd.f32 %v8541_v45, %v3284_v35  ;;  %v3589_v45 = vsel %vm295_vm2, %v3586_v8, %v3588_v19  ;;  %vm4644_vm2 = vcmask 33792  }
 0x48e   :  { %v3445_v29 = vadd.f32 %v8543_v41, %v3285_v30 }
 0x48f   :  { %v3596_v9 = vadd.f32 %v3587_v5, %v3444_v58 }
 0x490   :  { %v8548_v50 = vpop.permute.xlu0 %3718  ;;  %v3597_v21 = vadd.f32 %v3589_v45, %v3445_v29  ;;  %v4212_v45 = vstv %s4211_s9 }
 0x491   :  { %v8550_v26 = vpop.permute.xlu1 %3720  ;;  %v3730_v62 = vadd.f32 %v8548_v50, %v3594_v52 }
 0x492   :  { %v3731_v11 = vadd.f32 %v8550_v26, %v3595_v34 }
 0x494   :  { %v8555_v16 = vpop.permute.xlu0 %3722 }
 0x495   :  { %v8557_v36 = vpop.permute.xlu1 %3878  ;;  %v3732_v31 = vadd.f32 %v8555_v16, %v3596_v9 }
 0x496   :  { %v3890_v42 = vadd.f32 %v8557_v36, %v3730_v62 }
 0x498   :  { %v3881_v57 = vpop.permute.xlu0 %3880 }
 0x499   :  { %v8561_v51 = vpop.permute.xlu1 %3724  ;;  %v3891_v0 = vadd.f32 %v3881_v57, %v3731_v11 }
 0x49a   :  { %v3733_v50 = vadd.f32 %v8561_v51, %v3597_v21 }
 0x49c   :  { %v3883_v46 = vpop.permute.xlu0 %3882 }
 0x49d   :  { %v4039_v53 = vpop.permute.xlu1 %4038  ;;  %v3892_v32 = vadd.f32 %v3883_v46, %v3732_v31 }
 0x49e   :  { %v4050_v41 = vadd.f32 %v4039_v53, %v3890_v42 }
 0x4a0   :  { %v4041_v4 = vpop.permute.xlu0 %4040 }
 0x4a1   :  { %v3885_v3 = vpop.permute.xlu1 %3884  ;;  %v4051_v56 = vadd.f32 %v4041_v4, %v3891_v0 }
 0x4a2   :  { %v3893_v40 = vadd.f32 %v3885_v3, %v3733_v50 }
 0x4a4   :  { %v4043_v61 = vpop.permute.xlu0 %4042 }
 0x4a5   :  { %v4099_v25 = vpop.permute.xlu1 %4098  ;;  %v4052_v49 = vadd.f32 %v4043_v61, %v3892_v32 }
 0x4a6   :  { %v4110_v26 = vadd.f32 %v4099_v25, %v4050_v41 }
 0x4a8   :  { %v4101_v37 = vpop.permute.xlu0 %4100 }
 0x4a9   :  { %v4045_v63 = vpop.permute.xlu1 %4044  ;;  %v4111_v17 = vadd.f32 %v4101_v37, %v4051_v56  ;;  %v4218_v56 = vstv %s4760_s10 }
 0x4aa   :  { %v4053_v12 = vadd.f32 %v4045_v63, %v3893_v40 }
 0x4ac   :  { %v4103_v2 = vpop.permute.xlu0 %4102 }
 0x4ad   :  { %v4139_v10 = vpop.permute.xlu1 %4138  ;;  %v4112_v1 = vadd.f32 %v4103_v2, %v4052_v49 }
 0x4ae   :  { %v4150_v28 = vadd.f32 %v4139_v10, %v4110_v26 }
 0x4b0   :  { %v4141_v33 = vpop.permute.xlu0 %4140  ;;  %v4155_v60 = vsel %vm4154_vm9, %v4150_v28, 0.0 }
 0x4b1   :  { %v4151_v36 = vadd.f32 %v4141_v33, %v4111_v17  ;;  %v4105_v57 = vpop.permute.xlu1 %4104 }
 0x4b2   :  { %v4113_v16 = vadd.f32 %v4105_v57, %v4053_v12 }
 0x4b3   :  { %v4156_v14 = vsel %vm4154_vm9, %v4151_v36, 0.0 }
 0x4b4   :  { %v4157_v46 = vadd.f32 %v4156_v14, %v4155_v60 }
 0x4b5   :  { %v4143_v53 = vpop.permute.xlu0 %4142  ;;  %v4145_v51 = vpop.permute.xlu1 %4144 }
 0x4b6   :  { %v4152_v24 = vadd.f32 %v4143_v53, %v4112_v1  ;;  %v4153_v38 = vadd.f32 %v4145_v51, %v4113_v16 }
 0x4b8   :  { %v4158_v4 = vsel %vm4154_vm9, %v4152_v24, 0.0  ;;  %v4160_v6 = vsel %vm4154_vm9, %v4153_v38, 0.0 }
 0x4b9   :  { %v4159_v13 = vadd.f32 %v4158_v4, %v4157_v46  ;;  %v4894_v4 = vld [vmem:[#allocation2 + $0x18] sm:$0xff] }
 0x4bb   :  { %v4161_v44 = vadd.f32 %v4160_v6, %v4159_v13  ;;  %v4895_v6 = vld [vmem:[#allocation2] sm:$0xff] }
 0x4bd   :  { %4162 = vadd.xlane.f32.xlu0 %v4161_v44  ;;  %v4896_v44 = vld [vmem:[#allocation2 + $0x10] sm:$0xff] }
 0x54a   :  { %v4163_v3 = vpop.xlane.xlu0 %4162 }
 0x54b   :  { %v4164_v55 = vrot.slane %v4163_v3, 4 }
 0x54d   :  { %v4165_v18 = vadd.f32 %v4164_v55, %v4163_v3  ;;  %v4798_v3 = vpack.c.bf16 %v4896_v44, %v4895_v6  ;;  %v4897_v55 = vld [vmem:[#allocation2 + $0x88] sm:$0xff]  ;;  %v4916_v44 = vld [vmem:[#allocation2 + $0x78] sm:$0xff] }
 0x54e   :  { %v4915_v6 = vld [vmem:[#allocation2 + $0x68] sm:$0xff] }
 0x54f   :  { %v4166_v39 = vrot.slane %v4165_v18, 2 }
 0x551   :  { %v4167_v47 = vadd.f32 %v4166_v39, %v4165_v18  ;;  %v4898_v18 = vld [vmem:[#allocation2 + $0x98] sm:$0xff] }
 0x552   :  { %v4812_v39 = vpack.c.bf16 %v4898_v18, %v4897_v55  ;;  %v4917_v18 = vld [vmem:[#allocation2 + $0xc0] sm:$0xff] }
 0x553   :  { %v4168_v23 = vrot.slane %v4167_v47, 1 }
 0x554   :  { %4813 = vmatprep.subr.bf16.mxu1 %v4812_v39  ;;  %v4918_v39 = vld [vmem:[#allocation2 + $0xd0] sm:$0xff] }
 0x555   :  { %v4169_v20 = vadd.f32 %v4168_v23, %v4167_v47  ;;  %v4899_v47 = vld [vmem:[#allocation2 + $0x80] sm:$0xff]  ;;  %v4900_v23 = vld [vmem:[#allocation2 + $0x90] sm:$0xff] }
 0x557   :  { %4840 = vpush %v4169_v20  ;;  %v4814_v20 = vpack.c.bf16 %v4900_v23, %v4899_v47  ;;  %v4822_v47 = vpack.c.bf16 %v4918_v39, %v4917_v18  ;;  %v4547_v18 = vld [vmem:[%s8726_s3] sm:$0xff]  ;;  %v4548_v39 = vld [vmem:[%s8726_s3 + $0x8] sm:$0xff] }
 0x559   :  { %4815 = vmatpush1.bf16.xpose.msra.mxu1 %v4814_v20 }
 0x588   :  { %s4841_s8 = spop %4840 }
 0x589   :  { %s4173_s20 = smul.f32 0.001953125, %s4841_s8 }
 0x58b   :  { %v4174_v22 = vstv %s4173_s20 }
 0x58c   :  { %v4175_v48 = vsub.f32 %v4150_v28, %v4174_v22  ;;  %v4176_v43 = vsub.f32 %v4151_v36, %v4174_v22  ;;  %v4177_v7 = vsub.f32 %v4152_v24, %v4174_v22  ;;  %v4178_v54 = vsub.f32 %v4153_v38, %v4174_v22  ;;  %v4893_v38 = vld [vmem:[#allocation2 + $0x8] sm:$0xff] }
 0x58d   :  { %v4796_v13 = vpack.c.bf16 %v4894_v4, %v4893_v38 }
 0x58e   :  { %v4179_v61 = vmul.f32 %v4175_v48, %v4175_v48  ;;  %v4180_v35 = vmul.f32 %v4176_v43, %v4176_v43  ;;  %v4181_v25 = vmul.f32 %v4177_v7, %v4177_v7  ;;  %v4182_v30 = vmul.f32 %v4178_v54, %v4178_v54 }
 0x58f   :  { %4797 = vmatprep.subr.bf16.mxu0 %v4796_v13 }
 0x590   :  { %v4183_v15 = vsel %vm4154_vm9, %v4179_v61, 0.0  ;;  %v4184_v27 = vsel %vm4154_vm9, %v4180_v35, 0.0  ;;  %v4186_v58 = vsel %vm4154_vm9, %v4181_v25, 0.0  ;;  %v4188_v34 = vsel %vm4154_vm9, %v4182_v30, 0.0  ;;  %4799 = vmatpush1.bf16.xpose.msra.mxu0 %v4798_v3  ;;  %v4904_v61 = vld [vmem:[#allocation2 + $0x30] sm:$0xff] }
 0x591   :  { %v4185_v8 = vadd.f32 %v4184_v27, %v4183_v15  ;;  %v4808_v3 = vpack.c.bf16 %v4916_v44, %v4915_v6 }
 0x593   :  { %v4187_v52 = vadd.f32 %v4186_v58, %v4185_v8 }
 0x595   :  { %v4189_v19 = vadd.f32 %v4188_v34, %v4187_v52 }
 0x597   :  { %4190 = vadd.xlane.f32.xlu1 %v4189_v19 }
 0x624   :  { %v4191_v29 = vpop.xlane.xlu1 %4190 }
 0x625   :  { %v4192_v59 = vrot.slane %v4191_v29, 4 }
 0x627   :  { %v4193_v37 = vadd.f32 %v4192_v59, %v4191_v29 }
 0x629   :  { %v4194_v62 = vrot.slane %v4193_v37, 2 }
 0x62b   :  { %v4195_v11 = vadd.f32 %v4194_v62, %v4193_v37 }
 0x62d   :  { %v4196_v63 = vrot.slane %v4195_v11, 1 }
 0x62f   :  { %v4197_v5 = vadd.f32 %v4196_v63, %v4195_v11 }
 0x631   :  { %4842 = vpush %v4197_v5 }
 0x662   :  { %s4843_s13 = spop %4842 }
 0x663   :  { %s4201_s26 = smul.f32 0.001953125, %s4843_s13 }
 0x665   :  { %s4202_s7 = sadd.f32 1e-05, %s4201_s26 }
 0x667   :  { %v4203_v9 = vstv %s4202_s7 }
 0x668   :  { %4871 = vrsqrt.f32 %v4203_v9 }
 0x672   :  { %v4872_v42 = vpop.eup %4871 }
 0x673   :  { %4844 = vpush %v4872_v42 }
 0x6a4   :  { %s4845_s11 = spop %4844 }
 0x6a5   :  { %v4206_v0 = vstv %s4845_s11 }
 0x6a6   :  { %v4207_v21 = vmul.f32 %v4206_v0, %v4175_v48  ;;  %v4208_v2 = vmul.f32 %v4206_v0, %v4176_v43  ;;  %v4209_v31 = vmul.f32 %v4206_v0, %v4177_v7  ;;  %v4210_v41 = vmul.f32 %v4206_v0, %v4178_v54  ;;  %v4901_v48 = vld [vmem:[#allocation2 + $0x28] sm:$0xff]  ;;  %v4902_v43 = vld [vmem:[#allocation2 + $0x38] sm:$0xff]  ;;  %v4903_v54 = vld [vmem:[#allocation2 + $0x20] sm:$0xff] }
 0x6a7   :  { %v4800_v7 = vpack.c.bf16 %v4902_v43, %v4901_v48  ;;  %v4802_v35 = vpack.c.bf16 %v4904_v61, %v4903_v54  ;;  %v4919_v48 = vld [vmem:[#allocation2 + $0x60] sm:$0xff]  ;;  %v4920_v43 = vld [vmem:[#allocation2 + $0x70] sm:$0xff]  ;;  %v4921_v54 = vld [vmem:[#allocation2 + $0xe8] sm:$0xff] }
 0x6a8   :  { %v4213_v10 = vmul.f32 %v4212_v45, %v4207_v21  ;;  %v4214_v50 = vmul.f32 %v4212_v45, %v4208_v2  ;;  %v4215_v32 = vmul.f32 %v4212_v45, %v4209_v31  ;;  %v4216_v26 = vmul.f32 %v4212_v45, %v4210_v41  ;;  %v4922_v61 = vld [vmem:[#allocation2 + $0xf8] sm:$0xff] }
 0x6a9   :  { %4801 = vmatprep.subr.bf16.mxu0 %v4800_v7  ;;  %v4810_v7 = vpack.c.bf16 %v4920_v43, %v4919_v48 }
 0x6aa   :  { %v4219_v17 = vadd.f32 %v4218_v56, %v4213_v10  ;;  %v4220_v40 = vadd.f32 %v4218_v56, %v4214_v50  ;;  %v4221_v33 = vadd.f32 %v4218_v56, %v4215_v32  ;;  %v4222_v49 = vadd.f32 %v4218_v56, %v4216_v26  ;;  %4803 = vmatpush1.bf16.xpose.msra.mxu0 %v4802_v35  ;;  %v4905_v56 = vld [vmem:[#allocation2 + $0xa8] sm:$0xff]  ;;  %v4906_v10 = vld [vmem:[#allocation2 + $0xb8] sm:$0xff]  ;;  %v4907_v32 = vld [vmem:[#allocation2 + $0xa0] sm:$0xff] }
 0x6ab   :  { %v4816_v50 = vpack.c.bf16 %v4906_v10, %v4905_v56  ;;  %v4908_v26 = vld [vmem:[#allocation2 + $0xb0] sm:$0xff]  ;;  %v4824_v35 = vpack.c.bf16 %v4922_v61, %v4921_v54  ;;  %v5022_v56 = vmov 1966171168   ;;  %v4550_v61 = vld [vmem:[%s8726_s3 + $0x18] sm:$0xff] }
 0x6ac   :  { %v4761_v28 = vmul.f32 -1.442695, %v4219_v17  ;;  %v4762_v36 = vmul.f32 -1.442695, %v4220_v40  ;;  %v4763_v57 = vmul.f32 -1.442695, %v4221_v33  ;;  %v4818_v17 = vpack.c.bf16 %v4908_v26, %v4907_v32 }
 0x6ad   :  { %v4764_v12 = vmul.f32 -1.442695, %v4222_v49  ;;  %4817 = vmatprep.subr.bf16.mxu1 %v4816_v50  ;;  %v4364_v10 = vunpack.c.l.s4 %v5022_v56  ;;  %v4366_v50 = vlaneseq  ;;  %v4549_v54 = vld [vmem:[%s8726_s3 + $0x10] sm:$0xff] }
 0x6ae   :  { %4873 = vpow2.f32 %v4761_v28  ;;  %v4909_v28 = vld [vmem:[#allocation2 + $0x48] sm:$0xff]  ;;  %4819 = vmatpush1.bf16.xpose.msra.mxu1 %v4818_v17 }
 0x6af   :  { %4875 = vpow2.f32 %v4762_v36  ;;  %v4910_v36 = vld [vmem:[#allocation2 + $0x58] sm:$0xff] }
 0x6b0   :  { %4877 = vpow2.f32 %v4763_v57  ;;  %v4804_v57 = vpack.c.bf16 %v4910_v36, %v4909_v28 }
 0x6b1   :  { %4879 = vpow2.f32 %v4764_v12  ;;  %v4911_v12 = vld [vmem:[#allocation2 + $0x40] sm:$0xff] }
 0x6b2   :  { %4805 = vmatprep.subr.bf16.mxu0 %v4804_v57 }
 0x6b8   :  { %v4874_v1 = vpop.eup %4873 }
 0x6b9   :  { %v4876_v14 = vpop.eup %4875  ;;  %v4235_v16 = vadd.f32 1.0, %v4874_v1  ;;  %v4912_v1 = vld [vmem:[#allocation2 + $0x50] sm:$0xff] }
 0x6ba   :  { %v4878_v53 = vpop.eup %4877  ;;  %v4236_v60 = vadd.f32 1.0, %v4876_v14  ;;  %v4806_v14 = vpack.c.bf16 %v4912_v1, %v4911_v12  ;;  %v4365_v12 = vunpack.c.0.s8 %v4364_v10  ;;  %v4367_v1 = vshrl.u32 %v4366_v50, 7 }
 0x6bb   :  { %v4880_v24 = vpop.eup %4879  ;;  %v4237_v51 = vadd.f32 1.0, %v4878_v53  ;;  %4881 = vrcp.f32 %v4235_v16  ;;  %v4913_v16 = vld [vmem:[#allocation2 + $0xc8] sm:$0xff]  ;;  %v4914_v53 = vld [vmem:[#allocation2 + $0xd8] sm:$0xff] }
 0x6bc   :  { %v4238_v46 = vadd.f32 1.0, %v4880_v24  ;;  %4883 = vrcp.f32 %v4236_v60  ;;  %v4820_v60 = vpack.c.bf16 %v4914_v53, %v4913_v16  ;;  %4807 = vmatpush1.bf16.xpose.msra.mxu0 %v4806_v14 }
 0x6bd   :  { %4885 = vrcp.f32 %v4237_v51  ;;  %4809 = vmatprep.subr.bf16.mxu0 %v4808_v3  ;;  %v4391_v3 = vsub.s32 1, %v4367_v1 }
 0x6be   :  { %4887 = vrcp.f32 %v4238_v46  ;;  %4821 = vmatprep.subr.bf16.mxu1 %v4820_v60 }
 0x6bf   :  { %4823 = vmatpush1.bf16.xpose.msra.mxu1 %v4822_v47 }
 0x6c0   :  { %4825 = vmatprep.subr.bf16.mxu1 %v4824_v35 }
 0x6c4   :  { %4811 = vmatpush1.bf16.xpose.msra.mxu0 %v4810_v7  ;;  %v4829_v7 = vpack.c.bf16 %v4548_v39, %v4547_v18 }
 0x6c5   :  { %v8598_v22 = vpop.eup %4881 }
 0x6c6   :  { %v8600_v25 = vpop.eup %4883  ;;  %v4253_v30 = vrot.slane %v8598_v22, 1  ;;  %v4258_v52 = vrot.slane %v8598_v22, 2  ;;  %v4264_v62 = vrot.slane %v8598_v22, 3  ;;  %v4270_v42 = vrot.slane %v8598_v22, 4 }
 0x6c7   :  { %v8603_v15 = vpop.eup %4885  ;;  %v4299_v27 = vrot.slane %v8600_v25, 1  ;;  %v4304_v29 = vrot.slane %v8600_v25, 2  ;;  %v4310_v5 = vrot.slane %v8600_v25, 3  ;;  %v4316_v0 = vrot.slane %v8600_v25, 4 }
 0x6c8   :  { %v8606_v8 = vpop.eup %4887  ;;  %v4254_v58 = vsel %vm4250_vm10, %v8603_v15, %v4253_v30  ;;  %v4259_v34 = vrot.slane %v8603_v15, 1  ;;  %v4265_v11 = vrot.slane %v8603_v15, 2  ;;  %v4271_v45 = vrot.slane %v8603_v15, 3 }
 0x6c9   :  { %v4300_v19 = vsel %vm4250_vm10, %v8606_v8, %v4299_v27  ;;  %4255 = vrot.lane.b32.xlu0 %v4254_v58, %s5003_s6  ;;  %v4305_v59 = vrot.slane %v8606_v8, 1  ;;  %v4311_v9 = vrot.slane %v8606_v8, 2  ;;  %v4296_v21 = vrot.slane %v8606_v8, 7 }
 0x6ca   :  { %4301 = vrot.lane.b32.xlu1 %v4300_v19, %s5003_s6  ;;  %v4260_v37 = vsel %vm4250_vm10, %v4259_v34, %v4258_v52  ;;  %v4249_v2 = vrot.slane %v8603_v15, 7  ;;  %v4266_v31 = vsel %vm4250_vm10, %v4265_v11, %v4264_v62  ;;  %v4317_v41 = vrot.slane %v8606_v8, 3  ;;  %v4923_v62 = vld [vmem:[#allocation2 + $0xe0] sm:$0xff]  ;;  %v4924_v11 = vld [vmem:[#allocation2 + $0xf0] sm:$0xff] }
 0x6cb   :  { %v4306_v63 = vsel %vm4250_vm10, %v4305_v59, %v4304_v29  ;;  %v4312_v40 = vsel %vm4250_vm10, %v4311_v9, %v4310_v5  ;;  %v8637_v33 = vsel %vm4250_vm10, %v4296_v21, %v8600_v25  ;;  %v4272_v24 = vsel %vm4250_vm10, %v4271_v45, %v4270_v42 }
 0x6cc   :  { %v8641_v49 = vsel %vm4250_vm10, %v4249_v2, %v8598_v22  ;;  %v4276_v51 = vrot.slane %v8598_v22, 5  ;;  %v4277_v46 = vrot.slane %v8603_v15, 4  ;;  %v4318_v38 = vsel %vm4250_vm10, %v4317_v41, %v4316_v0 }
 0x6cd   :  { %4261 = vrot.lane.b32.xlu0 %v4260_v37, %s5011_s19  ;;  %v4322_v4 = vrot.slane %v8600_v25, 5  ;;  %v4323_v13 = vrot.slane %v8606_v8, 4  ;;  %v4282_v55 = vrot.slane %v8598_v22, 6  ;;  %v4283_v20 = vrot.slane %v8603_v15, 5 }
 0x6ce   :  { %4307 = vrot.lane.b32.xlu1 %v4306_v63, %s5011_s19  ;;  %v4278_v23 = vsel %vm4250_vm10, %v4277_v46, %v4276_v51  ;;  %v4328_v27 = vrot.slane %v8600_v25, 6  ;;  %v4329_v58 = vrot.slane %v8606_v8, 5  ;;  %v4288_v34 = vrot.slane %v8598_v22, 7 }
 0x6cf   :  { %v4324_v30 = vsel %vm4250_vm10, %v4323_v13, %v4322_v4  ;;  %v4284_v52 = vsel %vm4250_vm10, %v4283_v20, %v4282_v55  ;;  %v4289_v19 = vrot.slane %v8603_v15, 6  ;;  %v4334_v59 = vrot.slane %v8600_v25, 7 }
 0x6d0   :  { %v4330_v29 = vsel %vm4250_vm10, %v4329_v58, %v4328_v27  ;;  %v4335_v37 = vrot.slane %v8606_v8, 6  ;;  %v4826_v63 = vpack.c.bf16 %v4924_v11, %v4923_v62  ;;  %v5021_v15 = vmov 0.0|0.0   ;;  %v4551_v58 = vld [vmem:[%s8726_s3 + $0x20] sm:$0xff] }
 0x6d1   :  { %4267 = vrot.lane.b32.xlu0 %v4266_v31, %s5010_s18  ;;  %v4290_v5 = vsel %vm4250_vm10, %v4289_v19, %v4288_v34  ;;  %4828 = vmatprep.subr.bf16.mxu0 %v5021_v15  ;;  %v4368_v4 = vsub.s32 %v4365_v12, %v4367_v1  ;;  %v4387_v55 = vsub.s32 0, %v4367_v1  ;;  %v4832_v27 = vpack.c.bf16 %v4550_v61, %v4549_v54  ;;  %v4553_v19 = vld [vmem:[%s8726_s3 + $0x30] sm:$0xff] }
 0x6d2   :  { %4313 = vrot.lane.b32.xlu1 %v4312_v40, %s5010_s18  ;;  %v4336_v22 = vsel %vm4250_vm10, %v4335_v37, %v4334_v59  ;;  %4827 = vmatpush1.bf16.xpose.msra.mxu1 %v4826_v63  ;;  %v5024_v37 = vmov 0.0  }
 0x6d5   :  { %4273 = vrot.lane.b32.xlu0 %v4272_v24, %s5009_s17 }
 0x6d6   :  { %4319 = vrot.lane.b32.xlu1 %v4318_v38, %s5009_s17 }
 0x6d9   :  { %4279 = vrot.lane.b32.xlu0 %v4278_v23, %s5008_s16 }
 0x6da   :  { %4325 = vrot.lane.b32.xlu1 %v4324_v30, %s5008_s16 }
 0x6dd   :  { %4285 = vrot.lane.b32.xlu0 %v4284_v52, %s5006_s2  ;;  %v4552_v52 = vld [vmem:[%s8726_s3 + $0x28] sm:$0xff] }
 0x6de   :  { %4331 = vrot.lane.b32.xlu1 %v4330_v29, %s5006_s2  ;;  %v4835_v34 = vpack.c.bf16 %v4552_v52, %v4551_v58  ;;  %v4554_v29 = vld [vmem:[%s8726_s3 + $0x38] sm:$0xff]  ;;  %s5025_s3 = smov [#allocation9]  }
 0x6df   :  { %v4838_v59 = vpack.c.bf16 %v4554_v29, %v4553_v19  ;;  %s4652_s24 = sshll.u32 %s5025_s3, 4  ;;  %s4653_s24 = int_to_ptr.vmem [resolvable:$true] %s4652_s24 }
 0x6e0   :  { %s4971_s29 = scalar_lea.vmem %s4653_s24, 32  ;;  %p4976_p5 = scmp.lt.s32.totalorder %s4653_s24, %s4653_s24 }
 0x6e1   :  { %4291 = vrot.lane.b32.xlu0 %v4290_v5, %s5007_s15  ;;  %p4972_p4 = scmp.ne.s32.totalorder %s4653_s24, %s4971_s29  ;;  %p4977_p6 = scmp.lt.s32.totalorder %s4971_s29, %s4971_s29 }
 0x6e2   :  { %4337 = vrot.lane.b32.xlu1 %v4336_v22, %s5007_s15 }
 0x6e3   :  { %p4978_p7 = por %p4977_p6, %p4976_p5 }
 0x6e5   :  { %p4979_p8 = pnand %p4978_p7, %p4972_p4 }
 0x73b   :  { %v4256_v25 = vpop.permute.xlu0 %4255 }
 0x73c   :  { %v4302_v9 = vpop.permute.xlu1 %4301  ;;  %v4340_v32 = vsel %vm4154_vm9, %v8641_v49, %v4256_v25 }
 0x73d   :  { %v4353_v26 = vsel %vm4154_vm9, %v8637_v33, %v4302_v9 }
 0x73f   :  { %v4262_v8 = vpop.permute.xlu0 %4261 }
 0x740   :  { %v4308_v42 = vpop.permute.xlu1 %4307  ;;  %v4342_v17 = vsel %vm4341_vm11, %v4340_v32, %v4262_v8  ;;  %v4765_v8 = vld [vmem:[%s8727_s4] ss:$0 sm:$0xff] }
 0x741   :  { %v4354_v28 = vsel %vm4341_vm11, %v4353_v26, %v4308_v42 }
 0x743   :  { %v4268_v0 = vpop.permute.xlu0 %4267 }
 0x744   :  { %v4314_v45 = vpop.permute.xlu1 %4313  ;;  %v4344_v36 = vsel %vm4343_vm12, %v4342_v17, %v4268_v0 }
 0x745   :  { %v4355_v14 = vsel %vm4343_vm12, %v4354_v28, %v4314_v45 }
 0x747   :  { %v4274_v21 = vpop.permute.xlu0 %4273 }
 0x748   :  { %v4320_v2 = vpop.permute.xlu1 %4319  ;;  %v4346_v16 = vsel %vm4345_vm13, %v4344_v36, %v4274_v21 }
 0x749   :  { %v4356_v53 = vsel %vm4345_vm13, %v4355_v14, %v4320_v2 }
 0x74b   :  { %v4280_v31 = vpop.permute.xlu0 %4279 }
 0x74c   :  { %v4326_v41 = vpop.permute.xlu1 %4325  ;;  %v4348_v49 = vsel %vm4347_vm14, %v4346_v16, %v4280_v31 }
 0x74d   :  { %v4357_v60 = vsel %vm4347_vm14, %v4356_v53, %v4326_v41 }
 0x74f   :  { %v4286_v40 = vpop.permute.xlu0 %4285 }
 0x750   :  { %v4332_v57 = vpop.permute.xlu1 %4331  ;;  %v4350_v24 = vsel %vm4349_vm15, %v4348_v49, %v4286_v40 }
 0x751   :  { %v4358_v33 = vsel %vm4349_vm15, %v4357_v60, %v4332_v57 }
 0x753   :  { %v4292_v51 = vpop.permute.xlu0 %4291 }
 0x754   :  { %v4338_v46 = vpop.permute.xlu1 %4337  ;;  %v4352_v38 = vsel %vm4351_vm0, %v4350_v24, %v4292_v51 }
 0x755   :  { %v4359_v13 = vsel %vm4351_vm0, %v4358_v33, %v4338_v46 }
 0x756   :  { %v4362_v6 = vcombine.low %v4352_v38, %v4359_v13 }
 0x758   :  { %v4369_v44 = vrot.slane %v4362_v6, %v4368_v4 }
 0x75a   :  { %v4377_v47 = vrot.slane %v4369_v44, %v4368_v4  ;;  %v4370_v23 = vcombine.high %v4369_v44, %v4369_v44 }
 0x75c   :  { %v4392_v20 = vrot.slane %v4377_v47, %v4391_v3  ;;  %v4388_v48 = vrot.slane %v4377_v47, %v4387_v55  ;;  %v4384_v43 = vrot.slane %v4370_v23, %v4368_v4 }
 0x75e   :  { %4459 = vmatprep.mubr.f32.mxu0 %v4392_v20  ;;  %v4472_v35 = vrot.slane %v4384_v43, %v4391_v3  ;;  %v4468_v30 = vrot.slane %v4384_v43, %v4387_v55 }
 0x75f   :  { %4460 = vmatmul.mubr.f32.vlgmr.msra.gmra.mrb[0].mxu0 %v4388_v48 }
 0x760   :  { %4539 = vmatprep.mubr.f32.mxu1 %v4472_v35  ;;  %4830 = vmatpush3.bf16.msra.mxu0 %v4829_v7 }
 0x761   :  { %4540 = vmatmul.mubr.f32.vlgmr.msra.gmra.mrb[0].mxu1 %v4468_v30  ;;  %4831 = vmatprep.subr.bf16.mxu0 %v5021_v15 }
 0x762   :  { %4793 = vmatprep.mubr.msk.f32.mxu0 %vm5023_vm1, %v5024_v37 }
 0x764   :  { %4833 = vmatpush3.bf16.msra.mxu0 %v4832_v27 }
 0x765   :  { %4834 = vmatprep.subr.bf16.mxu0 %v5021_v15 }
 0x768   :  { %4836 = vmatpush3.bf16.msra.mxu0 %v4835_v34 }
 0x769   :  { %4837 = vmatprep.subr.bf16.mxu0 %v5021_v15 }
 0x76c   :  { %4839 = vmatpush3.bf16.msra.mxu0 %v4838_v59 }
 0x832   :  { %v4461_v62 = vpop.f32.mrb[0].mxu0 }
 0x833   :  { %v4463_v11 = vpop.f32.mrb[1].mxu0  ;;  %v4545_v25 = vmul.f32 0.00390625, %v4461_v62 }
 0x834   :  { %v4541_v63 = vpop.f32.mrb[0].mxu1 }
 0x835   :  { %v4546_v5 = vmul.f32 0.00390625, %v4541_v63  ;;  %v4543_v22 = vpop.f32.mrb[1].mxu1 }
 0x837   :  { %v4564_v15 = vrot.slane %v4546_v5, 7 }
 0x839   :  { %v4565_v9 = vsel %vm4250_vm10, %v4564_v15, %v4545_v25 }
 0x83a   :  { %4794 = vmatmul.mubr.msk.f32.vlgmr.msra.gmra.mrb[2].mxu0 %vm4345_vm13, %v4565_v9 }
 0x90d   :  { %v4634_v42 = vpop.f32.mrb[2].mxu0 }
 0x90e   :  { %v4635_v0 = vadd.f32 %v4765_v8, %v4634_v42  ;;  %v4795_v45 = vpop.f32.mrb[3].mxu0 }
 0x910   :  { %v4767_v21 = vmul.f32 -1.442695, %v4635_v0 }
 0x912   :  { %4889 = vpow2.f32 %v4767_v21 }
 0x91c   :  { %v4890_v2 = vpop.eup %4889 }
 0x91d   :  { %v4641_v31 = vadd.f32 1.0, %v4890_v2 }
 0x91f   :  { %4891 = vrcp.f32 %v4641_v31 }
 0x929   :  { %v4892_v41 = vpop.eup %4891 }
 0x92a   :  { %4645 = vst.msk [vmem:[#allocation9] sm:$0x3] %vm4644_vm2, %v4892_v41 }
 0x92b   :  { %4982 = shalt.err (!%p4979_p8)
}
 0x92c   :  { %s4983_s20 = scalar_lea.hbm %s8728_s5, 32 }
 0x92d   :  { %p4984_p9 = scmp.ne.s32.totalorder %s8728_s5, %s4983_s20  ;;  %p4987_p10 = scmp.lt.u32.totalorder %s4983_s20, %s8728_s5 }
 0x92f   :  { %p4989_p11 = pnand %p4987_p10, %p4984_p9 }
 0x931   :  { %4992 = shalt.err (!%p4989_p11)
}
 0x932   :  { %4655 = dma.vmem_to_hbm [thread:$0]  %s4653_s24, 32, %s8728_s5, [#allocation4]  }
 0x933   :  { %4999 = dma.done.wait [#allocation4], 32  }
 0x934   :  { %5000 = vsyncadd [#allocation4], 4294967264 }
 0x935   :  { %4659 = vsyncpa [#allocation3], 1 }
 0x936   :  { %4660 = vsyncpa [#allocation4], 1 }
 0x937   :  { %4661 = vsyncpa [#allocation5], 1 }
 0x938   :  { %4662 = vsyncpa [#allocation8], 1 }

</bundles_post_ra>
